<compile_context>
chip_gen: v7x
topology: tpu7x:2x2x1
jax: 0.10.0
libtpu: 0.0.40
codegen_flags: <defaults>
</compile_context>

<pallas_src>
import functools

import jax
import jax.numpy as jnp
import numpy as np
from jax.experimental import pallas as pl
from jax.experimental.pallas import tpu as pltpu


# ---------------------------------------------------------------------------
# Geometry (specialised to 16x16 inputs / depth=8, i.e. one block per stage).
#   stage          spatial   layout (pitch P, stretch Q)
#   conv1 output   14x14     (16, 1)
#   block1         14x14     (16, 1)
#   block2 (s=2)    7x7      (32, 2)
#   block3 (s=2)    4x4      (64, 4)
# Every conv is 9 shifted contiguous (RMAX, Cin) slices of a margin-padded
# VMEM slab, each hit with one MXU matmul and accumulated in registers.
# ---------------------------------------------------------------------------
S = 16                    # flat row pitch of a full-resolution image row
RMAX = 14 * S             # uniform accumulator / slab extent (224 rows)
XROWS = S * S + 8         # padded flattened-input rows (>= 257)
B8, B16, B32 = 32, 48, 80             # top zero margins (>= max |tap offset|)
ROWS8, ROWS16, ROWS32 = 288, 320, 384  # scratch slab heights (incl. margins)


def _valid_mask(C, pitch, q, width):
    """(RMAX, C) bool mask of flat rows holding real pixels of a stage."""
    r = jax.lax.broadcasted_iota(jnp.int32, (RMAX, C), 0)
    pos = r % pitch
    ok = pos < width * q
    if q > 1:
        ok = ok & (pos % q == 0)
    return ok


def _conv9(load, w_ref, pitch, q, relu_in=False):
    """3x3 conv = 9 shifted-slice matmuls; returns (RMAX, Cout) f32 acc."""
    acc = None
    for kh in range(3):
        for kw in range(3):
            off = (kh - 1) * pitch + (kw - 1) * q
            lhs = load(off)
            if relu_in:
                lhs = jnp.maximum(lhs, 0.0)
            d = jnp.dot(lhs, w_ref[3 * kh + kw],
                        preferred_element_type=jnp.float32)
            acc = d if acc is None else acc + d
    return acc


def _resnet_kernel(x_ref, w1_ref, w2a_ref, w3a_ref, w2b_ref, w3b_ref,
                   wsb_ref, w2c_ref, w3c_ref, wsc_ref,
                   hid_ref, feat_ref, p8, p16, p32):
    # Zero margins / gaps once; later steps fully overwrite the slab rows with
    # already-masked values, so the margins stay zero ("arbitrary" grid axis).
    @pl.when(pl.program_id(0) == 0)
    def _init():
        p8[...] = jnp.zeros(p8.shape, p8.dtype)
        p16[...] = jnp.zeros(p16.shape, p16.dtype)
        p32[...] = jnp.zeros(p32.shape, p32.dtype)

    c1 = w1_ref.shape[-1]
    c2 = w3b_ref.shape[-1]
    c3 = w3c_ref.shape[-1]
    m1 = _valid_mask(c1, S, 1, S - 2)       # 14x14 stage, layout (16, 1)
    m2 = _valid_mask(c2, 2 * S, 2, 7)       # 7x7  stage, layout (32, 2)
    m3 = _valid_mask(c3, 4 * S, 4, 4)       # 4x4  stage, layout (64, 4)

    # conv1: 3x3, stride 1, pad 0.  bn1 is identity (bn=False).
    # TODO(synk): ACT is undefined in the reference source; assumed ReLU.
    acc = _conv9(lambda off: x_ref[0, 17 + off: 17 + off + RMAX, :],
                 w1_ref, S, 1)
    hid = jnp.where(m1, acc, 0.0)
    hid_ref[0] = hid                                    # returned tensor #1

    # --- block 1: identity shortcut (relu -> conv2 -> relu -> conv3 -> +x) --
    p8[B8:B8 + RMAX, :] = jnp.maximum(hid, 0.0)
    acc = _conv9(lambda off: p8[B8 + off: B8 + off + RMAX, :], w2a_ref, S, 1)
    p8[B8:B8 + RMAX, :] = jnp.where(m1, jnp.maximum(acc, 0.0), 0.0)
    acc = _conv9(lambda off: p8[B8 + off: B8 + off + RMAX, :], w3a_ref, S, 1)
    out1 = jnp.where(m1, acc + hid_ref[0], 0.0)
    p8[B8:B8 + RMAX, :] = out1          # pre-activation block-2 input

    # --- block 2: stride 2, projection shortcut (layout (16,1) -> (32,2)) ---
    acc = _conv9(lambda off: p8[B8 + off: B8 + off + RMAX, :],
                 w2b_ref, S, 1, relu_in=True)
    p16[B16:B16 + RMAX, :] = jnp.where(m2, jnp.maximum(acc, 0.0), 0.0)
    acc = _conv9(lambda off: p16[B16 + off: B16 + off + RMAX, :],
                 w3b_ref, 2 * S, 2)
    short = jnp.dot(p8[B8:B8 + RMAX, :], wsb_ref[...],
                    preferred_element_type=jnp.float32)
    p16[B16:B16 + RMAX, :] = jnp.where(m2, acc + short, 0.0)

    # --- block 3: stride 2, projection shortcut (layout (32,2) -> (64,4)) ---
    acc = _conv9(lambda off: p16[B16 + off: B16 + off + RMAX, :],
                 w2c_ref, 2 * S, 2, relu_in=True)
    p32[B32:B32 + RMAX, :] = jnp.where(m3, jnp.maximum(acc, 0.0), 0.0)
    acc = _conv9(lambda off: p32[B32 + off: B32 + off + RMAX, :],
                 w3c_ref, 4 * S, 4)
    short = jnp.dot(p16[B16:B16 + RMAX, :], wsc_ref[...],
                    preferred_element_type=jnp.float32)
    feat_ref[0] = acc + short                           # returned tensor #2


# ----------------------------- pallas_call glue -----------------------------

def _fused_forward(x_slab, pk):
    n, _, cin = x_slab.shape
    c1 = pk["w1"].shape[-1]
    c2 = pk["w3b"].shape[-1]
    c3 = pk["w3c"].shape[-1]

    def wspec(w):
        return pl.BlockSpec(w.shape, lambda i, nd=w.ndim: (0,) * nd)

    weights = [pk[k] for k in ("w1", "w2a", "w3a", "w2b", "w3b", "wsb",
                               "w2c", "w3c", "wsc")]
    in_specs = ([pl.BlockSpec((1, XROWS, cin), lambda i: (i, 0, 0))]
                + [wspec(w) for w in weights])
    out_specs = (pl.BlockSpec((1, RMAX, c1), lambda i: (i, 0, 0)),
                 pl.BlockSpec((1, RMAX, c3), lambda i: (i, 0, 0)))
    out_shape = (jax.ShapeDtypeStruct((n, RMAX, c1), jnp.float32),
                 jax.ShapeDtypeStruct((n, RMAX, c3), jnp.float32))
    scratch = [pltpu.VMEM((ROWS8, c1), jnp.float32),
               pltpu.VMEM((ROWS16, c2), jnp.float32),
               pltpu.VMEM((ROWS32, c3), jnp.float32)]

    flops = 2 * n * RMAX * (9 * (cin * c1 + 2 * c1 * c1 + c1 * c2 + c2 * c2
                                 + c2 * c3 + c3 * c3) + c1 * c2 + c2 * c3)
    bytes_accessed = 4 * (x_slab.size + sum(int(w.size) for w in weights)
                          + n * RMAX * (c1 + c3))

    return pl.pallas_call(
        _resnet_kernel,
        out_shape=out_shape,
        grid=(n,),
        in_specs=in_specs,
        out_specs=out_specs,
        scratch_shapes=scratch,
        compiler_params=pltpu.CompilerParams(
            # "arbitrary": scratch margins are zeroed only on step 0 and must
            # persist across (serial) grid steps.
            dimension_semantics=("arbitrary",),
            vmem_limit_bytes=32 * 1024 * 1024),
        cost_estimate=pl.CostEstimate(flops=int(flops), transcendentals=0,
                                      bytes_accessed=int(bytes_accessed)),
    )(x_slab, *weights)


def resnet_forward(x_nchw, packed):
    n = x_nchw.shape[0]
    if x_nchw.shape[1] == 1:
        x_nchw = jnp.ones((n, 3, x_nchw.shape[2], x_nchw.shape[3]),
                          x_nchw.dtype) * x_nchw
    _, cin, h, w = x_nchw.shape
    assert h == S and w == S, "fused kernel is specialised to 16x16 inputs"
    # inp_noise == 0 in this config -> noise branch never taken.
    x = jnp.transpose(x_nchw, (0, 2, 3, 1)).reshape(n, h * w, cin)
    x = jnp.pad(x, ((0, 0), (0, XROWS - h * w), (0, 0)))

    hid_slab, feat_slab = _fused_forward(x, packed)

    c1 = hid_slab.shape[-1]
    c3 = feat_slab.shape[-1]
    hid = hid_slab.reshape(n, RMAX // S, S, c1)[:, :, :S - 2, :]
    hid = jnp.transpose(hid, (0, 3, 1, 2))                    # (N, 8, 14, 14)
    feat = feat_slab.reshape(n, RMAX // S, S, c3)[:, ::4, ::4, :]
    feat = jnp.transpose(feat, (0, 3, 1, 2))                  # (N, 32, 4, 4)
    return hid, feat


# ------------------------------ Parameters ----------------------------------

def init_resnet_params(key, depth=8, nb_filters=8, num_classes=10,
                       inp_channels=3, k=1, kernel_size=3):
    assert (depth - 2) % 6 == 0, "resnet depth should be 6n+2"
    n = (depth - 2) // 6
    nfilters = [nb_filters, nb_filters * k, 2 * nb_filters * k,
                4 * nb_filters * k, num_classes]
    keys = jax.random.split(key, 64)
    kidx = [0]

    def nxt():
        kk = keys[kidx[0]]
        kidx[0] += 1
        return kk

    def conv_w(cout, cin, kh, kw):
        fan_in = cin * kh * kw
        return (jax.random.normal(nxt(), (cout, cin, kh, kw), jnp.float32)
                * (1.0 / np.sqrt(fan_in)))

    params = {"conv1": conv_w(nfilters[0], inp_channels,
                              kernel_size, kernel_size)}
    blocks = []
    prev = nfilters[0]
    for stage in range(3):
        cur = nfilters[stage + 1]
        for i in range(n):
            stride = 1 if i > 0 or stage == 0 else 2
            blk = {"stride": stride,
                   "conv2": conv_w(cur, prev, 3, 3),
                   "conv3": conv_w(cur, cur, 3, 3)}
            if stride > 1 or prev != cur:
                blk["shortcut"] = conv_w(cur, prev, 1, 1)
            blocks.append(blk)
            prev = cur
    params["blocks"] = blocks
    return params


def _pack3x3(w):
    # (Cout, Cin, 3, 3) -> (9, Cin, Cout), tap index t = 3*kh + kw
    cout, cin = w.shape[0], w.shape[1]
    return jnp.transpose(w, (2, 3, 1, 0)).reshape(9, cin, cout)


def _pack1x1(w):
    # (Cout, Cin, 1, 1) -> (Cin, Cout)
    return jnp.transpose(w[:, :, 0, 0], (1, 0))


def pack_params(params):
    blocks = params["blocks"]
    assert len(blocks) == 3 and "shortcut" not in blocks[0]
    assert "shortcut" in blocks[1] and "shortcut" in blocks[2]
    return dict(
        w1=_pack3x3(params["conv1"]),
        w2a=_pack3x3(blocks[0]["conv2"]), w3a=_pack3x3(blocks[0]["conv3"]),
        w2b=_pack3x3(blocks[1]["conv2"]), w3b=_pack3x3(blocks[1]["conv3"]),
        wsb=_pack1x1(blocks[1]["shortcut"]),
        w2c=_pack3x3(blocks[2]["conv2"]), w3c=_pack3x3(blocks[2]["conv3"]),
        wsc=_pack1x1(blocks[2]["shortcut"]),
    )


# ------------------------------ Reference ------------------------------------

def _ref_conv(x, w, stride, padding):
    return jax.lax.conv_general_dilated(
        x, w, window_strides=(stride, stride),
        padding=[(padding, padding), (padding, padding)],
        dimension_numbers=("NCHW", "OIHW", "NCHW"))


def ref_forward(x, params):
    hid = _ref_conv(x, params["conv1"], 1, 0)
    out = hid
    for p in params["blocks"]:
        o = jnp.maximum(out, 0.0)
        o = jnp.maximum(_ref_conv(o, p["conv2"], p["stride"], 1), 0.0)
        o = _ref_conv(o, p["conv3"], 1, 1)
        short = (_ref_conv(out, p["shortcut"], p["stride"], 0)
                 if "shortcut" in p else out)
        out = o + short
    return hid, out


# -------------------------------- Main ---------------------------------------

if __name__ == "__main__":
    key = jax.random.PRNGKey(0)
    kx, kp = jax.random.split(key)
    # depth=8 (n=1), nb_filters=8 -> nfilters [8, 8, 16, 32, 10]
    x = jax.random.normal(kx, (2, 3, 16, 16), jnp.float32)
    params = init_resnet_params(kp, depth=8, nb_filters=8, num_classes=10,
                                inp_channels=3, k=1, kernel_size=3)
    packed = pack_params(params)                      # weights packed ONCE

    fwd = jax.jit(functools.partial(resnet_forward, packed=packed))
    hid, feat = fwd(x)
    hid = jax.block_until_ready(hid)
    feat = jax.block_until_ready(feat)

    assert hid.shape == (2, 8, 14, 14), hid.shape
    assert feat.shape == (2, 32, 4, 4), feat.shape

    hid_r, feat_r = ref_forward(x, params)
    np.testing.assert_allclose(np.array(hid), np.array(hid_r),
                               rtol=2e-3, atol=2e-3)
    np.testing.assert_allclose(np.array(feat), np.array(feat_r),
                               rtol=2e-3, atol=2e-3)

    print("KERNEL_OK")
</pallas_src>

<mosaic_0001>
module attributes {stable_mosaic.version = 11 : i64} {
  func.func @_resnet_kernel(%arg0: i32, %arg1: memref<1x264x3xf32, #tpu.memory_space<vmem>>, %arg2: memref<9x3x8xf32, #tpu.memory_space<vmem>>, %arg3: memref<9x8x8xf32, #tpu.memory_space<vmem>>, %arg4: memref<9x8x8xf32, #tpu.memory_space<vmem>>, %arg5: memref<9x8x16xf32, #tpu.memory_space<vmem>>, %arg6: memref<9x16x16xf32, #tpu.memory_space<vmem>>, %arg7: memref<8x16xf32, #tpu.memory_space<vmem>>, %arg8: memref<9x16x32xf32, #tpu.memory_space<vmem>>, %arg9: memref<9x32x32xf32, #tpu.memory_space<vmem>>, %arg10: memref<16x32xf32, #tpu.memory_space<vmem>>, %arg11: memref<1x224x8xf32, #tpu.memory_space<vmem>>, %arg12: memref<1x224x32xf32, #tpu.memory_space<vmem>>, %arg13: memref<288x8xf32, #tpu.memory_space<vmem>>, %arg14: memref<320x16xf32, #tpu.memory_space<vmem>>, %arg15: memref<384x32xf32, #tpu.memory_space<vmem>>) attributes {dimension_semantics = [#tpu.dimension_semantics<arbitrary>], iteration_bounds = array<i64: 2>, scalar_prefetch = 0 : i64, scratch_operands = 3 : i64, tpu.core_type = #tpu.core_type<tc>, window_params = [{transform_indices = @transform_0, window_bounds = array<i64: 1, 264, 3>}, {pipeline_mode = #tpu.pipeline_mode<synchronous>, transform_indices = @transform_1, window_bounds = array<i64: 9, 3, 8>}, {pipeline_mode = #tpu.pipeline_mode<synchronous>, transform_indices = @transform_2, window_bounds = array<i64: 9, 8, 8>}, {pipeline_mode = #tpu.pipeline_mode<synchronous>, transform_indices = @transform_3, window_bounds = array<i64: 9, 8, 8>}, {pipeline_mode = #tpu.pipeline_mode<synchronous>, transform_indices = @transform_4, window_bounds = array<i64: 9, 8, 16>}, {pipeline_mode = #tpu.pipeline_mode<synchronous>, transform_indices = @transform_5, window_bounds = array<i64: 9, 16, 16>}, {pipeline_mode = #tpu.pipeline_mode<synchronous>, transform_indices = @transform_6, window_bounds = array<i64: 8, 16>}, {pipeline_mode = #tpu.pipeline_mode<synchronous>, transform_indices = @transform_7, window_bounds = array<i64: 9, 16, 32>}, {pipeline_mode = #tpu.pipeline_mode<synchronous>, transform_indices = @transform_8, window_bounds = array<i64: 9, 32, 32>}, {pipeline_mode = #tpu.pipeline_mode<synchronous>, transform_indices = @transform_9, window_bounds = array<i64: 16, 32>}, {transform_indices = @transform_10, window_bounds = array<i64: 1, 224, 8>}, {transform_indices = @transform_11, window_bounds = array<i64: 1, 224, 32>}]} {
    %c0_i32 = arith.constant 0 : i32
    %0 = arith.cmpi eq, %arg0, %c0_i32 : i32
    %1 = arith.extui %0 : i1 to i32
    %c0_i32_0 = arith.constant 0 : i32
    %2 = arith.cmpi ne, %1, %c0_i32_0 : i32
    scf.if %2 {
      %cst_441 = arith.constant 0.000000e+00 : f32
      %494 = vector.broadcast %cst_441 : f32 to vector<288x8xf32>
      %c0_442 = arith.constant 0 : index
      %c0_443 = arith.constant 0 : index
      %495 = vector.load %arg13[%c0_442, %c0_443] : memref<288x8xf32, #tpu.memory_space<vmem>>, vector<288x8xf32>
      tpu.vector_store %arg13[%c0_442, %c0_443], %494 {strides = array<i32>} : memref<288x8xf32, #tpu.memory_space<vmem>>, vector<288x8xf32>,
      %cst_444 = arith.constant 0.000000e+00 : f32
      %496 = vector.broadcast %cst_444 : f32 to vector<320x16xf32>
      %c0_445 = arith.constant 0 : index
      %c0_446 = arith.constant 0 : index
      %497 = vector.load %arg14[%c0_445, %c0_446] : memref<320x16xf32, #tpu.memory_space<vmem>>, vector<320x16xf32>
      tpu.vector_store %arg14[%c0_445, %c0_446], %496 {strides = array<i32>} : memref<320x16xf32, #tpu.memory_space<vmem>>, vector<320x16xf32>,
      %cst_447 = arith.constant 0.000000e+00 : f32
      %498 = vector.broadcast %cst_447 : f32 to vector<384x32xf32>
      %c0_448 = arith.constant 0 : index
      %c0_449 = arith.constant 0 : index
      %499 = vector.load %arg15[%c0_448, %c0_449] : memref<384x32xf32, #tpu.memory_space<vmem>>, vector<384x32xf32>
      tpu.vector_store %arg15[%c0_448, %c0_449], %498 {strides = array<i32>} : memref<384x32xf32, #tpu.memory_space<vmem>>, vector<384x32xf32>,
    } else {
    }
    %3 = tpu.iota {dimensions = array<i32: 0>} : vector<224x8xi32>
    %c16_i32 = arith.constant 16 : i32
    %c0_i32_1 = arith.constant 0 : i32
    %4 = arith.cmpi eq, %c16_i32, %c0_i32_1 : i32
    %c1_i32 = arith.constant 1 : i32
    %5 = arith.select %4, %c1_i32, %c16_i32 : i32
    %6 = vector.broadcast %5 : i32 to vector<224x8xi32>
    %7 = arith.remsi %3, %6 : vector<224x8xi32>
    %c0_i32_2 = arith.constant 0 : i32
    %8 = vector.broadcast %c0_i32_2 : i32 to vector<224x8xi32>
    %9 = arith.cmpi ne, %7, %8 : vector<224x8xi32>
    %c0_i32_3 = arith.constant 0 : i32
    %10 = vector.broadcast %c0_i32_3 : i32 to vector<224x8xi32>
    %11 = arith.cmpi slt, %7, %10 : vector<224x8xi32>
    %c0_i32_4 = arith.constant 0 : i32
    %12 = arith.cmpi slt, %5, %c0_i32_4 : i32
    %13 = vector.broadcast %12 : i1 to vector<224x8xi1>
    %14 = vector.broadcast %13 : vector<224x8xi1> to vector<224x8xi1>
    %15 = arith.xori %11, %14 : vector<224x8xi1>
    %16 = arith.andi %15, %9 : vector<224x8xi1>
    %17 = vector.broadcast %5 : i32 to vector<224x8xi32>
    %18 = arith.addi %7, %17 : vector<224x8xi32>
    %19 = arith.select %16, %18, %7 : vector<224x8xi1>, vector<224x8xi32>
    %c14_i32 = arith.constant 14 : i32
    %20 = vector.broadcast %c14_i32 : i32 to vector<224x8xi32>
    %21 = arith.cmpi slt, %19, %20 : vector<224x8xi32>
    %22 = tpu.iota {dimensions = array<i32: 0>} : vector<224x16xi32>
    %c32_i32 = arith.constant 32 : i32
    %c0_i32_5 = arith.constant 0 : i32
    %23 = arith.cmpi eq, %c32_i32, %c0_i32_5 : i32
    %c1_i32_6 = arith.constant 1 : i32
    %24 = arith.select %23, %c1_i32_6, %c32_i32 : i32
    %25 = vector.broadcast %24 : i32 to vector<224x16xi32>
    %26 = arith.remsi %22, %25 : vector<224x16xi32>
    %c0_i32_7 = arith.constant 0 : i32
    %27 = vector.broadcast %c0_i32_7 : i32 to vector<224x16xi32>
    %28 = arith.cmpi ne, %26, %27 : vector<224x16xi32>
    %c0_i32_8 = arith.constant 0 : i32
    %29 = vector.broadcast %c0_i32_8 : i32 to vector<224x16xi32>
    %30 = arith.cmpi slt, %26, %29 : vector<224x16xi32>
    %c0_i32_9 = arith.constant 0 : i32
    %31 = arith.cmpi slt, %24, %c0_i32_9 : i32
    %32 = vector.broadcast %31 : i1 to vector<224x16xi1>
    %33 = vector.broadcast %32 : vector<224x16xi1> to vector<224x16xi1>
    %34 = arith.xori %30, %33 : vector<224x16xi1>
    %35 = arith.andi %34, %28 : vector<224x16xi1>
    %36 = vector.broadcast %24 : i32 to vector<224x16xi32>
    %37 = arith.addi %26, %36 : vector<224x16xi32>
    %38 = arith.select %35, %37, %26 : vector<224x16xi1>, vector<224x16xi32>
    %c14_i32_10 = arith.constant 14 : i32
    %39 = vector.broadcast %c14_i32_10 : i32 to vector<224x16xi32>
    %40 = arith.cmpi slt, %38, %39 : vector<224x16xi32>
    %c2_i32 = arith.constant 2 : i32
    %c0_i32_11 = arith.constant 0 : i32
    %41 = arith.cmpi eq, %c2_i32, %c0_i32_11 : i32
    %c1_i32_12 = arith.constant 1 : i32
    %42 = arith.select %41, %c1_i32_12, %c2_i32 : i32
    %43 = vector.broadcast %42 : i32 to vector<224x16xi32>
    %44 = arith.remsi %38, %43 : vector<224x16xi32>
    %c0_i32_13 = arith.constant 0 : i32
    %45 = vector.broadcast %c0_i32_13 : i32 to vector<224x16xi32>
    %46 = arith.cmpi ne, %44, %45 : vector<224x16xi32>
    %c0_i32_14 = arith.constant 0 : i32
    %47 = vector.broadcast %c0_i32_14 : i32 to vector<224x16xi32>
    %48 = arith.cmpi slt, %44, %47 : vector<224x16xi32>
    %c0_i32_15 = arith.constant 0 : i32
    %49 = arith.cmpi slt, %42, %c0_i32_15 : i32
    %50 = vector.broadcast %49 : i1 to vector<224x16xi1>
    %51 = vector.broadcast %50 : vector<224x16xi1> to vector<224x16xi1>
    %52 = arith.xori %48, %51 : vector<224x16xi1>
    %53 = arith.andi %52, %46 : vector<224x16xi1>
    %54 = vector.broadcast %42 : i32 to vector<224x16xi32>
    %55 = arith.addi %44, %54 : vector<224x16xi32>
    %56 = arith.select %53, %55, %44 : vector<224x16xi1>, vector<224x16xi32>
    %c0_i32_16 = arith.constant 0 : i32
    %57 = vector.broadcast %c0_i32_16 : i32 to vector<224x16xi32>
    %58 = arith.cmpi eq, %56, %57 : vector<224x16xi32>
    %59 = arith.andi %40, %58 : vector<224x16xi1>
    %60 = tpu.iota {dimensions = array<i32: 0>} : vector<224x32xi32>
    %c64_i32 = arith.constant 64 : i32
    %c0_i32_17 = arith.constant 0 : i32
    %61 = arith.cmpi eq, %c64_i32, %c0_i32_17 : i32
    %c1_i32_18 = arith.constant 1 : i32
    %62 = arith.select %61, %c1_i32_18, %c64_i32 : i32
    %63 = vector.broadcast %62 : i32 to vector<224x32xi32>
    %64 = arith.remsi %60, %63 : vector<224x32xi32>
    %c0_i32_19 = arith.constant 0 : i32
    %65 = vector.broadcast %c0_i32_19 : i32 to vector<224x32xi32>
    %66 = arith.cmpi ne, %64, %65 : vector<224x32xi32>
    %c0_i32_20 = arith.constant 0 : i32
    %67 = vector.broadcast %c0_i32_20 : i32 to vector<224x32xi32>
    %68 = arith.cmpi slt, %64, %67 : vector<224x32xi32>
    %c0_i32_21 = arith.constant 0 : i32
    %69 = arith.cmpi slt, %62, %c0_i32_21 : i32
    %70 = vector.broadcast %69 : i1 to vector<224x32xi1>
    %71 = vector.broadcast %70 : vector<224x32xi1> to vector<224x32xi1>
    %72 = arith.xori %68, %71 : vector<224x32xi1>
    %73 = arith.andi %72, %66 : vector<224x32xi1>
    %74 = vector.broadcast %62 : i32 to vector<224x32xi32>
    %75 = arith.addi %64, %74 : vector<224x32xi32>
    %76 = arith.select %73, %75, %64 : vector<224x32xi1>, vector<224x32xi32>
    %c16_i32_22 = arith.constant 16 : i32
    %77 = vector.broadcast %c16_i32_22 : i32 to vector<224x32xi32>
    %78 = arith.cmpi slt, %76, %77 : vector<224x32xi32>
    %c4_i32 = arith.constant 4 : i32
    %c0_i32_23 = arith.constant 0 : i32
    %79 = arith.cmpi eq, %c4_i32, %c0_i32_23 : i32
    %c1_i32_24 = arith.constant 1 : i32
    %80 = arith.select %79, %c1_i32_24, %c4_i32 : i32
    %81 = vector.broadcast %80 : i32 to vector<224x32xi32>
    %82 = arith.remsi %76, %81 : vector<224x32xi32>
    %c0_i32_25 = arith.constant 0 : i32
    %83 = vector.broadcast %c0_i32_25 : i32 to vector<224x32xi32>
    %84 = arith.cmpi ne, %82, %83 : vector<224x32xi32>
    %c0_i32_26 = arith.constant 0 : i32
    %85 = vector.broadcast %c0_i32_26 : i32 to vector<224x32xi32>
    %86 = arith.cmpi slt, %82, %85 : vector<224x32xi32>
    %c0_i32_27 = arith.constant 0 : i32
    %87 = arith.cmpi slt, %80, %c0_i32_27 : i32
    %88 = vector.broadcast %87 : i1 to vector<224x32xi1>
    %89 = vector.broadcast %88 : vector<224x32xi1> to vector<224x32xi1>
    %90 = arith.xori %86, %89 : vector<224x32xi1>
    %91 = arith.andi %90, %84 : vector<224x32xi1>
    %92 = vector.broadcast %80 : i32 to vector<224x32xi32>
    %93 = arith.addi %82, %92 : vector<224x32xi32>
    %94 = arith.select %91, %93, %82 : vector<224x32xi1>, vector<224x32xi32>
    %c0_i32_28 = arith.constant 0 : i32
    %95 = vector.broadcast %c0_i32_28 : i32 to vector<224x32xi32>
    %96 = arith.cmpi eq, %94, %95 : vector<224x32xi32>
    %97 = arith.andi %78, %96 : vector<224x32xi1>
    %c0 = arith.constant 0 : index
    %c0_29 = arith.constant 0 : index
    %c0_30 = arith.constant 0 : index
    %98 = vector.load %arg1[%c0, %c0_29, %c0_30] : memref<1x264x3xf32, #tpu.memory_space<vmem>>, vector<1x224x3xf32>
    %99 = vector.shape_cast %98 : vector<1x224x3xf32> to vector<224x3xf32>
    %c0_31 = arith.constant 0 : index
    %c0_32 = arith.constant 0 : index
    %c0_33 = arith.constant 0 : index
    %100 = vector.load %arg2[%c0_31, %c0_32, %c0_33] : memref<9x3x8xf32, #tpu.memory_space<vmem>>, vector<1x3x8xf32>
    %101 = vector.shape_cast %100 : vector<1x3x8xf32> to vector<3x8xf32>
    %cst = arith.constant dense<0.000000e+00> : vector<224x8xf32>
    %102 = tpu.matmul %99, %101, %cst {dimension_numbers = #tpu.dot_dimension_numbers<[1], [0], [0], [1], [0, 0, 1, 1], [], []>} : vector<224x3xf32>, vector<3x8xf32>, vector<224x8xf32> -> vector<224x8xf32>
    %c0_34 = arith.constant 0 : index
    %c1 = arith.constant 1 : index
    %c0_35 = arith.constant 0 : index
    %103 = vector.load %arg1[%c0_34, %c1, %c0_35] : memref<1x264x3xf32, #tpu.memory_space<vmem>>, vector<1x224x3xf32>
    %104 = vector.shape_cast %103 : vector<1x224x3xf32> to vector<224x3xf32>
    %c1_36 = arith.constant 1 : index
    %c0_37 = arith.constant 0 : index
    %c0_38 = arith.constant 0 : index
    %105 = vector.load %arg2[%c1_36, %c0_37, %c0_38] : memref<9x3x8xf32, #tpu.memory_space<vmem>>, vector<1x3x8xf32>
    %106 = vector.shape_cast %105 : vector<1x3x8xf32> to vector<3x8xf32>
    %cst_39 = arith.constant dense<0.000000e+00> : vector<224x8xf32>
    %107 = tpu.matmul %104, %106, %cst_39 {dimension_numbers = #tpu.dot_dimension_numbers<[1], [0], [0], [1], [0, 0, 1, 1], [], []>} : vector<224x3xf32>, vector<3x8xf32>, vector<224x8xf32> -> vector<224x8xf32>
    %108 = arith.addf %102, %107 : vector<224x8xf32>
    %c0_40 = arith.constant 0 : index
    %c2 = arith.constant 2 : index
    %c0_41 = arith.constant 0 : index
    %109 = vector.load %arg1[%c0_40, %c2, %c0_41] : memref<1x264x3xf32, #tpu.memory_space<vmem>>, vector<1x224x3xf32>
    %110 = vector.shape_cast %109 : vector<1x224x3xf32> to vector<224x3xf32>
    %c2_42 = arith.constant 2 : index
    %c0_43 = arith.constant 0 : index
    %c0_44 = arith.constant 0 : index
    %111 = vector.load %arg2[%c2_42, %c0_43, %c0_44] : memref<9x3x8xf32, #tpu.memory_space<vmem>>, vector<1x3x8xf32>
    %112 = vector.shape_cast %111 : vector<1x3x8xf32> to vector<3x8xf32>
    %cst_45 = arith.constant dense<0.000000e+00> : vector<224x8xf32>
    %113 = tpu.matmul %110, %112, %cst_45 {dimension_numbers = #tpu.dot_dimension_numbers<[1], [0], [0], [1], [0, 0, 1, 1], [], []>} : vector<224x3xf32>, vector<3x8xf32>, vector<224x8xf32> -> vector<224x8xf32>
    %114 = arith.addf %108, %113 : vector<224x8xf32>
    %c0_46 = arith.constant 0 : index
    %c16 = arith.constant 16 : index
    %c0_47 = arith.constant 0 : index
    %115 = vector.load %arg1[%c0_46, %c16, %c0_47] : memref<1x264x3xf32, #tpu.memory_space<vmem>>, vector<1x224x3xf32>
    %116 = vector.shape_cast %115 : vector<1x224x3xf32> to vector<224x3xf32>
    %c3 = arith.constant 3 : index
    %c0_48 = arith.constant 0 : index
    %c0_49 = arith.constant 0 : index
    %117 = vector.load %arg2[%c3, %c0_48, %c0_49] : memref<9x3x8xf32, #tpu.memory_space<vmem>>, vector<1x3x8xf32>
    %118 = vector.shape_cast %117 : vector<1x3x8xf32> to vector<3x8xf32>
    %cst_50 = arith.constant dense<0.000000e+00> : vector<224x8xf32>
    %119 = tpu.matmul %116, %118, %cst_50 {dimension_numbers = #tpu.dot_dimension_numbers<[1], [0], [0], [1], [0, 0, 1, 1], [], []>} : vector<224x3xf32>, vector<3x8xf32>, vector<224x8xf32> -> vector<224x8xf32>
    %120 = arith.addf %114, %119 : vector<224x8xf32>
    %c0_51 = arith.constant 0 : index
    %c17 = arith.constant 17 : index
    %c0_52 = arith.constant 0 : index
    %121 = vector.load %arg1[%c0_51, %c17, %c0_52] : memref<1x264x3xf32, #tpu.memory_space<vmem>>, vector<1x224x3xf32>
    %122 = vector.shape_cast %121 : vector<1x224x3xf32> to vector<224x3xf32>
    %c4 = arith.constant 4 : index
    %c0_53 = arith.constant 0 : index
    %c0_54 = arith.constant 0 : index
    %123 = vector.load %arg2[%c4, %c0_53, %c0_54] : memref<9x3x8xf32, #tpu.memory_space<vmem>>, vector<1x3x8xf32>
    %124 = vector.shape_cast %123 : vector<1x3x8xf32> to vector<3x8xf32>
    %cst_55 = arith.constant dense<0.000000e+00> : vector<224x8xf32>
    %125 = tpu.matmul %122, %124, %cst_55 {dimension_numbers = #tpu.dot_dimension_numbers<[1], [0], [0], [1], [0, 0, 1, 1], [], []>} : vector<224x3xf32>, vector<3x8xf32>, vector<224x8xf32> -> vector<224x8xf32>
    %126 = arith.addf %120, %125 : vector<224x8xf32>
    %c0_56 = arith.constant 0 : index
    %c18 = arith.constant 18 : index
    %c0_57 = arith.constant 0 : index
    %127 = vector.load %arg1[%c0_56, %c18, %c0_57] : memref<1x264x3xf32, #tpu.memory_space<vmem>>, vector<1x224x3xf32>
    %128 = vector.shape_cast %127 : vector<1x224x3xf32> to vector<224x3xf32>
    %c5 = arith.constant 5 : index
    %c0_58 = arith.constant 0 : index
    %c0_59 = arith.constant 0 : index
    %129 = vector.load %arg2[%c5, %c0_58, %c0_59] : memref<9x3x8xf32, #tpu.memory_space<vmem>>, vector<1x3x8xf32>
    %130 = vector.shape_cast %129 : vector<1x3x8xf32> to vector<3x8xf32>
    %cst_60 = arith.constant dense<0.000000e+00> : vector<224x8xf32>
    %131 = tpu.matmul %128, %130, %cst_60 {dimension_numbers = #tpu.dot_dimension_numbers<[1], [0], [0], [1], [0, 0, 1, 1], [], []>} : vector<224x3xf32>, vector<3x8xf32>, vector<224x8xf32> -> vector<224x8xf32>
    %132 = arith.addf %126, %131 : vector<224x8xf32>
    %c0_61 = arith.constant 0 : index
    %c32 = arith.constant 32 : index
    %c0_62 = arith.constant 0 : index
    %133 = vector.load %arg1[%c0_61, %c32, %c0_62] : memref<1x264x3xf32, #tpu.memory_space<vmem>>, vector<1x224x3xf32>
    %134 = vector.shape_cast %133 : vector<1x224x3xf32> to vector<224x3xf32>
    %c6 = arith.constant 6 : index
    %c0_63 = arith.constant 0 : index
    %c0_64 = arith.constant 0 : index
    %135 = vector.load %arg2[%c6, %c0_63, %c0_64] : memref<9x3x8xf32, #tpu.memory_space<vmem>>, vector<1x3x8xf32>
    %136 = vector.shape_cast %135 : vector<1x3x8xf32> to vector<3x8xf32>
    %cst_65 = arith.constant dense<0.000000e+00> : vector<224x8xf32>
    %137 = tpu.matmul %134, %136, %cst_65 {dimension_numbers = #tpu.dot_dimension_numbers<[1], [0], [0], [1], [0, 0, 1, 1], [], []>} : vector<224x3xf32>, vector<3x8xf32>, vector<224x8xf32> -> vector<224x8xf32>
    %138 = arith.addf %132, %137 : vector<224x8xf32>
    %c0_66 = arith.constant 0 : index
    %c33 = arith.constant 33 : index
    %c0_67 = arith.constant 0 : index
    %139 = vector.load %arg1[%c0_66, %c33, %c0_67] : memref<1x264x3xf32, #tpu.memory_space<vmem>>, vector<1x224x3xf32>
    %140 = vector.shape_cast %139 : vector<1x224x3xf32> to vector<224x3xf32>
    %c7 = arith.constant 7 : index
    %c0_68 = arith.constant 0 : index
    %c0_69 = arith.constant 0 : index
    %141 = vector.load %arg2[%c7, %c0_68, %c0_69] : memref<9x3x8xf32, #tpu.memory_space<vmem>>, vector<1x3x8xf32>
    %142 = vector.shape_cast %141 : vector<1x3x8xf32> to vector<3x8xf32>
    %cst_70 = arith.constant dense<0.000000e+00> : vector<224x8xf32>
    %143 = tpu.matmul %140, %142, %cst_70 {dimension_numbers = #tpu.dot_dimension_numbers<[1], [0], [0], [1], [0, 0, 1, 1], [], []>} : vector<224x3xf32>, vector<3x8xf32>, vector<224x8xf32> -> vector<224x8xf32>
    %144 = arith.addf %138, %143 : vector<224x8xf32>
    %c0_71 = arith.constant 0 : index
    %c34 = arith.constant 34 : index
    %c0_72 = arith.constant 0 : index
    %145 = vector.load %arg1[%c0_71, %c34, %c0_72] : memref<1x264x3xf32, #tpu.memory_space<vmem>>, vector<1x224x3xf32>
    %146 = vector.shape_cast %145 : vector<1x224x3xf32> to vector<224x3xf32>
    %c8 = arith.constant 8 : index
    %c0_73 = arith.constant 0 : index
    %c0_74 = arith.constant 0 : index
    %147 = vector.load %arg2[%c8, %c0_73, %c0_74] : memref<9x3x8xf32, #tpu.memory_space<vmem>>, vector<1x3x8xf32>
    %148 = vector.shape_cast %147 : vector<1x3x8xf32> to vector<3x8xf32>
    %cst_75 = arith.constant dense<0.000000e+00> : vector<224x8xf32>
    %149 = tpu.matmul %146, %148, %cst_75 {dimension_numbers = #tpu.dot_dimension_numbers<[1], [0], [0], [1], [0, 0, 1, 1], [], []>} : vector<224x3xf32>, vector<3x8xf32>, vector<224x8xf32> -> vector<224x8xf32>
    %150 = arith.addf %144, %149 : vector<224x8xf32>
    %cst_76 = arith.constant 0.000000e+00 : f32
    %151 = vector.broadcast %cst_76 : f32 to vector<224x8xf32>
    %152 = arith.select %21, %150, %151 : vector<224x8xi1>, vector<224x8xf32>
    %c0_77 = arith.constant 0 : index
    %c0_78 = arith.constant 0 : index
    %c0_79 = arith.constant 0 : index
    %153 = vector.load %arg11[%c0_77, %c0_78, %c0_79] : memref<1x224x8xf32, #tpu.memory_space<vmem>>, vector<1x224x8xf32>
    %154 = vector.shape_cast %153 : vector<1x224x8xf32> to vector<224x8xf32>
    %155 = vector.shape_cast %152 : vector<224x8xf32> to vector<1x224x8xf32>
    tpu.vector_store %arg11[%c0_77, %c0_78, %c0_79], %155 {strides = array<i32>} : memref<1x224x8xf32, #tpu.memory_space<vmem>>, vector<1x224x8xf32>,
    %cst_80 = arith.constant 0.000000e+00 : f32
    %156 = vector.broadcast %cst_80 : f32 to vector<224x8xf32>
    %157 = arith.maximumf %152, %156 : vector<224x8xf32>
    %c32_81 = arith.constant 32 : index
    %c0_82 = arith.constant 0 : index
    %158 = vector.load %arg13[%c32_81, %c0_82] : memref<288x8xf32, #tpu.memory_space<vmem>>, vector<224x8xf32>
    tpu.vector_store %arg13[%c32_81, %c0_82], %157 {strides = array<i32>} : memref<288x8xf32, #tpu.memory_space<vmem>>, vector<224x8xf32>,
    %c15 = arith.constant 15 : index
    %c0_83 = arith.constant 0 : index
    %159 = vector.load %arg13[%c15, %c0_83] : memref<288x8xf32, #tpu.memory_space<vmem>>, vector<224x8xf32>
    %c0_84 = arith.constant 0 : index
    %c0_85 = arith.constant 0 : index
    %c0_86 = arith.constant 0 : index
    %160 = vector.load %arg3[%c0_84, %c0_85, %c0_86] : memref<9x8x8xf32, #tpu.memory_space<vmem>>, vector<1x8x8xf32>
    %161 = vector.shape_cast %160 : vector<1x8x8xf32> to vector<8x8xf32>
    %cst_87 = arith.constant dense<0.000000e+00> : vector<224x8xf32>
    %162 = tpu.matmul %159, %161, %cst_87 {dimension_numbers = #tpu.dot_dimension_numbers<[1], [0], [0], [1], [0, 0, 1, 1], [], []>} : vector<224x8xf32>, vector<8x8xf32>, vector<224x8xf32> -> vector<224x8xf32>
    %c16_88 = arith.constant 16 : index
    %c0_89 = arith.constant 0 : index
    %163 = vector.load %arg13[%c16_88, %c0_89] : memref<288x8xf32, #tpu.memory_space<vmem>>, vector<224x8xf32>
    %c1_90 = arith.constant 1 : index
    %c0_91 = arith.constant 0 : index
    %c0_92 = arith.constant 0 : index
    %164 = vector.load %arg3[%c1_90, %c0_91, %c0_92] : memref<9x8x8xf32, #tpu.memory_space<vmem>>, vector<1x8x8xf32>
    %165 = vector.shape_cast %164 : vector<1x8x8xf32> to vector<8x8xf32>
    %cst_93 = arith.constant dense<0.000000e+00> : vector<224x8xf32>
    %166 = tpu.matmul %163, %165, %cst_93 {dimension_numbers = #tpu.dot_dimension_numbers<[1], [0], [0], [1], [0, 0, 1, 1], [], []>} : vector<224x8xf32>, vector<8x8xf32>, vector<224x8xf32> -> vector<224x8xf32>
    %167 = arith.addf %162, %166 : vector<224x8xf32>
    %c17_94 = arith.constant 17 : index
    %c0_95 = arith.constant 0 : index
    %168 = vector.load %arg13[%c17_94, %c0_95] : memref<288x8xf32, #tpu.memory_space<vmem>>, vector<224x8xf32>
    %c2_96 = arith.constant 2 : index
    %c0_97 = arith.constant 0 : index
    %c0_98 = arith.constant 0 : index
    %169 = vector.load %arg3[%c2_96, %c0_97, %c0_98] : memref<9x8x8xf32, #tpu.memory_space<vmem>>, vector<1x8x8xf32>
    %170 = vector.shape_cast %169 : vector<1x8x8xf32> to vector<8x8xf32>
    %cst_99 = arith.constant dense<0.000000e+00> : vector<224x8xf32>
    %171 = tpu.matmul %168, %170, %cst_99 {dimension_numbers = #tpu.dot_dimension_numbers<[1], [0], [0], [1], [0, 0, 1, 1], [], []>} : vector<224x8xf32>, vector<8x8xf32>, vector<224x8xf32> -> vector<224x8xf32>
    %172 = arith.addf %167, %171 : vector<224x8xf32>
    %c31 = arith.constant 31 : index
    %c0_100 = arith.constant 0 : index
    %173 = vector.load %arg13[%c31, %c0_100] : memref<288x8xf32, #tpu.memory_space<vmem>>, vector<224x8xf32>
    %c3_101 = arith.constant 3 : index
    %c0_102 = arith.constant 0 : index
    %c0_103 = arith.constant 0 : index
    %174 = vector.load %arg3[%c3_101, %c0_102, %c0_103] : memref<9x8x8xf32, #tpu.memory_space<vmem>>, vector<1x8x8xf32>
    %175 = vector.shape_cast %174 : vector<1x8x8xf32> to vector<8x8xf32>
    %cst_104 = arith.constant dense<0.000000e+00> : vector<224x8xf32>
    %176 = tpu.matmul %173, %175, %cst_104 {dimension_numbers = #tpu.dot_dimension_numbers<[1], [0], [0], [1], [0, 0, 1, 1], [], []>} : vector<224x8xf32>, vector<8x8xf32>, vector<224x8xf32> -> vector<224x8xf32>
    %177 = arith.addf %172, %176 : vector<224x8xf32>
    %c32_105 = arith.constant 32 : index
    %c0_106 = arith.constant 0 : index
    %178 = vector.load %arg13[%c32_105, %c0_106] : memref<288x8xf32, #tpu.memory_space<vmem>>, vector<224x8xf32>
    %c4_107 = arith.constant 4 : index
    %c0_108 = arith.constant 0 : index
    %c0_109 = arith.constant 0 : index
    %179 = vector.load %arg3[%c4_107, %c0_108, %c0_109] : memref<9x8x8xf32, #tpu.memory_space<vmem>>, vector<1x8x8xf32>
    %180 = vector.shape_cast %179 : vector<1x8x8xf32> to vector<8x8xf32>
    %cst_110 = arith.constant dense<0.000000e+00> : vector<224x8xf32>
    %181 = tpu.matmul %178, %180, %cst_110 {dimension_numbers = #tpu.dot_dimension_numbers<[1], [0], [0], [1], [0, 0, 1, 1], [], []>} : vector<224x8xf32>, vector<8x8xf32>, vector<224x8xf32> -> vector<224x8xf32>
    %182 = arith.addf %177, %181 : vector<224x8xf32>
    %c33_111 = arith.constant 33 : index
    %c0_112 = arith.constant 0 : index
    %183 = vector.load %arg13[%c33_111, %c0_112] : memref<288x8xf32, #tpu.memory_space<vmem>>, vector<224x8xf32>
    %c5_113 = arith.constant 5 : index
    %c0_114 = arith.constant 0 : index
    %c0_115 = arith.constant 0 : index
    %184 = vector.load %arg3[%c5_113, %c0_114, %c0_115] : memref<9x8x8xf32, #tpu.memory_space<vmem>>, vector<1x8x8xf32>
    %185 = vector.shape_cast %184 : vector<1x8x8xf32> to vector<8x8xf32>
    %cst_116 = arith.constant dense<0.000000e+00> : vector<224x8xf32>
    %186 = tpu.matmul %183, %185, %cst_116 {dimension_numbers = #tpu.dot_dimension_numbers<[1], [0], [0], [1], [0, 0, 1, 1], [], []>} : vector<224x8xf32>, vector<8x8xf32>, vector<224x8xf32> -> vector<224x8xf32>
    %187 = arith.addf %182, %186 : vector<224x8xf32>
    %c47 = arith.constant 47 : index
    %c0_117 = arith.constant 0 : index
    %188 = vector.load %arg13[%c47, %c0_117] : memref<288x8xf32, #tpu.memory_space<vmem>>, vector<224x8xf32>
    %c6_118 = arith.constant 6 : index
    %c0_119 = arith.constant 0 : index
    %c0_120 = arith.constant 0 : index
    %189 = vector.load %arg3[%c6_118, %c0_119, %c0_120] : memref<9x8x8xf32, #tpu.memory_space<vmem>>, vector<1x8x8xf32>
    %190 = vector.shape_cast %189 : vector<1x8x8xf32> to vector<8x8xf32>
    %cst_121 = arith.constant dense<0.000000e+00> : vector<224x8xf32>
    %191 = tpu.matmul %188, %190, %cst_121 {dimension_numbers = #tpu.dot_dimension_numbers<[1], [0], [0], [1], [0, 0, 1, 1], [], []>} : vector<224x8xf32>, vector<8x8xf32>, vector<224x8xf32> -> vector<224x8xf32>
    %192 = arith.addf %187, %191 : vector<224x8xf32>
    %c48 = arith.constant 48 : index
    %c0_122 = arith.constant 0 : index
    %193 = vector.load %arg13[%c48, %c0_122] : memref<288x8xf32, #tpu.memory_space<vmem>>, vector<224x8xf32>
    %c7_123 = arith.constant 7 : index
    %c0_124 = arith.constant 0 : index
    %c0_125 = arith.constant 0 : index
    %194 = vector.load %arg3[%c7_123, %c0_124, %c0_125] : memref<9x8x8xf32, #tpu.memory_space<vmem>>, vector<1x8x8xf32>
    %195 = vector.shape_cast %194 : vector<1x8x8xf32> to vector<8x8xf32>
    %cst_126 = arith.constant dense<0.000000e+00> : vector<224x8xf32>
    %196 = tpu.matmul %193, %195, %cst_126 {dimension_numbers = #tpu.dot_dimension_numbers<[1], [0], [0], [1], [0, 0, 1, 1], [], []>} : vector<224x8xf32>, vector<8x8xf32>, vector<224x8xf32> -> vector<224x8xf32>
    %197 = arith.addf %192, %196 : vector<224x8xf32>
    %c49 = arith.constant 49 : index
    %c0_127 = arith.constant 0 : index
    %198 = vector.load %arg13[%c49, %c0_127] : memref<288x8xf32, #tpu.memory_space<vmem>>, vector<224x8xf32>
    %c8_128 = arith.constant 8 : index
    %c0_129 = arith.constant 0 : index
    %c0_130 = arith.constant 0 : index
    %199 = vector.load %arg3[%c8_128, %c0_129, %c0_130] : memref<9x8x8xf32, #tpu.memory_space<vmem>>, vector<1x8x8xf32>
    %200 = vector.shape_cast %199 : vector<1x8x8xf32> to vector<8x8xf32>
    %cst_131 = arith.constant dense<0.000000e+00> : vector<224x8xf32>
    %201 = tpu.matmul %198, %200, %cst_131 {dimension_numbers = #tpu.dot_dimension_numbers<[1], [0], [0], [1], [0, 0, 1, 1], [], []>} : vector<224x8xf32>, vector<8x8xf32>, vector<224x8xf32> -> vector<224x8xf32>
    %202 = arith.addf %197, %201 : vector<224x8xf32>
    %cst_132 = arith.constant 0.000000e+00 : f32
    %203 = vector.broadcast %cst_132 : f32 to vector<224x8xf32>
    %204 = arith.maximumf %202, %203 : vector<224x8xf32>
    %cst_133 = arith.constant 0.000000e+00 : f32
    %205 = vector.broadcast %cst_133 : f32 to vector<224x8xf32>
    %206 = arith.select %21, %204, %205 : vector<224x8xi1>, vector<224x8xf32>
    %c32_134 = arith.constant 32 : index
    %c0_135 = arith.constant 0 : index
    %207 = vector.load %arg13[%c32_134, %c0_135] : memref<288x8xf32, #tpu.memory_space<vmem>>, vector<224x8xf32>
    tpu.vector_store %arg13[%c32_134, %c0_135], %206 {strides = array<i32>} : memref<288x8xf32, #tpu.memory_space<vmem>>, vector<224x8xf32>,
    %c15_136 = arith.constant 15 : index
    %c0_137 = arith.constant 0 : index
    %208 = vector.load %arg13[%c15_136, %c0_137] : memref<288x8xf32, #tpu.memory_space<vmem>>, vector<224x8xf32>
    %c0_138 = arith.constant 0 : index
    %c0_139 = arith.constant 0 : index
    %c0_140 = arith.constant 0 : index
    %209 = vector.load %arg4[%c0_138, %c0_139, %c0_140] : memref<9x8x8xf32, #tpu.memory_space<vmem>>, vector<1x8x8xf32>
    %210 = vector.shape_cast %209 : vector<1x8x8xf32> to vector<8x8xf32>
    %cst_141 = arith.constant dense<0.000000e+00> : vector<224x8xf32>
    %211 = tpu.matmul %208, %210, %cst_141 {dimension_numbers = #tpu.dot_dimension_numbers<[1], [0], [0], [1], [0, 0, 1, 1], [], []>} : vector<224x8xf32>, vector<8x8xf32>, vector<224x8xf32> -> vector<224x8xf32>
    %c16_142 = arith.constant 16 : index
    %c0_143 = arith.constant 0 : index
    %212 = vector.load %arg13[%c16_142, %c0_143] : memref<288x8xf32, #tpu.memory_space<vmem>>, vector<224x8xf32>
    %c1_144 = arith.constant 1 : index
    %c0_145 = arith.constant 0 : index
    %c0_146 = arith.constant 0 : index
    %213 = vector.load %arg4[%c1_144, %c0_145, %c0_146] : memref<9x8x8xf32, #tpu.memory_space<vmem>>, vector<1x8x8xf32>
    %214 = vector.shape_cast %213 : vector<1x8x8xf32> to vector<8x8xf32>
    %cst_147 = arith.constant dense<0.000000e+00> : vector<224x8xf32>
    %215 = tpu.matmul %212, %214, %cst_147 {dimension_numbers = #tpu.dot_dimension_numbers<[1], [0], [0], [1], [0, 0, 1, 1], [], []>} : vector<224x8xf32>, vector<8x8xf32>, vector<224x8xf32> -> vector<224x8xf32>
    %216 = arith.addf %211, %215 : vector<224x8xf32>
    %c17_148 = arith.constant 17 : index
    %c0_149 = arith.constant 0 : index
    %217 = vector.load %arg13[%c17_148, %c0_149] : memref<288x8xf32, #tpu.memory_space<vmem>>, vector<224x8xf32>
    %c2_150 = arith.constant 2 : index
    %c0_151 = arith.constant 0 : index
    %c0_152 = arith.constant 0 : index
    %218 = vector.load %arg4[%c2_150, %c0_151, %c0_152] : memref<9x8x8xf32, #tpu.memory_space<vmem>>, vector<1x8x8xf32>
    %219 = vector.shape_cast %218 : vector<1x8x8xf32> to vector<8x8xf32>
    %cst_153 = arith.constant dense<0.000000e+00> : vector<224x8xf32>
    %220 = tpu.matmul %217, %219, %cst_153 {dimension_numbers = #tpu.dot_dimension_numbers<[1], [0], [0], [1], [0, 0, 1, 1], [], []>} : vector<224x8xf32>, vector<8x8xf32>, vector<224x8xf32> -> vector<224x8xf32>
    %221 = arith.addf %216, %220 : vector<224x8xf32>
    %c31_154 = arith.constant 31 : index
    %c0_155 = arith.constant 0 : index
    %222 = vector.load %arg13[%c31_154, %c0_155] : memref<288x8xf32, #tpu.memory_space<vmem>>, vector<224x8xf32>
    %c3_156 = arith.constant 3 : index
    %c0_157 = arith.constant 0 : index
    %c0_158 = arith.constant 0 : index
    %223 = vector.load %arg4[%c3_156, %c0_157, %c0_158] : memref<9x8x8xf32, #tpu.memory_space<vmem>>, vector<1x8x8xf32>
    %224 = vector.shape_cast %223 : vector<1x8x8xf32> to vector<8x8xf32>
    %cst_159 = arith.constant dense<0.000000e+00> : vector<224x8xf32>
    %225 = tpu.matmul %222, %224, %cst_159 {dimension_numbers = #tpu.dot_dimension_numbers<[1], [0], [0], [1], [0, 0, 1, 1], [], []>} : vector<224x8xf32>, vector<8x8xf32>, vector<224x8xf32> -> vector<224x8xf32>
    %226 = arith.addf %221, %225 : vector<224x8xf32>
    %c32_160 = arith.constant 32 : index
    %c0_161 = arith.constant 0 : index
    %227 = vector.load %arg13[%c32_160, %c0_161] : memref<288x8xf32, #tpu.memory_space<vmem>>, vector<224x8xf32>
    %c4_162 = arith.constant 4 : index
    %c0_163 = arith.constant 0 : index
    %c0_164 = arith.constant 0 : index
    %228 = vector.load %arg4[%c4_162, %c0_163, %c0_164] : memref<9x8x8xf32, #tpu.memory_space<vmem>>, vector<1x8x8xf32>
    %229 = vector.shape_cast %228 : vector<1x8x8xf32> to vector<8x8xf32>
    %cst_165 = arith.constant dense<0.000000e+00> : vector<224x8xf32>
    %230 = tpu.matmul %227, %229, %cst_165 {dimension_numbers = #tpu.dot_dimension_numbers<[1], [0], [0], [1], [0, 0, 1, 1], [], []>} : vector<224x8xf32>, vector<8x8xf32>, vector<224x8xf32> -> vector<224x8xf32>
    %231 = arith.addf %226, %230 : vector<224x8xf32>
    %c33_166 = arith.constant 33 : index
    %c0_167 = arith.constant 0 : index
    %232 = vector.load %arg13[%c33_166, %c0_167] : memref<288x8xf32, #tpu.memory_space<vmem>>, vector<224x8xf32>
    %c5_168 = arith.constant 5 : index
    %c0_169 = arith.constant 0 : index
    %c0_170 = arith.constant 0 : index
    %233 = vector.load %arg4[%c5_168, %c0_169, %c0_170] : memref<9x8x8xf32, #tpu.memory_space<vmem>>, vector<1x8x8xf32>
    %234 = vector.shape_cast %233 : vector<1x8x8xf32> to vector<8x8xf32>
    %cst_171 = arith.constant dense<0.000000e+00> : vector<224x8xf32>
    %235 = tpu.matmul %232, %234, %cst_171 {dimension_numbers = #tpu.dot_dimension_numbers<[1], [0], [0], [1], [0, 0, 1, 1], [], []>} : vector<224x8xf32>, vector<8x8xf32>, vector<224x8xf32> -> vector<224x8xf32>
    %236 = arith.addf %231, %235 : vector<224x8xf32>
    %c47_172 = arith.constant 47 : index
    %c0_173 = arith.constant 0 : index
    %237 = vector.load %arg13[%c47_172, %c0_173] : memref<288x8xf32, #tpu.memory_space<vmem>>, vector<224x8xf32>
    %c6_174 = arith.constant 6 : index
    %c0_175 = arith.constant 0 : index
    %c0_176 = arith.constant 0 : index
    %238 = vector.load %arg4[%c6_174, %c0_175, %c0_176] : memref<9x8x8xf32, #tpu.memory_space<vmem>>, vector<1x8x8xf32>
    %239 = vector.shape_cast %238 : vector<1x8x8xf32> to vector<8x8xf32>
    %cst_177 = arith.constant dense<0.000000e+00> : vector<224x8xf32>
    %240 = tpu.matmul %237, %239, %cst_177 {dimension_numbers = #tpu.dot_dimension_numbers<[1], [0], [0], [1], [0, 0, 1, 1], [], []>} : vector<224x8xf32>, vector<8x8xf32>, vector<224x8xf32> -> vector<224x8xf32>
    %241 = arith.addf %236, %240 : vector<224x8xf32>
    %c48_178 = arith.constant 48 : index
    %c0_179 = arith.constant 0 : index
    %242 = vector.load %arg13[%c48_178, %c0_179] : memref<288x8xf32, #tpu.memory_space<vmem>>, vector<224x8xf32>
    %c7_180 = arith.constant 7 : index
    %c0_181 = arith.constant 0 : index
    %c0_182 = arith.constant 0 : index
    %243 = vector.load %arg4[%c7_180, %c0_181, %c0_182] : memref<9x8x8xf32, #tpu.memory_space<vmem>>, vector<1x8x8xf32>
    %244 = vector.shape_cast %243 : vector<1x8x8xf32> to vector<8x8xf32>
    %cst_183 = arith.constant dense<0.000000e+00> : vector<224x8xf32>
    %245 = tpu.matmul %242, %244, %cst_183 {dimension_numbers = #tpu.dot_dimension_numbers<[1], [0], [0], [1], [0, 0, 1, 1], [], []>} : vector<224x8xf32>, vector<8x8xf32>, vector<224x8xf32> -> vector<224x8xf32>
    %246 = arith.addf %241, %245 : vector<224x8xf32>
    %c49_184 = arith.constant 49 : index
    %c0_185 = arith.constant 0 : index
    %247 = vector.load %arg13[%c49_184, %c0_185] : memref<288x8xf32, #tpu.memory_space<vmem>>, vector<224x8xf32>
    %c8_186 = arith.constant 8 : index
    %c0_187 = arith.constant 0 : index
    %c0_188 = arith.constant 0 : index
    %248 = vector.load %arg4[%c8_186, %c0_187, %c0_188] : memref<9x8x8xf32, #tpu.memory_space<vmem>>, vector<1x8x8xf32>
    %249 = vector.shape_cast %248 : vector<1x8x8xf32> to vector<8x8xf32>
    %cst_189 = arith.constant dense<0.000000e+00> : vector<224x8xf32>
    %250 = tpu.matmul %247, %249, %cst_189 {dimension_numbers = #tpu.dot_dimension_numbers<[1], [0], [0], [1], [0, 0, 1, 1], [], []>} : vector<224x8xf32>, vector<8x8xf32>, vector<224x8xf32> -> vector<224x8xf32>
    %251 = arith.addf %246, %250 : vector<224x8xf32>
    %c0_190 = arith.constant 0 : index
    %c0_191 = arith.constant 0 : index
    %c0_192 = arith.constant 0 : index
    %252 = vector.load %arg11[%c0_190, %c0_191, %c0_192] : memref<1x224x8xf32, #tpu.memory_space<vmem>>, vector<1x224x8xf32>
    %253 = vector.shape_cast %252 : vector<1x224x8xf32> to vector<224x8xf32>
    %254 = arith.addf %251, %253 : vector<224x8xf32>
    %cst_193 = arith.constant 0.000000e+00 : f32
    %255 = vector.broadcast %cst_193 : f32 to vector<224x8xf32>
    %256 = arith.select %21, %254, %255 : vector<224x8xi1>, vector<224x8xf32>
    %c32_194 = arith.constant 32 : index
    %c0_195 = arith.constant 0 : index
    %257 = vector.load %arg13[%c32_194, %c0_195] : memref<288x8xf32, #tpu.memory_space<vmem>>, vector<224x8xf32>
    tpu.vector_store %arg13[%c32_194, %c0_195], %256 {strides = array<i32>} : memref<288x8xf32, #tpu.memory_space<vmem>>, vector<224x8xf32>,
    %c15_196 = arith.constant 15 : index
    %c0_197 = arith.constant 0 : index
    %258 = vector.load %arg13[%c15_196, %c0_197] : memref<288x8xf32, #tpu.memory_space<vmem>>, vector<224x8xf32>
    %cst_198 = arith.constant 0.000000e+00 : f32
    %259 = vector.broadcast %cst_198 : f32 to vector<224x8xf32>
    %260 = arith.maximumf %258, %259 : vector<224x8xf32>
    %c0_199 = arith.constant 0 : index
    %c0_200 = arith.constant 0 : index
    %c0_201 = arith.constant 0 : index
    %261 = vector.load %arg5[%c0_199, %c0_200, %c0_201] : memref<9x8x16xf32, #tpu.memory_space<vmem>>, vector<1x8x16xf32>
    %262 = vector.shape_cast %261 : vector<1x8x16xf32> to vector<8x16xf32>
    %cst_202 = arith.constant dense<0.000000e+00> : vector<224x16xf32>
    %263 = tpu.matmul %260, %262, %cst_202 {dimension_numbers = #tpu.dot_dimension_numbers<[1], [0], [0], [1], [0, 0, 1, 1], [], []>} : vector<224x8xf32>, vector<8x16xf32>, vector<224x16xf32> -> vector<224x16xf32>
    %c16_203 = arith.constant 16 : index
    %c0_204 = arith.constant 0 : index
    %264 = vector.load %arg13[%c16_203, %c0_204] : memref<288x8xf32, #tpu.memory_space<vmem>>, vector<224x8xf32>
    %cst_205 = arith.constant 0.000000e+00 : f32
    %265 = vector.broadcast %cst_205 : f32 to vector<224x8xf32>
    %266 = arith.maximumf %264, %265 : vector<224x8xf32>
    %c1_206 = arith.constant 1 : index
    %c0_207 = arith.constant 0 : index
    %c0_208 = arith.constant 0 : index
    %267 = vector.load %arg5[%c1_206, %c0_207, %c0_208] : memref<9x8x16xf32, #tpu.memory_space<vmem>>, vector<1x8x16xf32>
    %268 = vector.shape_cast %267 : vector<1x8x16xf32> to vector<8x16xf32>
    %cst_209 = arith.constant dense<0.000000e+00> : vector<224x16xf32>
    %269 = tpu.matmul %266, %268, %cst_209 {dimension_numbers = #tpu.dot_dimension_numbers<[1], [0], [0], [1], [0, 0, 1, 1], [], []>} : vector<224x8xf32>, vector<8x16xf32>, vector<224x16xf32> -> vector<224x16xf32>
    %270 = arith.addf %263, %269 : vector<224x16xf32>
    %c17_210 = arith.constant 17 : index
    %c0_211 = arith.constant 0 : index
    %271 = vector.load %arg13[%c17_210, %c0_211] : memref<288x8xf32, #tpu.memory_space<vmem>>, vector<224x8xf32>
    %cst_212 = arith.constant 0.000000e+00 : f32
    %272 = vector.broadcast %cst_212 : f32 to vector<224x8xf32>
    %273 = arith.maximumf %271, %272 : vector<224x8xf32>
    %c2_213 = arith.constant 2 : index
    %c0_214 = arith.constant 0 : index
    %c0_215 = arith.constant 0 : index
    %274 = vector.load %arg5[%c2_213, %c0_214, %c0_215] : memref<9x8x16xf32, #tpu.memory_space<vmem>>, vector<1x8x16xf32>
    %275 = vector.shape_cast %274 : vector<1x8x16xf32> to vector<8x16xf32>
    %cst_216 = arith.constant dense<0.000000e+00> : vector<224x16xf32>
    %276 = tpu.matmul %273, %275, %cst_216 {dimension_numbers = #tpu.dot_dimension_numbers<[1], [0], [0], [1], [0, 0, 1, 1], [], []>} : vector<224x8xf32>, vector<8x16xf32>, vector<224x16xf32> -> vector<224x16xf32>
    %277 = arith.addf %270, %276 : vector<224x16xf32>
    %c31_217 = arith.constant 31 : index
    %c0_218 = arith.constant 0 : index
    %278 = vector.load %arg13[%c31_217, %c0_218] : memref<288x8xf32, #tpu.memory_space<vmem>>, vector<224x8xf32>
    %cst_219 = arith.constant 0.000000e+00 : f32
    %279 = vector.broadcast %cst_219 : f32 to vector<224x8xf32>
    %280 = arith.maximumf %278, %279 : vector<224x8xf32>
    %c3_220 = arith.constant 3 : index
    %c0_221 = arith.constant 0 : index
    %c0_222 = arith.constant 0 : index
    %281 = vector.load %arg5[%c3_220, %c0_221, %c0_222] : memref<9x8x16xf32, #tpu.memory_space<vmem>>, vector<1x8x16xf32>
    %282 = vector.shape_cast %281 : vector<1x8x16xf32> to vector<8x16xf32>
    %cst_223 = arith.constant dense<0.000000e+00> : vector<224x16xf32>
    %283 = tpu.matmul %280, %282, %cst_223 {dimension_numbers = #tpu.dot_dimension_numbers<[1], [0], [0], [1], [0, 0, 1, 1], [], []>} : vector<224x8xf32>, vector<8x16xf32>, vector<224x16xf32> -> vector<224x16xf32>
    %284 = arith.addf %277, %283 : vector<224x16xf32>
    %c32_224 = arith.constant 32 : index
    %c0_225 = arith.constant 0 : index
    %285 = vector.load %arg13[%c32_224, %c0_225] : memref<288x8xf32, #tpu.memory_space<vmem>>, vector<224x8xf32>
    %cst_226 = arith.constant 0.000000e+00 : f32
    %286 = vector.broadcast %cst_226 : f32 to vector<224x8xf32>
    %287 = arith.maximumf %285, %286 : vector<224x8xf32>
    %c4_227 = arith.constant 4 : index
    %c0_228 = arith.constant 0 : index
    %c0_229 = arith.constant 0 : index
    %288 = vector.load %arg5[%c4_227, %c0_228, %c0_229] : memref<9x8x16xf32, #tpu.memory_space<vmem>>, vector<1x8x16xf32>
    %289 = vector.shape_cast %288 : vector<1x8x16xf32> to vector<8x16xf32>
    %cst_230 = arith.constant dense<0.000000e+00> : vector<224x16xf32>
    %290 = tpu.matmul %287, %289, %cst_230 {dimension_numbers = #tpu.dot_dimension_numbers<[1], [0], [0], [1], [0, 0, 1, 1], [], []>} : vector<224x8xf32>, vector<8x16xf32>, vector<224x16xf32> -> vector<224x16xf32>
    %291 = arith.addf %284, %290 : vector<224x16xf32>
    %c33_231 = arith.constant 33 : index
    %c0_232 = arith.constant 0 : index
    %292 = vector.load %arg13[%c33_231, %c0_232] : memref<288x8xf32, #tpu.memory_space<vmem>>, vector<224x8xf32>
    %cst_233 = arith.constant 0.000000e+00 : f32
    %293 = vector.broadcast %cst_233 : f32 to vector<224x8xf32>
    %294 = arith.maximumf %292, %293 : vector<224x8xf32>
    %c5_234 = arith.constant 5 : index
    %c0_235 = arith.constant 0 : index
    %c0_236 = arith.constant 0 : index
    %295 = vector.load %arg5[%c5_234, %c0_235, %c0_236] : memref<9x8x16xf32, #tpu.memory_space<vmem>>, vector<1x8x16xf32>
    %296 = vector.shape_cast %295 : vector<1x8x16xf32> to vector<8x16xf32>
    %cst_237 = arith.constant dense<0.000000e+00> : vector<224x16xf32>
    %297 = tpu.matmul %294, %296, %cst_237 {dimension_numbers = #tpu.dot_dimension_numbers<[1], [0], [0], [1], [0, 0, 1, 1], [], []>} : vector<224x8xf32>, vector<8x16xf32>, vector<224x16xf32> -> vector<224x16xf32>
    %298 = arith.addf %291, %297 : vector<224x16xf32>
    %c47_238 = arith.constant 47 : index
    %c0_239 = arith.constant 0 : index
    %299 = vector.load %arg13[%c47_238, %c0_239] : memref<288x8xf32, #tpu.memory_space<vmem>>, vector<224x8xf32>
    %cst_240 = arith.constant 0.000000e+00 : f32
    %300 = vector.broadcast %cst_240 : f32 to vector<224x8xf32>
    %301 = arith.maximumf %299, %300 : vector<224x8xf32>
    %c6_241 = arith.constant 6 : index
    %c0_242 = arith.constant 0 : index
    %c0_243 = arith.constant 0 : index
    %302 = vector.load %arg5[%c6_241, %c0_242, %c0_243] : memref<9x8x16xf32, #tpu.memory_space<vmem>>, vector<1x8x16xf32>
    %303 = vector.shape_cast %302 : vector<1x8x16xf32> to vector<8x16xf32>
    %cst_244 = arith.constant dense<0.000000e+00> : vector<224x16xf32>
    %304 = tpu.matmul %301, %303, %cst_244 {dimension_numbers = #tpu.dot_dimension_numbers<[1], [0], [0], [1], [0, 0, 1, 1], [], []>} : vector<224x8xf32>, vector<8x16xf32>, vector<224x16xf32> -> vector<224x16xf32>
    %305 = arith.addf %298, %304 : vector<224x16xf32>
    %c48_245 = arith.constant 48 : index
    %c0_246 = arith.constant 0 : index
    %306 = vector.load %arg13[%c48_245, %c0_246] : memref<288x8xf32, #tpu.memory_space<vmem>>, vector<224x8xf32>
    %cst_247 = arith.constant 0.000000e+00 : f32
    %307 = vector.broadcast %cst_247 : f32 to vector<224x8xf32>
    %308 = arith.maximumf %306, %307 : vector<224x8xf32>
    %c7_248 = arith.constant 7 : index
    %c0_249 = arith.constant 0 : index
    %c0_250 = arith.constant 0 : index
    %309 = vector.load %arg5[%c7_248, %c0_249, %c0_250] : memref<9x8x16xf32, #tpu.memory_space<vmem>>, vector<1x8x16xf32>
    %310 = vector.shape_cast %309 : vector<1x8x16xf32> to vector<8x16xf32>
    %cst_251 = arith.constant dense<0.000000e+00> : vector<224x16xf32>
    %311 = tpu.matmul %308, %310, %cst_251 {dimension_numbers = #tpu.dot_dimension_numbers<[1], [0], [0], [1], [0, 0, 1, 1], [], []>} : vector<224x8xf32>, vector<8x16xf32>, vector<224x16xf32> -> vector<224x16xf32>
    %312 = arith.addf %305, %311 : vector<224x16xf32>
    %c49_252 = arith.constant 49 : index
    %c0_253 = arith.constant 0 : index
    %313 = vector.load %arg13[%c49_252, %c0_253] : memref<288x8xf32, #tpu.memory_space<vmem>>, vector<224x8xf32>
    %cst_254 = arith.constant 0.000000e+00 : f32
    %314 = vector.broadcast %cst_254 : f32 to vector<224x8xf32>
    %315 = arith.maximumf %313, %314 : vector<224x8xf32>
    %c8_255 = arith.constant 8 : index
    %c0_256 = arith.constant 0 : index
    %c0_257 = arith.constant 0 : index
    %316 = vector.load %arg5[%c8_255, %c0_256, %c0_257] : memref<9x8x16xf32, #tpu.memory_space<vmem>>, vector<1x8x16xf32>
    %317 = vector.shape_cast %316 : vector<1x8x16xf32> to vector<8x16xf32>
    %cst_258 = arith.constant dense<0.000000e+00> : vector<224x16xf32>
    %318 = tpu.matmul %315, %317, %cst_258 {dimension_numbers = #tpu.dot_dimension_numbers<[1], [0], [0], [1], [0, 0, 1, 1], [], []>} : vector<224x8xf32>, vector<8x16xf32>, vector<224x16xf32> -> vector<224x16xf32>
    %319 = arith.addf %312, %318 : vector<224x16xf32>
    %cst_259 = arith.constant 0.000000e+00 : f32
    %320 = vector.broadcast %cst_259 : f32 to vector<224x16xf32>
    %321 = arith.maximumf %319, %320 : vector<224x16xf32>
    %cst_260 = arith.constant 0.000000e+00 : f32
    %322 = vector.broadcast %cst_260 : f32 to vector<224x16xf32>
    %323 = arith.select %59, %321, %322 : vector<224x16xi1>, vector<224x16xf32>
    %c48_261 = arith.constant 48 : index
    %c0_262 = arith.constant 0 : index
    %324 = vector.load %arg14[%c48_261, %c0_262] : memref<320x16xf32, #tpu.memory_space<vmem>>, vector<224x16xf32>
    tpu.vector_store %arg14[%c48_261, %c0_262], %323 {strides = array<i32>} : memref<320x16xf32, #tpu.memory_space<vmem>>, vector<224x16xf32>,
    %c14 = arith.constant 14 : index
    %c0_263 = arith.constant 0 : index
    %325 = vector.load %arg14[%c14, %c0_263] : memref<320x16xf32, #tpu.memory_space<vmem>>, vector<224x16xf32>
    %c0_264 = arith.constant 0 : index
    %c0_265 = arith.constant 0 : index
    %c0_266 = arith.constant 0 : index
    %326 = vector.load %arg6[%c0_264, %c0_265, %c0_266] : memref<9x16x16xf32, #tpu.memory_space<vmem>>, vector<1x16x16xf32>
    %327 = vector.shape_cast %326 : vector<1x16x16xf32> to vector<16x16xf32>
    %cst_267 = arith.constant dense<0.000000e+00> : vector<224x16xf32>
    %328 = tpu.matmul %325, %327, %cst_267 {dimension_numbers = #tpu.dot_dimension_numbers<[1], [0], [0], [1], [0, 0, 1, 1], [], []>} : vector<224x16xf32>, vector<16x16xf32>, vector<224x16xf32> -> vector<224x16xf32>
    %c16_268 = arith.constant 16 : index
    %c0_269 = arith.constant 0 : index
    %329 = vector.load %arg14[%c16_268, %c0_269] : memref<320x16xf32, #tpu.memory_space<vmem>>, vector<224x16xf32>
    %c1_270 = arith.constant 1 : index
    %c0_271 = arith.constant 0 : index
    %c0_272 = arith.constant 0 : index
    %330 = vector.load %arg6[%c1_270, %c0_271, %c0_272] : memref<9x16x16xf32, #tpu.memory_space<vmem>>, vector<1x16x16xf32>
    %331 = vector.shape_cast %330 : vector<1x16x16xf32> to vector<16x16xf32>
    %cst_273 = arith.constant dense<0.000000e+00> : vector<224x16xf32>
    %332 = tpu.matmul %329, %331, %cst_273 {dimension_numbers = #tpu.dot_dimension_numbers<[1], [0], [0], [1], [0, 0, 1, 1], [], []>} : vector<224x16xf32>, vector<16x16xf32>, vector<224x16xf32> -> vector<224x16xf32>
    %333 = arith.addf %328, %332 : vector<224x16xf32>
    %c18_274 = arith.constant 18 : index
    %c0_275 = arith.constant 0 : index
    %334 = vector.load %arg14[%c18_274, %c0_275] : memref<320x16xf32, #tpu.memory_space<vmem>>, vector<224x16xf32>
    %c2_276 = arith.constant 2 : index
    %c0_277 = arith.constant 0 : index
    %c0_278 = arith.constant 0 : index
    %335 = vector.load %arg6[%c2_276, %c0_277, %c0_278] : memref<9x16x16xf32, #tpu.memory_space<vmem>>, vector<1x16x16xf32>
    %336 = vector.shape_cast %335 : vector<1x16x16xf32> to vector<16x16xf32>
    %cst_279 = arith.constant dense<0.000000e+00> : vector<224x16xf32>
    %337 = tpu.matmul %334, %336, %cst_279 {dimension_numbers = #tpu.dot_dimension_numbers<[1], [0], [0], [1], [0, 0, 1, 1], [], []>} : vector<224x16xf32>, vector<16x16xf32>, vector<224x16xf32> -> vector<224x16xf32>
    %338 = arith.addf %333, %337 : vector<224x16xf32>
    %c46 = arith.constant 46 : index
    %c0_280 = arith.constant 0 : index
    %339 = vector.load %arg14[%c46, %c0_280] : memref<320x16xf32, #tpu.memory_space<vmem>>, vector<224x16xf32>
    %c3_281 = arith.constant 3 : index
    %c0_282 = arith.constant 0 : index
    %c0_283 = arith.constant 0 : index
    %340 = vector.load %arg6[%c3_281, %c0_282, %c0_283] : memref<9x16x16xf32, #tpu.memory_space<vmem>>, vector<1x16x16xf32>
    %341 = vector.shape_cast %340 : vector<1x16x16xf32> to vector<16x16xf32>
    %cst_284 = arith.constant dense<0.000000e+00> : vector<224x16xf32>
    %342 = tpu.matmul %339, %341, %cst_284 {dimension_numbers = #tpu.dot_dimension_numbers<[1], [0], [0], [1], [0, 0, 1, 1], [], []>} : vector<224x16xf32>, vector<16x16xf32>, vector<224x16xf32> -> vector<224x16xf32>
    %343 = arith.addf %338, %342 : vector<224x16xf32>
    %c48_285 = arith.constant 48 : index
    %c0_286 = arith.constant 0 : index
    %344 = vector.load %arg14[%c48_285, %c0_286] : memref<320x16xf32, #tpu.memory_space<vmem>>, vector<224x16xf32>
    %c4_287 = arith.constant 4 : index
    %c0_288 = arith.constant 0 : index
    %c0_289 = arith.constant 0 : index
    %345 = vector.load %arg6[%c4_287, %c0_288, %c0_289] : memref<9x16x16xf32, #tpu.memory_space<vmem>>, vector<1x16x16xf32>
    %346 = vector.shape_cast %345 : vector<1x16x16xf32> to vector<16x16xf32>
    %cst_290 = arith.constant dense<0.000000e+00> : vector<224x16xf32>
    %347 = tpu.matmul %344, %346, %cst_290 {dimension_numbers = #tpu.dot_dimension_numbers<[1], [0], [0], [1], [0, 0, 1, 1], [], []>} : vector<224x16xf32>, vector<16x16xf32>, vector<224x16xf32> -> vector<224x16xf32>
    %348 = arith.addf %343, %347 : vector<224x16xf32>
    %c50 = arith.constant 50 : index
    %c0_291 = arith.constant 0 : index
    %349 = vector.load %arg14[%c50, %c0_291] : memref<320x16xf32, #tpu.memory_space<vmem>>, vector<224x16xf32>
    %c5_292 = arith.constant 5 : index
    %c0_293 = arith.constant 0 : index
    %c0_294 = arith.constant 0 : index
    %350 = vector.load %arg6[%c5_292, %c0_293, %c0_294] : memref<9x16x16xf32, #tpu.memory_space<vmem>>, vector<1x16x16xf32>
    %351 = vector.shape_cast %350 : vector<1x16x16xf32> to vector<16x16xf32>
    %cst_295 = arith.constant dense<0.000000e+00> : vector<224x16xf32>
    %352 = tpu.matmul %349, %351, %cst_295 {dimension_numbers = #tpu.dot_dimension_numbers<[1], [0], [0], [1], [0, 0, 1, 1], [], []>} : vector<224x16xf32>, vector<16x16xf32>, vector<224x16xf32> -> vector<224x16xf32>
    %353 = arith.addf %348, %352 : vector<224x16xf32>
    %c78 = arith.constant 78 : index
    %c0_296 = arith.constant 0 : index
    %354 = vector.load %arg14[%c78, %c0_296] : memref<320x16xf32, #tpu.memory_space<vmem>>, vector<224x16xf32>
    %c6_297 = arith.constant 6 : index
    %c0_298 = arith.constant 0 : index
    %c0_299 = arith.constant 0 : index
    %355 = vector.load %arg6[%c6_297, %c0_298, %c0_299] : memref<9x16x16xf32, #tpu.memory_space<vmem>>, vector<1x16x16xf32>
    %356 = vector.shape_cast %355 : vector<1x16x16xf32> to vector<16x16xf32>
    %cst_300 = arith.constant dense<0.000000e+00> : vector<224x16xf32>
    %357 = tpu.matmul %354, %356, %cst_300 {dimension_numbers = #tpu.dot_dimension_numbers<[1], [0], [0], [1], [0, 0, 1, 1], [], []>} : vector<224x16xf32>, vector<16x16xf32>, vector<224x16xf32> -> vector<224x16xf32>
    %358 = arith.addf %353, %357 : vector<224x16xf32>
    %c80 = arith.constant 80 : index
    %c0_301 = arith.constant 0 : index
    %359 = vector.load %arg14[%c80, %c0_301] : memref<320x16xf32, #tpu.memory_space<vmem>>, vector<224x16xf32>
    %c7_302 = arith.constant 7 : index
    %c0_303 = arith.constant 0 : index
    %c0_304 = arith.constant 0 : index
    %360 = vector.load %arg6[%c7_302, %c0_303, %c0_304] : memref<9x16x16xf32, #tpu.memory_space<vmem>>, vector<1x16x16xf32>
    %361 = vector.shape_cast %360 : vector<1x16x16xf32> to vector<16x16xf32>
    %cst_305 = arith.constant dense<0.000000e+00> : vector<224x16xf32>
    %362 = tpu.matmul %359, %361, %cst_305 {dimension_numbers = #tpu.dot_dimension_numbers<[1], [0], [0], [1], [0, 0, 1, 1], [], []>} : vector<224x16xf32>, vector<16x16xf32>, vector<224x16xf32> -> vector<224x16xf32>
    %363 = arith.addf %358, %362 : vector<224x16xf32>
    %c82 = arith.constant 82 : index
    %c0_306 = arith.constant 0 : index
    %364 = vector.load %arg14[%c82, %c0_306] : memref<320x16xf32, #tpu.memory_space<vmem>>, vector<224x16xf32>
    %c8_307 = arith.constant 8 : index
    %c0_308 = arith.constant 0 : index
    %c0_309 = arith.constant 0 : index
    %365 = vector.load %arg6[%c8_307, %c0_308, %c0_309] : memref<9x16x16xf32, #tpu.memory_space<vmem>>, vector<1x16x16xf32>
    %366 = vector.shape_cast %365 : vector<1x16x16xf32> to vector<16x16xf32>
    %cst_310 = arith.constant dense<0.000000e+00> : vector<224x16xf32>
    %367 = tpu.matmul %364, %366, %cst_310 {dimension_numbers = #tpu.dot_dimension_numbers<[1], [0], [0], [1], [0, 0, 1, 1], [], []>} : vector<224x16xf32>, vector<16x16xf32>, vector<224x16xf32> -> vector<224x16xf32>
    %368 = arith.addf %363, %367 : vector<224x16xf32>
    %c32_311 = arith.constant 32 : index
    %c0_312 = arith.constant 0 : index
    %369 = vector.load %arg13[%c32_311, %c0_312] : memref<288x8xf32, #tpu.memory_space<vmem>>, vector<224x8xf32>
    %c0_313 = arith.constant 0 : index
    %c0_314 = arith.constant 0 : index
    %370 = vector.load %arg7[%c0_313, %c0_314] : memref<8x16xf32, #tpu.memory_space<vmem>>, vector<8x16xf32>
    %cst_315 = arith.constant dense<0.000000e+00> : vector<224x16xf32>
    %371 = tpu.matmul %369, %370, %cst_315 {dimension_numbers = #tpu.dot_dimension_numbers<[1], [0], [0], [1], [0, 0, 1, 1], [], []>} : vector<224x8xf32>, vector<8x16xf32>, vector<224x16xf32> -> vector<224x16xf32>
    %372 = arith.addf %368, %371 : vector<224x16xf32>
    %cst_316 = arith.constant 0.000000e+00 : f32
    %373 = vector.broadcast %cst_316 : f32 to vector<224x16xf32>
    %374 = arith.select %59, %372, %373 : vector<224x16xi1>, vector<224x16xf32>
    %c48_317 = arith.constant 48 : index
    %c0_318 = arith.constant 0 : index
    %375 = vector.load %arg14[%c48_317, %c0_318] : memref<320x16xf32, #tpu.memory_space<vmem>>, vector<224x16xf32>
    tpu.vector_store %arg14[%c48_317, %c0_318], %374 {strides = array<i32>} : memref<320x16xf32, #tpu.memory_space<vmem>>, vector<224x16xf32>,
    %c14_319 = arith.constant 14 : index
    %c0_320 = arith.constant 0 : index
    %376 = vector.load %arg14[%c14_319, %c0_320] : memref<320x16xf32, #tpu.memory_space<vmem>>, vector<224x16xf32>
    %cst_321 = arith.constant 0.000000e+00 : f32
    %377 = vector.broadcast %cst_321 : f32 to vector<224x16xf32>
    %378 = arith.maximumf %376, %377 : vector<224x16xf32>
    %c0_322 = arith.constant 0 : index
    %c0_323 = arith.constant 0 : index
    %c0_324 = arith.constant 0 : index
    %379 = vector.load %arg8[%c0_322, %c0_323, %c0_324] : memref<9x16x32xf32, #tpu.memory_space<vmem>>, vector<1x16x32xf32>
    %380 = vector.shape_cast %379 : vector<1x16x32xf32> to vector<16x32xf32>
    %cst_325 = arith.constant dense<0.000000e+00> : vector<224x32xf32>
    %381 = tpu.matmul %378, %380, %cst_325 {dimension_numbers = #tpu.dot_dimension_numbers<[1], [0], [0], [1], [0, 0, 1, 1], [], []>} : vector<224x16xf32>, vector<16x32xf32>, vector<224x32xf32> -> vector<224x32xf32>
    %c16_326 = arith.constant 16 : index
    %c0_327 = arith.constant 0 : index
    %382 = vector.load %arg14[%c16_326, %c0_327] : memref<320x16xf32, #tpu.memory_space<vmem>>, vector<224x16xf32>
    %cst_328 = arith.constant 0.000000e+00 : f32
    %383 = vector.broadcast %cst_328 : f32 to vector<224x16xf32>
    %384 = arith.maximumf %382, %383 : vector<224x16xf32>
    %c1_329 = arith.constant 1 : index
    %c0_330 = arith.constant 0 : index
    %c0_331 = arith.constant 0 : index
    %385 = vector.load %arg8[%c1_329, %c0_330, %c0_331] : memref<9x16x32xf32, #tpu.memory_space<vmem>>, vector<1x16x32xf32>
    %386 = vector.shape_cast %385 : vector<1x16x32xf32> to vector<16x32xf32>
    %cst_332 = arith.constant dense<0.000000e+00> : vector<224x32xf32>
    %387 = tpu.matmul %384, %386, %cst_332 {dimension_numbers = #tpu.dot_dimension_numbers<[1], [0], [0], [1], [0, 0, 1, 1], [], []>} : vector<224x16xf32>, vector<16x32xf32>, vector<224x32xf32> -> vector<224x32xf32>
    %388 = arith.addf %381, %387 : vector<224x32xf32>
    %c18_333 = arith.constant 18 : index
    %c0_334 = arith.constant 0 : index
    %389 = vector.load %arg14[%c18_333, %c0_334] : memref<320x16xf32, #tpu.memory_space<vmem>>, vector<224x16xf32>
    %cst_335 = arith.constant 0.000000e+00 : f32
    %390 = vector.broadcast %cst_335 : f32 to vector<224x16xf32>
    %391 = arith.maximumf %389, %390 : vector<224x16xf32>
    %c2_336 = arith.constant 2 : index
    %c0_337 = arith.constant 0 : index
    %c0_338 = arith.constant 0 : index
    %392 = vector.load %arg8[%c2_336, %c0_337, %c0_338] : memref<9x16x32xf32, #tpu.memory_space<vmem>>, vector<1x16x32xf32>
    %393 = vector.shape_cast %392 : vector<1x16x32xf32> to vector<16x32xf32>
    %cst_339 = arith.constant dense<0.000000e+00> : vector<224x32xf32>
    %394 = tpu.matmul %391, %393, %cst_339 {dimension_numbers = #tpu.dot_dimension_numbers<[1], [0], [0], [1], [0, 0, 1, 1], [], []>} : vector<224x16xf32>, vector<16x32xf32>, vector<224x32xf32> -> vector<224x32xf32>
    %395 = arith.addf %388, %394 : vector<224x32xf32>
    %c46_340 = arith.constant 46 : index
    %c0_341 = arith.constant 0 : index
    %396 = vector.load %arg14[%c46_340, %c0_341] : memref<320x16xf32, #tpu.memory_space<vmem>>, vector<224x16xf32>
    %cst_342 = arith.constant 0.000000e+00 : f32
    %397 = vector.broadcast %cst_342 : f32 to vector<224x16xf32>
    %398 = arith.maximumf %396, %397 : vector<224x16xf32>
    %c3_343 = arith.constant 3 : index
    %c0_344 = arith.constant 0 : index
    %c0_345 = arith.constant 0 : index
    %399 = vector.load %arg8[%c3_343, %c0_344, %c0_345] : memref<9x16x32xf32, #tpu.memory_space<vmem>>, vector<1x16x32xf32>
    %400 = vector.shape_cast %399 : vector<1x16x32xf32> to vector<16x32xf32>
    %cst_346 = arith.constant dense<0.000000e+00> : vector<224x32xf32>
    %401 = tpu.matmul %398, %400, %cst_346 {dimension_numbers = #tpu.dot_dimension_numbers<[1], [0], [0], [1], [0, 0, 1, 1], [], []>} : vector<224x16xf32>, vector<16x32xf32>, vector<224x32xf32> -> vector<224x32xf32>
    %402 = arith.addf %395, %401 : vector<224x32xf32>
    %c48_347 = arith.constant 48 : index
    %c0_348 = arith.constant 0 : index
    %403 = vector.load %arg14[%c48_347, %c0_348] : memref<320x16xf32, #tpu.memory_space<vmem>>, vector<224x16xf32>
    %cst_349 = arith.constant 0.000000e+00 : f32
    %404 = vector.broadcast %cst_349 : f32 to vector<224x16xf32>
    %405 = arith.maximumf %403, %404 : vector<224x16xf32>
    %c4_350 = arith.constant 4 : index
    %c0_351 = arith.constant 0 : index
    %c0_352 = arith.constant 0 : index
    %406 = vector.load %arg8[%c4_350, %c0_351, %c0_352] : memref<9x16x32xf32, #tpu.memory_space<vmem>>, vector<1x16x32xf32>
    %407 = vector.shape_cast %406 : vector<1x16x32xf32> to vector<16x32xf32>
    %cst_353 = arith.constant dense<0.000000e+00> : vector<224x32xf32>
    %408 = tpu.matmul %405, %407, %cst_353 {dimension_numbers = #tpu.dot_dimension_numbers<[1], [0], [0], [1], [0, 0, 1, 1], [], []>} : vector<224x16xf32>, vector<16x32xf32>, vector<224x32xf32> -> vector<224x32xf32>
    %409 = arith.addf %402, %408 : vector<224x32xf32>
    %c50_354 = arith.constant 50 : index
    %c0_355 = arith.constant 0 : index
    %410 = vector.load %arg14[%c50_354, %c0_355] : memref<320x16xf32, #tpu.memory_space<vmem>>, vector<224x16xf32>
    %cst_356 = arith.constant 0.000000e+00 : f32
    %411 = vector.broadcast %cst_356 : f32 to vector<224x16xf32>
    %412 = arith.maximumf %410, %411 : vector<224x16xf32>
    %c5_357 = arith.constant 5 : index
    %c0_358 = arith.constant 0 : index
    %c0_359 = arith.constant 0 : index
    %413 = vector.load %arg8[%c5_357, %c0_358, %c0_359] : memref<9x16x32xf32, #tpu.memory_space<vmem>>, vector<1x16x32xf32>
    %414 = vector.shape_cast %413 : vector<1x16x32xf32> to vector<16x32xf32>
    %cst_360 = arith.constant dense<0.000000e+00> : vector<224x32xf32>
    %415 = tpu.matmul %412, %414, %cst_360 {dimension_numbers = #tpu.dot_dimension_numbers<[1], [0], [0], [1], [0, 0, 1, 1], [], []>} : vector<224x16xf32>, vector<16x32xf32>, vector<224x32xf32> -> vector<224x32xf32>
    %416 = arith.addf %409, %415 : vector<224x32xf32>
    %c78_361 = arith.constant 78 : index
    %c0_362 = arith.constant 0 : index
    %417 = vector.load %arg14[%c78_361, %c0_362] : memref<320x16xf32, #tpu.memory_space<vmem>>, vector<224x16xf32>
    %cst_363 = arith.constant 0.000000e+00 : f32
    %418 = vector.broadcast %cst_363 : f32 to vector<224x16xf32>
    %419 = arith.maximumf %417, %418 : vector<224x16xf32>
    %c6_364 = arith.constant 6 : index
    %c0_365 = arith.constant 0 : index
    %c0_366 = arith.constant 0 : index
    %420 = vector.load %arg8[%c6_364, %c0_365, %c0_366] : memref<9x16x32xf32, #tpu.memory_space<vmem>>, vector<1x16x32xf32>
    %421 = vector.shape_cast %420 : vector<1x16x32xf32> to vector<16x32xf32>
    %cst_367 = arith.constant dense<0.000000e+00> : vector<224x32xf32>
    %422 = tpu.matmul %419, %421, %cst_367 {dimension_numbers = #tpu.dot_dimension_numbers<[1], [0], [0], [1], [0, 0, 1, 1], [], []>} : vector<224x16xf32>, vector<16x32xf32>, vector<224x32xf32> -> vector<224x32xf32>
    %423 = arith.addf %416, %422 : vector<224x32xf32>
    %c80_368 = arith.constant 80 : index
    %c0_369 = arith.constant 0 : index
    %424 = vector.load %arg14[%c80_368, %c0_369] : memref<320x16xf32, #tpu.memory_space<vmem>>, vector<224x16xf32>
    %cst_370 = arith.constant 0.000000e+00 : f32
    %425 = vector.broadcast %cst_370 : f32 to vector<224x16xf32>
    %426 = arith.maximumf %424, %425 : vector<224x16xf32>
    %c7_371 = arith.constant 7 : index
    %c0_372 = arith.constant 0 : index
    %c0_373 = arith.constant 0 : index
    %427 = vector.load %arg8[%c7_371, %c0_372, %c0_373] : memref<9x16x32xf32, #tpu.memory_space<vmem>>, vector<1x16x32xf32>
    %428 = vector.shape_cast %427 : vector<1x16x32xf32> to vector<16x32xf32>
    %cst_374 = arith.constant dense<0.000000e+00> : vector<224x32xf32>
    %429 = tpu.matmul %426, %428, %cst_374 {dimension_numbers = #tpu.dot_dimension_numbers<[1], [0], [0], [1], [0, 0, 1, 1], [], []>} : vector<224x16xf32>, vector<16x32xf32>, vector<224x32xf32> -> vector<224x32xf32>
    %430 = arith.addf %423, %429 : vector<224x32xf32>
    %c82_375 = arith.constant 82 : index
    %c0_376 = arith.constant 0 : index
    %431 = vector.load %arg14[%c82_375, %c0_376] : memref<320x16xf32, #tpu.memory_space<vmem>>, vector<224x16xf32>
    %cst_377 = arith.constant 0.000000e+00 : f32
    %432 = vector.broadcast %cst_377 : f32 to vector<224x16xf32>
    %433 = arith.maximumf %431, %432 : vector<224x16xf32>
    %c8_378 = arith.constant 8 : index
    %c0_379 = arith.constant 0 : index
    %c0_380 = arith.constant 0 : index
    %434 = vector.load %arg8[%c8_378, %c0_379, %c0_380] : memref<9x16x32xf32, #tpu.memory_space<vmem>>, vector<1x16x32xf32>
    %435 = vector.shape_cast %434 : vector<1x16x32xf32> to vector<16x32xf32>
    %cst_381 = arith.constant dense<0.000000e+00> : vector<224x32xf32>
    %436 = tpu.matmul %433, %435, %cst_381 {dimension_numbers = #tpu.dot_dimension_numbers<[1], [0], [0], [1], [0, 0, 1, 1], [], []>} : vector<224x16xf32>, vector<16x32xf32>, vector<224x32xf32> -> vector<224x32xf32>
    %437 = arith.addf %430, %436 : vector<224x32xf32>
    %cst_382 = arith.constant 0.000000e+00 : f32
    %438 = vector.broadcast %cst_382 : f32 to vector<224x32xf32>
    %439 = arith.maximumf %437, %438 : vector<224x32xf32>
    %cst_383 = arith.constant 0.000000e+00 : f32
    %440 = vector.broadcast %cst_383 : f32 to vector<224x32xf32>
    %441 = arith.select %97, %439, %440 : vector<224x32xi1>, vector<224x32xf32>
    %c80_384 = arith.constant 80 : index
    %c0_385 = arith.constant 0 : index
    %442 = vector.load %arg15[%c80_384, %c0_385] : memref<384x32xf32, #tpu.memory_space<vmem>>, vector<224x32xf32>
    tpu.vector_store %arg15[%c80_384, %c0_385], %441 {strides = array<i32>} : memref<384x32xf32, #tpu.memory_space<vmem>>, vector<224x32xf32>,
    %c12 = arith.constant 12 : index
    %c0_386 = arith.constant 0 : index
    %443 = vector.load %arg15[%c12, %c0_386] : memref<384x32xf32, #tpu.memory_space<vmem>>, vector<224x32xf32>
    %c0_387 = arith.constant 0 : index
    %c0_388 = arith.constant 0 : index
    %c0_389 = arith.constant 0 : index
    %444 = vector.load %arg9[%c0_387, %c0_388, %c0_389] : memref<9x32x32xf32, #tpu.memory_space<vmem>>, vector<1x32x32xf32>
    %445 = vector.shape_cast %444 : vector<1x32x32xf32> to vector<32x32xf32>
    %cst_390 = arith.constant dense<0.000000e+00> : vector<224x32xf32>
    %446 = tpu.matmul %443, %445, %cst_390 {dimension_numbers = #tpu.dot_dimension_numbers<[1], [0], [0], [1], [0, 0, 1, 1], [], []>} : vector<224x32xf32>, vector<32x32xf32>, vector<224x32xf32> -> vector<224x32xf32>
    %c16_391 = arith.constant 16 : index
    %c0_392 = arith.constant 0 : index
    %447 = vector.load %arg15[%c16_391, %c0_392] : memref<384x32xf32, #tpu.memory_space<vmem>>, vector<224x32xf32>
    %c1_393 = arith.constant 1 : index
    %c0_394 = arith.constant 0 : index
    %c0_395 = arith.constant 0 : index
    %448 = vector.load %arg9[%c1_393, %c0_394, %c0_395] : memref<9x32x32xf32, #tpu.memory_space<vmem>>, vector<1x32x32xf32>
    %449 = vector.shape_cast %448 : vector<1x32x32xf32> to vector<32x32xf32>
    %cst_396 = arith.constant dense<0.000000e+00> : vector<224x32xf32>
    %450 = tpu.matmul %447, %449, %cst_396 {dimension_numbers = #tpu.dot_dimension_numbers<[1], [0], [0], [1], [0, 0, 1, 1], [], []>} : vector<224x32xf32>, vector<32x32xf32>, vector<224x32xf32> -> vector<224x32xf32>
    %451 = arith.addf %446, %450 : vector<224x32xf32>
    %c20 = arith.constant 20 : index
    %c0_397 = arith.constant 0 : index
    %452 = vector.load %arg15[%c20, %c0_397] : memref<384x32xf32, #tpu.memory_space<vmem>>, vector<224x32xf32>
    %c2_398 = arith.constant 2 : index
    %c0_399 = arith.constant 0 : index
    %c0_400 = arith.constant 0 : index
    %453 = vector.load %arg9[%c2_398, %c0_399, %c0_400] : memref<9x32x32xf32, #tpu.memory_space<vmem>>, vector<1x32x32xf32>
    %454 = vector.shape_cast %453 : vector<1x32x32xf32> to vector<32x32xf32>
    %cst_401 = arith.constant dense<0.000000e+00> : vector<224x32xf32>
    %455 = tpu.matmul %452, %454, %cst_401 {dimension_numbers = #tpu.dot_dimension_numbers<[1], [0], [0], [1], [0, 0, 1, 1], [], []>} : vector<224x32xf32>, vector<32x32xf32>, vector<224x32xf32> -> vector<224x32xf32>
    %456 = arith.addf %451, %455 : vector<224x32xf32>
    %c76 = arith.constant 76 : index
    %c0_402 = arith.constant 0 : index
    %457 = vector.load %arg15[%c76, %c0_402] : memref<384x32xf32, #tpu.memory_space<vmem>>, vector<224x32xf32>
    %c3_403 = arith.constant 3 : index
    %c0_404 = arith.constant 0 : index
    %c0_405 = arith.constant 0 : index
    %458 = vector.load %arg9[%c3_403, %c0_404, %c0_405] : memref<9x32x32xf32, #tpu.memory_space<vmem>>, vector<1x32x32xf32>
    %459 = vector.shape_cast %458 : vector<1x32x32xf32> to vector<32x32xf32>
    %cst_406 = arith.constant dense<0.000000e+00> : vector<224x32xf32>
    %460 = tpu.matmul %457, %459, %cst_406 {dimension_numbers = #tpu.dot_dimension_numbers<[1], [0], [0], [1], [0, 0, 1, 1], [], []>} : vector<224x32xf32>, vector<32x32xf32>, vector<224x32xf32> -> vector<224x32xf32>
    %461 = arith.addf %456, %460 : vector<224x32xf32>
    %c80_407 = arith.constant 80 : index
    %c0_408 = arith.constant 0 : index
    %462 = vector.load %arg15[%c80_407, %c0_408] : memref<384x32xf32, #tpu.memory_space<vmem>>, vector<224x32xf32>
    %c4_409 = arith.constant 4 : index
    %c0_410 = arith.constant 0 : index
    %c0_411 = arith.constant 0 : index
    %463 = vector.load %arg9[%c4_409, %c0_410, %c0_411] : memref<9x32x32xf32, #tpu.memory_space<vmem>>, vector<1x32x32xf32>
    %464 = vector.shape_cast %463 : vector<1x32x32xf32> to vector<32x32xf32>
    %cst_412 = arith.constant dense<0.000000e+00> : vector<224x32xf32>
    %465 = tpu.matmul %462, %464, %cst_412 {dimension_numbers = #tpu.dot_dimension_numbers<[1], [0], [0], [1], [0, 0, 1, 1], [], []>} : vector<224x32xf32>, vector<32x32xf32>, vector<224x32xf32> -> vector<224x32xf32>
    %466 = arith.addf %461, %465 : vector<224x32xf32>
    %c84 = arith.constant 84 : index
    %c0_413 = arith.constant 0 : index
    %467 = vector.load %arg15[%c84, %c0_413] : memref<384x32xf32, #tpu.memory_space<vmem>>, vector<224x32xf32>
    %c5_414 = arith.constant 5 : index
    %c0_415 = arith.constant 0 : index
    %c0_416 = arith.constant 0 : index
    %468 = vector.load %arg9[%c5_414, %c0_415, %c0_416] : memref<9x32x32xf32, #tpu.memory_space<vmem>>, vector<1x32x32xf32>
    %469 = vector.shape_cast %468 : vector<1x32x32xf32> to vector<32x32xf32>
    %cst_417 = arith.constant dense<0.000000e+00> : vector<224x32xf32>
    %470 = tpu.matmul %467, %469, %cst_417 {dimension_numbers = #tpu.dot_dimension_numbers<[1], [0], [0], [1], [0, 0, 1, 1], [], []>} : vector<224x32xf32>, vector<32x32xf32>, vector<224x32xf32> -> vector<224x32xf32>
    %471 = arith.addf %466, %470 : vector<224x32xf32>
    %c140 = arith.constant 140 : index
    %c0_418 = arith.constant 0 : index
    %472 = vector.load %arg15[%c140, %c0_418] : memref<384x32xf32, #tpu.memory_space<vmem>>, vector<224x32xf32>
    %c6_419 = arith.constant 6 : index
    %c0_420 = arith.constant 0 : index
    %c0_421 = arith.constant 0 : index
    %473 = vector.load %arg9[%c6_419, %c0_420, %c0_421] : memref<9x32x32xf32, #tpu.memory_space<vmem>>, vector<1x32x32xf32>
    %474 = vector.shape_cast %473 : vector<1x32x32xf32> to vector<32x32xf32>
    %cst_422 = arith.constant dense<0.000000e+00> : vector<224x32xf32>
    %475 = tpu.matmul %472, %474, %cst_422 {dimension_numbers = #tpu.dot_dimension_numbers<[1], [0], [0], [1], [0, 0, 1, 1], [], []>} : vector<224x32xf32>, vector<32x32xf32>, vector<224x32xf32> -> vector<224x32xf32>
    %476 = arith.addf %471, %475 : vector<224x32xf32>
    %c144 = arith.constant 144 : index
    %c0_423 = arith.constant 0 : index
    %477 = vector.load %arg15[%c144, %c0_423] : memref<384x32xf32, #tpu.memory_space<vmem>>, vector<224x32xf32>
    %c7_424 = arith.constant 7 : index
    %c0_425 = arith.constant 0 : index
    %c0_426 = arith.constant 0 : index
    %478 = vector.load %arg9[%c7_424, %c0_425, %c0_426] : memref<9x32x32xf32, #tpu.memory_space<vmem>>, vector<1x32x32xf32>
    %479 = vector.shape_cast %478 : vector<1x32x32xf32> to vector<32x32xf32>
    %cst_427 = arith.constant dense<0.000000e+00> : vector<224x32xf32>
    %480 = tpu.matmul %477, %479, %cst_427 {dimension_numbers = #tpu.dot_dimension_numbers<[1], [0], [0], [1], [0, 0, 1, 1], [], []>} : vector<224x32xf32>, vector<32x32xf32>, vector<224x32xf32> -> vector<224x32xf32>
    %481 = arith.addf %476, %480 : vector<224x32xf32>
    %c148 = arith.constant 148 : index
    %c0_428 = arith.constant 0 : index
    %482 = vector.load %arg15[%c148, %c0_428] : memref<384x32xf32, #tpu.memory_space<vmem>>, vector<224x32xf32>
    %c8_429 = arith.constant 8 : index
    %c0_430 = arith.constant 0 : index
    %c0_431 = arith.constant 0 : index
    %483 = vector.load %arg9[%c8_429, %c0_430, %c0_431] : memref<9x32x32xf32, #tpu.memory_space<vmem>>, vector<1x32x32xf32>
    %484 = vector.shape_cast %483 : vector<1x32x32xf32> to vector<32x32xf32>
    %cst_432 = arith.constant dense<0.000000e+00> : vector<224x32xf32>
    %485 = tpu.matmul %482, %484, %cst_432 {dimension_numbers = #tpu.dot_dimension_numbers<[1], [0], [0], [1], [0, 0, 1, 1], [], []>} : vector<224x32xf32>, vector<32x32xf32>, vector<224x32xf32> -> vector<224x32xf32>
    %486 = arith.addf %481, %485 : vector<224x32xf32>
    %c48_433 = arith.constant 48 : index
    %c0_434 = arith.constant 0 : index
    %487 = vector.load %arg14[%c48_433, %c0_434] : memref<320x16xf32, #tpu.memory_space<vmem>>, vector<224x16xf32>
    %c0_435 = arith.constant 0 : index
    %c0_436 = arith.constant 0 : index
    %488 = vector.load %arg10[%c0_435, %c0_436] : memref<16x32xf32, #tpu.memory_space<vmem>>, vector<16x32xf32>
    %cst_437 = arith.constant dense<0.000000e+00> : vector<224x32xf32>
    %489 = tpu.matmul %487, %488, %cst_437 {dimension_numbers = #tpu.dot_dimension_numbers<[1], [0], [0], [1], [0, 0, 1, 1], [], []>} : vector<224x16xf32>, vector<16x32xf32>, vector<224x32xf32> -> vector<224x32xf32>
    %490 = arith.addf %486, %489 : vector<224x32xf32>
    %c0_438 = arith.constant 0 : index
    %c0_439 = arith.constant 0 : index
    %c0_440 = arith.constant 0 : index
    %491 = vector.load %arg12[%c0_438, %c0_439, %c0_440] : memref<1x224x32xf32, #tpu.memory_space<vmem>>, vector<1x224x32xf32>
    %492 = vector.shape_cast %491 : vector<1x224x32xf32> to vector<224x32xf32>
    %493 = vector.shape_cast %490 : vector<224x32xf32> to vector<1x224x32xf32>
    tpu.vector_store %arg12[%c0_438, %c0_439, %c0_440], %493 {strides = array<i32>} : memref<1x224x32xf32, #tpu.memory_space<vmem>>, vector<1x224x32xf32>,
    return
  }
  func.func @transform_0(%arg0: i32) -> (i32, i32, i32) {
    %c0_i32 = arith.constant 0 : i32
    %c0_i32_0 = arith.constant 0 : i32
    %c0_i32_1 = arith.constant 0 : i32
    return %arg0, %c0_i32, %c0_i32_0 : i32, i32, i32
  }
  func.func @transform_1(%arg0: i32) -> (i32, i32, i32) {
    %c0_i32 = arith.constant 0 : i32
    %c0_i32_0 = arith.constant 0 : i32
    %c0_i32_1 = arith.constant 0 : i32
    %c0_i32_2 = arith.constant 0 : i32
    return %c0_i32, %c0_i32_0, %c0_i32_1 : i32, i32, i32
  }
  func.func @transform_2(%arg0: i32) -> (i32, i32, i32) {
    %c0_i32 = arith.constant 0 : i32
    %c0_i32_0 = arith.constant 0 : i32
    %c0_i32_1 = arith.constant 0 : i32
    %c0_i32_2 = arith.constant 0 : i32
    return %c0_i32, %c0_i32_0, %c0_i32_1 : i32, i32, i32
  }
  func.func @transform_3(%arg0: i32) -> (i32, i32, i32) {
    %c0_i32 = arith.constant 0 : i32
    %c0_i32_0 = arith.constant 0 : i32
    %c0_i32_1 = arith.constant 0 : i32
    %c0_i32_2 = arith.constant 0 : i32
    return %c0_i32, %c0_i32_0, %c0_i32_1 : i32, i32, i32
  }
  func.func @transform_4(%arg0: i32) -> (i32, i32, i32) {
    %c0_i32 = arith.constant 0 : i32
    %c0_i32_0 = arith.constant 0 : i32
    %c0_i32_1 = arith.constant 0 : i32
    %c0_i32_2 = arith.constant 0 : i32
    return %c0_i32, %c0_i32_0, %c0_i32_1 : i32, i32, i32
  }
  func.func @transform_5(%arg0: i32) -> (i32, i32, i32) {
    %c0_i32 = arith.constant 0 : i32
    %c0_i32_0 = arith.constant 0 : i32
    %c0_i32_1 = arith.constant 0 : i32
    %c0_i32_2 = arith.constant 0 : i32
    return %c0_i32, %c0_i32_0, %c0_i32_1 : i32, i32, i32
  }
  func.func @transform_6(%arg0: i32) -> (i32, i32) {
    %c0_i32 = arith.constant 0 : i32
    %c0_i32_0 = arith.constant 0 : i32
    %c0_i32_1 = arith.constant 0 : i32
    return %c0_i32, %c0_i32_0 : i32, i32
  }
  func.func @transform_7(%arg0: i32) -> (i32, i32, i32) {
    %c0_i32 = arith.constant 0 : i32
    %c0_i32_0 = arith.constant 0 : i32
    %c0_i32_1 = arith.constant 0 : i32
    %c0_i32_2 = arith.constant 0 : i32
    return %c0_i32, %c0_i32_0, %c0_i32_1 : i32, i32, i32
  }
  func.func @transform_8(%arg0: i32) -> (i32, i32, i32) {
    %c0_i32 = arith.constant 0 : i32
    %c0_i32_0 = arith.constant 0 : i32
    %c0_i32_1 = arith.constant 0 : i32
    %c0_i32_2 = arith.constant 0 : i32
    return %c0_i32, %c0_i32_0, %c0_i32_1 : i32, i32, i32
  }
  func.func @transform_9(%arg0: i32) -> (i32, i32) {
    %c0_i32 = arith.constant 0 : i32
    %c0_i32_0 = arith.constant 0 : i32
    %c0_i32_1 = arith.constant 0 : i32
    return %c0_i32, %c0_i32_0 : i32, i32
  }
  func.func @transform_10(%arg0: i32) -> (i32, i32, i32) {
    %c0_i32 = arith.constant 0 : i32
    %c0_i32_0 = arith.constant 0 : i32
    %c0_i32_1 = arith.constant 0 : i32
    return %arg0, %c0_i32, %c0_i32_0 : i32, i32, i32
  }
  func.func @transform_11(%arg0: i32) -> (i32, i32, i32) {
    %c0_i32 = arith.constant 0 : i32
    %c0_i32_0 = arith.constant 0 : i32
    %c0_i32_1 = arith.constant 0 : i32
    return %arg0, %c0_i32, %c0_i32_0 : i32, i32, i32
  }
}

</mosaic_0001>

<bundles_post_ra>
// kernel: resnet_forward.1
= control target key start
LH: loop header
LB: loop body
LE: loop exit
PB: predicated region body
PF: predicated region fallthrough
CT: control target
= control target key end

     0   :  { %s34097_s17 = smov 0   ;;  %s40486_s0 = inlined_call_operand.vmem [shape: f32[2,264,3], index: 0, kind: input, shape index: {}]   ;;  %s40487_s1 = inlined_call_operand.vmem [shape: f32[9,3,8], index: 1, kind: input, shape index: {}]   ;;  %s40488_s2 = inlined_call_operand.vmem [shape: f32[9,8,8], index: 2, kind: input, shape index: {}]   ;;  %s40489_s3 = inlined_call_operand.vmem [shape: f32[9,8,8], index: 3, kind: input, shape index: {}]   ;;  %s40490_s4 = inlined_call_operand.vmem [shape: f32[9,8,16], index: 4, kind: input, shape index: {}]   ;;  %s40491_s5 = inlined_call_operand.vmem [shape: f32[9,16,16], index: 5, kind: input, shape index: {}]   ;;  %s40492_s6 = inlined_call_operand.vmem [shape: f32[8,16], index: 6, kind: input, shape index: {}]   ;;  %s40493_s7 = inlined_call_operand.vmem [shape: f32[9,16,32], index: 7, kind: input, shape index: {}]   ;;  %s40494_s8 = inlined_call_operand.vmem [shape: f32[9,32,32], index: 8, kind: input, shape index: {}]   ;;  %s40495_s9 = inlined_call_operand.vmem [shape: f32[16,32], index: 9, kind: input, shape index: {}]   ;;  %s40496_s10 = inlined_call_operand.vmem [shape: f32[2,224,8], index: 10, kind: output, shape index: {0}]   ;;  %s40497_s11 = inlined_call_operand.vmem [shape: f32[2,224,32], index: 11, kind: output, shape index: {1}]  }
   0x1 LB: > { %s25820_s18 = sadd.s32 4294967295, %s34033_s17   ;;  %p25824_p0 = scmp.ge.s32.totalorder %s34033_s17, 1  ;;  %s34033_s17 = sphi %s34097_s17, %s22_s17  }
   0x2   : > { %p340_p1 = scmp.lt.s32.totalorder %s34033_s17, 3 }
   0x4   : > { %p341_p2 = pnand %p25824_p0, %p340_p1 }
   0x6   : > { %344 = sbr.rel (%p341_p2) target bundleno = 4681 (0x1249), region = 60 }
   0xd   : > { %p385_p3 = scmp.lt.s32.totalorder %s25820_s18, 1  ;;  %p25828_p4 = scmp.ne.s32.totalorder %s25820_s18, 0 }
   0xe   : > { %vm404_vm0 = vcmask (!%p25828_p4), 64512   ;;  %vm441_vm1 = vcmask (!%p25828_p4), 130048   ;;  %vm482_vm2 = vcmask (!%p25828_p4), 261120   ;;  %v34035_v0 = vmov (!%p25828_p4), 0.0  }
   0xf   : > { %s386_s19 = scalar_select %p385_p3, %s25820_s18, 1 }
  0x10   : > { %403 = sbr.rel (%p25828_p4) target bundleno = 75 (0x4b), region = 64  ;;  %406 = vst.msk [vmem:[#allocation2 + $0x8] sm:$0xff] (!%p25828_p4), %vm404_vm0, %v34035_v0  ;;  %407 = vst.msk [vmem:[#allocation2 + $0x10] sm:$0xff] (!%p25828_p4), %vm404_vm0, %v34035_v0 }
  0x11   : > { %s34015_s20 = smul.u32 264, %s386_s19  ;;  %408 = vst.msk [vmem:[#allocation2 + $0x18] sm:$0xff] (!%p25828_p4), %vm404_vm0, %v34035_v0  ;;  %409 = vst.msk [vmem:[#allocation2 + $0x20] sm:$0xff] (!%p25828_p4), %vm404_vm0, %v34035_v0 }
  0x12   : > { %s34016_s21 = smul.u32 224, %s386_s19  ;;  %410 = vst.msk [vmem:[#allocation2 + $0x28] sm:$0xff] (!%p25828_p4), %vm404_vm0, %v34035_v0  ;;  %411 = vst.msk [vmem:[#allocation2 + $0x30] sm:$0xff] (!%p25828_p4), %vm404_vm0, %v34035_v0 }
  0x13   : > { %s34108_s24 = scalar_lea.vmem %s40486_s0, %s34015_s20  ;;  %412 = vst.msk [vmem:[#allocation2 + $0x38] sm:$0xff] (!%p25828_p4), %vm404_vm0, %v34035_v0  ;;  %413 = vst.msk [vmem:[#allocation2 + $0x40] sm:$0xff] (!%p25828_p4), %vm404_vm0, %v34035_v0 }
  0x14   : > { %s34113_s27 = scalar_lea.vmem %s40496_s10, %s34016_s21  ;;  %s34118_s30 = scalar_lea.vmem %s40497_s11, %s34016_s21  ;;  %414 = vst.msk [vmem:[#allocation2 + $0x48] sm:$0xff] (!%p25828_p4), %vm404_vm0, %v34035_v0  ;;  %415 = vst.msk [vmem:[#allocation2 + $0x50] sm:$0xff] (!%p25828_p4), %vm404_vm0, %v34035_v0 }
  0x15   : > { %416 = vst.msk [vmem:[#allocation2 + $0x58] sm:$0xff] (!%p25828_p4), %vm404_vm0, %v34035_v0  ;;  %417 = vst.msk [vmem:[#allocation2 + $0x60] sm:$0xff] (!%p25828_p4), %vm404_vm0, %v34035_v0 }
  0x16   : > { %418 = vst.msk [vmem:[#allocation2 + $0x68] sm:$0xff] (!%p25828_p4), %vm404_vm0, %v34035_v0  ;;  %419 = vst.msk [vmem:[#allocation2 + $0x70] sm:$0xff] (!%p25828_p4), %vm404_vm0, %v34035_v0 }
  0x17   : > { %420 = vst.msk [vmem:[#allocation2 + $0x78] sm:$0xff] %vm404_vm0, %v34035_v0  ;;  %421 = vst.msk [vmem:[#allocation2 + $0x80] sm:$0xff] %vm404_vm0, %v34035_v0 }
  0x18   : > { %422 = vst.msk [vmem:[#allocation2 + $0x88] sm:$0xff] %vm404_vm0, %v34035_v0  ;;  %423 = vst.msk [vmem:[#allocation2 + $0x90] sm:$0xff] %vm404_vm0, %v34035_v0 }
  0x19   : > { %424 = vst.msk [vmem:[#allocation2 + $0x98] sm:$0xff] %vm404_vm0, %v34035_v0  ;;  %425 = vst.msk [vmem:[#allocation2 + $0xa0] sm:$0xff] %vm404_vm0, %v34035_v0 }
  0x1a   : > { %426 = vst.msk [vmem:[#allocation2 + $0xa8] sm:$0xff] %vm404_vm0, %v34035_v0  ;;  %427 = vst.msk [vmem:[#allocation2 + $0xb0] sm:$0xff] %vm404_vm0, %v34035_v0 }
  0x1b   : > { %428 = vst.msk [vmem:[#allocation2 + $0xb8] sm:$0xff] %vm404_vm0, %v34035_v0  ;;  %429 = vst.msk [vmem:[#allocation2 + $0xc0] sm:$0xff] %vm404_vm0, %v34035_v0 }
  0x1c   : > { %430 = vst.msk [vmem:[#allocation2 + $0xc8] sm:$0xff] %vm404_vm0, %v34035_v0  ;;  %431 = vst.msk [vmem:[#allocation2 + $0xd0] sm:$0xff] %vm404_vm0, %v34035_v0 }
  0x1d   : > { %432 = vst.msk [vmem:[#allocation2 + $0xd8] sm:$0xff] %vm404_vm0, %v34035_v0  ;;  %433 = vst.msk [vmem:[#allocation2 + $0xe0] sm:$0xff] %vm404_vm0, %v34035_v0 }
  0x1e   : > { %434 = vst.msk [vmem:[#allocation2 + $0xe8] sm:$0xff] %vm404_vm0, %v34035_v0  ;;  %435 = vst.msk [vmem:[#allocation2 + $0xf0] sm:$0xff] %vm404_vm0, %v34035_v0 }
  0x1f   : > { %436 = vst.msk [vmem:[#allocation2 + $0xf8] sm:$0xff] %vm404_vm0, %v34035_v0  ;;  %437 = vst.msk [vmem:[#allocation2 + $0x100] sm:$0xff] %vm404_vm0, %v34035_v0 }
  0x20   : > { %438 = vst.msk [vmem:[#allocation2 + $0x108] sm:$0xff] %vm404_vm0, %v34035_v0  ;;  %439 = vst.msk [vmem:[#allocation2 + $0x110] sm:$0xff] %vm404_vm0, %v34035_v0 }
  0x21   : > { %443 = vst.msk [vmem:[#allocation3 + $0x8] sm:$0xff] %vm441_vm1, %v34035_v0  ;;  %444 = vst.msk [vmem:[#allocation3 + $0x10] sm:$0xff] %vm441_vm1, %v34035_v0 }
  0x22   : > { %445 = vst.msk [vmem:[#allocation3 + $0x18] sm:$0xff] %vm441_vm1, %v34035_v0  ;;  %446 = vst.msk [vmem:[#allocation3 + $0x20] sm:$0xff] %vm441_vm1, %v34035_v0 }
  0x23   : > { %447 = vst.msk [vmem:[#allocation3 + $0x28] sm:$0xff] %vm441_vm1, %v34035_v0  ;;  %448 = vst.msk [vmem:[#allocation3 + $0x30] sm:$0xff] %vm441_vm1, %v34035_v0 }
  0x24   : > { %449 = vst.msk [vmem:[#allocation3 + $0x38] sm:$0xff] %vm441_vm1, %v34035_v0  ;;  %450 = vst.msk [vmem:[#allocation3 + $0x40] sm:$0xff] %vm441_vm1, %v34035_v0 }
  0x25   : > { %451 = vst.msk [vmem:[#allocation3 + $0x48] sm:$0xff] %vm441_vm1, %v34035_v0  ;;  %452 = vst.msk [vmem:[#allocation3 + $0x50] sm:$0xff] %vm441_vm1, %v34035_v0 }
  0x26   : > { %453 = vst.msk [vmem:[#allocation3 + $0x58] sm:$0xff] %vm441_vm1, %v34035_v0  ;;  %454 = vst.msk [vmem:[#allocation3 + $0x60] sm:$0xff] %vm441_vm1, %v34035_v0 }
  0x27   : > { %455 = vst.msk [vmem:[#allocation3 + $0x68] sm:$0xff] %vm441_vm1, %v34035_v0  ;;  %456 = vst.msk [vmem:[#allocation3 + $0x70] sm:$0xff] %vm441_vm1, %v34035_v0 }
  0x28   : > { %457 = vst.msk [vmem:[#allocation3 + $0x78] sm:$0xff] %vm441_vm1, %v34035_v0  ;;  %458 = vst.msk [vmem:[#allocation3 + $0x80] sm:$0xff] %vm441_vm1, %v34035_v0 }
  0x29   : > { %459 = vst.msk [vmem:[#allocation3 + $0x88] sm:$0xff] %vm441_vm1, %v34035_v0  ;;  %460 = vst.msk [vmem:[#allocation3 + $0x90] sm:$0xff] %vm441_vm1, %v34035_v0 }
  0x2a   : > { %461 = vst.msk [vmem:[#allocation3 + $0x98] sm:$0xff] %vm441_vm1, %v34035_v0  ;;  %462 = vst.msk [vmem:[#allocation3 + $0xa0] sm:$0xff] %vm441_vm1, %v34035_v0 }
  0x2b   : > { %463 = vst.msk [vmem:[#allocation3 + $0xa8] sm:$0xff] %vm441_vm1, %v34035_v0  ;;  %464 = vst.msk [vmem:[#allocation3 + $0xb0] sm:$0xff] %vm441_vm1, %v34035_v0 }
  0x2c   : > { %465 = vst.msk [vmem:[#allocation3 + $0xb8] sm:$0xff] %vm441_vm1, %v34035_v0  ;;  %466 = vst.msk [vmem:[#allocation3 + $0xc0] sm:$0xff] %vm441_vm1, %v34035_v0 }
  0x2d   : > { %467 = vst.msk [vmem:[#allocation3 + $0xc8] sm:$0xff] %vm441_vm1, %v34035_v0  ;;  %468 = vst.msk [vmem:[#allocation3 + $0xd0] sm:$0xff] %vm441_vm1, %v34035_v0 }
  0x2e   : > { %469 = vst.msk [vmem:[#allocation3 + $0xd8] sm:$0xff] %vm441_vm1, %v34035_v0  ;;  %470 = vst.msk [vmem:[#allocation3 + $0xe0] sm:$0xff] %vm441_vm1, %v34035_v0 }
  0x2f   : > { %471 = vst.msk [vmem:[#allocation3 + $0xe8] sm:$0xff] %vm441_vm1, %v34035_v0  ;;  %472 = vst.msk [vmem:[#allocation3 + $0xf0] sm:$0xff] %vm441_vm1, %v34035_v0 }
  0x30   : > { %473 = vst.msk [vmem:[#allocation3 + $0xf8] sm:$0xff] %vm441_vm1, %v34035_v0  ;;  %474 = vst.msk [vmem:[#allocation3 + $0x100] sm:$0xff] %vm441_vm1, %v34035_v0 }
  0x31   : > { %475 = vst.msk [vmem:[#allocation3 + $0x108] sm:$0xff] %vm441_vm1, %v34035_v0  ;;  %476 = vst.msk [vmem:[#allocation3 + $0x110] sm:$0xff] %vm441_vm1, %v34035_v0 }
  0x32   : > { %477 = vst.msk [vmem:[#allocation3 + $0x118] sm:$0xff] %vm441_vm1, %v34035_v0  ;;  %478 = vst.msk [vmem:[#allocation3 + $0x120] sm:$0xff] %vm441_vm1, %v34035_v0 }
  0x33   : > { %479 = vst.msk [vmem:[#allocation3 + $0x128] sm:$0xff] %vm441_vm1, %v34035_v0  ;;  %480 = vst.msk [vmem:[#allocation3 + $0x130] sm:$0xff] %vm441_vm1, %v34035_v0 }
  0x34   : > { %484 = vst.msk [vmem:[#allocation4 + $0x8] sm:$0xff] %vm482_vm2, %v34035_v0  ;;  %485 = vst.msk [vmem:[#allocation4 + $0x10] sm:$0xff] %vm482_vm2, %v34035_v0 }
  0x35   : > { %486 = vst.msk [vmem:[#allocation4 + $0x18] sm:$0xff] %vm482_vm2, %v34035_v0  ;;  %487 = vst.msk [vmem:[#allocation4 + $0x20] sm:$0xff] %vm482_vm2, %v34035_v0 }
  0x36   : > { %488 = vst.msk [vmem:[#allocation4 + $0x28] sm:$0xff] %vm482_vm2, %v34035_v0  ;;  %489 = vst.msk [vmem:[#allocation4 + $0x30] sm:$0xff] %vm482_vm2, %v34035_v0 }
  0x37   : > { %490 = vst.msk [vmem:[#allocation4 + $0x38] sm:$0xff] %vm482_vm2, %v34035_v0  ;;  %491 = vst.msk [vmem:[#allocation4 + $0x40] sm:$0xff] %vm482_vm2, %v34035_v0 }
  0x38   : > { %492 = vst.msk [vmem:[#allocation4 + $0x48] sm:$0xff] %vm482_vm2, %v34035_v0  ;;  %493 = vst.msk [vmem:[#allocation4 + $0x50] sm:$0xff] %vm482_vm2, %v34035_v0 }
  0x39   : > { %494 = vst.msk [vmem:[#allocation4 + $0x58] sm:$0xff] %vm482_vm2, %v34035_v0  ;;  %495 = vst.msk [vmem:[#allocation4 + $0x60] sm:$0xff] %vm482_vm2, %v34035_v0 }
  0x3a   : > { %496 = vst.msk [vmem:[#allocation4 + $0x68] sm:$0xff] %vm482_vm2, %v34035_v0  ;;  %497 = vst.msk [vmem:[#allocation4 + $0x70] sm:$0xff] %vm482_vm2, %v34035_v0 }
  0x3b   : > { %498 = vst.msk [vmem:[#allocation4 + $0x78] sm:$0xff] %vm482_vm2, %v34035_v0  ;;  %499 = vst.msk [vmem:[#allocation4 + $0x80] sm:$0xff] %vm482_vm2, %v34035_v0 }
  0x3c   : > { %500 = vst.msk [vmem:[#allocation4 + $0x88] sm:$0xff] %vm482_vm2, %v34035_v0  ;;  %501 = vst.msk [vmem:[#allocation4 + $0x90] sm:$0xff] %vm482_vm2, %v34035_v0 }
  0x3d   : > { %502 = vst.msk [vmem:[#allocation4 + $0x98] sm:$0xff] %vm482_vm2, %v34035_v0  ;;  %503 = vst.msk [vmem:[#allocation4 + $0xa0] sm:$0xff] %vm482_vm2, %v34035_v0 }
  0x3e   : > { %504 = vst.msk [vmem:[#allocation4 + $0xa8] sm:$0xff] %vm482_vm2, %v34035_v0  ;;  %505 = vst.msk [vmem:[#allocation4 + $0xb0] sm:$0xff] %vm482_vm2, %v34035_v0 }
  0x3f   : > { %506 = vst.msk [vmem:[#allocation4 + $0xb8] sm:$0xff] %vm482_vm2, %v34035_v0  ;;  %507 = vst.msk [vmem:[#allocation4 + $0xc0] sm:$0xff] %vm482_vm2, %v34035_v0 }
  0x40   : > { %508 = vst.msk [vmem:[#allocation4 + $0xc8] sm:$0xff] %vm482_vm2, %v34035_v0  ;;  %509 = vst.msk [vmem:[#allocation4 + $0xd0] sm:$0xff] %vm482_vm2, %v34035_v0 }
  0x41   : > { %510 = vst.msk [vmem:[#allocation4 + $0xd8] sm:$0xff] %vm482_vm2, %v34035_v0  ;;  %511 = vst.msk [vmem:[#allocation4 + $0xe0] sm:$0xff] %vm482_vm2, %v34035_v0 }
  0x42   : > { %512 = vst.msk [vmem:[#allocation4 + $0xe8] sm:$0xff] %vm482_vm2, %v34035_v0  ;;  %513 = vst.msk [vmem:[#allocation4 + $0xf0] sm:$0xff] %vm482_vm2, %v34035_v0 }
  0x43   : > { %514 = vst.msk [vmem:[#allocation4 + $0xf8] sm:$0xff] %vm482_vm2, %v34035_v0  ;;  %515 = vst.msk [vmem:[#allocation4 + $0x100] sm:$0xff] %vm482_vm2, %v34035_v0 }
  0x44   : > { %516 = vst.msk [vmem:[#allocation4 + $0x108] sm:$0xff] %vm482_vm2, %v34035_v0  ;;  %517 = vst.msk [vmem:[#allocation4 + $0x110] sm:$0xff] %vm482_vm2, %v34035_v0 }
  0x45   : > { %518 = vst.msk [vmem:[#allocation4 + $0x118] sm:$0xff] %vm482_vm2, %v34035_v0  ;;  %519 = vst.msk [vmem:[#allocation4 + $0x120] sm:$0xff] %vm482_vm2, %v34035_v0 }
  0x46   : > { %520 = vst.msk [vmem:[#allocation4 + $0x128] sm:$0xff] %vm482_vm2, %v34035_v0  ;;  %521 = vst.msk [vmem:[#allocation4 + $0x130] sm:$0xff] %vm482_vm2, %v34035_v0 }
  0x47   : > { %522 = vst.msk [vmem:[#allocation4 + $0x138] sm:$0xff] %vm482_vm2, %v34035_v0  ;;  %523 = vst.msk [vmem:[#allocation4 + $0x140] sm:$0xff] %vm482_vm2, %v34035_v0 }
  0x48   : > { %524 = vst.msk [vmem:[#allocation4 + $0x148] sm:$0xff] %vm482_vm2, %v34035_v0  ;;  %525 = vst.msk [vmem:[#allocation4 + $0x150] sm:$0xff] %vm482_vm2, %v34035_v0 }
  0x49   : > { %526 = vst.msk [vmem:[#allocation4 + $0x158] sm:$0xff] %vm482_vm2, %v34035_v0  ;;  %527 = vst.msk [vmem:[#allocation4 + $0x160] sm:$0xff] %vm482_vm2, %v34035_v0 }
  0x4a   : > { %528 = vst.msk [vmem:[#allocation4 + $0x168] sm:$0xff] %vm482_vm2, %v34035_v0  ;;  %529 = vst.msk [vmem:[#allocation4 + $0x170] sm:$0xff] %vm482_vm2, %v34035_v0 }
  0x4b PF: > { %v25829_v1 = vld [vmem:[%s40487_s1 + $0x4] sm:$0x7]  ;;  %vm2580_vm3 = vcmask 1042432   ;;  %vm2495_vm4 = vcmask 23552   ;;  %v2466_v3 = vld [vmem:[%s34108_s24 + $0x9] sm:$0xff]  ;;  %v34367_v5 = vld [vmem:[%s34108_s24 + $0x11] sm:$0xff] }
  0x4c   : > { %v2465_v2 = vld [vmem:[%s34108_s24 + $0x1] sm:$0xff]  ;;  %29687 = vmatprep.subr.msk.mxu0 %vm2580_vm3, %v25829_v1  ;;  %v34376_v6 = vld [vmem:[%s34108_s24 + $0x19] sm:$0xff]  ;;  %v34386_v8 = vld [vmem:[%s34108_s24 + $0x29] sm:$0xff]  ;;  %vm5559_vm5 = vcmask 64512  }
  0x4d   : > { %29689 = vmatprep.mubr.msk.f32.mxu0 %vm2495_vm4, %v2465_v2  ;;  %v2464_v4 = vld [vmem:[%s40487_s1] sm:$0x7]  ;;  %29688 = vmatpush3.msk.msra.mxu0 %vm2580_vm3, %v25829_v1  ;;  %v34389_v9 = vld [vmem:[%s34108_s24 + $0x31] sm:$0xff]  ;;  %v25888_v10 = vld [vmem:[%s40487_s1 + $0x8] sm:$0x7] }
  0x4e   : > { %29690 = vmatmul.mubr.msk.f32.vlgmr.msra.gmra.mrb[0].mxu0 %vm2495_vm4, %v2466_v3  ;;  %29731 = vmatprep.subr.msk.mxu0 %vm2580_vm3, %v2464_v4  ;;  %v34379_v7 = vld [vmem:[%s34108_s24 + $0x21] sm:$0xff]  ;;  %v34400_v11 = vld [vmem:[%s34108_s24 + $0x39] sm:$0xff]  ;;  %v34410_v13 = vld [vmem:[%s34108_s24 + $0x49] sm:$0xff] }
  0x4f   : > { %29732 = vmatpush3.msk.msra.mxu0 %vm2580_vm3, %v2464_v4  ;;  %29692 = vmatprep.mubr.msk.f32.mxu0 %vm2495_vm4, %v34367_v5  ;;  %v34403_v12 = vld [vmem:[%s34108_s24 + $0x41] sm:$0xff]  ;;  %v34413_v14 = vld [vmem:[%s34108_s24 + $0x51] sm:$0xff]  ;;  %v34420_v15 = vld [vmem:[%s34108_s24 + $0x59] sm:$0xff] }
  0x50   : > { %29775 = vmatprep.subr.msk.mxu0 %vm2580_vm3, %v25888_v10  ;;  %v34423_v16 = vld [vmem:[%s34108_s24 + $0x61] sm:$0xff]  ;;  %v34430_v17 = vld [vmem:[%s34108_s24 + $0x69] sm:$0xff]  ;;  %v34433_v18 = vld [vmem:[%s34108_s24 + $0x71] sm:$0xff] }
  0x51   : > { %v34440_v19 = vld [vmem:[%s34108_s24 + $0x79] sm:$0xff]  ;;  %v34443_v20 = vld [vmem:[%s34108_s24 + $0x81] sm:$0xff]  ;;  %v34450_v21 = vld [vmem:[%s34108_s24 + $0x89] sm:$0xff] }
  0x52   : > { %29693 = vmatmul.mubr.msk.f32.gmra.mrb[2].mxu0 %vm2495_vm4, %v34376_v6  ;;  %v34453_v22 = vld [vmem:[%s34108_s24 + $0x91] sm:$0xff]  ;;  %v34460_v23 = vld [vmem:[%s34108_s24 + $0x99] sm:$0xff]  ;;  %v34463_v24 = vld [vmem:[%s34108_s24 + $0xa1] sm:$0xff] }
  0x53   : > { %29695 = vmatprep.mubr.msk.f32.mxu0 %vm2495_vm4, %v34379_v7  ;;  %v34470_v25 = vld [vmem:[%s34108_s24 + $0xa9] sm:$0xff]  ;;  %v34473_v26 = vld [vmem:[%s34108_s24 + $0xb1] sm:$0xff]  ;;  %v34480_v27 = vld [vmem:[%s34108_s24 + $0xb9] sm:$0xff] }
  0x54   : > { %v34483_v28 = vld [vmem:[%s34108_s24 + $0xc1] sm:$0xff]  ;;  %v34490_v29 = vld [vmem:[%s34108_s24 + $0xc9] sm:$0xff]  ;;  %v34493_v30 = vld [vmem:[%s34108_s24 + $0xd1] sm:$0xff] }
  0x55   : > { %v34500_v31 = vld [vmem:[%s34108_s24 + $0xd9] sm:$0xff]  ;;  %v2437_v33 = vld [vmem:[%s34108_s24 + $0x8] sm:$0xff]  ;;  %v34508_v34 = vld [vmem:[%s34108_s24 + $0x10] sm:$0xff] }
  0x56   : > { %29696 = vmatmul.mubr.msk.f32.gmra.mrb[4].mxu0 %vm2495_vm4, %v34386_v8  ;;  %v2436_v32 = vld [vmem:[%s34108_s24] sm:$0xff]  ;;  %v25918_v35 = vld [vmem:[%s40487_s1 + $0xc] sm:$0x7]  ;;  %v34518_v36 = vld [vmem:[%s34108_s24 + $0x18] sm:$0xff] }
  0x57   : > { %29698 = vmatprep.mubr.msk.f32.mxu0 %vm2495_vm4, %v34389_v9  ;;  %v34521_v37 = vld [vmem:[%s34108_s24 + $0x20] sm:$0xff]  ;;  %v34529_v38 = vld [vmem:[%s34108_s24 + $0x28] sm:$0xff]  ;;  %v34532_v39 = vld [vmem:[%s34108_s24 + $0x30] sm:$0xff] }
  0x58   : > { %v34539_v40 = vld [vmem:[%s34108_s24 + $0x38] sm:$0xff]  ;;  %v34542_v41 = vld [vmem:[%s34108_s24 + $0x40] sm:$0xff]  ;;  %v34549_v42 = vld [vmem:[%s34108_s24 + $0x48] sm:$0xff] }
  0x59   : > { %v34552_v43 = vld [vmem:[%s34108_s24 + $0x50] sm:$0xff]  ;;  %v34559_v44 = vld [vmem:[%s34108_s24 + $0x58] sm:$0xff]  ;;  %v34562_v45 = vld [vmem:[%s34108_s24 + $0x60] sm:$0xff] }
  0x5a   : > { %29699 = vmatmul.mubr.msk.f32.gmra.mrb[6].mxu0 %vm2495_vm4, %v34400_v11  ;;  %v34569_v46 = vld [vmem:[%s34108_s24 + $0x68] sm:$0xff]  ;;  %v34572_v47 = vld [vmem:[%s34108_s24 + $0x70] sm:$0xff]  ;;  %v34579_v48 = vld [vmem:[%s34108_s24 + $0x78] sm:$0xff] }
  0x5b   : > { %29701 = vmatprep.mubr.msk.f32.mxu0 %vm2495_vm4, %v34403_v12  ;;  %v34582_v49 = vld [vmem:[%s34108_s24 + $0x80] sm:$0xff]  ;;  %v34589_v50 = vld [vmem:[%s34108_s24 + $0x88] sm:$0xff]  ;;  %v34592_v51 = vld [vmem:[%s34108_s24 + $0x90] sm:$0xff] }
  0x5c   : > { %v34599_v52 = vld [vmem:[%s34108_s24 + $0x98] sm:$0xff]  ;;  %v34602_v53 = vld [vmem:[%s34108_s24 + $0xa0] sm:$0xff]  ;;  %v34609_v54 = vld [vmem:[%s34108_s24 + $0xa8] sm:$0xff] }
  0x5d   : > { %v34612_v55 = vld [vmem:[%s34108_s24 + $0xb0] sm:$0xff]  ;;  %v34619_v56 = vld [vmem:[%s34108_s24 + $0xb8] sm:$0xff]  ;;  %v34622_v57 = vld [vmem:[%s34108_s24 + $0xc0] sm:$0xff] }
  0x5e   : > { %29702 = vmatmul.mubr.msk.f32.gmra.mrb[8].mxu0 %vm2495_vm4, %v34410_v13  ;;  %v34629_v58 = vld [vmem:[%s34108_s24 + $0xc8] sm:$0xff]  ;;  %v34632_v59 = vld [vmem:[%s34108_s24 + $0xd0] sm:$0xff]  ;;  %v34639_v60 = vld [vmem:[%s34108_s24 + $0xd8] sm:$0xff] }
  0x5f   : > { %29704 = vmatprep.mubr.msk.f32.mxu0 %vm2495_vm4, %v34413_v14  ;;  %v3081_v61 = vld [vmem:[%s34108_s24 + $0x2] sm:$0xff]  ;;  %v3082_v62 = vld [vmem:[%s34108_s24 + $0xa] sm:$0xff]  ;;  %v34647_v63 = vld [vmem:[%s34108_s24 + $0x12] sm:$0xff] }
  0x60   : > { %v25948_v0 = vld [vmem:[%s40487_s1 + $0x10] sm:$0x7]  ;;  %v34657_v1 = vld [vmem:[%s34108_s24 + $0x1a] sm:$0xff]  ;;  %v34660_v2 = vld [vmem:[%s34108_s24 + $0x22] sm:$0xff] }
  0x61   : > { %40849 = vst [vmem:[#allocation5_spill] sm:$0xff] %v34660_v2  ;;  %v34668_v3 = vld [vmem:[%s34108_s24 + $0x2a] sm:$0xff]  ;;  %v34671_v4 = vld [vmem:[%s34108_s24 + $0x32] sm:$0xff] }
  0x62   : > { %29705 = vmatmul.mubr.msk.f32.gmra.mrb[10].mxu0 %vm2495_vm4, %v34420_v15  ;;  %40850 = vst [vmem:[#allocation6_spill] sm:$0xff] %v34671_v4 }
  0x63   : > { %29707 = vmatprep.mubr.msk.f32.mxu0 %vm2495_vm4, %v34423_v16 }
  0x66   : > { %29708 = vmatmul.mubr.msk.f32.gmra.mrb[12].mxu0 %vm2495_vm4, %v34430_v17 }
  0x67   : > { %29710 = vmatprep.mubr.msk.f32.mxu0 %vm2495_vm4, %v34433_v18 }
  0x6a   : > { %29711 = vmatmul.mubr.msk.f32.gmra.mrb[14].mxu0 %vm2495_vm4, %v34440_v19 }
  0x6b   : > { %29713 = vmatprep.mubr.msk.f32.mxu0 %vm2495_vm4, %v34443_v20 }
  0x6e   : > { %29714 = vmatmul.mubr.msk.f32.gmra.mrb[16].mxu0 %vm2495_vm4, %v34450_v21 }
  0x6f   : > { %29716 = vmatprep.mubr.msk.f32.mxu0 %vm2495_vm4, %v34453_v22 }
  0x72   : > { %29717 = vmatmul.mubr.msk.f32.gmra.mrb[18].mxu0 %vm2495_vm4, %v34460_v23 }
  0x73   : > { %29719 = vmatprep.mubr.msk.f32.mxu0 %vm2495_vm4, %v34463_v24 }
  0x76   : > { %29720 = vmatmul.mubr.msk.f32.gmra.mrb[20].mxu0 %vm2495_vm4, %v34470_v25 }
  0x77   : > { %29722 = vmatprep.mubr.msk.f32.mxu0 %vm2495_vm4, %v34473_v26 }
  0x7a   : > { %29723 = vmatmul.mubr.msk.f32.gmra.mrb[22].mxu0 %vm2495_vm4, %v34480_v27 }
  0x7b   : > { %29725 = vmatprep.mubr.msk.f32.mxu0 %vm2495_vm4, %v34483_v28 }
  0x7e   : > { %29726 = vmatmul.mubr.msk.f32.gmra.mrb[24].mxu0 %vm2495_vm4, %v34490_v29 }
  0x7f   : > { %29728 = vmatprep.mubr.msk.f32.mxu0 %vm2495_vm4, %v34493_v30 }
  0x82   : > { %29729 = vmatmul.mubr.msk.f32.gmra.mrb[26].mxu0 %vm2495_vm4, %v34500_v31 }
  0x83   : > { %29733 = vmatprep.mubr.msk.f32.mxu0 %vm2495_vm4, %v2436_v32  ;;  %v34681_v32 = vld [vmem:[%s34108_s24 + $0x42] sm:$0xff] }
  0x84   : > { %40852 = vst [vmem:[#allocation8_spill] sm:$0xff] %v34681_v32 }
  0x86   : > { %29734 = vmatmul.mubr.msk.f32.vlgmr.msra.gmra.mrb[0].mxu0 %vm2495_vm4, %v2437_v33  ;;  %v34688_v33 = vld [vmem:[%s34108_s24 + $0x4a] sm:$0xff] }
  0x87   : > { %29776 = vmatpush3.msk.msra.mxu0 %vm2580_vm3, %v25888_v10  ;;  %29736 = vmatprep.mubr.msk.f32.mxu0 %vm2495_vm4, %v34508_v34  ;;  %v34678_v10 = vld [vmem:[%s34108_s24 + $0x3a] sm:$0xff]  ;;  %40853 = vst [vmem:[#allocation9_spill] sm:$0xff] %v34688_v33 }
  0x88   : > { %29819 = vmatprep.subr.msk.mxu0 %vm2580_vm3, %v25918_v35  ;;  %40851 = vst [vmem:[#allocation7_spill] sm:$0xff] %v34678_v10 }
  0x8a   : > { %29737 = vmatmul.mubr.msk.f32.gmra.mrb[2].mxu0 %vm2495_vm4, %v34518_v36 }
  0x8b   : > { %29739 = vmatprep.mubr.msk.f32.mxu0 %vm2495_vm4, %v34521_v37 }
  0x8e   : > { %29740 = vmatmul.mubr.msk.f32.gmra.mrb[4].mxu0 %vm2495_vm4, %v34529_v38 }
  0x8f   : > { %29742 = vmatprep.mubr.msk.f32.mxu0 %vm2495_vm4, %v34532_v39 }
  0x92   : > { %29743 = vmatmul.mubr.msk.f32.gmra.mrb[6].mxu0 %vm2495_vm4, %v34539_v40 }
  0x93   : > { %29745 = vmatprep.mubr.msk.f32.mxu0 %vm2495_vm4, %v34542_v41 }
  0x96   : > { %29746 = vmatmul.mubr.msk.f32.gmra.mrb[8].mxu0 %vm2495_vm4, %v34549_v42 }
  0x97   : > { %29748 = vmatprep.mubr.msk.f32.mxu0 %vm2495_vm4, %v34552_v43 }
  0x9a   : > { %29749 = vmatmul.mubr.msk.f32.gmra.mrb[10].mxu0 %vm2495_vm4, %v34559_v44 }
  0x9b   : > { %29751 = vmatprep.mubr.msk.f32.mxu0 %vm2495_vm4, %v34562_v45 }
  0x9e   : > { %29752 = vmatmul.mubr.msk.f32.gmra.mrb[12].mxu0 %vm2495_vm4, %v34569_v46 }
  0x9f   : > { %29754 = vmatprep.mubr.msk.f32.mxu0 %vm2495_vm4, %v34572_v47 }
  0xa2   : > { %29755 = vmatmul.mubr.msk.f32.gmra.mrb[14].mxu0 %vm2495_vm4, %v34579_v48 }
  0xa3   : > { %29757 = vmatprep.mubr.msk.f32.mxu0 %vm2495_vm4, %v34582_v49 }
  0xa6   : > { %29758 = vmatmul.mubr.msk.f32.gmra.mrb[16].mxu0 %vm2495_vm4, %v34589_v50 }
  0xa7   : > { %29760 = vmatprep.mubr.msk.f32.mxu0 %vm2495_vm4, %v34592_v51 }
  0xaa   : > { %29761 = vmatmul.mubr.msk.f32.gmra.mrb[18].mxu0 %vm2495_vm4, %v34599_v52 }
  0xab   : > { %29763 = vmatprep.mubr.msk.f32.mxu0 %vm2495_vm4, %v34602_v53 }
  0xae   : > { %29764 = vmatmul.mubr.msk.f32.gmra.mrb[20].mxu0 %vm2495_vm4, %v34609_v54 }
  0xaf   : > { %29766 = vmatprep.mubr.msk.f32.mxu0 %vm2495_vm4, %v34612_v55 }
  0xb2   : > { %29767 = vmatmul.mubr.msk.f32.gmra.mrb[22].mxu0 %vm2495_vm4, %v34619_v56 }
  0xb3   : > { %29769 = vmatprep.mubr.msk.f32.mxu0 %vm2495_vm4, %v34622_v57 }
  0xb6   : > { %29770 = vmatmul.mubr.msk.f32.gmra.mrb[24].mxu0 %vm2495_vm4, %v34629_v58 }
  0xb7   : > { %29772 = vmatprep.mubr.msk.f32.mxu0 %vm2495_vm4, %v34632_v59 }
  0xba   : > { %29773 = vmatmul.mubr.msk.f32.gmra.mrb[26].mxu0 %vm2495_vm4, %v34639_v60 }
  0xbb   : > { %29777 = vmatprep.mubr.msk.f32.mxu0 %vm2495_vm4, %v3081_v61  ;;  %v34698_v61 = vld [vmem:[%s34108_s24 + $0x5a] sm:$0xff] }
  0xbc   : > { %40855 = vst [vmem:[#allocation11_spill] sm:$0xff] %v34698_v61 }
  0xbe   : > { %29778 = vmatmul.mubr.msk.f32.vlgmr.msra.gmra.mrb[0].mxu0 %vm2495_vm4, %v3082_v62  ;;  %v34701_v62 = vld [vmem:[%s34108_s24 + $0x62] sm:$0xff] }
  0xbf   : > { %29820 = vmatpush3.msk.msra.mxu0 %vm2580_vm3, %v25918_v35  ;;  %29780 = vmatprep.mubr.msk.f32.mxu0 %vm2495_vm4, %v34647_v63  ;;  %v34691_v35 = vld [vmem:[%s34108_s24 + $0x52] sm:$0xff]  ;;  %40856 = vst [vmem:[#allocation12_spill] sm:$0xff] %v34701_v62 }
  0xc0   : > { %29863 = vmatprep.subr.msk.mxu0 %vm2580_vm3, %v25948_v0  ;;  %40854 = vst [vmem:[#allocation10_spill] sm:$0xff] %v34691_v35 }
  0xc2   : > { %29781 = vmatmul.mubr.msk.f32.gmra.mrb[2].mxu0 %vm2495_vm4, %v34657_v1 }
  0xc3   : > { %29783 = vmatprep.mubr.msk.f32.mxu0 %vm2495_vm4, %v34660_v2 }
  0xc6   : > { %29784 = vmatmul.mubr.msk.f32.gmra.mrb[4].mxu0 %vm2495_vm4, %v34668_v3 }
  0xc7   : > { %29786 = vmatprep.mubr.msk.f32.mxu0 %vm2495_vm4, %v34671_v4 }
  0xca   : > { %29787 = vmatmul.mubr.msk.f32.gmra.mrb[6].mxu0 %vm2495_vm4, %v34678_v10  ;;  %v34711_v10 = vld [vmem:[%s34108_s24 + $0x72] sm:$0xff] }
  0xcb   : > { %29789 = vmatprep.mubr.msk.f32.mxu0 %vm2495_vm4, %v34681_v32  ;;  %v34708_v32 = vld [vmem:[%s34108_s24 + $0x6a] sm:$0xff]  ;;  %40858 = vst [vmem:[#allocation14_spill] sm:$0xff] %v34711_v10 }
  0xcc   : > { %40857 = vst [vmem:[#allocation13_spill] sm:$0xff] %v34708_v32 }
  0xce   : > { %29790 = vmatmul.mubr.msk.f32.gmra.mrb[8].mxu0 %vm2495_vm4, %v34688_v33  ;;  %v34721_v33 = vld [vmem:[%s34108_s24 + $0x82] sm:$0xff] }
  0xcf   : > { %29792 = vmatprep.mubr.msk.f32.mxu0 %vm2495_vm4, %v34691_v35  ;;  %v34718_v35 = vld [vmem:[%s34108_s24 + $0x7a] sm:$0xff]  ;;  %40860 = vst [vmem:[#allocation16_spill] sm:$0xff] %v34721_v33 }
  0xd0   : > { %40859 = vst [vmem:[#allocation15_spill] sm:$0xff] %v34718_v35 }
  0xd2   : > { %29793 = vmatmul.mubr.msk.f32.gmra.mrb[10].mxu0 %vm2495_vm4, %v34698_v61  ;;  %v34731_v61 = vld [vmem:[%s34108_s24 + $0x92] sm:$0xff] }
  0xd3   : > { %29795 = vmatprep.mubr.msk.f32.mxu0 %vm2495_vm4, %v34701_v62  ;;  %v34728_v62 = vld [vmem:[%s34108_s24 + $0x8a] sm:$0xff]  ;;  %40862 = vst [vmem:[#allocation18_spill] sm:$0xff] %v34731_v61 }
  0xd4   : > { %40861 = vst [vmem:[#allocation17_spill] sm:$0xff] %v34728_v62 }
  0xd6   : > { %29796 = vmatmul.mubr.msk.f32.gmra.mrb[12].mxu0 %vm2495_vm4, %v34708_v32  ;;  %v34741_v32 = vld [vmem:[%s34108_s24 + $0xa2] sm:$0xff] }
  0xd7   : > { %29798 = vmatprep.mubr.msk.f32.mxu0 %vm2495_vm4, %v34711_v10  ;;  %v34738_v10 = vld [vmem:[%s34108_s24 + $0x9a] sm:$0xff]  ;;  %40864 = vst [vmem:[#allocation20_spill] sm:$0xff] %v34741_v32 }
  0xd8   : > { %40863 = vst [vmem:[#allocation19_spill] sm:$0xff] %v34738_v10 }
  0xda   : > { %29799 = vmatmul.mubr.msk.f32.gmra.mrb[14].mxu0 %vm2495_vm4, %v34718_v35  ;;  %v34751_v35 = vld [vmem:[%s34108_s24 + $0xb2] sm:$0xff] }
  0xdb   : > { %29801 = vmatprep.mubr.msk.f32.mxu0 %vm2495_vm4, %v34721_v33  ;;  %v34748_v33 = vld [vmem:[%s34108_s24 + $0xaa] sm:$0xff]  ;;  %40865 = vst [vmem:[#allocation21_spill] sm:$0xff] %v34751_v35 }
  0xde   : > { %29802 = vmatmul.mubr.msk.f32.gmra.mrb[16].mxu0 %vm2495_vm4, %v34728_v62  ;;  %v34761_v62 = vld [vmem:[%s34108_s24 + $0xc2] sm:$0xff] }
  0xdf   : > { %29804 = vmatprep.mubr.msk.f32.mxu0 %vm2495_vm4, %v34731_v61  ;;  %v34758_v61 = vld [vmem:[%s34108_s24 + $0xba] sm:$0xff]  ;;  %40866 = vst [vmem:[#allocation22_spill] sm:$0xff] %v34761_v62 }
  0xe2   : > { %29805 = vmatmul.mubr.msk.f32.gmra.mrb[18].mxu0 %vm2495_vm4, %v34738_v10  ;;  %v34771_v10 = vld [vmem:[%s34108_s24 + $0xd2] sm:$0xff] }
  0xe3   : > { %29807 = vmatprep.mubr.msk.f32.mxu0 %vm2495_vm4, %v34741_v32  ;;  %v34768_v32 = vld [vmem:[%s34108_s24 + $0xca] sm:$0xff]  ;;  %40867 = vst [vmem:[#allocation23_spill] sm:$0xff] %v34771_v10 }
  0xe6   : > { %29808 = vmatmul.mubr.msk.f32.gmra.mrb[20].mxu0 %vm2495_vm4, %v34748_v33 }
  0xe7   : > { %29810 = vmatprep.mubr.msk.f32.mxu0 %vm2495_vm4, %v34751_v35  ;;  %v34778_v35 = vld [vmem:[%s34108_s24 + $0xda] sm:$0xff] }
  0xea   : > { %29811 = vmatmul.mubr.msk.f32.gmra.mrb[22].mxu0 %vm2495_vm4, %v34758_v61 }
  0xeb   : > { %29813 = vmatprep.mubr.msk.f32.mxu0 %vm2495_vm4, %v34761_v62  ;;  %v25978_v62 = vld [vmem:[%s40487_s1 + $0x14] sm:$0x7] }
  0xee   : > { %29814 = vmatmul.mubr.msk.f32.gmra.mrb[24].mxu0 %vm2495_vm4, %v34768_v32 }
  0xef   : > { %29816 = vmatprep.mubr.msk.f32.mxu0 %vm2495_vm4, %v34771_v10 }
  0xf2   : > { %29817 = vmatmul.mubr.msk.f32.gmra.mrb[26].mxu0 %vm2495_vm4, %v34778_v35 }
  0xf3   : > { %29821 = vmatprep.mubr.msk.f32.mxu0 %vm2495_vm4, %v34508_v34  ;;  %v34838_v34 = vld [vmem:[%s34108_s24 + $0xe0] sm:$0xff] }
  0xf6   : > { %29822 = vmatmul.mubr.msk.f32.vlgmr.msra.gmra.mrb[0].mxu0 %vm2495_vm4, %v34518_v36  ;;  %v34845_v36 = vld [vmem:[%s34108_s24 + $0xe8] sm:$0xff] }
  0xf7   : > { %29864 = vmatpush3.msk.msra.mxu0 %vm2580_vm3, %v25948_v0  ;;  %29824 = vmatprep.mubr.msk.f32.mxu0 %vm2495_vm4, %v34521_v37  ;;  %v26008_v0 = vld [vmem:[%s40487_s1 + $0x18] sm:$0x7] }
  0xf8   : > { %29907 = vmatprep.subr.msk.mxu0 %vm2580_vm3, %v25978_v62 }
  0xfa   : > { %29825 = vmatmul.mubr.msk.f32.gmra.mrb[2].mxu0 %vm2495_vm4, %v34529_v38 }
  0xfb   : > { %29827 = vmatprep.mubr.msk.f32.mxu0 %vm2495_vm4, %v34532_v39 }
  0xfe   : > { %29828 = vmatmul.mubr.msk.f32.gmra.mrb[4].mxu0 %vm2495_vm4, %v34539_v40 }
  0xff   : > { %29830 = vmatprep.mubr.msk.f32.mxu0 %vm2495_vm4, %v34542_v41 }
 0x102   : > { %29831 = vmatmul.mubr.msk.f32.gmra.mrb[6].mxu0 %vm2495_vm4, %v34549_v42 }
 0x103   : > { %29833 = vmatprep.mubr.msk.f32.mxu0 %vm2495_vm4, %v34552_v43 }
 0x106   : > { %29834 = vmatmul.mubr.msk.f32.gmra.mrb[8].mxu0 %vm2495_vm4, %v34559_v44 }
 0x107   : > { %29836 = vmatprep.mubr.msk.f32.mxu0 %vm2495_vm4, %v34562_v45 }
 0x10a   : > { %29837 = vmatmul.mubr.msk.f32.gmra.mrb[10].mxu0 %vm2495_vm4, %v34569_v46 }
 0x10b   : > { %29839 = vmatprep.mubr.msk.f32.mxu0 %vm2495_vm4, %v34572_v47 }
 0x10e   : > { %29840 = vmatmul.mubr.msk.f32.gmra.mrb[12].mxu0 %vm2495_vm4, %v34579_v48 }
 0x10f   : > { %29842 = vmatprep.mubr.msk.f32.mxu0 %vm2495_vm4, %v34582_v49 }
 0x112   : > { %29843 = vmatmul.mubr.msk.f32.gmra.mrb[14].mxu0 %vm2495_vm4, %v34589_v50 }
 0x113   : > { %29845 = vmatprep.mubr.msk.f32.mxu0 %vm2495_vm4, %v34592_v51 }
 0x116   : > { %29846 = vmatmul.mubr.msk.f32.gmra.mrb[16].mxu0 %vm2495_vm4, %v34599_v52 }
 0x117   : > { %29848 = vmatprep.mubr.msk.f32.mxu0 %vm2495_vm4, %v34602_v53 }
 0x11a   : > { %29849 = vmatmul.mubr.msk.f32.gmra.mrb[18].mxu0 %vm2495_vm4, %v34609_v54 }
 0x11b   : > { %29851 = vmatprep.mubr.msk.f32.mxu0 %vm2495_vm4, %v34612_v55 }
 0x11e   : > { %29852 = vmatmul.mubr.msk.f32.gmra.mrb[20].mxu0 %vm2495_vm4, %v34619_v56 }
 0x11f   : > { %29854 = vmatprep.mubr.msk.f32.mxu0 %vm2495_vm4, %v34622_v57 }
 0x122   : > { %29855 = vmatmul.mubr.msk.f32.gmra.mrb[22].mxu0 %vm2495_vm4, %v34629_v58 }
 0x123   : > { %29857 = vmatprep.mubr.msk.f32.mxu0 %vm2495_vm4, %v34632_v59 }
 0x126   : > { %29858 = vmatmul.mubr.msk.f32.gmra.mrb[24].mxu0 %vm2495_vm4, %v34639_v60 }
 0x127   : > { %29860 = vmatprep.mubr.msk.f32.mxu0 %vm2495_vm4, %v34838_v34 }
 0x12a   : > { %29861 = vmatmul.mubr.msk.f32.gmra.mrb[26].mxu0 %vm2495_vm4, %v34845_v36 }
 0x12b   : > { %29865 = vmatprep.mubr.msk.f32.mxu0 %vm2495_vm4, %v34367_v5  ;;  %v34905_v5 = vld [vmem:[%s34108_s24 + $0xe1] sm:$0xff] }
 0x12c   : > { %40868 = vst [vmem:[#allocation24_spill] sm:$0xff] %v34905_v5 }
 0x12e   : > { %29866 = vmatmul.mubr.msk.f32.vlgmr.msra.gmra.mrb[0].mxu0 %vm2495_vm4, %v34376_v6  ;;  %v34912_v6 = vld [vmem:[%s34108_s24 + $0xe9] sm:$0xff] }
 0x12f   : > { %29908 = vmatpush3.msk.msra.mxu0 %vm2580_vm3, %v25978_v62  ;;  %29868 = vmatprep.mubr.msk.f32.mxu0 %vm2495_vm4, %v34379_v7  ;;  %40869 = vst [vmem:[#allocation25_spill] sm:$0xff] %v34912_v6  ;;  %v26038_v62 = vld [vmem:[%s40487_s1 + $0x1c] sm:$0x7] }
 0x130   : > { %29951 = vmatprep.subr.msk.mxu0 %vm2580_vm3, %v26008_v0 }
 0x132   : > { %29869 = vmatmul.mubr.msk.f32.gmra.mrb[2].mxu0 %vm2495_vm4, %v34386_v8 }
 0x133   : > { %29871 = vmatprep.mubr.msk.f32.mxu0 %vm2495_vm4, %v34389_v9 }
 0x136   : > { %29872 = vmatmul.mubr.msk.f32.gmra.mrb[4].mxu0 %vm2495_vm4, %v34400_v11 }
 0x137   : > { %29874 = vmatprep.mubr.msk.f32.mxu0 %vm2495_vm4, %v34403_v12 }
 0x13a   : > { %29875 = vmatmul.mubr.msk.f32.gmra.mrb[6].mxu0 %vm2495_vm4, %v34410_v13 }
 0x13b   : > { %29877 = vmatprep.mubr.msk.f32.mxu0 %vm2495_vm4, %v34413_v14 }
 0x13e   : > { %29878 = vmatmul.mubr.msk.f32.gmra.mrb[8].mxu0 %vm2495_vm4, %v34420_v15 }
 0x13f   : > { %29880 = vmatprep.mubr.msk.f32.mxu0 %vm2495_vm4, %v34423_v16 }
 0x142   : > { %29881 = vmatmul.mubr.msk.f32.gmra.mrb[10].mxu0 %vm2495_vm4, %v34430_v17 }
 0x143   : > { %29883 = vmatprep.mubr.msk.f32.mxu0 %vm2495_vm4, %v34433_v18 }
 0x146   : > { %29884 = vmatmul.mubr.msk.f32.gmra.mrb[12].mxu0 %vm2495_vm4, %v34440_v19 }
 0x147   : > { %29886 = vmatprep.mubr.msk.f32.mxu0 %vm2495_vm4, %v34443_v20 }
 0x14a   : > { %29887 = vmatmul.mubr.msk.f32.gmra.mrb[14].mxu0 %vm2495_vm4, %v34450_v21 }
 0x14b   : > { %29889 = vmatprep.mubr.msk.f32.mxu0 %vm2495_vm4, %v34453_v22 }
 0x14e   : > { %29890 = vmatmul.mubr.msk.f32.gmra.mrb[16].mxu0 %vm2495_vm4, %v34460_v23 }
 0x14f   : > { %29892 = vmatprep.mubr.msk.f32.mxu0 %vm2495_vm4, %v34463_v24 }
 0x152   : > { %29893 = vmatmul.mubr.msk.f32.gmra.mrb[18].mxu0 %vm2495_vm4, %v34470_v25 }
 0x153   : > { %29895 = vmatprep.mubr.msk.f32.mxu0 %vm2495_vm4, %v34473_v26 }
 0x156   : > { %29896 = vmatmul.mubr.msk.f32.gmra.mrb[20].mxu0 %vm2495_vm4, %v34480_v27 }
 0x157   : > { %29898 = vmatprep.mubr.msk.f32.mxu0 %vm2495_vm4, %v34483_v28 }
 0x15a   : > { %29899 = vmatmul.mubr.msk.f32.gmra.mrb[22].mxu0 %vm2495_vm4, %v34490_v29 }
 0x15b   : > { %29901 = vmatprep.mubr.msk.f32.mxu0 %vm2495_vm4, %v34493_v30 }
 0x15e   : > { %29902 = vmatmul.mubr.msk.f32.gmra.mrb[24].mxu0 %vm2495_vm4, %v34500_v31 }
 0x15f   : > { %29904 = vmatprep.mubr.msk.f32.mxu0 %vm2495_vm4, %v34905_v5  ;;  %v40875_v5 = vld [vmem:[#allocation12_spill] sm:$0xff] }
 0x162   : > { %29905 = vmatmul.mubr.msk.f32.gmra.mrb[26].mxu0 %vm2495_vm4, %v34912_v6  ;;  %v40871_v6 = vld [vmem:[#allocation8_spill] sm:$0xff] }
 0x163   : > { %29909 = vmatprep.mubr.msk.f32.mxu0 %vm2495_vm4, %v34647_v63  ;;  %v40870_v63 = vld [vmem:[#allocation7_spill] sm:$0xff] }
 0x166   : > { %29910 = vmatmul.mubr.msk.f32.vlgmr.msra.gmra.mrb[0].mxu0 %vm2495_vm4, %v34657_v1  ;;  %v40872_v1 = vld [vmem:[#allocation9_spill] sm:$0xff] }
 0x167   : > { %29952 = vmatpush3.msk.msra.mxu0 %vm2580_vm3, %v26008_v0  ;;  %29912 = vmatprep.mubr.msk.f32.mxu0 %vm2495_vm4, %v34660_v2  ;;  %v40873_v0 = vld [vmem:[#allocation10_spill] sm:$0xff]  ;;  %v40874_v2 = vld [vmem:[#allocation11_spill] sm:$0xff] }
 0x168   : > { %29995 = vmatprep.subr.msk.mxu0 %vm2580_vm3, %v26038_v62 }
 0x16a   : > { %29913 = vmatmul.mubr.msk.f32.gmra.mrb[2].mxu0 %vm2495_vm4, %v34668_v3 }
 0x16b   : > { %29915 = vmatprep.mubr.msk.f32.mxu0 %vm2495_vm4, %v34671_v4  ;;  %v40876_v4 = vld [vmem:[#allocation13_spill] sm:$0xff] }
 0x16e   : > { %29916 = vmatmul.mubr.msk.f32.gmra.mrb[4].mxu0 %vm2495_vm4, %v40870_v63  ;;  %v40877_v63 = vld [vmem:[#allocation14_spill] sm:$0xff] }
 0x16f   : > { %29918 = vmatprep.mubr.msk.f32.mxu0 %vm2495_vm4, %v40871_v6  ;;  %v40878_v6 = vld [vmem:[#allocation15_spill] sm:$0xff] }
 0x172   : > { %29919 = vmatmul.mubr.msk.f32.gmra.mrb[6].mxu0 %vm2495_vm4, %v40872_v1  ;;  %v40879_v1 = vld [vmem:[#allocation16_spill] sm:$0xff] }
 0x173   : > { %29921 = vmatprep.mubr.msk.f32.mxu0 %vm2495_vm4, %v40873_v0  ;;  %v40880_v0 = vld [vmem:[#allocation17_spill] sm:$0xff] }
 0x176   : > { %29922 = vmatmul.mubr.msk.f32.gmra.mrb[8].mxu0 %vm2495_vm4, %v40874_v2  ;;  %v40881_v2 = vld [vmem:[#allocation18_spill] sm:$0xff] }
 0x177   : > { %29924 = vmatprep.mubr.msk.f32.mxu0 %vm2495_vm4, %v40875_v5  ;;  %v40882_v5 = vld [vmem:[#allocation19_spill] sm:$0xff] }
 0x17a   : > { %29925 = vmatmul.mubr.msk.f32.gmra.mrb[10].mxu0 %vm2495_vm4, %v40876_v4  ;;  %v40883_v4 = vld [vmem:[#allocation20_spill] sm:$0xff] }
 0x17b   : > { %29927 = vmatprep.mubr.msk.f32.mxu0 %vm2495_vm4, %v40877_v63  ;;  %v40884_v63 = vld [vmem:[#allocation21_spill] sm:$0xff] }
 0x17e   : > { %29928 = vmatmul.mubr.msk.f32.gmra.mrb[12].mxu0 %vm2495_vm4, %v40878_v6 }
 0x17f   : > { %29930 = vmatprep.mubr.msk.f32.mxu0 %vm2495_vm4, %v40879_v1  ;;  %v40885_v1 = vld [vmem:[#allocation22_spill] sm:$0xff] }
 0x182   : > { %29931 = vmatmul.mubr.msk.f32.gmra.mrb[14].mxu0 %vm2495_vm4, %v40880_v0 }
 0x183   : > { %29933 = vmatprep.mubr.msk.f32.mxu0 %vm2495_vm4, %v40881_v2 }
 0x186   : > { %29934 = vmatmul.mubr.msk.f32.gmra.mrb[16].mxu0 %vm2495_vm4, %v40882_v5  ;;  %v34972_v5 = vld [vmem:[%s34108_s24 + $0xe2] sm:$0xff] }
 0x187   : > { %29936 = vmatprep.mubr.msk.f32.mxu0 %vm2495_vm4, %v40883_v4 }
 0x18a   : > { %29937 = vmatmul.mubr.msk.f32.gmra.mrb[18].mxu0 %vm2495_vm4, %v34748_v33 }
 0x18b   : > { %29939 = vmatprep.mubr.msk.f32.mxu0 %vm2495_vm4, %v40884_v63  ;;  %v34979_v63 = vld [vmem:[%s34108_s24 + $0xea] sm:$0xff] }
 0x18e   : > { %29940 = vmatmul.mubr.msk.f32.gmra.mrb[20].mxu0 %vm2495_vm4, %v34758_v61 }
 0x18f   : > { %29942 = vmatprep.mubr.msk.f32.mxu0 %vm2495_vm4, %v40885_v1 }
 0x192   : > { %29943 = vmatmul.mubr.msk.f32.gmra.mrb[22].mxu0 %vm2495_vm4, %v34768_v32 }
 0x193   : > { %29945 = vmatprep.mubr.msk.f32.mxu0 %vm2495_vm4, %v34771_v10  ;;  %v26068_v10 = vld [vmem:[%s40487_s1 + $0x20] sm:$0x7] }
 0x196   : > { %29946 = vmatmul.mubr.msk.f32.gmra.mrb[24].mxu0 %vm2495_vm4, %v34778_v35 }
 0x197   : > { %29948 = vmatprep.mubr.msk.f32.mxu0 %vm2495_vm4, %v34972_v5 }
 0x19a   : > { %29949 = vmatmul.mubr.msk.f32.gmra.mrb[26].mxu0 %vm2495_vm4, %v34979_v63 }
 0x19b   : > { %29953 = vmatprep.mubr.msk.f32.mxu0 %vm2495_vm4, %v34521_v37  ;;  %v4507_v37 = vld [vmem:[%s34108_s24 + $0xf0] sm:$0xff] }
 0x19e   : > { %29954 = vmatmul.mubr.msk.f32.vlgmr.msra.gmra.mrb[0].mxu0 %vm2495_vm4, %v34529_v38  ;;  %v4508_v38 = vld [vmem:[%s34108_s24 + $0xf8] sm:$0xff] }
 0x19f   : > { %29996 = vmatpush3.msk.msra.mxu0 %vm2580_vm3, %v26038_v62  ;;  %29956 = vmatprep.mubr.msk.f32.mxu0 %vm2495_vm4, %v34532_v39  ;;  %v26098_v39 = vld [vmem:[%s40488_s2 + $0x8] sm:$0xff] }
 0x1a0   : > { %30039 = vmatprep.subr.msk.mxu0 %vm2580_vm3, %v26068_v10 }
 0x1a2   : > { %29957 = vmatmul.mubr.msk.f32.gmra.mrb[2].mxu0 %vm2495_vm4, %v34539_v40  ;;  %v35175_v40 = vld [vmem:[%s40488_s2 + $0x28] sm:$0xff] }
 0x1a3   : > { %29959 = vmatprep.mubr.msk.f32.mxu0 %vm2495_vm4, %v34542_v41  ;;  %v35181_v41 = vld [vmem:[%s40488_s2 + $0x10] sm:$0xff] }
 0x1a6   : > { %29960 = vmatmul.mubr.msk.f32.gmra.mrb[4].mxu0 %vm2495_vm4, %v34549_v42  ;;  %v531_v42 = vlaneseq }
 0x1a7   : > { %29962 = vmatprep.mubr.msk.f32.mxu0 %vm2495_vm4, %v34552_v43 }
 0x1a8   : > { %v35184_v43 = vshrl.u32 %v531_v42, 7 }
 0x1aa   : > { %29963 = vmatmul.mubr.msk.f32.gmra.mrb[6].mxu0 %vm2495_vm4, %v34559_v44  ;;  %40902 = vst [vmem:[#allocation15_spill] sm:$0xff] %v35184_v43  ;;  %v35187_v44 = vadd.s32 8, %v35184_v43 }
 0x1ab   : > { %29965 = vmatprep.mubr.msk.f32.mxu0 %vm2495_vm4, %v34562_v45 }
 0x1ac   : > { %40903 = vst [vmem:[#allocation17_spill] sm:$0xff] %v35187_v44  ;;  %v571_v45 = vand.u32 15, %v35187_v44 }
 0x1ae   : > { %29966 = vmatmul.mubr.msk.f32.gmra.mrb[8].mxu0 %vm2495_vm4, %v34569_v46  ;;  %v535_v46 = vadd.s32 24, %v35184_v43  ;;  %vm35194_vm6 = vcmp.lt.s32.totalorder %v571_v45, 14 }
 0x1af   : > { %29968 = vmatprep.mubr.msk.f32.mxu0 %vm2495_vm4, %v34572_v47  ;;  %v35192_v47 = vadd.s32 40, %v35184_v43 }
 0x1b1   : > { %40904 = vst [vmem:[#allocation18_spill] sm:$0xff] %v35192_v47 }
 0x1b2   : > { %29969 = vmatmul.mubr.msk.f32.gmra.mrb[10].mxu0 %vm2495_vm4, %v34579_v48  ;;  %v40905_v48 = vmov 0 }
 0x1b3   : > { %29971 = vmatprep.mubr.msk.f32.mxu0 %vm2495_vm4, %v34582_v49  ;;  %v40906_v48 = vsel %vm35194_vm6, 4294967295, %v40905_v48  ;;  %v585_v49 = vand.u32 15, %v535_v46 }
 0x1b4   : > { %40907 = vst [vmem:[#allocation20_spill] sm:$0xff] %v40906_v48 }
 0x1b5   : > { %vm35205_vm7 = vcmp.lt.s32.totalorder %v585_v49, 14 }
 0x1b6   : > { %29972 = vmatmul.mubr.msk.f32.gmra.mrb[12].mxu0 %vm2495_vm4, %v34589_v50 }
 0x1b7   : > { %29974 = vmatprep.mubr.msk.f32.mxu0 %vm2495_vm4, %v34592_v51 }
 0x1ba   : > { %29975 = vmatmul.mubr.msk.f32.gmra.mrb[14].mxu0 %vm2495_vm4, %v34599_v52 }
 0x1bb   : > { %29977 = vmatprep.mubr.msk.f32.mxu0 %vm2495_vm4, %v34602_v53  ;;  %v599_v53 = vand.u32 15, %v35192_v47 }
 0x1bd   : > { %vm35214_vm8 = vcmp.lt.s32.totalorder %v599_v53, 14 }
 0x1be   : > { %29978 = vmatmul.mubr.msk.f32.gmra.mrb[16].mxu0 %vm2495_vm4, %v34609_v54 }
 0x1bf   : > { %29980 = vmatprep.mubr.msk.f32.mxu0 %vm2495_vm4, %v34612_v55 }
 0x1c2   : > { %29981 = vmatmul.mubr.msk.f32.gmra.mrb[18].mxu0 %vm2495_vm4, %v34619_v56  ;;  %v40908_v56 = vmov 0 }
 0x1c3   : > { %29983 = vmatprep.mubr.msk.f32.mxu0 %vm2495_vm4, %v34622_v57  ;;  %v40909_v56 = vsel %vm35205_vm7, 4294967295, %v40908_v56  ;;  %v539_v57 = vadd.s32 56, %v35184_v43 }
 0x1c4   : > { %40910 = vst [vmem:[#allocation22_spill] sm:$0xff] %v40909_v56 }
 0x1c6   : > { %29984 = vmatmul.mubr.msk.f32.gmra.mrb[20].mxu0 %vm2495_vm4, %v34629_v58 }
 0x1c7   : > { %29986 = vmatprep.mubr.msk.f32.mxu0 %vm2495_vm4, %v34632_v59 }
 0x1ca   : > { %29987 = vmatmul.mubr.msk.f32.gmra.mrb[22].mxu0 %vm2495_vm4, %v34639_v60 }
 0x1cb   : > { %29989 = vmatprep.mubr.msk.f32.mxu0 %vm2495_vm4, %v34838_v34  ;;  %v543_v34 = vadd.s32 88, %v35184_v43 }
 0x1ce   : > { %29990 = vmatmul.mubr.msk.f32.gmra.mrb[24].mxu0 %vm2495_vm4, %v34845_v36 }
 0x1cf   : > { %29992 = vmatprep.mubr.msk.f32.mxu0 %vm2495_vm4, %v4507_v37 }
 0x1d2   : > { %29993 = vmatmul.mubr.msk.f32.gmra.mrb[26].mxu0 %vm2495_vm4, %v4508_v38 }
 0x1d3   : > { %29997 = vmatprep.mubr.msk.f32.mxu0 %vm2495_vm4, %v34379_v7  ;;  %v40886_v7 = vld [vmem:[#allocation24_spill] sm:$0xff] }
 0x1d6   : > { %29998 = vmatmul.mubr.msk.f32.vlgmr.msra.gmra.mrb[0].mxu0 %vm2495_vm4, %v34386_v8  ;;  %v4857_v8 = vld [vmem:[%s34108_s24 + $0xf1] sm:$0xff] }
 0x1d7   : > { %30040 = vmatpush3.msk.msra.mxu0 %vm2580_vm3, %v26068_v10  ;;  %30000 = vmatprep.mubr.msk.f32.mxu0 %vm2495_vm4, %v34389_v9  ;;  %v40887_v9 = vld [vmem:[#allocation25_spill] sm:$0xff]  ;;  %v613_v10 = vand.u32 15, %v539_v57  ;;  %v551_v57 = vadd.s32 152, %v35184_v43 }
 0x1d8   : > { %30083 = vmatprep.subr.mxu0 %v26098_v39 }
 0x1d9   : > { %vm35234_vm9 = vcmp.lt.s32.totalorder %v613_v10, 14  ;;  %v40935_v10 = vmov 0 }
 0x1da   : > { %30001 = vmatmul.mubr.msk.f32.gmra.mrb[2].mxu0 %vm2495_vm4, %v34400_v11  ;;  %v4858_v11 = vld [vmem:[%s34108_s24 + $0xf9] sm:$0xff] }
 0x1db   : > { %30003 = vmatprep.mubr.msk.f32.mxu0 %vm2495_vm4, %v34403_v12  ;;  %v40888_v12 = vld [vmem:[#allocation5_spill] sm:$0xff] }
 0x1de   : > { %30004 = vmatmul.mubr.msk.f32.gmra.mrb[4].mxu0 %vm2495_vm4, %v34410_v13  ;;  %v40889_v13 = vld [vmem:[#allocation6_spill] sm:$0xff] }
 0x1df   : > { %30006 = vmatprep.mubr.msk.f32.mxu0 %vm2495_vm4, %v34413_v14  ;;  %v40890_v14 = vld [vmem:[#allocation7_spill] sm:$0xff] }
 0x1e2   : > { %30007 = vmatmul.mubr.msk.f32.gmra.mrb[6].mxu0 %vm2495_vm4, %v34420_v15  ;;  %v40891_v15 = vld [vmem:[#allocation8_spill] sm:$0xff] }
 0x1e3   : > { %30009 = vmatprep.mubr.msk.f32.mxu0 %vm2495_vm4, %v34423_v16  ;;  %v40892_v16 = vld [vmem:[#allocation9_spill] sm:$0xff] }
 0x1e6   : > { %30010 = vmatmul.mubr.msk.f32.gmra.mrb[8].mxu0 %vm2495_vm4, %v34430_v17  ;;  %v40893_v17 = vld [vmem:[#allocation10_spill] sm:$0xff] }
 0x1e7   : > { %30012 = vmatprep.mubr.msk.f32.mxu0 %vm2495_vm4, %v34433_v18  ;;  %v40894_v18 = vld [vmem:[#allocation11_spill] sm:$0xff] }
 0x1ea   : > { %30013 = vmatmul.mubr.msk.f32.gmra.mrb[10].mxu0 %vm2495_vm4, %v34440_v19  ;;  %v40895_v19 = vld [vmem:[#allocation12_spill] sm:$0xff] }
 0x1eb   : > { %30015 = vmatprep.mubr.msk.f32.mxu0 %vm2495_vm4, %v34443_v20  ;;  %v40896_v20 = vld [vmem:[#allocation13_spill] sm:$0xff] }
 0x1ee   : > { %30016 = vmatmul.mubr.msk.f32.gmra.mrb[12].mxu0 %vm2495_vm4, %v34450_v21  ;;  %v40897_v21 = vld [vmem:[#allocation14_spill] sm:$0xff] }
 0x1ef   : > { %30018 = vmatprep.mubr.msk.f32.mxu0 %vm2495_vm4, %v34453_v22  ;;  %v40898_v22 = vld [vmem:[#allocation16_spill] sm:$0xff] }
 0x1f2   : > { %30019 = vmatmul.mubr.msk.f32.gmra.mrb[14].mxu0 %vm2495_vm4, %v34460_v23  ;;  %v40899_v23 = vld [vmem:[#allocation19_spill] sm:$0xff] }
 0x1f3   : > { %30021 = vmatprep.mubr.msk.f32.mxu0 %vm2495_vm4, %v34463_v24  ;;  %v40900_v24 = vld [vmem:[#allocation21_spill] sm:$0xff] }
 0x1f6   : > { %30022 = vmatmul.mubr.msk.f32.gmra.mrb[16].mxu0 %vm2495_vm4, %v34470_v25  ;;  %v40901_v25 = vld [vmem:[#allocation23_spill] sm:$0xff] }
 0x1f7   : > { %30024 = vmatprep.mubr.msk.f32.mxu0 %vm2495_vm4, %v34473_v26  ;;  %v5207_v26 = vld [vmem:[%s34108_s24 + $0xf2] sm:$0xff] }
 0x1fa   : > { %30025 = vmatmul.mubr.msk.f32.gmra.mrb[18].mxu0 %vm2495_vm4, %v34480_v27  ;;  %v5208_v27 = vld [vmem:[%s34108_s24 + $0xfa] sm:$0xff] }
 0x1fb   : > { %30027 = vmatprep.mubr.msk.f32.mxu0 %vm2495_vm4, %v34483_v28  ;;  %v5673_v28 = vld [vmem:[#allocation2 + $0x10] sm:$0xff] }
 0x1fe   : > { %30028 = vmatmul.mubr.msk.f32.gmra.mrb[20].mxu0 %vm2495_vm4, %v34490_v29  ;;  %v5674_v29 = vld [vmem:[#allocation2 + $0x18] sm:$0xff] }
 0x1ff   : > { %30030 = vmatprep.mubr.msk.f32.mxu0 %vm2495_vm4, %v34493_v30  ;;  %v5672_v30 = vld [vmem:[%s40488_s2] sm:$0xff] }
 0x202   : > { %30031 = vmatmul.mubr.msk.f32.gmra.mrb[22].mxu0 %vm2495_vm4, %v34500_v31  ;;  %v35168_v31 = vld [vmem:[%s40488_s2 + $0x20] sm:$0xff] }
 0x203   : > { %30033 = vmatprep.mubr.msk.f32.mxu0 %vm2495_vm4, %v40886_v7  ;;  %32787 = vmatprep.subr.mxu1 %v35168_v31 }
 0x204   : > { %32788 = vmatpush3.msra.mxu1 %v35168_v31 }
 0x205   : > { %30303 = vmatprep.subr.mxu1 %v35175_v40 }
 0x206   : > { %30034 = vmatmul.mubr.msk.f32.gmra.mrb[24].mxu0 %vm2495_vm4, %v40887_v9  ;;  %v40918_v9 = vmov 0 }
 0x207   : > { %30036 = vmatprep.mubr.msk.f32.mxu0 %vm2495_vm4, %v4857_v8 }
 0x20a   : > { %30037 = vmatmul.mubr.msk.f32.gmra.mrb[26].mxu0 %vm2495_vm4, %v4858_v11  ;;  %v35254_v11 = vadd.s32 104, %v35184_v43 }
 0x20b   : > { %30041 = vmatprep.mubr.msk.f32.mxu0 %vm2495_vm4, %v40888_v12 }
 0x20c   : > { %40921 = vst [vmem:[#allocation7_spill] sm:$0xff] %v35254_v11 }
 0x20e   : > { %30042 = vmatmul.mubr.msk.f32.vlgmr.msra.gmra.mrb[0].mxu0 %vm2495_vm4, %v34668_v3 }
 0x20f   : > { %30044 = vmatprep.mubr.msk.f32.mxu0 %vm2495_vm4, %v40889_v13  ;;  %30084 = vmatpush3.msra.mxu0 %v26098_v39  ;;  %v641_v39 = vand.u32 15, %v543_v34  ;;  %v35344_v34 = vadd.s32 168, %v35184_v43 }
 0x210   : > { %30127 = vmatprep.subr.mxu0 %v5672_v30 }
 0x211   : > { %vm35268_vm11 = vcmp.lt.s32.totalorder %v641_v39, 14  ;;  %40938 = vst [vmem:[#allocation19_spill] sm:$0xff] %v35344_v34  ;;  %v40941_v39 = vmov 0 }
 0x212   : > { %30045 = vmatmul.mubr.msk.f32.gmra.mrb[2].mxu0 %vm2495_vm4, %v40890_v14 }
 0x213   : > { %30047 = vmatprep.mubr.msk.f32.mxu0 %vm2495_vm4, %v40891_v15 }
 0x216   : > { %30048 = vmatmul.mubr.msk.f32.gmra.mrb[4].mxu0 %vm2495_vm4, %v40892_v16 }
 0x217   : > { %30050 = vmatprep.mubr.msk.f32.mxu0 %vm2495_vm4, %v40893_v17  ;;  %v40922_v17 = vmov 0 }
 0x218   : > { %v40923_v17 = vsel %vm35268_vm11, 4294967295, %v40922_v17 }
 0x219   : > { %40924 = vst [vmem:[#allocation8_spill] sm:$0xff] %v40923_v17 }
 0x21a   : > { %30051 = vmatmul.mubr.msk.f32.gmra.mrb[6].mxu0 %vm2495_vm4, %v40894_v18 }
 0x21b   : > { %30053 = vmatprep.mubr.msk.f32.mxu0 %vm2495_vm4, %v40895_v19 }
 0x21e   : > { %30054 = vmatmul.mubr.msk.f32.gmra.mrb[8].mxu0 %vm2495_vm4, %v40896_v20  ;;  %v655_v20 = vand.u32 15, %v35254_v11 }
 0x21f   : > { %30056 = vmatprep.mubr.msk.f32.mxu0 %vm2495_vm4, %v40897_v21  ;;  %v547_v21 = vadd.s32 120, %v35184_v43 }
 0x220   : > { %vm35297_vm12 = vcmp.lt.s32.totalorder %v655_v20, 14 }
 0x221   : > { %v669_v42 = vand.u32 15, %v547_v21 }
 0x222   : > { %30057 = vmatmul.mubr.msk.f32.gmra.mrb[10].mxu0 %vm2495_vm4, %v40878_v6  ;;  %v40915_v6 = vmov 0 }
 0x223   : > { %30059 = vmatprep.mubr.msk.f32.mxu0 %vm2495_vm4, %v40898_v22  ;;  %v40916_v6 = vsel %vm35234_vm9, 4294967295, %v40915_v6  ;;  %vm35318_vm13 = vcmp.lt.s32.totalorder %v669_v42, 14  ;;  %v35404_v42 = vld [vmem:[%s40488_s2 + $0x30] sm:$0xff] }
 0x224   : > { %40917 = vst [vmem:[#allocation5_spill] sm:$0xff] %v40916_v6 }
 0x226   : > { %30060 = vmatmul.mubr.msk.f32.gmra.mrb[12].mxu0 %vm2495_vm4, %v40880_v0 }
 0x227   : > { %30062 = vmatprep.mubr.msk.f32.mxu0 %vm2495_vm4, %v40881_v2  ;;  %v40911_v2 = vmov 0 }
 0x228   : > { %v40912_v2 = vsel %vm35214_vm8, 4294967295, %v40911_v2 }
 0x229   : > { %40913 = vst [vmem:[#allocation24_spill] sm:$0xff] %v40912_v2 }
 0x22a   : > { %30063 = vmatmul.mubr.msk.f32.gmra.mrb[14].mxu0 %vm2495_vm4, %v40899_v23 }
 0x22b   : > { %30065 = vmatprep.mubr.msk.f32.mxu0 %vm2495_vm4, %v40883_v4 }
 0x22e   : > { %30066 = vmatmul.mubr.msk.f32.gmra.mrb[16].mxu0 %vm2495_vm4, %v34748_v33 }
 0x22f   : > { %30068 = vmatprep.mubr.msk.f32.mxu0 %vm2495_vm4, %v40900_v24 }
 0x232   : > { %30069 = vmatmul.mubr.msk.f32.gmra.mrb[18].mxu0 %vm2495_vm4, %v34758_v61 }
 0x233   : > { %30071 = vmatprep.mubr.msk.f32.mxu0 %vm2495_vm4, %v40885_v1 }
 0x236   : > { %30072 = vmatmul.mubr.msk.f32.gmra.mrb[20].mxu0 %vm2495_vm4, %v34768_v32  ;;  %v35223_v32 = vadd.s32 72, %v35184_v43 }
 0x237   : > { %30074 = vmatprep.mubr.msk.f32.mxu0 %vm2495_vm4, %v40901_v25 }
 0x238   : > { %40914 = vst [vmem:[#allocation25_spill] sm:$0xff] %v35223_v32  ;;  %v627_v62 = vand.u32 15, %v35223_v32 }
 0x23a   : > { %30075 = vmatmul.mubr.msk.f32.gmra.mrb[22].mxu0 %vm2495_vm4, %v34778_v35  ;;  %vm35249_vm10 = vcmp.lt.s32.totalorder %v627_v62, 14 }
 0x23b   : > { %30077 = vmatprep.mubr.msk.f32.mxu0 %vm2495_vm4, %v34972_v5  ;;  %v40919_v9 = vsel %vm35249_vm10, 4294967295, %v40918_v9 }
 0x23c   : > { %40920 = vst [vmem:[#allocation6_spill] sm:$0xff] %v40919_v9 }
 0x23e   : > { %30078 = vmatmul.mubr.msk.f32.gmra.mrb[24].mxu0 %vm2495_vm4, %v34979_v63 }
 0x23f   : > { %30080 = vmatprep.mubr.msk.f32.mxu0 %vm2495_vm4, %v5207_v26 }
 0x242   : > { %30081 = vmatmul.mubr.msk.f32.gmra.mrb[26].mxu0 %vm2495_vm4, %v5208_v27  ;;  %v35291_v27 = vadd.s32 136, %v35184_v43  ;;  %vm15346_vm4 = vcmask 130048  }
 0x243   : > { %30085 = vmatprep.mubr.msk.f32.mxu0 %vm5559_vm5, %v5673_v28 }
 0x244   : > { %40925 = vst [vmem:[#allocation9_spill] sm:$0xff] %v35291_v27 }
 0x246   : > { %30086 = vmatmul.mubr.msk.f32.vlgmr.msra.gmra.mrb[28].mxu0 %vm5559_vm5, %v5674_v29 }
 0x247   : > { %30128 = vmatpush3.msra.mxu0 %v5672_v30  ;;  %v40926_v30 = vmov 0 }
 0x248   : > { %30171 = vmatprep.subr.mxu0 %v35181_v41  ;;  %v40927_v30 = vsel %vm35297_vm12, 4294967295, %v40926_v30 }
 0x249   : > { %40928 = vst [vmem:[#allocation10_spill] sm:$0xff] %v40927_v30 }
 0x2e1   : > { %v30043_v50 = vpop.f32.mrb[0].mxu0 }
 0x2e2   : > { %v5532_v51 = vsel %vm35194_vm6, %v30043_v50, 0.0  ;;  %v5364_v52 = vpop.f32.mrb[1].mxu0 }
 0x2e3   : > { %5561 = vst.msk [vmem:[%s34113_s27 + $0x8] sm:$0xff] %vm5559_vm5, %v5532_v51  ;;  %v5589_v54 = vmax.f32 %v5532_v51, 0.0  ;;  %5560 = vst.msk [vmem:[%s34113_s27] sm:$0xff] %vm5559_vm5, %v5364_v52  ;;  %v5588_v55 = vmax.f32 %v5364_v52, 0.0  ;;  %v683_v52 = vand.u32 15, %v35291_v27 }
 0x2e5   : > { %5617 = vst.msk [vmem:[#allocation2 + $0x28] sm:$0xff] %vm5559_vm5, %v5589_v54  ;;  %5616 = vst.msk [vmem:[#allocation2 + $0x20] sm:$0xff] %vm5559_vm5, %v5588_v55  ;;  %v30046_v58 = vpop.f32.mrb[2].mxu0  ;;  %v40930_v55 = vmov 0  ;;  %vm35335_vm14 = vcmp.lt.s32.totalorder %v683_v52, 14 }
 0x2e6   : > { %v5534_v59 = vsel %vm35205_vm7, %v30046_v58, 0.0  ;;  %v5374_v60 = vpop.f32.mrb[3].mxu0  ;;  %v40931_v55 = vsel %vm35318_vm13, 4294967295, %v40930_v55  ;;  %v40936_v10 = vsel %vm35335_vm14, 4294967295, %v40935_v10 }
 0x2e7   : > { %5563 = vst.msk [vmem:[%s34113_s27 + $0x18] sm:$0xff] %vm5559_vm5, %v5534_v59  ;;  %v5591_v3 = vmax.f32 %v5534_v59, 0.0  ;;  %5562 = vst.msk [vmem:[%s34113_s27 + $0x10] sm:$0xff] %vm5559_vm5, %v5374_v60  ;;  %v5590_v4 = vmax.f32 %v5374_v60, 0.0 }
 0x2e8   : > { %40932 = vst [vmem:[#allocation12_spill] sm:$0xff] %v40931_v55  ;;  %40937 = vst [vmem:[#allocation16_spill] sm:$0xff] %v40936_v10 }
 0x2e9   : > { %5619 = vst.msk [vmem:[#allocation2 + $0x38] sm:$0xff] %vm5559_vm5, %v5591_v3  ;;  %5618 = vst.msk [vmem:[#allocation2 + $0x30] sm:$0xff] %vm5559_vm5, %v5590_v4  ;;  %v30049_v33 = vpop.f32.mrb[4].mxu0 }
 0x2ea   : > { %v5536_v35 = vsel %vm35214_vm8, %v30049_v33, 0.0  ;;  %v5384_v61 = vpop.f32.mrb[5].mxu0 }
 0x2eb   : > { %5565 = vst.msk [vmem:[%s34113_s27 + $0x28] sm:$0xff] %vm5559_vm5, %v5536_v35  ;;  %v5593_v36 = vmax.f32 %v5536_v35, 0.0  ;;  %5564 = vst.msk [vmem:[%s34113_s27 + $0x20] sm:$0xff] %vm5559_vm5, %v5384_v61  ;;  %v5592_v5 = vmax.f32 %v5384_v61, 0.0  ;;  %v697_v61 = vand.u32 15, %v551_v57  ;;  %v559_v57 = vadd.s32 216, %v35184_v43 }
 0x2ec   : > { %v5675_v63 = vld [vmem:[#allocation2 + $0x20] sm:$0xff]  ;;  %v5676_v1 = vld [vmem:[#allocation2 + $0x28] sm:$0xff] }
 0x2ed   : > { %5621 = vst.msk [vmem:[#allocation2 + $0x48] sm:$0xff] %vm5559_vm5, %v5593_v36  ;;  %5620 = vst.msk [vmem:[#allocation2 + $0x40] sm:$0xff] %vm5559_vm5, %v5592_v5  ;;  %v30052_v0 = vpop.f32.mrb[6].mxu0  ;;  %30088 = vmatprep.mubr.msk.f32.mxu0 %vm5559_vm5, %v5675_v63  ;;  %vm35363_vm15 = vcmp.lt.s32.totalorder %v697_v61, 14 }
 0x2ee   : > { %v5538_v37 = vsel %vm35234_vm9, %v30052_v0, 0.0  ;;  %v5394_v38 = vpop.f32.mrb[7].mxu0  ;;  %30089 = vmatmul.mubr.msk.f32.gmra.mrb[30].mxu0 %vm5559_vm5, %v5676_v1  ;;  %v555_v0 = vadd.s32 184, %v35184_v43  ;;  %v40942_v39 = vsel %vm35363_vm15, 4294967295, %v40941_v39 }
 0x2ef   : > { %5567 = vst.msk [vmem:[%s34113_s27 + $0x38] sm:$0xff] %vm5559_vm5, %v5538_v37  ;;  %v5595_v7 = vmax.f32 %v5538_v37, 0.0  ;;  %5566 = vst.msk [vmem:[%s34113_s27 + $0x30] sm:$0xff] %vm5559_vm5, %v5394_v38  ;;  %v5594_v8 = vmax.f32 %v5394_v38, 0.0 }
 0x2f0   : > { %v35256_v12 = vld [vmem:[#allocation2 + $0x30] sm:$0xff]  ;;  %v35258_v13 = vld [vmem:[#allocation2 + $0x38] sm:$0xff]  ;;  %40943 = vst [vmem:[#allocation26_spill] sm:$0xff] %v40942_v39 }
 0x2f1   : > { %5623 = vst.msk [vmem:[#allocation2 + $0x58] sm:$0xff] %vm5559_vm5, %v5595_v7  ;;  %5622 = vst.msk [vmem:[#allocation2 + $0x50] sm:$0xff] %vm5559_vm5, %v5594_v8  ;;  %v30055_v14 = vpop.f32.mrb[8].mxu0  ;;  %30091 = vmatprep.mubr.msk.f32.mxu0 %vm5559_vm5, %v35256_v12  ;;  %v711_v7 = vand.u32 15, %v35344_v34 }
 0x2f2   : > { %v5540_v15 = vsel %vm35249_vm10, %v30055_v14, 0.0  ;;  %v5404_v16 = vpop.f32.mrb[9].mxu0  ;;  %30092 = vmatmul.mubr.msk.f32.gmra.mrb[32].mxu0 %vm5559_vm5, %v35258_v13 }
 0x2f3   : > { %5569 = vst.msk [vmem:[%s34113_s27 + $0x48] sm:$0xff] %vm5559_vm5, %v5540_v15  ;;  %v5597_v18 = vmax.f32 %v5540_v15, 0.0  ;;  %5568 = vst.msk [vmem:[%s34113_s27 + $0x40] sm:$0xff] %vm5559_vm5, %v5404_v16  ;;  %v5596_v19 = vmax.f32 %v5404_v16, 0.0  ;;  %vm35384_vm0 = vcmp.lt.s32.totalorder %v711_v7, 14 }
 0x2f4   : > { %v35278_v22 = vld [vmem:[#allocation2 + $0x40] sm:$0xff]  ;;  %v35280_v23 = vld [vmem:[#allocation2 + $0x48] sm:$0xff] }
 0x2f5   : > { %5625 = vst.msk [vmem:[#allocation2 + $0x68] sm:$0xff] %vm5559_vm5, %v5597_v18  ;;  %5624 = vst.msk [vmem:[#allocation2 + $0x60] sm:$0xff] %vm5559_vm5, %v5596_v19  ;;  %v30058_v24 = vpop.f32.mrb[10].mxu0  ;;  %30094 = vmatprep.mubr.msk.f32.mxu0 %vm5559_vm5, %v35278_v22  ;;  %v725_v19 = vand.u32 15, %v555_v0 }
 0x2f6   : > { %v5542_v25 = vsel %vm35268_vm11, %v30058_v24, 0.0  ;;  %v5414_v26 = vpop.f32.mrb[11].mxu0  ;;  %30095 = vmatmul.mubr.msk.f32.gmra.mrb[34].mxu0 %vm5559_vm5, %v35280_v23  ;;  %v40946_v24 = vmov 0 }
 0x2f7   : > { %5571 = vst.msk [vmem:[%s34113_s27 + $0x58] sm:$0xff] %vm5559_vm5, %v5542_v25  ;;  %v5599_v28 = vmax.f32 %v5542_v25, 0.0  ;;  %5570 = vst.msk [vmem:[%s34113_s27 + $0x50] sm:$0xff] %vm5559_vm5, %v5414_v26  ;;  %v5598_v29 = vmax.f32 %v5414_v26, 0.0  ;;  %v40947_v24 = vsel %vm35384_vm0, 4294967295, %v40946_v24  ;;  %v35389_v25 = vadd.s32 200, %v35184_v43 }
 0x2f8   : > { %v35301_v45 = vld [vmem:[#allocation2 + $0x50] sm:$0xff]  ;;  %v35303_v46 = vld [vmem:[#allocation2 + $0x58] sm:$0xff]  ;;  %40948 = vst [vmem:[#allocation29_spill] sm:$0xff] %v40947_v24  ;;  %vm35412_vm1 = vcmp.lt.s32.totalorder %v725_v19, 14 }
 0x2f9   : > { %40929 = vst [vmem:[#allocation11_spill] sm:$0xff] %v35303_v46  ;;  %5627 = vst.msk [vmem:[#allocation2 + $0x78] sm:$0xff] %vm5559_vm5, %v5599_v28  ;;  %v30061_v49 = vpop.f32.mrb[12].mxu0  ;;  %30097 = vmatprep.mubr.msk.f32.mxu0 %vm5559_vm5, %v35301_v45  ;;  %v35598_v34 = vld [vmem:[#allocation2 + $0x57] sm:$0xff] }
 0x2fa   : > { %5626 = vst.msk [vmem:[#allocation2 + $0x70] sm:$0xff] %vm5559_vm5, %v5598_v29  ;;  %v5544_v50 = vsel %vm35297_vm12, %v30061_v49, 0.0  ;;  %v5424_v51 = vpop.f32.mrb[13].mxu0  ;;  %30098 = vmatmul.mubr.msk.f32.gmra.mrb[36].mxu0 %vm5559_vm5, %v35303_v46  ;;  %40949 = vst [vmem:[#allocation30_spill] sm:$0xff] %v35389_v25 }
 0x2fb   : > { %5573 = vst.msk [vmem:[%s34113_s27 + $0x68] sm:$0xff] %vm5559_vm5, %v5544_v50  ;;  %v5601_v53 = vmax.f32 %v5544_v50, 0.0  ;;  %5572 = vst.msk [vmem:[%s34113_s27 + $0x60] sm:$0xff] %vm5559_vm5, %v5424_v51  ;;  %v5600_v54 = vmax.f32 %v5424_v51, 0.0  ;;  %v40952_v51 = vmov 0 }
 0x2fc   : > { %v35323_v58 = vld [vmem:[#allocation2 + $0x60] sm:$0xff]  ;;  %v35325_v59 = vld [vmem:[#allocation2 + $0x68] sm:$0xff]  ;;  %v40953_v51 = vsel %vm35412_vm1, 4294967295, %v40952_v51 }
 0x2fd   : > { %40933 = vst [vmem:[#allocation13_spill] sm:$0xff] %v35323_v58  ;;  %40934 = vst [vmem:[#allocation14_spill] sm:$0xff] %v35325_v59  ;;  %v30064_v60 = vpop.f32.mrb[14].mxu0  ;;  %30100 = vmatprep.mubr.msk.f32.mxu0 %vm5559_vm5, %v35323_v58  ;;  %v35600_v27 = vld [vmem:[#allocation2 + $0x59] sm:$0xff]  ;;  %v35608_v32 = vld [vmem:[#allocation2 + $0x61] sm:$0xff] }
 0x2fe   : > { %5629 = vst.msk [vmem:[#allocation2 + $0x88] sm:$0xff] %vm5559_vm5, %v5601_v53  ;;  %5628 = vst.msk [vmem:[#allocation2 + $0x80] sm:$0xff] %vm5559_vm5, %v5600_v54  ;;  %v5546_v3 = vsel %vm35318_vm13, %v30064_v60, 0.0  ;;  %v5434_v4 = vpop.f32.mrb[15].mxu0  ;;  %30101 = vmatmul.mubr.msk.f32.gmra.mrb[38].mxu0 %vm5559_vm5, %v35325_v59  ;;  %v739_v54 = vand.u32 15, %v35389_v25  ;;  %v35592_v25 = vld [vmem:[#allocation2 + $0x51] sm:$0xff] }
 0x2ff   : > { %5575 = vst.msk [vmem:[%s34113_s27 + $0x78] sm:$0xff] %vm5559_vm5, %v5546_v3  ;;  %v5603_v33 = vmax.f32 %v5546_v3, 0.0  ;;  %5574 = vst.msk [vmem:[%s34113_s27 + $0x70] sm:$0xff] %vm5559_vm5, %v5434_v4  ;;  %v5602_v35 = vmax.f32 %v5434_v4, 0.0  ;;  %v35606_v11 = vld [vmem:[#allocation2 + $0x5f] sm:$0xff]  ;;  %v35614_v47 = vld [vmem:[#allocation2 + $0x67] sm:$0xff] }
 0x300   : > { %v35348_v5 = vld [vmem:[#allocation2 + $0x78] sm:$0xff]  ;;  %40954 = vst [vmem:[#allocation33_spill] sm:$0xff] %v40953_v51  ;;  %vm35444_vm2 = vcmp.lt.s32.totalorder %v739_v54, 14 }
 0x301   : > { %v35346_v36 = vld [vmem:[#allocation2 + $0x70] sm:$0xff]  ;;  %40940 = vst [vmem:[#allocation23_spill] sm:$0xff] %v35348_v5  ;;  %5631 = vst.msk [vmem:[#allocation2 + $0x98] sm:$0xff] %vm5559_vm5, %v5603_v33  ;;  %v30067_v62 = vpop.f32.mrb[16].mxu0  ;;  %v6282_v58 = vld [vmem:[#allocation2 + $0x19] sm:$0xff] }
 0x302   : > { %40939 = vst [vmem:[#allocation21_spill] sm:$0xff] %v35346_v36  ;;  %5630 = vst.msk [vmem:[#allocation2 + $0x90] sm:$0xff] %vm5559_vm5, %v5602_v35  ;;  %30103 = vmatprep.mubr.msk.f32.mxu0 %vm5559_vm5, %v35346_v36  ;;  %v5548_v63 = vsel %vm35335_vm14, %v30067_v62, 0.0  ;;  %v5444_v1 = vpop.f32.mrb[17].mxu0  ;;  %v40957_v62 = vmov 0  ;;  %v35616_v43 = vld [vmem:[#allocation2 + $0x69] sm:$0xff] }
 0x303   : > { %30104 = vmatmul.mubr.msk.f32.gmra.mrb[40].mxu0 %vm5559_vm5, %v35348_v5  ;;  %5577 = vst.msk [vmem:[%s34113_s27 + $0x88] sm:$0xff] %vm5559_vm5, %v5548_v63  ;;  %v5605_v37 = vmax.f32 %v5548_v63, 0.0  ;;  %5576 = vst.msk [vmem:[%s34113_s27 + $0x80] sm:$0xff] %vm5559_vm5, %v5444_v1  ;;  %v5604_v38 = vmax.f32 %v5444_v1, 0.0  ;;  %v40958_v62 = vsel %vm35444_vm2, 4294967295, %v40957_v62  ;;  %v753_v63 = vand.u32 15, %v559_v57 }
 0x304   : > { %40959 = vst [vmem:[#allocation36_spill] sm:$0xff] %v40958_v62  ;;  %v35622_v44 = vld [vmem:[#allocation2 + $0x6f] sm:$0xff]  ;;  %v35630_v62 = vld [vmem:[#allocation2 + $0x77] sm:$0xff] }
 0x305   : > { %v35368_v8 = vld [vmem:[#allocation2 + $0x80] sm:$0xff]  ;;  %v35370_v14 = vld [vmem:[#allocation2 + $0x88] sm:$0xff]  ;;  %5633 = vst.msk [vmem:[#allocation2 + $0xa8] sm:$0xff] %vm5559_vm5, %v5605_v37  ;;  %5632 = vst.msk [vmem:[#allocation2 + $0xa0] sm:$0xff] %vm5559_vm5, %v5604_v38  ;;  %v30070_v15 = vpop.f32.mrb[18].mxu0  ;;  %vm35468_vm3 = vcmp.lt.s32.totalorder %v753_v63, 14 }
 0x306   : > { %40944 = vst [vmem:[#allocation27_spill] sm:$0xff] %v35368_v8  ;;  %40945 = vst [vmem:[#allocation28_spill] sm:$0xff] %v35370_v14  ;;  %30106 = vmatprep.mubr.msk.f32.mxu0 %vm5559_vm5, %v35368_v8  ;;  %v5550_v16 = vsel %vm35363_vm15, %v30070_v15, 0.0  ;;  %v5454_v18 = vpop.f32.mrb[19].mxu0  ;;  %v35528_v63 = vld [vmem:[#allocation2 + $0x1f] sm:$0xff]  ;;  %v35646_v10 = vld [vmem:[#allocation2 + $0x87] sm:$0xff] }
 0x307   : > { %30107 = vmatmul.mubr.msk.f32.gmra.mrb[42].mxu0 %vm5559_vm5, %v35370_v14  ;;  %5579 = vst.msk [vmem:[%s34113_s27 + $0x98] sm:$0xff] %vm5559_vm5, %v5550_v16  ;;  %v5607_v20 = vmax.f32 %v5550_v16, 0.0  ;;  %5578 = vst.msk [vmem:[%s34113_s27 + $0x90] sm:$0xff] %vm5559_vm5, %v5454_v18  ;;  %v5606_v21 = vmax.f32 %v5454_v18, 0.0  ;;  %v40962_v18 = vmov 0  ;;  %v35632_v51 = vld [vmem:[#allocation2 + $0x79] sm:$0xff] }
 0x308   : > { %v35393_v28 = vld [vmem:[#allocation2 + $0x98] sm:$0xff]  ;;  %v40963_v18 = vsel %vm35468_vm3, 4294967295, %v40962_v18  ;;  %v35640_v39 = vld [vmem:[#allocation2 + $0x81] sm:$0xff] }
 0x309   : > { %v35391_v26 = vld [vmem:[#allocation2 + $0x90] sm:$0xff]  ;;  %40951 = vst [vmem:[#allocation32_spill] sm:$0xff] %v35393_v28  ;;  %5635 = vst.msk [vmem:[#allocation2 + $0xb8] sm:$0xff] %vm5559_vm5, %v5607_v20  ;;  %v30073_v29 = vpop.f32.mrb[20].mxu0  ;;  %v35638_v24 = vld [vmem:[#allocation2 + $0x7f] sm:$0xff] }
 0x30a   : > { %40950 = vst [vmem:[#allocation31_spill] sm:$0xff] %v35391_v26  ;;  %5634 = vst.msk [vmem:[#allocation2 + $0xb0] sm:$0xff] %vm5559_vm5, %v5606_v21  ;;  %30109 = vmatprep.mubr.msk.f32.mxu0 %vm5559_vm5, %v35391_v26  ;;  %30282 = vmatprep.mubr.msk.f32.mxu1 %vm5559_vm5, %v35391_v26  ;;  %v5552_v49 = vsel %vm35384_vm0, %v30073_v29, 0.0  ;;  %v5464_v50 = vpop.f32.mrb[21].mxu0  ;;  %v35648_v55 = vld [vmem:[#allocation2 + $0x89] sm:$0xff]  ;;  %v35656_v17 = vld [vmem:[#allocation2 + $0x91] sm:$0xff] }
 0x30b   : > { %30110 = vmatmul.mubr.msk.f32.gmra.mrb[44].mxu0 %vm5559_vm5, %v35393_v28  ;;  %30283 = vmatmul.mubr.msk.f32.vlgmr.msra.gmra.mrb[0].mxu1 %vm5559_vm5, %v35393_v28  ;;  %5581 = vst.msk [vmem:[%s34113_s27 + $0xa8] sm:$0xff] %vm5559_vm5, %v5552_v49  ;;  %v5609_v52 = vmax.f32 %v5552_v49, 0.0  ;;  %5580 = vst.msk [vmem:[%s34113_s27 + $0xa0] sm:$0xff] %vm5559_vm5, %v5464_v50  ;;  %v5608_v53 = vmax.f32 %v5464_v50, 0.0  ;;  %v35654_v30 = vld [vmem:[#allocation2 + $0x8f] sm:$0xff]  ;;  %v35662_v9 = vld [vmem:[#allocation2 + $0x97] sm:$0xff] }
 0x30c   : > { %30304 = vmatpush3.msra.mxu1 %v35175_v40  ;;  %v35423_v60 = vld [vmem:[#allocation2 + $0xa0] sm:$0xff]  ;;  %v35425_v3 = vld [vmem:[#allocation2 + $0xa8] sm:$0xff]  ;;  %40964 = vst [vmem:[#allocation39_spill] sm:$0xff] %v40963_v18  ;;  %v35624_v18 = vld [vmem:[#allocation2 + $0x71] sm:$0xff] }
 0x30d   : > { %40955 = vst [vmem:[#allocation34_spill] sm:$0xff] %v35423_v60  ;;  %40956 = vst [vmem:[#allocation35_spill] sm:$0xff] %v35425_v3  ;;  %30347 = vmatprep.subr.mxu1 %v35404_v42  ;;  %v30076_v4 = vpop.f32.mrb[22].mxu0  ;;  %30112 = vmatprep.mubr.msk.f32.mxu0 %vm5559_vm5, %v35423_v60  ;;  %v35664_v6 = vld [vmem:[#allocation2 + $0x99] sm:$0xff]  ;;  %v35672_v56 = vld [vmem:[#allocation2 + $0xa1] sm:$0xff] }
 0x30e   : > { %5637 = vst.msk [vmem:[#allocation2 + $0xc8] sm:$0xff] %vm5559_vm5, %v5609_v52  ;;  %5636 = vst.msk [vmem:[#allocation2 + $0xc0] sm:$0xff] %vm5559_vm5, %v5608_v53  ;;  %30285 = vmatprep.mubr.msk.f32.mxu1 %vm5559_vm5, %v35423_v60  ;;  %v5554_v40 = vsel %vm35412_vm1, %v30076_v4, 0.0  ;;  %v5474_v33 = vpop.f32.mrb[23].mxu0  ;;  %v35670_v2 = vld [vmem:[#allocation2 + $0x9f] sm:$0xff]  ;;  %v35678_v48 = vld [vmem:[#allocation2 + $0xa7] sm:$0xff] }
 0x30f   : > { %30113 = vmatmul.mubr.msk.f32.gmra.mrb[46].mxu0 %vm5559_vm5, %v35425_v3  ;;  %30286 = vmatmul.mubr.msk.f32.gmra.mrb[2].mxu1 %vm5559_vm5, %v35425_v3  ;;  %5583 = vst.msk [vmem:[%s34113_s27 + $0xb8] sm:$0xff] %vm5559_vm5, %v5554_v40  ;;  %v5611_v35 = vmax.f32 %v5554_v40, 0.0  ;;  %5582 = vst.msk [vmem:[%s34113_s27 + $0xb0] sm:$0xff] %vm5559_vm5, %v5474_v33  ;;  %v5610_v61 = vmax.f32 %v5474_v33, 0.0  ;;  %v5644_v40 = vld [vmem:[#allocation2 + $0xf] sm:$0xff]  ;;  %v5645_v33 = vld [vmem:[#allocation2 + $0x17] sm:$0xff] }
 0x310   : > { %v35450_v0 = vld [vmem:[#allocation2 + $0xb8] sm:$0xff] }
 0x311   : > { %v35448_v1 = vld [vmem:[#allocation2 + $0xb0] sm:$0xff]  ;;  %40961 = vst [vmem:[#allocation38_spill] sm:$0xff] %v35450_v0  ;;  %5639 = vst.msk [vmem:[#allocation2 + $0xd8] sm:$0xff] %vm5559_vm5, %v5611_v35  ;;  %v30079_v37 = vpop.f32.mrb[24].mxu0 }
 0x312   : > { %40960 = vst [vmem:[#allocation37_spill] sm:$0xff] %v35448_v1  ;;  %5638 = vst.msk [vmem:[#allocation2 + $0xd0] sm:$0xff] %vm5559_vm5, %v5610_v61  ;;  %30115 = vmatprep.mubr.msk.f32.mxu0 %vm5559_vm5, %v35448_v1  ;;  %30288 = vmatprep.mubr.msk.f32.mxu1 %vm5559_vm5, %v35448_v1  ;;  %v5556_v38 = vsel %vm35444_vm2, %v30079_v37, 0.0  ;;  %v5484_v7 = vpop.f32.mrb[25].mxu0  ;;  %v35530_v37 = vld [vmem:[#allocation2 + $0x21] sm:$0xff]  ;;  %v6281_v8 = vld [vmem:[#allocation2 + $0x11] sm:$0xff] }
 0x313   : > { %30116 = vmatmul.mubr.msk.f32.gmra.mrb[48].mxu0 %vm5559_vm5, %v35450_v0  ;;  %30289 = vmatmul.mubr.msk.f32.gmra.mrb[4].mxu1 %vm5559_vm5, %v35450_v0  ;;  %5585 = vst.msk [vmem:[%s34113_s27 + $0xc8] sm:$0xff] %vm5559_vm5, %v5556_v38  ;;  %v5613_v15 = vmax.f32 %v5556_v38, 0.0  ;;  %5584 = vst.msk [vmem:[%s34113_s27 + $0xc0] sm:$0xff] %vm5559_vm5, %v5484_v7  ;;  %v5612_v16 = vmax.f32 %v5484_v7, 0.0  ;;  %v35535_v38 = vld [vmem:[%s40488_s2 + $0x18] sm:$0xff]  ;;  %v35542_v7 = vld [vmem:[#allocation2 + $0x27] sm:$0xff] }
 0x315   : > { %v35472_v19 = vld [vmem:[#allocation2 + $0xc0] sm:$0xff]  ;;  %v35474_v20 = vld [vmem:[#allocation2 + $0xc8] sm:$0xff]  ;;  %5641 = vst.msk [vmem:[#allocation2 + $0xe8] sm:$0xff] %vm5559_vm5, %v5613_v15  ;;  %5640 = vst.msk [vmem:[#allocation2 + $0xe0] sm:$0xff] %vm5559_vm5, %v5612_v16  ;;  %v30082_v21 = vpop.f32.mrb[26].mxu0 }
 0x316   : > { %40965 = vst [vmem:[#allocation40_spill] sm:$0xff] %v35472_v19  ;;  %40966 = vst [vmem:[#allocation41_spill] sm:$0xff] %v35474_v20  ;;  %30118 = vmatprep.mubr.msk.f32.mxu0 %vm5559_vm5, %v35472_v19  ;;  %30291 = vmatprep.mubr.msk.f32.mxu1 %vm5559_vm5, %v35472_v19  ;;  %v5558_v29 = vsel %vm35468_vm3, %v30082_v21, 0.0  ;;  %v5494_v49 = vpop.f32.mrb[27].mxu0  ;;  %v35544_v15 = vld [vmem:[#allocation2 + $0x29] sm:$0xff]  ;;  %v35553_v21 = vld [vmem:[#allocation2 + $0x31] sm:$0xff] }
 0x317   : > { %30119 = vmatmul.mubr.msk.f32.gmra.mrb[50].mxu0 %vm5559_vm5, %v35474_v20  ;;  %30292 = vmatmul.mubr.msk.f32.gmra.mrb[6].mxu1 %vm5559_vm5, %v35474_v20  ;;  %5587 = vst.msk [vmem:[%s34113_s27 + $0xd8] sm:$0xff] %vm5559_vm5, %v5558_v29  ;;  %v5615_v50 = vmax.f32 %v5558_v29, 0.0  ;;  %5586 = vst.msk [vmem:[%s34113_s27 + $0xd0] sm:$0xff] %vm5559_vm5, %v5494_v49  ;;  %v5614_v52 = vmax.f32 %v5494_v49, 0.0  ;;  %v35551_v16 = vld [vmem:[#allocation2 + $0x2f] sm:$0xff]  ;;  %v35565_v29 = vld [vmem:[#allocation2 + $0x37] sm:$0xff] }
 0x318   : > { %v35494_v54 = vld [vmem:[#allocation2 + $0xd8] sm:$0xff]  ;;  %v35704_v20 = vld [vmem:[#allocation2 + $0xc1] sm:$0xff] }
 0x319   : > { %v35492_v53 = vld [vmem:[#allocation2 + $0xd0] sm:$0xff]  ;;  %40968 = vst [vmem:[#allocation43_spill] sm:$0xff] %v35494_v54  ;;  %5643 = vst.msk [vmem:[#allocation2 + $0xf8] sm:$0xff] %vm5559_vm5, %v5615_v50  ;;  %v35567_v49 = vld [vmem:[#allocation2 + $0x39] sm:$0xff] }
 0x31a   : > { %40967 = vst [vmem:[#allocation42_spill] sm:$0xff] %v35492_v53  ;;  %5642 = vst.msk [vmem:[#allocation2 + $0xf0] sm:$0xff] %vm5559_vm5, %v5614_v52  ;;  %30121 = vmatprep.mubr.msk.f32.mxu0 %vm5559_vm5, %v35492_v53  ;;  %30294 = vmatprep.mubr.msk.f32.mxu1 %vm5559_vm5, %v35492_v53  ;;  %v35574_v50 = vld [vmem:[#allocation2 + $0x3f] sm:$0xff]  ;;  %v35710_v19 = vld [vmem:[#allocation2 + $0xc7] sm:$0xff] }
 0x31b   : > { %30122 = vmatmul.mubr.msk.f32.gmra.mrb[52].mxu0 %vm5559_vm5, %v35494_v54  ;;  %30295 = vmatmul.mubr.msk.f32.gmra.mrb[8].mxu1 %vm5559_vm5, %v35494_v54  ;;  %v35576_v52 = vld [vmem:[#allocation2 + $0x41] sm:$0xff]  ;;  %v35696_v54 = vld [vmem:[#allocation2 + $0xb9] sm:$0xff]  ;;  %v35712_v0 = vld [vmem:[#allocation2 + $0xc9] sm:$0xff] }
 0x31c   : > { %v35506_v57 = vld [vmem:[#allocation2 + $0xe0] sm:$0xff]  ;;  %v35508_v4 = vld [vmem:[#allocation2 + $0xe8] sm:$0xff]  ;;  %v35720_v3 = vld [vmem:[#allocation2 + $0xd1] sm:$0xff] }
 0x31d   : > { %40969 = vst [vmem:[#allocation44_spill] sm:$0xff] %v35506_v57  ;;  %40970 = vst [vmem:[#allocation45_spill] sm:$0xff] %v35508_v4  ;;  %30124 = vmatprep.mubr.msk.f32.mxu0 %vm5559_vm5, %v35506_v57  ;;  %30297 = vmatprep.mubr.msk.f32.mxu1 %vm5559_vm5, %v35506_v57  ;;  %v35694_v57 = vld [vmem:[#allocation2 + $0xb7] sm:$0xff]  ;;  %v35702_v53 = vld [vmem:[#allocation2 + $0xbf] sm:$0xff] }
 0x31e   : > { %v35718_v1 = vld [vmem:[#allocation2 + $0xcf] sm:$0xff]  ;;  %v35726_v60 = vld [vmem:[#allocation2 + $0xd7] sm:$0xff]  ;;  %v35734_v26 = vld [vmem:[#allocation2 + $0xdf] sm:$0xff] }
 0x31f   : > { %30125 = vmatmul.mubr.msk.f32.gmra.mrb[54].mxu0 %vm5559_vm5, %v35508_v4  ;;  %30298 = vmatmul.mubr.msk.f32.gmra.mrb[10].mxu1 %vm5559_vm5, %v35508_v4  ;;  %v35688_v4 = vld [vmem:[#allocation2 + $0xb1] sm:$0xff]  ;;  %v35728_v28 = vld [vmem:[#allocation2 + $0xd9] sm:$0xff]  ;;  %v35736_v14 = vld [vmem:[#allocation2 + $0xe1] sm:$0xff] }
 0x320   : > { %30129 = vmatprep.mubr.msk.f32.mxu0 %vm5559_vm5, %v5644_v40  ;;  %v35521_v61 = vld [vmem:[#allocation2 + $0xf8] sm:$0xff]  ;;  %v35584_v40 = vld [vmem:[#allocation2 + $0x49] sm:$0xff] }
 0x321   : > { %v35519_v35 = vld [vmem:[#allocation2 + $0xf0] sm:$0xff]  ;;  %40972 = vst [vmem:[#allocation47_spill] sm:$0xff] %v35521_v61  ;;  %v35742_v5 = vld [vmem:[#allocation2 + $0xe7] sm:$0xff]  ;;  %v35755_v46 = vld [vmem:[#allocation2 + $0xf9] sm:$0xff] }
 0x322   : > { %40971 = vst [vmem:[#allocation46_spill] sm:$0xff] %v35519_v35  ;;  %30300 = vmatprep.mubr.msk.f32.mxu1 %vm5559_vm5, %v35519_v35  ;;  %v35686_v35 = vld [vmem:[#allocation2 + $0xaf] sm:$0xff] }
 0x323   : > { %30130 = vmatmul.mubr.msk.f32.vlgmr.msra.gmra.mrb[28].mxu0 %vm5559_vm5, %v5645_v33  ;;  %30301 = vmatmul.mubr.msk.f32.gmra.mrb[12].mxu1 %vm5559_vm5, %v35521_v61  ;;  %v35590_v33 = vld [vmem:[#allocation2 + $0x4f] sm:$0xff] }
 0x324   : > { %30132 = vmatprep.mubr.msk.f32.mxu0 %vm5559_vm5, %v35528_v63  ;;  %30305 = vmatprep.mubr.msk.f32.mxu1 %vm5559_vm5, %v35530_v37  ;;  %v35680_v61 = vld [vmem:[#allocation2 + $0xa9] sm:$0xff]  ;;  %v35750_v59 = vld [vmem:[#allocation2 + $0xf1] sm:$0xff] }
 0x325   : > { %30172 = vmatpush3.msra.mxu0 %v35181_v41  ;;  %v35558_v41 = vld [vmem:[%s40488_s2 + $0x38] sm:$0xff]  ;;  %v35744_v36 = vld [vmem:[#allocation2 + $0xe9] sm:$0xff] }
 0x326   : > { %30215 = vmatprep.subr.mxu0 %v35535_v38 }
 0x327   : > { %30133 = vmatmul.mubr.msk.f32.gmra.mrb[30].mxu0 %vm5559_vm5, %v35542_v7  ;;  %30306 = vmatmul.mubr.msk.f32.vlgmr.msra.gmra.mrb[14].mxu1 %vm5559_vm5, %v35544_v15 }
 0x328   : > { %30135 = vmatprep.mubr.msk.f32.mxu0 %vm5559_vm5, %v35551_v16  ;;  %30308 = vmatprep.mubr.msk.f32.mxu1 %vm5559_vm5, %v35553_v21 }
 0x329   : > { %30348 = vmatpush3.msra.mxu1 %v35404_v42  ;;  %v35582_v42 = vld [vmem:[#allocation2 + $0x47] sm:$0xff] }
 0x32a   : > { %30391 = vmatprep.subr.mxu1 %v35558_v41 }
 0x32b   : > { %30136 = vmatmul.mubr.msk.f32.gmra.mrb[32].mxu0 %vm5559_vm5, %v35565_v29  ;;  %30309 = vmatmul.mubr.msk.f32.gmra.mrb[16].mxu1 %vm5559_vm5, %v35567_v49 }
 0x32c   : > { %30138 = vmatprep.mubr.msk.f32.mxu0 %vm5559_vm5, %v35574_v50  ;;  %30311 = vmatprep.mubr.msk.f32.mxu1 %vm5559_vm5, %v35576_v52 }
 0x32f   : > { %30139 = vmatmul.mubr.msk.f32.gmra.mrb[34].mxu0 %vm5559_vm5, %v35582_v42  ;;  %30312 = vmatmul.mubr.msk.f32.gmra.mrb[18].mxu1 %vm5559_vm5, %v35584_v40 }
 0x330   : > { %30141 = vmatprep.mubr.msk.f32.mxu0 %vm5559_vm5, %v35590_v33  ;;  %30314 = vmatprep.mubr.msk.f32.mxu1 %vm5559_vm5, %v35592_v25 }
 0x333   : > { %30142 = vmatmul.mubr.msk.f32.gmra.mrb[36].mxu0 %vm5559_vm5, %v35598_v34  ;;  %30315 = vmatmul.mubr.msk.f32.gmra.mrb[20].mxu1 %vm5559_vm5, %v35600_v27 }
 0x334   : > { %30144 = vmatprep.mubr.msk.f32.mxu0 %vm5559_vm5, %v35606_v11  ;;  %30317 = vmatprep.mubr.msk.f32.mxu1 %vm5559_vm5, %v35608_v32 }
 0x337   : > { %30145 = vmatmul.mubr.msk.f32.gmra.mrb[38].mxu0 %vm5559_vm5, %v35614_v47  ;;  %30318 = vmatmul.mubr.msk.f32.gmra.mrb[22].mxu1 %vm5559_vm5, %v35616_v43 }
 0x338   : > { %30147 = vmatprep.mubr.msk.f32.mxu0 %vm5559_vm5, %v35622_v44  ;;  %30320 = vmatprep.mubr.msk.f32.mxu1 %vm5559_vm5, %v35624_v18 }
 0x33b   : > { %30148 = vmatmul.mubr.msk.f32.gmra.mrb[40].mxu0 %vm5559_vm5, %v35630_v62  ;;  %30321 = vmatmul.mubr.msk.f32.gmra.mrb[24].mxu1 %vm5559_vm5, %v35632_v51 }
 0x33c   : > { %30150 = vmatprep.mubr.msk.f32.mxu0 %vm5559_vm5, %v35638_v24  ;;  %30323 = vmatprep.mubr.msk.f32.mxu1 %vm5559_vm5, %v35640_v39 }
 0x33f   : > { %30151 = vmatmul.mubr.msk.f32.gmra.mrb[42].mxu0 %vm5559_vm5, %v35646_v10  ;;  %30324 = vmatmul.mubr.msk.f32.gmra.mrb[26].mxu1 %vm5559_vm5, %v35648_v55 }
 0x340   : > { %30153 = vmatprep.mubr.msk.f32.mxu0 %vm5559_vm5, %v35654_v30  ;;  %30326 = vmatprep.mubr.msk.f32.mxu1 %vm5559_vm5, %v35656_v17 }
 0x343   : > { %30154 = vmatmul.mubr.msk.f32.gmra.mrb[44].mxu0 %vm5559_vm5, %v35662_v9  ;;  %30327 = vmatmul.mubr.msk.f32.gmra.mrb[0].mxu1 %vm5559_vm5, %v35664_v6 }
 0x344   : > { %30156 = vmatprep.mubr.msk.f32.mxu0 %vm5559_vm5, %v35670_v2  ;;  %30329 = vmatprep.mubr.msk.f32.mxu1 %vm5559_vm5, %v35672_v56 }
 0x347   : > { %30157 = vmatmul.mubr.msk.f32.gmra.mrb[46].mxu0 %vm5559_vm5, %v35678_v48  ;;  %30330 = vmatmul.mubr.msk.f32.gmra.mrb[2].mxu1 %vm5559_vm5, %v35680_v61 }
 0x348   : > { %30159 = vmatprep.mubr.msk.f32.mxu0 %vm5559_vm5, %v35686_v35  ;;  %30332 = vmatprep.mubr.msk.f32.mxu1 %vm5559_vm5, %v35688_v4 }
 0x34b   : > { %30160 = vmatmul.mubr.msk.f32.gmra.mrb[48].mxu0 %vm5559_vm5, %v35694_v57  ;;  %30333 = vmatmul.mubr.msk.f32.gmra.mrb[4].mxu1 %vm5559_vm5, %v35696_v54 }
 0x34c   : > { %30162 = vmatprep.mubr.msk.f32.mxu0 %vm5559_vm5, %v35702_v53  ;;  %30335 = vmatprep.mubr.msk.f32.mxu1 %vm5559_vm5, %v35704_v20 }
 0x34f   : > { %30163 = vmatmul.mubr.msk.f32.gmra.mrb[50].mxu0 %vm5559_vm5, %v35710_v19  ;;  %30336 = vmatmul.mubr.msk.f32.gmra.mrb[6].mxu1 %vm5559_vm5, %v35712_v0 }
 0x350   : > { %30165 = vmatprep.mubr.msk.f32.mxu0 %vm5559_vm5, %v35718_v1  ;;  %30338 = vmatprep.mubr.msk.f32.mxu1 %vm5559_vm5, %v35720_v3 }
 0x353   : > { %30166 = vmatmul.mubr.msk.f32.gmra.mrb[52].mxu0 %vm5559_vm5, %v35726_v60  ;;  %30339 = vmatmul.mubr.msk.f32.gmra.mrb[8].mxu1 %vm5559_vm5, %v35728_v28 }
 0x354   : > { %30168 = vmatprep.mubr.msk.f32.mxu0 %vm5559_vm5, %v35734_v26  ;;  %30341 = vmatprep.mubr.msk.f32.mxu1 %vm5559_vm5, %v35736_v14 }
 0x357   : > { %30169 = vmatmul.mubr.msk.f32.gmra.mrb[54].mxu0 %vm5559_vm5, %v35742_v5  ;;  %30342 = vmatmul.mubr.msk.f32.gmra.mrb[10].mxu1 %vm5559_vm5, %v35744_v36 }
 0x358   : > { %30344 = vmatprep.mubr.msk.f32.mxu1 %vm5559_vm5, %v35750_v59  ;;  %30173 = vmatprep.mubr.msk.f32.mxu0 %vm5559_vm5, %v6281_v8  ;;  %v7693_v8 = vld [vmem:[#allocation2 + $0xef] sm:$0xff] }
 0x35b   : > { %30174 = vmatmul.mubr.msk.f32.vlgmr.msra.gmra.mrb[28].mxu0 %vm5559_vm5, %v6282_v58  ;;  %30345 = vmatmul.mubr.msk.f32.gmra.mrb[12].mxu1 %vm5559_vm5, %v35755_v46  ;;  %v35773_v58 = vld [vmem:[%s40488_s2 + $0x40] sm:$0xff] }
 0x35c   : > { %30176 = vmatprep.mubr.msk.f32.mxu0 %vm5559_vm5, %v35530_v37  ;;  %30349 = vmatprep.mubr.msk.f32.mxu1 %vm5559_vm5, %v35551_v16  ;;  %v7694_v37 = vld [vmem:[#allocation2 + $0xf7] sm:$0xff] }
 0x35d   : > { %30216 = vmatpush3.msra.mxu0 %v35535_v38  ;;  %v7695_v38 = vld [vmem:[#allocation2 + $0xff] sm:$0xff] }
 0x35e   : > { %30259 = vmatprep.subr.mxu0 %v35168_v31 }
 0x35f   : > { %30177 = vmatmul.mubr.msk.f32.gmra.mrb[30].mxu0 %vm5559_vm5, %v35544_v15  ;;  %30350 = vmatmul.mubr.msk.f32.vlgmr.msra.gmra.mrb[14].mxu1 %vm5559_vm5, %v35565_v29  ;;  %v7696_v15 = vld [vmem:[#allocation2 + $0x107] sm:$0xff] }
 0x360   : > { %30179 = vmatprep.mubr.msk.f32.mxu0 %vm5559_vm5, %v35553_v21  ;;  %30352 = vmatprep.mubr.msk.f32.mxu1 %vm5559_vm5, %v35574_v50 }
 0x361   : > { %30392 = vmatpush3.msra.mxu1 %v35558_v41  ;;  %v6980_v41 = vld [vmem:[#allocation2 + $0x48] sm:$0xff] }
 0x362   : > { %30435 = vmatprep.subr.mxu1 %v35773_v58 }
 0x363   : > { %30180 = vmatmul.mubr.msk.f32.gmra.mrb[32].mxu0 %vm5559_vm5, %v35567_v49  ;;  %30353 = vmatmul.mubr.msk.f32.gmra.mrb[16].mxu1 %vm5559_vm5, %v35582_v42 }
 0x364   : > { %30182 = vmatprep.mubr.msk.f32.mxu0 %vm5559_vm5, %v35576_v52  ;;  %30355 = vmatprep.mubr.msk.f32.mxu1 %vm5559_vm5, %v35590_v33 }
 0x367   : > { %30183 = vmatmul.mubr.msk.f32.gmra.mrb[34].mxu0 %vm5559_vm5, %v35584_v40  ;;  %30356 = vmatmul.mubr.msk.f32.gmra.mrb[18].mxu1 %vm5559_vm5, %v35598_v34 }
 0x368   : > { %30185 = vmatprep.mubr.msk.f32.mxu0 %vm5559_vm5, %v35592_v25  ;;  %30358 = vmatprep.mubr.msk.f32.mxu1 %vm5559_vm5, %v35606_v11 }
 0x36b   : > { %30186 = vmatmul.mubr.msk.f32.gmra.mrb[36].mxu0 %vm5559_vm5, %v35600_v27  ;;  %30359 = vmatmul.mubr.msk.f32.gmra.mrb[20].mxu1 %vm5559_vm5, %v35614_v47 }
 0x36c   : > { %30188 = vmatprep.mubr.msk.f32.mxu0 %vm5559_vm5, %v35608_v32  ;;  %30361 = vmatprep.mubr.msk.f32.mxu1 %vm5559_vm5, %v35622_v44 }
 0x36f   : > { %30189 = vmatmul.mubr.msk.f32.gmra.mrb[38].mxu0 %vm5559_vm5, %v35616_v43  ;;  %30362 = vmatmul.mubr.msk.f32.gmra.mrb[22].mxu1 %vm5559_vm5, %v35630_v62 }
 0x370   : > { %30191 = vmatprep.mubr.msk.f32.mxu0 %vm5559_vm5, %v35624_v18  ;;  %30364 = vmatprep.mubr.msk.f32.mxu1 %vm5559_vm5, %v35638_v24 }
 0x373   : > { %30192 = vmatmul.mubr.msk.f32.gmra.mrb[40].mxu0 %vm5559_vm5, %v35632_v51  ;;  %30365 = vmatmul.mubr.msk.f32.gmra.mrb[24].mxu1 %vm5559_vm5, %v35646_v10 }
 0x374   : > { %30194 = vmatprep.mubr.msk.f32.mxu0 %vm5559_vm5, %v35640_v39  ;;  %30367 = vmatprep.mubr.msk.f32.mxu1 %vm5559_vm5, %v35654_v30 }
 0x377   : > { %30195 = vmatmul.mubr.msk.f32.gmra.mrb[42].mxu0 %vm5559_vm5, %v35648_v55  ;;  %30368 = vmatmul.mubr.msk.f32.gmra.mrb[26].mxu1 %vm5559_vm5, %v35662_v9 }
 0x378   : > { %30197 = vmatprep.mubr.msk.f32.mxu0 %vm5559_vm5, %v35656_v17  ;;  %30370 = vmatprep.mubr.msk.f32.mxu1 %vm5559_vm5, %v35670_v2 }
 0x37b   : > { %30198 = vmatmul.mubr.msk.f32.gmra.mrb[44].mxu0 %vm5559_vm5, %v35664_v6  ;;  %30371 = vmatmul.mubr.msk.f32.gmra.mrb[0].mxu1 %vm5559_vm5, %v35678_v48 }
 0x37c   : > { %30200 = vmatprep.mubr.msk.f32.mxu0 %vm5559_vm5, %v35672_v56  ;;  %30373 = vmatprep.mubr.msk.f32.mxu1 %vm5559_vm5, %v35686_v35 }
 0x37f   : > { %30201 = vmatmul.mubr.msk.f32.gmra.mrb[46].mxu0 %vm5559_vm5, %v35680_v61  ;;  %30374 = vmatmul.mubr.msk.f32.gmra.mrb[2].mxu1 %vm5559_vm5, %v35694_v57 }
 0x380   : > { %30203 = vmatprep.mubr.msk.f32.mxu0 %vm5559_vm5, %v35688_v4  ;;  %30376 = vmatprep.mubr.msk.f32.mxu1 %vm5559_vm5, %v35702_v53 }
 0x383   : > { %30204 = vmatmul.mubr.msk.f32.gmra.mrb[48].mxu0 %vm5559_vm5, %v35696_v54  ;;  %30377 = vmatmul.mubr.msk.f32.gmra.mrb[4].mxu1 %vm5559_vm5, %v35710_v19 }
 0x384   : > { %30206 = vmatprep.mubr.msk.f32.mxu0 %vm5559_vm5, %v35704_v20  ;;  %30379 = vmatprep.mubr.msk.f32.mxu1 %vm5559_vm5, %v35718_v1 }
 0x387   : > { %30207 = vmatmul.mubr.msk.f32.gmra.mrb[50].mxu0 %vm5559_vm5, %v35712_v0  ;;  %30380 = vmatmul.mubr.msk.f32.gmra.mrb[6].mxu1 %vm5559_vm5, %v35726_v60 }
 0x388   : > { %30209 = vmatprep.mubr.msk.f32.mxu0 %vm5559_vm5, %v35720_v3  ;;  %30382 = vmatprep.mubr.msk.f32.mxu1 %vm5559_vm5, %v35734_v26 }
 0x38b   : > { %30210 = vmatmul.mubr.msk.f32.gmra.mrb[52].mxu0 %vm5559_vm5, %v35728_v28  ;;  %30383 = vmatmul.mubr.msk.f32.gmra.mrb[8].mxu1 %vm5559_vm5, %v35742_v5 }
 0x38c   : > { %30212 = vmatprep.mubr.msk.f32.mxu0 %vm5559_vm5, %v35736_v14  ;;  %30385 = vmatprep.mubr.msk.f32.mxu1 %vm5559_vm5, %v7693_v8 }
 0x38f   : > { %30213 = vmatmul.mubr.msk.f32.gmra.mrb[54].mxu0 %vm5559_vm5, %v35744_v36  ;;  %30386 = vmatmul.mubr.msk.f32.gmra.mrb[10].mxu1 %vm5559_vm5, %v7694_v37 }
 0x390   : > { %30217 = vmatprep.mubr.msk.f32.mxu0 %vm5559_vm5, %v35528_v63  ;;  %30388 = vmatprep.mubr.msk.f32.mxu1 %vm5559_vm5, %v7695_v38  ;;  %v6977_v63 = vld [vmem:[#allocation2 + $0x30] sm:$0xff] }
 0x393   : > { %30218 = vmatmul.mubr.msk.f32.vlgmr.msra.gmra.mrb[28].mxu0 %vm5559_vm5, %v35542_v7  ;;  %30389 = vmatmul.mubr.msk.f32.gmra.mrb[12].mxu1 %vm5559_vm5, %v7696_v15  ;;  %v6978_v7 = vld [vmem:[#allocation2 + $0x38] sm:$0xff] }
 0x394   : > { %30220 = vmatprep.mubr.msk.f32.mxu0 %vm5559_vm5, %v35551_v16  ;;  %30393 = vmatprep.mubr.msk.f32.mxu1 %vm5559_vm5, %v35256_v12  ;;  %v40974_v12 = vld [vmem:[#allocation13_spill] sm:$0xff] }
 0x395   : > { %30260 = vmatpush3.msra.mxu0 %v35168_v31  ;;  %v40973_v31 = vld [vmem:[#allocation11_spill] sm:$0xff]  ;;  %v6979_v16 = vld [vmem:[#allocation2 + $0x40] sm:$0xff] }
 0x397   : > { %30221 = vmatmul.mubr.msk.f32.gmra.mrb[30].mxu0 %vm5559_vm5, %v35565_v29  ;;  %30394 = vmatmul.mubr.msk.f32.vlgmr.msra.gmra.mrb[14].mxu1 %vm5559_vm5, %v35258_v13  ;;  %v40975_v13 = vld [vmem:[#allocation14_spill] sm:$0xff]  ;;  %v6981_v29 = vld [vmem:[#allocation2 + $0x50] sm:$0xff] }
 0x398   : > { %30223 = vmatprep.mubr.msk.f32.mxu0 %vm5559_vm5, %v35574_v50  ;;  %30396 = vmatprep.mubr.msk.f32.mxu1 %vm5559_vm5, %v35278_v22  ;;  %v40976_v22 = vld [vmem:[#allocation21_spill] sm:$0xff]  ;;  %v6984_v50 = vld [vmem:[#allocation2 + $0x68] sm:$0xff] }
 0x399   : > { %30436 = vmatpush3.msra.mxu1 %v35773_v58 }
 0x39b   : > { %30224 = vmatmul.mubr.msk.f32.gmra.mrb[32].mxu0 %vm5559_vm5, %v35582_v42  ;;  %30397 = vmatmul.mubr.msk.f32.gmra.mrb[16].mxu1 %vm5559_vm5, %v35280_v23  ;;  %v40977_v23 = vld [vmem:[#allocation23_spill] sm:$0xff] }
 0x39c   : > { %30226 = vmatprep.mubr.msk.f32.mxu0 %vm5559_vm5, %v35590_v33  ;;  %30399 = vmatprep.mubr.msk.f32.mxu1 %vm5559_vm5, %v35301_v45  ;;  %v40981_v45 = vld [vmem:[#allocation32_spill] sm:$0xff] }
 0x39f   : > { %30227 = vmatmul.mubr.msk.f32.gmra.mrb[34].mxu0 %vm5559_vm5, %v35598_v34  ;;  %30400 = vmatmul.mubr.msk.f32.gmra.mrb[18].mxu1 %vm5559_vm5, %v40973_v31  ;;  %v40982_v34 = vld [vmem:[#allocation34_spill] sm:$0xff] }
 0x3a0   : > { %30229 = vmatprep.mubr.msk.f32.mxu0 %vm5559_vm5, %v35606_v11  ;;  %30402 = vmatprep.mubr.msk.f32.mxu1 %vm5559_vm5, %v40974_v12  ;;  %v40978_v11 = vld [vmem:[#allocation27_spill] sm:$0xff] }
 0x3a3   : > { %30230 = vmatmul.mubr.msk.f32.gmra.mrb[36].mxu0 %vm5559_vm5, %v35614_v47  ;;  %30403 = vmatmul.mubr.msk.f32.gmra.mrb[20].mxu1 %vm5559_vm5, %v40975_v13  ;;  %v40979_v47 = vld [vmem:[#allocation28_spill] sm:$0xff] }
 0x3a4   : > { %30232 = vmatprep.mubr.msk.f32.mxu0 %vm5559_vm5, %v35622_v44  ;;  %30405 = vmatprep.mubr.msk.f32.mxu1 %vm5559_vm5, %v40976_v22  ;;  %v40980_v44 = vld [vmem:[#allocation31_spill] sm:$0xff] }
 0x3a7   : > { %30233 = vmatmul.mubr.msk.f32.gmra.mrb[38].mxu0 %vm5559_vm5, %v35630_v62  ;;  %30406 = vmatmul.mubr.msk.f32.gmra.mrb[22].mxu1 %vm5559_vm5, %v40977_v23  ;;  %v40989_v62 = vld [vmem:[#allocation43_spill] sm:$0xff] }
 0x3a8   : > { %30235 = vmatprep.mubr.msk.f32.mxu0 %vm5559_vm5, %v35638_v24  ;;  %30408 = vmatprep.mubr.msk.f32.mxu1 %vm5559_vm5, %v40978_v11  ;;  %v40988_v24 = vld [vmem:[#allocation42_spill] sm:$0xff] }
 0x3ab   : > { %30236 = vmatmul.mubr.msk.f32.gmra.mrb[40].mxu0 %vm5559_vm5, %v35646_v10  ;;  %30409 = vmatmul.mubr.msk.f32.gmra.mrb[24].mxu1 %vm5559_vm5, %v40979_v47  ;;  %v40983_v10 = vld [vmem:[#allocation35_spill] sm:$0xff] }
 0x3ac   : > { %30238 = vmatprep.mubr.msk.f32.mxu0 %vm5559_vm5, %v35654_v30  ;;  %30411 = vmatprep.mubr.msk.f32.mxu1 %vm5559_vm5, %v40980_v44  ;;  %v40984_v30 = vld [vmem:[#allocation37_spill] sm:$0xff] }
 0x3af   : > { %30239 = vmatmul.mubr.msk.f32.gmra.mrb[42].mxu0 %vm5559_vm5, %v35662_v9  ;;  %30412 = vmatmul.mubr.msk.f32.gmra.mrb[26].mxu1 %vm5559_vm5, %v40981_v45  ;;  %v40985_v9 = vld [vmem:[#allocation38_spill] sm:$0xff] }
 0x3b0   : > { %30241 = vmatprep.mubr.msk.f32.mxu0 %vm5559_vm5, %v35670_v2  ;;  %30414 = vmatprep.mubr.msk.f32.mxu1 %vm5559_vm5, %v40982_v34  ;;  %v40986_v2 = vld [vmem:[#allocation40_spill] sm:$0xff] }
 0x3b3   : > { %30242 = vmatmul.mubr.msk.f32.gmra.mrb[44].mxu0 %vm5559_vm5, %v35678_v48  ;;  %30415 = vmatmul.mubr.msk.f32.gmra.mrb[0].mxu1 %vm5559_vm5, %v40983_v10  ;;  %v40987_v48 = vld [vmem:[#allocation41_spill] sm:$0xff] }
 0x3b4   : > { %30244 = vmatprep.mubr.msk.f32.mxu0 %vm5559_vm5, %v35686_v35  ;;  %30417 = vmatprep.mubr.msk.f32.mxu1 %vm5559_vm5, %v40984_v30  ;;  %v6976_v35 = vld [vmem:[#allocation2 + $0x28] sm:$0xff] }
 0x3b7   : > { %30245 = vmatmul.mubr.msk.f32.gmra.mrb[46].mxu0 %vm5559_vm5, %v35694_v57  ;;  %30418 = vmatmul.mubr.msk.f32.gmra.mrb[2].mxu1 %vm5559_vm5, %v40985_v9  ;;  %v40993_v57 = vld [vmem:[#allocation47_spill] sm:$0xff] }
 0x3b8   : > { %30247 = vmatprep.mubr.msk.f32.mxu0 %vm5559_vm5, %v35702_v53  ;;  %30420 = vmatprep.mubr.msk.f32.mxu1 %vm5559_vm5, %v40986_v2  ;;  %v40990_v53 = vld [vmem:[#allocation44_spill] sm:$0xff] }
 0x3bb   : > { %30248 = vmatmul.mubr.msk.f32.gmra.mrb[48].mxu0 %vm5559_vm5, %v35710_v19  ;;  %30421 = vmatmul.mubr.msk.f32.gmra.mrb[4].mxu1 %vm5559_vm5, %v40987_v48  ;;  %v40991_v19 = vld [vmem:[#allocation45_spill] sm:$0xff] }
 0x3bc   : > { %30250 = vmatprep.mubr.msk.f32.mxu0 %vm5559_vm5, %v35718_v1  ;;  %30423 = vmatprep.mubr.msk.f32.mxu1 %vm5559_vm5, %v40988_v24  ;;  %v40992_v1 = vld [vmem:[#allocation46_spill] sm:$0xff] }
 0x3bf   : > { %30251 = vmatmul.mubr.msk.f32.gmra.mrb[50].mxu0 %vm5559_vm5, %v35726_v60  ;;  %30424 = vmatmul.mubr.msk.f32.gmra.mrb[6].mxu1 %vm5559_vm5, %v40989_v62  ;;  %v8042_v60 = vld [vmem:[#allocation2 + $0x100] sm:$0xff] }
 0x3c0   : > { %30253 = vmatprep.mubr.msk.f32.mxu0 %vm5559_vm5, %v35734_v26  ;;  %30426 = vmatprep.mubr.msk.f32.mxu1 %vm5559_vm5, %v40990_v53  ;;  %v6975_v26 = vld [vmem:[#allocation2 + $0x20] sm:$0xff] }
 0x3c3   : > { %30254 = vmatmul.mubr.msk.f32.gmra.mrb[52].mxu0 %vm5559_vm5, %v35742_v5  ;;  %30427 = vmatmul.mubr.msk.f32.gmra.mrb[8].mxu1 %vm5559_vm5, %v40991_v19  ;;  %v8043_v5 = vld [vmem:[#allocation2 + $0x108] sm:$0xff] }
 0x3c4   : > { %30256 = vmatprep.mubr.msk.f32.mxu0 %vm5559_vm5, %v7693_v8  ;;  %30429 = vmatprep.mubr.msk.f32.mxu1 %vm5559_vm5, %v40992_v1 }
 0x3c7   : > { %30257 = vmatmul.mubr.msk.f32.gmra.mrb[54].mxu0 %vm5559_vm5, %v7694_v37  ;;  %30430 = vmatmul.mubr.msk.f32.gmra.mrb[10].mxu1 %vm5559_vm5, %v40993_v57 }
 0x3c8   : > { %30261 = vmatprep.mubr.msk.f32.mxu0 %vm5559_vm5, %v6975_v26  ;;  %30432 = vmatprep.mubr.msk.f32.mxu1 %vm5559_vm5, %v8042_v60 }
 0x3cb   : > { %30262 = vmatmul.mubr.msk.f32.vlgmr.msra.gmra.mrb[28].mxu0 %vm5559_vm5, %v6976_v35  ;;  %30433 = vmatmul.mubr.msk.f32.gmra.mrb[12].mxu1 %vm5559_vm5, %v8043_v5 }
 0x3cc   : > { %30264 = vmatprep.mubr.msk.f32.mxu0 %vm5559_vm5, %v6977_v63  ;;  %30437 = vmatprep.mubr.msk.f32.mxu1 %vm5559_vm5, %v35553_v21  ;;  %v6982_v21 = vld [vmem:[#allocation2 + $0x58] sm:$0xff] }
 0x3cf   : > { %30265 = vmatmul.mubr.msk.f32.gmra.mrb[30].mxu0 %vm5559_vm5, %v6978_v7  ;;  %30438 = vmatmul.mubr.msk.f32.vlgmr.msra.gmra.mrb[14].mxu1 %vm5559_vm5, %v35567_v49  ;;  %v6983_v49 = vld [vmem:[#allocation2 + $0x60] sm:$0xff] }
 0x3d0   : > { %30267 = vmatprep.mubr.msk.f32.mxu0 %vm5559_vm5, %v6979_v16  ;;  %30440 = vmatprep.mubr.msk.f32.mxu1 %vm5559_vm5, %v35576_v52  ;;  %v6985_v52 = vld [vmem:[#allocation2 + $0x70] sm:$0xff] }
 0x3d3   : > { %30268 = vmatmul.mubr.msk.f32.gmra.mrb[32].mxu0 %vm5559_vm5, %v6980_v41  ;;  %30441 = vmatmul.mubr.msk.f32.gmra.mrb[16].mxu1 %vm5559_vm5, %v35584_v40 }
 0x3d4   : > { %30270 = vmatprep.mubr.msk.f32.mxu0 %vm5559_vm5, %v6981_v29  ;;  %30443 = vmatprep.mubr.msk.f32.mxu1 %vm5559_vm5, %v35592_v25  ;;  %v6986_v25 = vld [vmem:[#allocation2 + $0x78] sm:$0xff] }
 0x3d7   : > { %30271 = vmatmul.mubr.msk.f32.gmra.mrb[34].mxu0 %vm5559_vm5, %v6982_v21  ;;  %30444 = vmatmul.mubr.msk.f32.gmra.mrb[18].mxu1 %vm5559_vm5, %v35600_v27  ;;  %v8822_v27 = vld [vmem:[%s40489_s3] sm:$0xff] }
 0x3d8   : > { %30273 = vmatprep.mubr.msk.f32.mxu0 %vm5559_vm5, %v6983_v49  ;;  %30446 = vmatprep.mubr.msk.f32.mxu1 %vm5559_vm5, %v35608_v32  ;;  %v26358_v32 = vld [vmem:[%s40489_s3 + $0x8] sm:$0xff] }
 0x3d9   : > { %30479 = vmatprep.subr.mxu0 %v26358_v32 }
 0x3da   : > { %30480 = vmatpush3.msra.mxu0 %v26358_v32 }
 0x3db   : > { %30274 = vmatmul.mubr.msk.f32.gmra.mrb[36].mxu0 %vm5559_vm5, %v6984_v50  ;;  %30447 = vmatmul.mubr.msk.f32.gmra.mrb[20].mxu1 %vm5559_vm5, %v35616_v43  ;;  %v8389_v43 = vld [vmem:[#allocation2 + $0x101] sm:$0xff] }
 0x3dc   : > { %30276 = vmatprep.mubr.msk.f32.mxu0 %vm5559_vm5, %v6985_v52  ;;  %30449 = vmatprep.mubr.msk.f32.mxu1 %vm5559_vm5, %v35624_v18 }
 0x3dd   : > { %30523 = vmatprep.subr.mxu0 %v8822_v27 }
 0x3df   : > { %30277 = vmatmul.mubr.msk.f32.gmra.mrb[38].mxu0 %vm5559_vm5, %v6986_v25  ;;  %30450 = vmatmul.mubr.msk.f32.gmra.mrb[22].mxu1 %vm5559_vm5, %v35632_v51 }
 0x3e0   : > { %30279 = vmatprep.mubr.msk.f32.mxu0 %vm5559_vm5, %v40978_v11  ;;  %30452 = vmatprep.mubr.msk.f32.mxu1 %vm5559_vm5, %v35640_v39 }
 0x3e3   : > { %30280 = vmatmul.mubr.msk.f32.gmra.mrb[40].mxu0 %vm5559_vm5, %v40979_v47  ;;  %30453 = vmatmul.mubr.msk.f32.gmra.mrb[24].mxu1 %vm5559_vm5, %v35648_v55 }
 0x3e4   : > { %30455 = vmatprep.mubr.msk.f32.mxu1 %vm5559_vm5, %v35656_v17  ;;  %v8824_v17 = vld [vmem:[#allocation2 + $0x18] sm:$0xff] }
 0x3e7   : > { %30456 = vmatmul.mubr.msk.f32.gmra.mrb[26].mxu1 %vm5559_vm5, %v35664_v6  ;;  %v8823_v6 = vld [vmem:[#allocation2 + $0x10] sm:$0xff] }
 0x3e8   : > { %30458 = vmatprep.mubr.msk.f32.mxu1 %vm5559_vm5, %v35672_v56  ;;  %v8390_v56 = vld [vmem:[#allocation2 + $0x109] sm:$0xff]  ;;  %30481 = vmatprep.mubr.msk.f32.mxu0 %vm5559_vm5, %v8823_v6 }
 0x3e9   : > { %30482 = vmatmul.mubr.msk.f32.vlgmr.msra.gmra.mrb[56].mxu0 %vm5559_vm5, %v8824_v17 }
 0x3ea   : > { %30524 = vmatpush3.msra.mxu0 %v8822_v27 }
 0x3eb   : > { %30459 = vmatmul.mubr.msk.f32.gmra.mrb[0].mxu1 %vm5559_vm5, %v35680_v61 }
 0x3ec   : > { %30461 = vmatprep.mubr.msk.f32.mxu1 %vm5559_vm5, %v35688_v4 }
 0x3ef   : > { %30462 = vmatmul.mubr.msk.f32.gmra.mrb[2].mxu1 %vm5559_vm5, %v35696_v54 }
 0x3f0   : > { %30464 = vmatprep.mubr.msk.f32.mxu1 %vm5559_vm5, %v35704_v20 }
 0x3f3   : > { %30465 = vmatmul.mubr.msk.f32.gmra.mrb[4].mxu1 %vm5559_vm5, %v35712_v0 }
 0x3f4   : > { %30467 = vmatprep.mubr.msk.f32.mxu1 %vm5559_vm5, %v35720_v3 }
 0x3f7   : > { %30468 = vmatmul.mubr.msk.f32.gmra.mrb[6].mxu1 %vm5559_vm5, %v35728_v28 }
 0x3f8   : > { %30470 = vmatprep.mubr.msk.f32.mxu1 %vm5559_vm5, %v35736_v14 }
 0x3fb   : > { %30471 = vmatmul.mubr.msk.f32.gmra.mrb[8].mxu1 %vm5559_vm5, %v35744_v36 }
 0x3fc   : > { %30473 = vmatprep.mubr.msk.f32.mxu1 %vm5559_vm5, %v35750_v59 }
 0x3ff   : > { %30474 = vmatmul.mubr.msk.f32.gmra.mrb[10].mxu1 %vm5559_vm5, %v35755_v46  ;;  %v36064_v46 = vld [vmem:[%s40489_s3 + $0x10] sm:$0xff] }
 0x400   : > { %30476 = vmatprep.mubr.msk.f32.mxu1 %vm5559_vm5, %v8389_v43  ;;  %30567 = vmatprep.subr.mxu0 %v36064_v46 }
 0x403   : > { %30477 = vmatmul.mubr.msk.f32.gmra.mrb[12].mxu1 %vm5559_vm5, %v8390_v56 }
 0x482   : > { %v36067_v55 = vpop.f32.mrb[42].mxu0 }
 0x483   : > { %v36069_v59 = vpop.f32.mrb[43].mxu0 }
 0x486   : > { %v36071_v36 = vpop.f32.mrb[44].mxu0 }
 0x487   : > { %v36073_v39 = vpop.f32.mrb[45].mxu0 }
 0x48a   : > { %v36075_v14 = vpop.f32.mrb[46].mxu0 }
 0x48b   : > { %v36077_v28 = vpop.f32.mrb[47].mxu0 }
 0x48e   : > { %v36079_v51 = vpop.f32.mrb[48].mxu0 }
 0x48f   : > { %v36081_v3 = vpop.f32.mrb[49].mxu0 }
 0x492   : > { %v36083_v0 = vpop.f32.mrb[50].mxu0 }
 0x493   : > { %v36085_v18 = vpop.f32.mrb[51].mxu0 }
 0x496   : > { %v36087_v20 = vpop.f32.mrb[52].mxu0 }
 0x497   : > { %v36089_v54 = vpop.f32.mrb[53].mxu0 }
 0x49a   : > { %v36091_v4 = vpop.f32.mrb[54].mxu0 }
 0x49b   : > { %v36093_v61 = vpop.f32.mrb[55].mxu0 }
 0x49e   : > { %v30263_v42 = vpop.f32.mrb[28].mxu0 }
 0x49f   : > { %v7155_v40 = vpop.f32.mrb[29].mxu0 }
 0x4a2   : > { %v30266_v33 = vpop.f32.mrb[30].mxu0  ;;  %v30439_v58 = vpop.f32.mrb[14].mxu1 }
 0x4a3   : > { %v32789_v8 = vadd.f32 %v30439_v58, %v30263_v42  ;;  %v7165_v37 = vpop.f32.mrb[31].mxu0  ;;  %v8543_v38 = vpop.f32.mrb[15].mxu1 }
 0x4a4   : > { %v32790_v15 = vadd.f32 %v8543_v38, %v7155_v40 }
 0x4a5   : > { %v8711_v31 = vmax.f32 %v32789_v8, 0.0 }
 0x4a6   : > { %v8710_v12 = vmax.f32 %v32790_v15, 0.0  ;;  %v30269_v13 = vpop.f32.mrb[32].mxu0  ;;  %v30442_v22 = vpop.f32.mrb[16].mxu1 }
 0x4a7   : > { %v8739_v11 = vsel %vm35194_vm6, %v8711_v31, 0.0  ;;  %v32791_v47 = vadd.f32 %v30442_v22, %v30266_v33  ;;  %v7175_v44 = vpop.f32.mrb[33].mxu0  ;;  %v8553_v45 = vpop.f32.mrb[17].mxu1 }
 0x4a8   : > { %8767 = vst.msk [vmem:[#allocation2 + $0x28] sm:$0xff] %vm5559_vm5, %v8739_v11  ;;  %8766 = vst.msk [vmem:[#allocation2 + $0x20] sm:$0xff] %vm5559_vm5, %v8710_v12  ;;  %v32792_v34 = vadd.f32 %v8553_v45, %v7165_v37 }
 0x4a9   : > { %v8713_v10 = vmax.f32 %v32791_v47, 0.0 }
 0x4aa   : > { %v8712_v30 = vmax.f32 %v32792_v34, 0.0  ;;  %v30272_v9 = vpop.f32.mrb[34].mxu0  ;;  %v30445_v2 = vpop.f32.mrb[18].mxu1 }
 0x4ab   : > { %v8741_v24 = vsel %vm35205_vm7, %v8713_v10, 0.0  ;;  %v32793_v62 = vadd.f32 %v30445_v2, %v30269_v13  ;;  %v7185_v53 = vpop.f32.mrb[35].mxu0  ;;  %v8563_v19 = vpop.f32.mrb[19].mxu1 }
 0x4ac   : > { %8769 = vst.msk [vmem:[#allocation2 + $0x38] sm:$0xff] %vm5559_vm5, %v8741_v24  ;;  %8768 = vst.msk [vmem:[#allocation2 + $0x30] sm:$0xff] %vm5559_vm5, %v8712_v30  ;;  %v32794_v1 = vadd.f32 %v8563_v19, %v7175_v44 }
 0x4ad   : > { %v8715_v60 = vmax.f32 %v32793_v62, 0.0 }
 0x4ae   : > { %v8714_v57 = vmax.f32 %v32794_v1, 0.0  ;;  %v30275_v26 = vpop.f32.mrb[36].mxu0  ;;  %v30448_v5 = vpop.f32.mrb[20].mxu1 }
 0x4af   : > { %v8743_v63 = vsel %vm35214_vm8, %v8715_v60, 0.0  ;;  %v32795_v7 = vadd.f32 %v30448_v5, %v30272_v9  ;;  %v7195_v16 = vpop.f32.mrb[37].mxu0  ;;  %v8573_v41 = vpop.f32.mrb[21].mxu1  ;;  %v36105_v29 = vld [vmem:[#allocation2 + $0x20] sm:$0xff]  ;;  %v36107_v21 = vld [vmem:[#allocation2 + $0x28] sm:$0xff] }
 0x4b0   : > { %8771 = vst.msk [vmem:[#allocation2 + $0x48] sm:$0xff] %vm5559_vm5, %v8743_v63  ;;  %8770 = vst.msk [vmem:[#allocation2 + $0x40] sm:$0xff] %vm5559_vm5, %v8714_v57  ;;  %v32796_v49 = vadd.f32 %v8573_v41, %v7185_v53  ;;  %30484 = vmatprep.mubr.msk.f32.mxu0 %vm5559_vm5, %v36105_v29 }
 0x4b1   : > { %v8717_v50 = vmax.f32 %v32795_v7, 0.0  ;;  %30485 = vmatmul.mubr.msk.f32.gmra.mrb[58].mxu0 %vm5559_vm5, %v36107_v21 }
 0x4b2   : > { %v8716_v52 = vmax.f32 %v32796_v49, 0.0  ;;  %v30278_v25 = vpop.f32.mrb[38].mxu0  ;;  %v30451_v43 = vpop.f32.mrb[22].mxu1 }
 0x4b3   : > { %v8745_v32 = vsel %vm35234_vm9, %v8717_v50, 0.0  ;;  %v32797_v6 = vadd.f32 %v30451_v43, %v30275_v26  ;;  %v7205_v17 = vpop.f32.mrb[39].mxu0  ;;  %v8583_v27 = vpop.f32.mrb[23].mxu1  ;;  %v36117_v42 = vld [vmem:[#allocation2 + $0x30] sm:$0xff]  ;;  %v36119_v40 = vld [vmem:[#allocation2 + $0x38] sm:$0xff] }
 0x4b4   : > { %8773 = vst.msk [vmem:[#allocation2 + $0x58] sm:$0xff] %vm5559_vm5, %v8745_v32  ;;  %8772 = vst.msk [vmem:[#allocation2 + $0x50] sm:$0xff] %vm5559_vm5, %v8716_v52  ;;  %v32798_v33 = vadd.f32 %v8583_v27, %v7195_v16  ;;  %30487 = vmatprep.mubr.msk.f32.mxu0 %vm5559_vm5, %v36117_v42  ;;  %v36392_v26 = vld [vmem:[#allocation2 + $0x29] sm:$0xff] }
 0x4b5   : > { %v8719_v58 = vmax.f32 %v32797_v6, 0.0  ;;  %30488 = vmatmul.mubr.msk.f32.gmra.mrb[60].mxu0 %vm5559_vm5, %v36119_v40 }
 0x4b6   : > { %v8718_v8 = vmax.f32 %v32798_v33, 0.0  ;;  %v30281_v37 = vpop.f32.mrb[40].mxu0  ;;  %v30454_v38 = vpop.f32.mrb[24].mxu1 }
 0x4b7   : > { %v8747_v31 = vsel %vm35249_vm10, %v8719_v58, 0.0  ;;  %v32799_v12 = vadd.f32 %v30454_v38, %v30278_v25  ;;  %v7215_v13 = vpop.f32.mrb[41].mxu0  ;;  %v8593_v22 = vpop.f32.mrb[25].mxu1  ;;  %v36129_v11 = vld [vmem:[#allocation2 + $0x40] sm:$0xff]  ;;  %v36131_v47 = vld [vmem:[#allocation2 + $0x48] sm:$0xff] }
 0x4b8   : > { %8775 = vst.msk [vmem:[#allocation2 + $0x68] sm:$0xff] %vm5559_vm5, %v8747_v31  ;;  %8774 = vst.msk [vmem:[#allocation2 + $0x60] sm:$0xff] %vm5559_vm5, %v8718_v8  ;;  %v32800_v44 = vadd.f32 %v8593_v22, %v7205_v17  ;;  %30490 = vmatprep.mubr.msk.f32.mxu0 %vm5559_vm5, %v36129_v11  ;;  %v26473_v8 = vld [vmem:[%s40489_s3 + $0x20] sm:$0xff] }
 0x4b9   : > { %v8721_v45 = vmax.f32 %v32799_v12, 0.0  ;;  %30491 = vmatmul.mubr.msk.f32.gmra.mrb[62].mxu0 %vm5559_vm5, %v36131_v47  ;;  %v36387_v25 = vld [vmem:[#allocation2 + $0x21] sm:$0xff]  ;;  %v36400_v30 = vld [vmem:[#allocation2 + $0x39] sm:$0xff] }
 0x4ba   : > { %v8720_v34 = vmax.f32 %v32800_v44, 0.0  ;;  %v30457_v10 = vpop.f32.mrb[26].mxu1  ;;  %41009 = vst [vmem:[#allocation13_spill] sm:$0xff] %v36400_v30 }
 0x4bb   : > { %v8749_v9 = vsel %vm35268_vm11, %v8721_v45, 0.0  ;;  %v32801_v2 = vadd.f32 %v30457_v10, %v30281_v37  ;;  %v8603_v24 = vpop.f32.mrb[27].mxu1  ;;  %v36141_v62 = vld [vmem:[#allocation2 + $0x50] sm:$0xff]  ;;  %v36143_v53 = vld [vmem:[#allocation2 + $0x58] sm:$0xff] }
 0x4bc   : > { %8777 = vst.msk [vmem:[#allocation2 + $0x78] sm:$0xff] %vm5559_vm5, %v8749_v9  ;;  %8776 = vst.msk [vmem:[#allocation2 + $0x70] sm:$0xff] %vm5559_vm5, %v8720_v34  ;;  %v32802_v19 = vadd.f32 %v8603_v24, %v7215_v13  ;;  %30493 = vmatprep.mubr.msk.f32.mxu0 %vm5559_vm5, %v36141_v62  ;;  %v9432_v45 = vld [vmem:[#allocation2 + $0x19] sm:$0xff]  ;;  %v36412_v15 = vld [vmem:[#allocation2 + $0x51] sm:$0xff] }
 0x4bd   : > { %v8723_v1 = vmax.f32 %v32801_v2, 0.0  ;;  %30494 = vmatmul.mubr.msk.f32.gmra.mrb[64].mxu0 %vm5559_vm5, %v36143_v53  ;;  %41012 = vst [vmem:[#allocation23_spill] sm:$0xff] %v36412_v15 }
 0x4be   : > { %v8722_v60 = vmax.f32 %v32802_v19, 0.0  ;;  %v30460_v57 = vpop.f32.mrb[0].mxu1 }
 0x4bf   : > { %v8751_v5 = vsel %vm35297_vm12, %v8723_v1, 0.0  ;;  %v32803_v63 = vadd.f32 %v30460_v57, %v36067_v55  ;;  %v8613_v7 = vpop.f32.mrb[1].mxu1  ;;  %v36154_v16 = vld [vmem:[#allocation2 + $0x60] sm:$0xff]  ;;  %v36156_v41 = vld [vmem:[#allocation2 + $0x68] sm:$0xff] }
 0x4c0   : > { %8779 = vst.msk [vmem:[#allocation2 + $0x88] sm:$0xff] %vm5559_vm5, %v8751_v5  ;;  %8778 = vst.msk [vmem:[#allocation2 + $0x80] sm:$0xff] %vm5559_vm5, %v8722_v60  ;;  %v32804_v49 = vadd.f32 %v8613_v7, %v36069_v59  ;;  %30496 = vmatprep.mubr.msk.f32.mxu0 %vm5559_vm5, %v36154_v16  ;;  %v36416_v56 = vld [vmem:[#allocation2 + $0x59] sm:$0xff]  ;;  %v36420_v35 = vld [vmem:[#allocation2 + $0x61] sm:$0xff] }
 0x4c1   : > { %v8725_v50 = vmax.f32 %v32803_v63, 0.0  ;;  %30497 = vmatmul.mubr.msk.f32.gmra.mrb[66].mxu0 %vm5559_vm5, %v36156_v41  ;;  %41013 = vst [vmem:[#allocation27_spill] sm:$0xff] %v36416_v56  ;;  %41014 = vst [vmem:[#allocation28_spill] sm:$0xff] %v36420_v35 }
 0x4c2   : > { %v8724_v52 = vmax.f32 %v32804_v49, 0.0  ;;  %v30463_v55 = vpop.f32.mrb[2].mxu1 }
 0x4c3   : > { %v8753_v43 = vsel %vm35318_vm13, %v8725_v50, 0.0  ;;  %v32805_v32 = vadd.f32 %v30463_v55, %v36071_v36  ;;  %v8623_v6 = vpop.f32.mrb[3].mxu1  ;;  %v36168_v17 = vld [vmem:[#allocation2 + $0x70] sm:$0xff]  ;;  %v36170_v27 = vld [vmem:[#allocation2 + $0x78] sm:$0xff] }
 0x4c4   : > { %8781 = vst.msk [vmem:[#allocation2 + $0x98] sm:$0xff] %vm5559_vm5, %v8753_v43  ;;  %8780 = vst.msk [vmem:[#allocation2 + $0x90] sm:$0xff] %vm5559_vm5, %v8724_v52  ;;  %v32806_v59 = vadd.f32 %v8623_v6, %v36073_v39  ;;  %30499 = vmatprep.mubr.msk.f32.mxu0 %vm5559_vm5, %v36168_v17  ;;  %v9431_v55 = vld [vmem:[#allocation2 + $0x11] sm:$0xff]  ;;  %v36424_v48 = vld [vmem:[#allocation2 + $0x69] sm:$0xff] }
 0x4c5   : > { %v8727_v33 = vmax.f32 %v32805_v32, 0.0  ;;  %30500 = vmatmul.mubr.msk.f32.gmra.mrb[68].mxu0 %vm5559_vm5, %v36170_v27  ;;  %41015 = vst [vmem:[#allocation31_spill] sm:$0xff] %v36424_v48  ;;  %v36428_v23 = vld [vmem:[#allocation2 + $0x71] sm:$0xff] }
 0x4c6   : > { %v8726_v58 = vmax.f32 %v32806_v59, 0.0  ;;  %v30466_v36 = vpop.f32.mrb[4].mxu1  ;;  %41016 = vst [vmem:[#allocation32_spill] sm:$0xff] %v36428_v23 }
 0x4c7   : > { %v8755_v37 = vsel %vm35335_vm14, %v8727_v33, 0.0  ;;  %v32807_v38 = vadd.f32 %v30466_v36, %v36075_v14  ;;  %v8633_v31 = vpop.f32.mrb[5].mxu1  ;;  %v36182_v12 = vld [vmem:[#allocation2 + $0x80] sm:$0xff]  ;;  %v36184_v13 = vld [vmem:[#allocation2 + $0x88] sm:$0xff] }
 0x4c8   : > { %8783 = vst.msk [vmem:[#allocation2 + $0xa8] sm:$0xff] %vm5559_vm5, %v8755_v37  ;;  %8782 = vst.msk [vmem:[#allocation2 + $0xa0] sm:$0xff] %vm5559_vm5, %v8726_v58  ;;  %v32808_v39 = vadd.f32 %v8633_v31, %v36077_v28  ;;  %30502 = vmatprep.mubr.msk.f32.mxu0 %vm5559_vm5, %v36182_v12 }
 0x4c9   : > { %v8729_v22 = vmax.f32 %v32807_v38, 0.0  ;;  %30503 = vmatmul.mubr.msk.f32.gmra.mrb[70].mxu0 %vm5559_vm5, %v36184_v13 }
 0x4ca   : > { %v8728_v44 = vmax.f32 %v32808_v39, 0.0  ;;  %v30469_v14 = vpop.f32.mrb[6].mxu1 }
 0x4cb   : > { %v8757_v34 = vsel %vm35363_vm15, %v8729_v22, 0.0  ;;  %v32809_v10 = vadd.f32 %v30469_v14, %v36079_v51  ;;  %v8643_v9 = vpop.f32.mrb[7].mxu1  ;;  %v36196_v2 = vld [vmem:[#allocation2 + $0x90] sm:$0xff]  ;;  %v36198_v24 = vld [vmem:[#allocation2 + $0x98] sm:$0xff] }
 0x4cc   : > { %8785 = vst.msk [vmem:[#allocation2 + $0xb8] sm:$0xff] %vm5559_vm5, %v8757_v34  ;;  %8784 = vst.msk [vmem:[#allocation2 + $0xb0] sm:$0xff] %vm5559_vm5, %v8728_v44  ;;  %v32810_v28 = vadd.f32 %v8643_v9, %v36081_v3  ;;  %30505 = vmatprep.mubr.msk.f32.mxu0 %vm5559_vm5, %v36196_v2 }
 0x4cd   : > { %v8731_v19 = vmax.f32 %v32809_v10, 0.0  ;;  %30506 = vmatmul.mubr.msk.f32.gmra.mrb[72].mxu0 %vm5559_vm5, %v36198_v24 }
 0x4ce   : > { %v8730_v1 = vmax.f32 %v32810_v28, 0.0  ;;  %v30472_v51 = vpop.f32.mrb[8].mxu1 }
 0x4cf   : > { %v8759_v57 = vsel %vm35384_vm0, %v8731_v19, 0.0  ;;  %v32811_v5 = vadd.f32 %v30472_v51, %v36083_v0  ;;  %v8653_v63 = vpop.f32.mrb[9].mxu1  ;;  %v36210_v7 = vld [vmem:[#allocation2 + $0xa0] sm:$0xff]  ;;  %v36212_v49 = vld [vmem:[#allocation2 + $0xa8] sm:$0xff]  ;;  %v8795_v51 = vld [vmem:[#allocation2 + $0x17] sm:$0xff] }
 0x4d0   : > { %8787 = vst.msk [vmem:[#allocation2 + $0xc8] sm:$0xff] %vm5559_vm5, %v8759_v57  ;;  %8786 = vst.msk [vmem:[#allocation2 + $0xc0] sm:$0xff] %vm5559_vm5, %v8730_v1  ;;  %v32812_v3 = vadd.f32 %v8653_v63, %v36085_v18  ;;  %30508 = vmatprep.mubr.msk.f32.mxu0 %vm5559_vm5, %v36210_v7  ;;  %v8794_v1 = vld [vmem:[#allocation2 + $0xf] sm:$0xff]  ;;  %v36273_v57 = vld [vmem:[%s40489_s3 + $0x18] sm:$0xff] }
 0x4d1   : > { %v8733_v50 = vmax.f32 %v32811_v5, 0.0  ;;  %30509 = vmatmul.mubr.msk.f32.gmra.mrb[74].mxu0 %vm5559_vm5, %v36212_v49  ;;  %v36276_v5 = vld [vmem:[#allocation2 + $0x1f] sm:$0xff]  ;;  %v36282_v63 = vld [vmem:[#allocation2 + $0x27] sm:$0xff] }
 0x4d2   : > { %v8732_v52 = vmax.f32 %v32812_v3, 0.0  ;;  %v30475_v0 = vpop.f32.mrb[10].mxu1  ;;  %v36286_v3 = vld [vmem:[#allocation2 + $0x2f] sm:$0xff] }
 0x4d3   : > { %v8761_v43 = vsel %vm35412_vm1, %v8733_v50, 0.0  ;;  %v32813_v32 = vadd.f32 %v30475_v0, %v36087_v20  ;;  %v8663_v6 = vpop.f32.mrb[11].mxu1  ;;  %v36224_v59 = vld [vmem:[#allocation2 + $0xb0] sm:$0xff]  ;;  %v36226_v33 = vld [vmem:[#allocation2 + $0xb8] sm:$0xff] }
 0x4d4   : > { %8789 = vst.msk [vmem:[#allocation2 + $0xd8] sm:$0xff] %vm5559_vm5, %v8761_v43  ;;  %8788 = vst.msk [vmem:[#allocation2 + $0xd0] sm:$0xff] %vm5559_vm5, %v8732_v52  ;;  %v32814_v18 = vadd.f32 %v8663_v6, %v36089_v54  ;;  %30511 = vmatprep.mubr.msk.f32.mxu0 %vm5559_vm5, %v36224_v59  ;;  %v36290_v50 = vld [vmem:[#allocation2 + $0x37] sm:$0xff]  ;;  %v36294_v52 = vld [vmem:[#allocation2 + $0x3f] sm:$0xff] }
 0x4d5   : > { %v8735_v58 = vmax.f32 %v32813_v32, 0.0  ;;  %30512 = vmatmul.mubr.msk.f32.gmra.mrb[76].mxu0 %vm5559_vm5, %v36226_v33  ;;  %v36302_v0 = vld [vmem:[#allocation2 + $0x4f] sm:$0xff]  ;;  %v36306_v43 = vld [vmem:[#allocation2 + $0x57] sm:$0xff]  ;;  %v36310_v32 = vld [vmem:[#allocation2 + $0x5f] sm:$0xff] }
 0x4d6   : > { %v8734_v36 = vmax.f32 %v32814_v18, 0.0  ;;  %v30478_v20 = vpop.f32.mrb[12].mxu1  ;;  %v36314_v6 = vld [vmem:[#allocation2 + $0x67] sm:$0xff]  ;;  %v36318_v18 = vld [vmem:[#allocation2 + $0x6f] sm:$0xff] }
 0x4d7   : > { %v8763_v38 = vsel %vm35444_vm2, %v8735_v58, 0.0  ;;  %v32815_v31 = vadd.f32 %v30478_v20, %v36091_v4  ;;  %v8673_v39 = vpop.f32.mrb[13].mxu1  ;;  %v36238_v22 = vld [vmem:[#allocation2 + $0xc0] sm:$0xff]  ;;  %v36240_v44 = vld [vmem:[#allocation2 + $0xc8] sm:$0xff]  ;;  %v36322_v58 = vld [vmem:[#allocation2 + $0x77] sm:$0xff] }
 0x4d8   : > { %8791 = vst.msk [vmem:[#allocation2 + $0xe8] sm:$0xff] %vm5559_vm5, %v8763_v38  ;;  %8790 = vst.msk [vmem:[#allocation2 + $0xe0] sm:$0xff] %vm5559_vm5, %v8734_v36  ;;  %v32816_v54 = vadd.f32 %v8673_v39, %v36093_v61  ;;  %30514 = vmatprep.mubr.msk.f32.mxu0 %vm5559_vm5, %v36238_v22  ;;  %v36326_v36 = vld [vmem:[#allocation2 + $0x7f] sm:$0xff]  ;;  %v36330_v20 = vld [vmem:[#allocation2 + $0x87] sm:$0xff] }
 0x4d9   : > { %v8737_v14 = vmax.f32 %v32815_v31, 0.0  ;;  %30515 = vmatmul.mubr.msk.f32.gmra.mrb[78].mxu0 %vm5559_vm5, %v36240_v44  ;;  %v36334_v38 = vld [vmem:[#allocation2 + $0x8f] sm:$0xff]  ;;  %v36338_v31 = vld [vmem:[#allocation2 + $0x97] sm:$0xff]  ;;  %v36342_v39 = vld [vmem:[#allocation2 + $0x9f] sm:$0xff] }
 0x4da   : > { %v8736_v34 = vmax.f32 %v32816_v54, 0.0  ;;  %v36346_v54 = vld [vmem:[#allocation2 + $0xa7] sm:$0xff] }
 0x4db   : > { %v8765_v10 = vsel %vm35468_vm3, %v8737_v14, 0.0  ;;  %v36251_v9 = vld [vmem:[#allocation2 + $0xd0] sm:$0xff]  ;;  %v36253_v28 = vld [vmem:[#allocation2 + $0xd8] sm:$0xff] }
 0x4dc   : > { %8793 = vst.msk [vmem:[#allocation2 + $0xf8] sm:$0xff] %vm5559_vm5, %v8765_v10  ;;  %8792 = vst.msk [vmem:[#allocation2 + $0xf0] sm:$0xff] %vm5559_vm5, %v8736_v34  ;;  %30517 = vmatprep.mubr.msk.f32.mxu0 %vm5559_vm5, %v36251_v9  ;;  %v36350_v14 = vld [vmem:[#allocation2 + $0xaf] sm:$0xff]  ;;  %v36354_v34 = vld [vmem:[#allocation2 + $0xb7] sm:$0xff] }
 0x4dd   : > { %30518 = vmatmul.mubr.msk.f32.gmra.mrb[80].mxu0 %vm5559_vm5, %v36253_v28  ;;  %v36358_v10 = vld [vmem:[#allocation2 + $0xbf] sm:$0xff]  ;;  %v36370_v4 = vld [vmem:[#allocation2 + $0xd7] sm:$0xff] }
 0x4df   : > { %v36261_v61 = vld [vmem:[#allocation2 + $0xe0] sm:$0xff]  ;;  %v36263_v19 = vld [vmem:[#allocation2 + $0xe8] sm:$0xff] }
 0x4e0   : > { %30520 = vmatprep.mubr.msk.f32.mxu0 %vm5559_vm5, %v36261_v61  ;;  %v36374_v37 = vld [vmem:[#allocation2 + $0xdf] sm:$0xff]  ;;  %v36378_v60 = vld [vmem:[#allocation2 + $0xe7] sm:$0xff] }
 0x4e1   : > { %30521 = vmatmul.mubr.msk.f32.gmra.mrb[82].mxu0 %vm5559_vm5, %v36263_v19 }
 0x4e2   : > { %30525 = vmatprep.mubr.msk.f32.mxu0 %vm5559_vm5, %v8794_v1  ;;  %v36362_v1 = vld [vmem:[#allocation2 + $0xc7] sm:$0xff] }
 0x4e5   : > { %30526 = vmatmul.mubr.msk.f32.vlgmr.msra.gmra.mrb[56].mxu0 %vm5559_vm5, %v8795_v51  ;;  %v36366_v51 = vld [vmem:[#allocation2 + $0xcf] sm:$0xff] }
 0x4e6   : > { %30528 = vmatprep.mubr.msk.f32.mxu0 %vm5559_vm5, %v36276_v5  ;;  %30568 = vmatpush3.msra.mxu0 %v36064_v46  ;;  %v36298_v46 = vld [vmem:[#allocation2 + $0x47] sm:$0xff] }
 0x4e7   : > { %30611 = vmatprep.subr.mxu0 %v36273_v57 }
 0x4e9   : > { %30529 = vmatmul.mubr.msk.f32.gmra.mrb[58].mxu0 %vm5559_vm5, %v36282_v63 }
 0x4ea   : > { %30531 = vmatprep.mubr.msk.f32.mxu0 %vm5559_vm5, %v36286_v3 }
 0x4ed   : > { %30532 = vmatmul.mubr.msk.f32.gmra.mrb[60].mxu0 %vm5559_vm5, %v36290_v50 }
 0x4ee   : > { %30534 = vmatprep.mubr.msk.f32.mxu0 %vm5559_vm5, %v36294_v52 }
 0x4f1   : > { %30535 = vmatmul.mubr.msk.f32.gmra.mrb[62].mxu0 %vm5559_vm5, %v36298_v46 }
 0x4f2   : > { %30537 = vmatprep.mubr.msk.f32.mxu0 %vm5559_vm5, %v36302_v0 }
 0x4f5   : > { %30538 = vmatmul.mubr.msk.f32.gmra.mrb[64].mxu0 %vm5559_vm5, %v36306_v43 }
 0x4f6   : > { %30540 = vmatprep.mubr.msk.f32.mxu0 %vm5559_vm5, %v36310_v32 }
 0x4f9   : > { %30541 = vmatmul.mubr.msk.f32.gmra.mrb[66].mxu0 %vm5559_vm5, %v36314_v6 }
 0x4fa   : > { %30543 = vmatprep.mubr.msk.f32.mxu0 %vm5559_vm5, %v36318_v18 }
 0x4fd   : > { %30544 = vmatmul.mubr.msk.f32.gmra.mrb[68].mxu0 %vm5559_vm5, %v36322_v58 }
 0x4fe   : > { %30546 = vmatprep.mubr.msk.f32.mxu0 %vm5559_vm5, %v36326_v36 }
 0x501   : > { %30547 = vmatmul.mubr.msk.f32.gmra.mrb[70].mxu0 %vm5559_vm5, %v36330_v20 }
 0x502   : > { %30549 = vmatprep.mubr.msk.f32.mxu0 %vm5559_vm5, %v36334_v38 }
 0x505   : > { %30550 = vmatmul.mubr.msk.f32.gmra.mrb[72].mxu0 %vm5559_vm5, %v36338_v31 }
 0x506   : > { %30552 = vmatprep.mubr.msk.f32.mxu0 %vm5559_vm5, %v36342_v39 }
 0x509   : > { %30553 = vmatmul.mubr.msk.f32.gmra.mrb[74].mxu0 %vm5559_vm5, %v36346_v54 }
 0x50a   : > { %30555 = vmatprep.mubr.msk.f32.mxu0 %vm5559_vm5, %v36350_v14 }
 0x50d   : > { %30556 = vmatmul.mubr.msk.f32.gmra.mrb[76].mxu0 %vm5559_vm5, %v36354_v34 }
 0x50e   : > { %30558 = vmatprep.mubr.msk.f32.mxu0 %vm5559_vm5, %v36358_v10 }
 0x511   : > { %30559 = vmatmul.mubr.msk.f32.gmra.mrb[78].mxu0 %vm5559_vm5, %v36362_v1 }
 0x512   : > { %30561 = vmatprep.mubr.msk.f32.mxu0 %vm5559_vm5, %v36366_v51 }
 0x515   : > { %30562 = vmatmul.mubr.msk.f32.gmra.mrb[80].mxu0 %vm5559_vm5, %v36370_v4 }
 0x516   : > { %30564 = vmatprep.mubr.msk.f32.mxu0 %vm5559_vm5, %v36374_v37 }
 0x519   : > { %30565 = vmatmul.mubr.msk.f32.gmra.mrb[82].mxu0 %vm5559_vm5, %v36378_v60 }
 0x51a   : > { %30569 = vmatprep.mubr.msk.f32.mxu0 %vm5559_vm5, %v9431_v55  ;;  %v36396_v55 = vld [vmem:[#allocation2 + $0x31] sm:$0xff] }
 0x51b   : > { %41008 = vst [vmem:[#allocation11_spill] sm:$0xff] %v36396_v55 }
 0x51d   : > { %30570 = vmatmul.mubr.msk.f32.vlgmr.msra.gmra.mrb[56].mxu0 %vm5559_vm5, %v9432_v45  ;;  %v36404_v45 = vld [vmem:[#allocation2 + $0x41] sm:$0xff] }
 0x51e   : > { %30572 = vmatprep.mubr.msk.f32.mxu0 %vm5559_vm5, %v36387_v25  ;;  %30612 = vmatpush3.msra.mxu0 %v36273_v57  ;;  %41010 = vst [vmem:[#allocation14_spill] sm:$0xff] %v36404_v45  ;;  %v36408_v57 = vld [vmem:[#allocation2 + $0x49] sm:$0xff] }
 0x51f   : > { %30655 = vmatprep.subr.mxu0 %v26473_v8  ;;  %41011 = vst [vmem:[#allocation21_spill] sm:$0xff] %v36408_v57 }
 0x521   : > { %30573 = vmatmul.mubr.msk.f32.gmra.mrb[58].mxu0 %vm5559_vm5, %v36392_v26 }
 0x522   : > { %30575 = vmatprep.mubr.msk.f32.mxu0 %vm5559_vm5, %v36396_v55 }
 0x525   : > { %30576 = vmatmul.mubr.msk.f32.gmra.mrb[60].mxu0 %vm5559_vm5, %v36400_v30 }
 0x526   : > { %30578 = vmatprep.mubr.msk.f32.mxu0 %vm5559_vm5, %v36404_v45 }
 0x529   : > { %30579 = vmatmul.mubr.msk.f32.gmra.mrb[62].mxu0 %vm5559_vm5, %v36408_v57 }
 0x52a   : > { %30581 = vmatprep.mubr.msk.f32.mxu0 %vm5559_vm5, %v36412_v15  ;;  %v36432_v15 = vld [vmem:[#allocation2 + $0x79] sm:$0xff] }
 0x52b   : > { %41017 = vst [vmem:[#allocation34_spill] sm:$0xff] %v36432_v15 }
 0x52d   : > { %30582 = vmatmul.mubr.msk.f32.gmra.mrb[64].mxu0 %vm5559_vm5, %v36416_v56  ;;  %v36436_v56 = vld [vmem:[#allocation2 + $0x81] sm:$0xff] }
 0x52e   : > { %30584 = vmatprep.mubr.msk.f32.mxu0 %vm5559_vm5, %v36420_v35  ;;  %41018 = vst [vmem:[#allocation35_spill] sm:$0xff] %v36436_v56  ;;  %v36440_v35 = vld [vmem:[#allocation2 + $0x89] sm:$0xff] }
 0x52f   : > { %41019 = vst [vmem:[#allocation37_spill] sm:$0xff] %v36440_v35 }
 0x531   : > { %30585 = vmatmul.mubr.msk.f32.gmra.mrb[66].mxu0 %vm5559_vm5, %v36424_v48  ;;  %v36444_v48 = vld [vmem:[#allocation2 + $0x91] sm:$0xff] }
 0x532   : > { %30587 = vmatprep.mubr.msk.f32.mxu0 %vm5559_vm5, %v36428_v23  ;;  %41020 = vst [vmem:[#allocation38_spill] sm:$0xff] %v36444_v48  ;;  %v36448_v23 = vld [vmem:[#allocation2 + $0x99] sm:$0xff] }
 0x533   : > { %41021 = vst [vmem:[#allocation40_spill] sm:$0xff] %v36448_v23 }
 0x535   : > { %30588 = vmatmul.mubr.msk.f32.gmra.mrb[68].mxu0 %vm5559_vm5, %v36432_v15  ;;  %v36452_v15 = vld [vmem:[#allocation2 + $0xa1] sm:$0xff] }
 0x536   : > { %30590 = vmatprep.mubr.msk.f32.mxu0 %vm5559_vm5, %v36436_v56  ;;  %41022 = vst [vmem:[#allocation41_spill] sm:$0xff] %v36452_v15  ;;  %v36456_v56 = vld [vmem:[#allocation2 + $0xa9] sm:$0xff] }
 0x537   : > { %41023 = vst [vmem:[#allocation42_spill] sm:$0xff] %v36456_v56 }
 0x539   : > { %30591 = vmatmul.mubr.msk.f32.gmra.mrb[70].mxu0 %vm5559_vm5, %v36440_v35  ;;  %v36460_v35 = vld [vmem:[#allocation2 + $0xb1] sm:$0xff] }
 0x53a   : > { %30593 = vmatprep.mubr.msk.f32.mxu0 %vm5559_vm5, %v36444_v48  ;;  %41024 = vst [vmem:[#allocation43_spill] sm:$0xff] %v36460_v35  ;;  %v36464_v48 = vld [vmem:[#allocation2 + $0xb9] sm:$0xff] }
 0x53b   : > { %41025 = vst [vmem:[#allocation44_spill] sm:$0xff] %v36464_v48 }
 0x53d   : > { %30594 = vmatmul.mubr.msk.f32.gmra.mrb[72].mxu0 %vm5559_vm5, %v36448_v23  ;;  %v36468_v23 = vld [vmem:[#allocation2 + $0xc1] sm:$0xff] }
 0x53e   : > { %30596 = vmatprep.mubr.msk.f32.mxu0 %vm5559_vm5, %v36452_v15  ;;  %41026 = vst [vmem:[#allocation45_spill] sm:$0xff] %v36468_v23  ;;  %v36472_v15 = vld [vmem:[#allocation2 + $0xc9] sm:$0xff] }
 0x541   : > { %30597 = vmatmul.mubr.msk.f32.gmra.mrb[74].mxu0 %vm5559_vm5, %v36456_v56  ;;  %v36476_v56 = vld [vmem:[#allocation2 + $0xd1] sm:$0xff] }
 0x542   : > { %30599 = vmatprep.mubr.msk.f32.mxu0 %vm5559_vm5, %v36460_v35  ;;  %41027 = vst [vmem:[#allocation46_spill] sm:$0xff] %v36476_v56  ;;  %v36480_v35 = vld [vmem:[#allocation2 + $0xd9] sm:$0xff] }
 0x545   : > { %30600 = vmatmul.mubr.msk.f32.gmra.mrb[76].mxu0 %vm5559_vm5, %v36464_v48  ;;  %v36484_v48 = vld [vmem:[#allocation2 + $0xe1] sm:$0xff] }
 0x546   : > { %30602 = vmatprep.mubr.msk.f32.mxu0 %vm5559_vm5, %v36468_v23  ;;  %41028 = vst [vmem:[#allocation47_spill] sm:$0xff] %v36484_v48  ;;  %v36488_v23 = vld [vmem:[#allocation2 + $0xe9] sm:$0xff] }
 0x549   : > { %30603 = vmatmul.mubr.msk.f32.gmra.mrb[78].mxu0 %vm5559_vm5, %v36472_v15 }
 0x54a   : > { %30605 = vmatprep.mubr.msk.f32.mxu0 %vm5559_vm5, %v36476_v56  ;;  %v26502_v56 = vld [vmem:[%s40489_s3 + $0x28] sm:$0xff] }
 0x54d   : > { %30606 = vmatmul.mubr.msk.f32.gmra.mrb[80].mxu0 %vm5559_vm5, %v36480_v35 }
 0x54e   : > { %30608 = vmatprep.mubr.msk.f32.mxu0 %vm5559_vm5, %v36484_v48 }
 0x551   : > { %30609 = vmatmul.mubr.msk.f32.gmra.mrb[82].mxu0 %vm5559_vm5, %v36488_v23 }
 0x552   : > { %30613 = vmatprep.mubr.msk.f32.mxu0 %vm5559_vm5, %v36276_v5  ;;  %v36551_v5 = vld [vmem:[#allocation2 + $0xf7] sm:$0xff] }
 0x555   : > { %30614 = vmatmul.mubr.msk.f32.vlgmr.msra.gmra.mrb[56].mxu0 %vm5559_vm5, %v36282_v63  ;;  %v26531_v63 = vld [vmem:[%s40489_s3 + $0x30] sm:$0xff] }
 0x556   : > { %30616 = vmatprep.mubr.msk.f32.mxu0 %vm5559_vm5, %v36286_v3  ;;  %30656 = vmatpush3.msra.mxu0 %v26473_v8  ;;  %v36547_v8 = vld [vmem:[#allocation2 + $0xef] sm:$0xff] }
 0x557   : > { %30699 = vmatprep.subr.mxu0 %v26502_v56 }
 0x559   : > { %30617 = vmatmul.mubr.msk.f32.gmra.mrb[58].mxu0 %vm5559_vm5, %v36290_v50 }
 0x55a   : > { %30619 = vmatprep.mubr.msk.f32.mxu0 %vm5559_vm5, %v36294_v52 }
 0x55d   : > { %30620 = vmatmul.mubr.msk.f32.gmra.mrb[60].mxu0 %vm5559_vm5, %v36298_v46 }
 0x55e   : > { %30622 = vmatprep.mubr.msk.f32.mxu0 %vm5559_vm5, %v36302_v0 }
 0x561   : > { %30623 = vmatmul.mubr.msk.f32.gmra.mrb[62].mxu0 %vm5559_vm5, %v36306_v43 }
 0x562   : > { %30625 = vmatprep.mubr.msk.f32.mxu0 %vm5559_vm5, %v36310_v32 }
 0x565   : > { %30626 = vmatmul.mubr.msk.f32.gmra.mrb[64].mxu0 %vm5559_vm5, %v36314_v6 }
 0x566   : > { %30628 = vmatprep.mubr.msk.f32.mxu0 %vm5559_vm5, %v36318_v18 }
 0x569   : > { %30629 = vmatmul.mubr.msk.f32.gmra.mrb[66].mxu0 %vm5559_vm5, %v36322_v58 }
 0x56a   : > { %30631 = vmatprep.mubr.msk.f32.mxu0 %vm5559_vm5, %v36326_v36 }
 0x56d   : > { %30632 = vmatmul.mubr.msk.f32.gmra.mrb[68].mxu0 %vm5559_vm5, %v36330_v20 }
 0x56e   : > { %30634 = vmatprep.mubr.msk.f32.mxu0 %vm5559_vm5, %v36334_v38 }
 0x571   : > { %30635 = vmatmul.mubr.msk.f32.gmra.mrb[70].mxu0 %vm5559_vm5, %v36338_v31 }
 0x572   : > { %30637 = vmatprep.mubr.msk.f32.mxu0 %vm5559_vm5, %v36342_v39 }
 0x575   : > { %30638 = vmatmul.mubr.msk.f32.gmra.mrb[72].mxu0 %vm5559_vm5, %v36346_v54 }
 0x576   : > { %30640 = vmatprep.mubr.msk.f32.mxu0 %vm5559_vm5, %v36350_v14 }
 0x579   : > { %30641 = vmatmul.mubr.msk.f32.gmra.mrb[74].mxu0 %vm5559_vm5, %v36354_v34 }
 0x57a   : > { %30643 = vmatprep.mubr.msk.f32.mxu0 %vm5559_vm5, %v36358_v10 }
 0x57d   : > { %30644 = vmatmul.mubr.msk.f32.gmra.mrb[76].mxu0 %vm5559_vm5, %v36362_v1 }
 0x57e   : > { %30646 = vmatprep.mubr.msk.f32.mxu0 %vm5559_vm5, %v36366_v51 }
 0x581   : > { %30647 = vmatmul.mubr.msk.f32.gmra.mrb[78].mxu0 %vm5559_vm5, %v36370_v4 }
 0x582   : > { %30649 = vmatprep.mubr.msk.f32.mxu0 %vm5559_vm5, %v36374_v37 }
 0x585   : > { %30650 = vmatmul.mubr.msk.f32.gmra.mrb[80].mxu0 %vm5559_vm5, %v36378_v60 }
 0x586   : > { %30652 = vmatprep.mubr.msk.f32.mxu0 %vm5559_vm5, %v36547_v8 }
 0x589   : > { %30653 = vmatmul.mubr.msk.f32.gmra.mrb[82].mxu0 %vm5559_vm5, %v36551_v5 }
 0x58a   : > { %30657 = vmatprep.mubr.msk.f32.mxu0 %vm5559_vm5, %v36105_v29  ;;  %v36610_v29 = vld [vmem:[#allocation2 + $0xf0] sm:$0xff] }
 0x58d   : > { %30658 = vmatmul.mubr.msk.f32.vlgmr.msra.gmra.mrb[56].mxu0 %vm5559_vm5, %v36107_v21  ;;  %v36614_v21 = vld [vmem:[#allocation2 + $0xf8] sm:$0xff] }
 0x58e   : > { %30660 = vmatprep.mubr.msk.f32.mxu0 %vm5559_vm5, %v36117_v42  ;;  %30700 = vmatpush3.msra.mxu0 %v26502_v56  ;;  %41029 = vst [vmem:[#allocation48_spill] sm:$0xff] %v36614_v21  ;;  %v26560_v56 = vld [vmem:[%s40489_s3 + $0x38] sm:$0xff] }
 0x58f   : > { %30743 = vmatprep.subr.mxu0 %v26531_v63 }
 0x591   : > { %30661 = vmatmul.mubr.msk.f32.gmra.mrb[58].mxu0 %vm5559_vm5, %v36119_v40 }
 0x592   : > { %30663 = vmatprep.mubr.msk.f32.mxu0 %vm5559_vm5, %v36129_v11 }
 0x595   : > { %30664 = vmatmul.mubr.msk.f32.gmra.mrb[60].mxu0 %vm5559_vm5, %v36131_v47 }
 0x596   : > { %30666 = vmatprep.mubr.msk.f32.mxu0 %vm5559_vm5, %v36141_v62 }
 0x599   : > { %30667 = vmatmul.mubr.msk.f32.gmra.mrb[62].mxu0 %vm5559_vm5, %v36143_v53 }
 0x59a   : > { %30669 = vmatprep.mubr.msk.f32.mxu0 %vm5559_vm5, %v36154_v16 }
 0x59d   : > { %30670 = vmatmul.mubr.msk.f32.gmra.mrb[64].mxu0 %vm5559_vm5, %v36156_v41 }
 0x59e   : > { %30672 = vmatprep.mubr.msk.f32.mxu0 %vm5559_vm5, %v36168_v17 }
 0x5a1   : > { %30673 = vmatmul.mubr.msk.f32.gmra.mrb[66].mxu0 %vm5559_vm5, %v36170_v27 }
 0x5a2   : > { %30675 = vmatprep.mubr.msk.f32.mxu0 %vm5559_vm5, %v36182_v12 }
 0x5a5   : > { %30676 = vmatmul.mubr.msk.f32.gmra.mrb[68].mxu0 %vm5559_vm5, %v36184_v13 }
 0x5a6   : > { %30678 = vmatprep.mubr.msk.f32.mxu0 %vm5559_vm5, %v36196_v2 }
 0x5a9   : > { %30679 = vmatmul.mubr.msk.f32.gmra.mrb[70].mxu0 %vm5559_vm5, %v36198_v24 }
 0x5aa   : > { %30681 = vmatprep.mubr.msk.f32.mxu0 %vm5559_vm5, %v36210_v7 }
 0x5ad   : > { %30682 = vmatmul.mubr.msk.f32.gmra.mrb[72].mxu0 %vm5559_vm5, %v36212_v49 }
 0x5ae   : > { %30684 = vmatprep.mubr.msk.f32.mxu0 %vm5559_vm5, %v36224_v59 }
 0x5b1   : > { %30685 = vmatmul.mubr.msk.f32.gmra.mrb[74].mxu0 %vm5559_vm5, %v36226_v33 }
 0x5b2   : > { %30687 = vmatprep.mubr.msk.f32.mxu0 %vm5559_vm5, %v36238_v22 }
 0x5b5   : > { %30688 = vmatmul.mubr.msk.f32.gmra.mrb[76].mxu0 %vm5559_vm5, %v36240_v44 }
 0x5b6   : > { %30690 = vmatprep.mubr.msk.f32.mxu0 %vm5559_vm5, %v36251_v9 }
 0x5b9   : > { %30691 = vmatmul.mubr.msk.f32.gmra.mrb[78].mxu0 %vm5559_vm5, %v36253_v28 }
 0x5ba   : > { %30693 = vmatprep.mubr.msk.f32.mxu0 %vm5559_vm5, %v36261_v61 }
 0x5bd   : > { %30694 = vmatmul.mubr.msk.f32.gmra.mrb[80].mxu0 %vm5559_vm5, %v36263_v19 }
 0x5be   : > { %30696 = vmatprep.mubr.msk.f32.mxu0 %vm5559_vm5, %v36610_v29 }
 0x5c1   : > { %30697 = vmatmul.mubr.msk.f32.gmra.mrb[82].mxu0 %vm5559_vm5, %v36614_v21  ;;  %v41031_v21 = vld [vmem:[#allocation27_spill] sm:$0xff] }
 0x5c2   : > { %30701 = vmatprep.mubr.msk.f32.mxu0 %vm5559_vm5, %v36387_v25  ;;  %v41030_v25 = vld [vmem:[#allocation23_spill] sm:$0xff] }
 0x5c5   : > { %30702 = vmatmul.mubr.msk.f32.vlgmr.msra.gmra.mrb[56].mxu0 %vm5559_vm5, %v36392_v26  ;;  %v41032_v26 = vld [vmem:[#allocation28_spill] sm:$0xff] }
 0x5c6   : > { %30704 = vmatprep.mubr.msk.f32.mxu0 %vm5559_vm5, %v36396_v55  ;;  %30744 = vmatpush3.msra.mxu0 %v26531_v63  ;;  %v41033_v63 = vld [vmem:[#allocation31_spill] sm:$0xff]  ;;  %v41034_v55 = vld [vmem:[#allocation32_spill] sm:$0xff] }
 0x5c7   : > { %30787 = vmatprep.subr.mxu0 %v26560_v56 }
 0x5c9   : > { %30705 = vmatmul.mubr.msk.f32.gmra.mrb[58].mxu0 %vm5559_vm5, %v36400_v30  ;;  %v41035_v30 = vld [vmem:[#allocation34_spill] sm:$0xff] }
 0x5ca   : > { %30707 = vmatprep.mubr.msk.f32.mxu0 %vm5559_vm5, %v36404_v45  ;;  %v41036_v45 = vld [vmem:[#allocation35_spill] sm:$0xff] }
 0x5cd   : > { %30708 = vmatmul.mubr.msk.f32.gmra.mrb[60].mxu0 %vm5559_vm5, %v36408_v57  ;;  %v41037_v57 = vld [vmem:[#allocation37_spill] sm:$0xff] }
 0x5ce   : > { %30710 = vmatprep.mubr.msk.f32.mxu0 %vm5559_vm5, %v41030_v25  ;;  %v41038_v25 = vld [vmem:[#allocation38_spill] sm:$0xff] }
 0x5d1   : > { %30711 = vmatmul.mubr.msk.f32.gmra.mrb[62].mxu0 %vm5559_vm5, %v41031_v21  ;;  %v41039_v21 = vld [vmem:[#allocation40_spill] sm:$0xff] }
 0x5d2   : > { %30713 = vmatprep.mubr.msk.f32.mxu0 %vm5559_vm5, %v41032_v26  ;;  %v41040_v26 = vld [vmem:[#allocation41_spill] sm:$0xff] }
 0x5d5   : > { %30714 = vmatmul.mubr.msk.f32.gmra.mrb[64].mxu0 %vm5559_vm5, %v41033_v63  ;;  %v41041_v63 = vld [vmem:[#allocation42_spill] sm:$0xff] }
 0x5d6   : > { %30716 = vmatprep.mubr.msk.f32.mxu0 %vm5559_vm5, %v41034_v55  ;;  %v41042_v55 = vld [vmem:[#allocation43_spill] sm:$0xff] }
 0x5d9   : > { %30717 = vmatmul.mubr.msk.f32.gmra.mrb[66].mxu0 %vm5559_vm5, %v41035_v30  ;;  %v41043_v30 = vld [vmem:[#allocation44_spill] sm:$0xff] }
 0x5da   : > { %30719 = vmatprep.mubr.msk.f32.mxu0 %vm5559_vm5, %v41036_v45  ;;  %v41044_v45 = vld [vmem:[#allocation45_spill] sm:$0xff] }
 0x5dd   : > { %30720 = vmatmul.mubr.msk.f32.gmra.mrb[68].mxu0 %vm5559_vm5, %v41037_v57 }
 0x5de   : > { %30722 = vmatprep.mubr.msk.f32.mxu0 %vm5559_vm5, %v41038_v25  ;;  %v41045_v25 = vld [vmem:[#allocation46_spill] sm:$0xff] }
 0x5e1   : > { %30723 = vmatmul.mubr.msk.f32.gmra.mrb[70].mxu0 %vm5559_vm5, %v41039_v21 }
 0x5e2   : > { %30725 = vmatprep.mubr.msk.f32.mxu0 %vm5559_vm5, %v41040_v26 }
 0x5e5   : > { %30726 = vmatmul.mubr.msk.f32.gmra.mrb[72].mxu0 %vm5559_vm5, %v41041_v63 }
 0x5e6   : > { %30728 = vmatprep.mubr.msk.f32.mxu0 %vm5559_vm5, %v41042_v55  ;;  %v36673_v55 = vld [vmem:[#allocation2 + $0xf1] sm:$0xff] }
 0x5e9   : > { %30729 = vmatmul.mubr.msk.f32.gmra.mrb[74].mxu0 %vm5559_vm5, %v41043_v30 }
 0x5ea   : > { %30731 = vmatprep.mubr.msk.f32.mxu0 %vm5559_vm5, %v41044_v45  ;;  %v36677_v45 = vld [vmem:[#allocation2 + $0xf9] sm:$0xff] }
 0x5ed   : > { %30732 = vmatmul.mubr.msk.f32.gmra.mrb[76].mxu0 %vm5559_vm5, %v36472_v15 }
 0x5ee   : > { %30734 = vmatprep.mubr.msk.f32.mxu0 %vm5559_vm5, %v41045_v25 }
 0x5f1   : > { %30735 = vmatmul.mubr.msk.f32.gmra.mrb[78].mxu0 %vm5559_vm5, %v36480_v35 }
 0x5f2   : > { %30737 = vmatprep.mubr.msk.f32.mxu0 %vm5559_vm5, %v36484_v48  ;;  %v26589_v48 = vld [vmem:[%s40489_s3 + $0x40] sm:$0xff] }
 0x5f5   : > { %30738 = vmatmul.mubr.msk.f32.gmra.mrb[80].mxu0 %vm5559_vm5, %v36488_v23 }
 0x5f6   : > { %30740 = vmatprep.mubr.msk.f32.mxu0 %vm5559_vm5, %v36673_v55 }
 0x5f9   : > { %30741 = vmatmul.mubr.msk.f32.gmra.mrb[82].mxu0 %vm5559_vm5, %v36677_v45 }
 0x5fa   : > { %30745 = vmatprep.mubr.msk.f32.mxu0 %vm5559_vm5, %v36286_v3  ;;  %v26618_v3 = vld [vmem:[%s40490_s4 + $0x8] sm:$0xff] }
 0x5fb   : > { %30875 = vmatprep.subr.mxu1 %v26618_v3 }
 0x5fc   : > { %30876 = vmatpush3.msra.mxu1 %v26618_v3 }
 0x5fd   : > { %30746 = vmatmul.mubr.msk.f32.vlgmr.msra.gmra.mrb[56].mxu0 %vm5559_vm5, %v36290_v50  ;;  %v10845_v50 = vld [vmem:[#allocation2 + $0xff] sm:$0xff] }
 0x5fe   : > { %30748 = vmatprep.mubr.msk.f32.mxu0 %vm5559_vm5, %v36294_v52  ;;  %30788 = vmatpush3.msra.mxu0 %v26560_v56  ;;  %v10846_v52 = vld [vmem:[#allocation2 + $0x107] sm:$0xff] }
 0x5ff   : > { %30831 = vmatprep.subr.mxu0 %v26589_v48 }
 0x601   : > { %30749 = vmatmul.mubr.msk.f32.gmra.mrb[58].mxu0 %vm5559_vm5, %v36298_v46 }
 0x602   : > { %30751 = vmatprep.mubr.msk.f32.mxu0 %vm5559_vm5, %v36302_v0 }
 0x605   : > { %30752 = vmatmul.mubr.msk.f32.gmra.mrb[60].mxu0 %vm5559_vm5, %v36306_v43 }
 0x606   : > { %30754 = vmatprep.mubr.msk.f32.mxu0 %vm5559_vm5, %v36310_v32  ;;  %v11863_v32 = vld [vmem:[%s34113_s27 + $0x18] sm:$0xff] }
 0x609   : > { %30755 = vmatmul.mubr.msk.f32.gmra.mrb[62].mxu0 %vm5559_vm5, %v36314_v6 }
 0x60a   : > { %30757 = vmatprep.mubr.msk.f32.mxu0 %vm5559_vm5, %v36318_v18 }
 0x60d   : > { %30758 = vmatmul.mubr.msk.f32.gmra.mrb[64].mxu0 %vm5559_vm5, %v36322_v58  ;;  %v11862_v58 = vld [vmem:[%s34113_s27 + $0x10] sm:$0xff] }
 0x60e   : > { %30760 = vmatprep.mubr.msk.f32.mxu0 %vm5559_vm5, %v36326_v36 }
 0x611   : > { %30761 = vmatmul.mubr.msk.f32.gmra.mrb[66].mxu0 %vm5559_vm5, %v36330_v20 }
 0x612   : > { %30763 = vmatprep.mubr.msk.f32.mxu0 %vm5559_vm5, %v36334_v38 }
 0x615   : > { %30764 = vmatmul.mubr.msk.f32.gmra.mrb[68].mxu0 %vm5559_vm5, %v36338_v31 }
 0x616   : > { %30766 = vmatprep.mubr.msk.f32.mxu0 %vm5559_vm5, %v36342_v39  ;;  %v11865_v39 = vld [vmem:[%s34113_s27 + $0x28] sm:$0xff] }
 0x619   : > { %30767 = vmatmul.mubr.msk.f32.gmra.mrb[70].mxu0 %vm5559_vm5, %v36346_v54 }
 0x61a   : > { %30769 = vmatprep.mubr.msk.f32.mxu0 %vm5559_vm5, %v36350_v14 }
 0x61d   : > { %30770 = vmatmul.mubr.msk.f32.gmra.mrb[72].mxu0 %vm5559_vm5, %v36354_v34  ;;  %v11864_v34 = vld [vmem:[%s34113_s27 + $0x20] sm:$0xff] }
 0x61e   : > { %30772 = vmatprep.mubr.msk.f32.mxu0 %vm5559_vm5, %v36358_v10 }
 0x621   : > { %30773 = vmatmul.mubr.msk.f32.gmra.mrb[74].mxu0 %vm5559_vm5, %v36362_v1 }
 0x622   : > { %30775 = vmatprep.mubr.msk.f32.mxu0 %vm5559_vm5, %v36366_v51 }
 0x625   : > { %30776 = vmatmul.mubr.msk.f32.gmra.mrb[76].mxu0 %vm5559_vm5, %v36370_v4  ;;  %v11861_v4 = vld [vmem:[%s34113_s27 + $0x8] sm:$0xff] }
 0x626   : > { %30778 = vmatprep.mubr.msk.f32.mxu0 %vm5559_vm5, %v36374_v37 }
 0x629   : > { %30779 = vmatmul.mubr.msk.f32.gmra.mrb[78].mxu0 %vm5559_vm5, %v36378_v60  ;;  %v41059_v60 = vld [vmem:[#allocation43_spill] sm:$0xff] }
 0x62a   : > { %30781 = vmatprep.mubr.msk.f32.mxu0 %vm5559_vm5, %v36547_v8  ;;  %v11867_v8 = vld [vmem:[%s34113_s27 + $0x38] sm:$0xff] }
 0x62d   : > { %30782 = vmatmul.mubr.msk.f32.gmra.mrb[80].mxu0 %vm5559_vm5, %v36551_v5 }
 0x62e   : > { %30784 = vmatprep.mubr.msk.f32.mxu0 %vm5559_vm5, %v10845_v50 }
 0x631   : > { %30785 = vmatmul.mubr.msk.f32.gmra.mrb[82].mxu0 %vm5559_vm5, %v10846_v52 }
 0x632   : > { %30789 = vmatprep.mubr.msk.f32.mxu0 %vm5559_vm5, %v36117_v42  ;;  %v41046_v42 = vld [vmem:[#allocation48_spill] sm:$0xff] }
 0x635   : > { %30790 = vmatmul.mubr.msk.f32.vlgmr.msra.gmra.mrb[56].mxu0 %vm5559_vm5, %v36119_v40  ;;  %v11193_v40 = vld [vmem:[#allocation2 + $0x108] sm:$0xff] }
 0x636   : > { %30792 = vmatprep.mubr.msk.f32.mxu0 %vm5559_vm5, %v36129_v11  ;;  %30832 = vmatpush3.msra.mxu0 %v26589_v48  ;;  %v11192_v48 = vld [vmem:[#allocation2 + $0x100] sm:$0xff]  ;;  %v41047_v11 = vld [vmem:[#allocation11_spill] sm:$0xff] }
 0x639   : > { %30793 = vmatmul.mubr.msk.f32.gmra.mrb[58].mxu0 %vm5559_vm5, %v36131_v47  ;;  %v41048_v47 = vld [vmem:[#allocation13_spill] sm:$0xff] }
 0x63a   : > { %30795 = vmatprep.mubr.msk.f32.mxu0 %vm5559_vm5, %v36141_v62  ;;  %v41049_v62 = vld [vmem:[#allocation14_spill] sm:$0xff] }
 0x63d   : > { %30796 = vmatmul.mubr.msk.f32.gmra.mrb[60].mxu0 %vm5559_vm5, %v36143_v53  ;;  %v41050_v53 = vld [vmem:[#allocation21_spill] sm:$0xff] }
 0x63e   : > { %30798 = vmatprep.mubr.msk.f32.mxu0 %vm5559_vm5, %v36154_v16  ;;  %v41051_v16 = vld [vmem:[#allocation23_spill] sm:$0xff] }
 0x641   : > { %30799 = vmatmul.mubr.msk.f32.gmra.mrb[62].mxu0 %vm5559_vm5, %v36156_v41  ;;  %v41052_v41 = vld [vmem:[#allocation27_spill] sm:$0xff] }
 0x642   : > { %30801 = vmatprep.mubr.msk.f32.mxu0 %vm5559_vm5, %v36168_v17  ;;  %v41053_v17 = vld [vmem:[#allocation28_spill] sm:$0xff] }
 0x645   : > { %30802 = vmatmul.mubr.msk.f32.gmra.mrb[64].mxu0 %vm5559_vm5, %v36170_v27  ;;  %v41054_v27 = vld [vmem:[#allocation31_spill] sm:$0xff] }
 0x646   : > { %30804 = vmatprep.mubr.msk.f32.mxu0 %vm5559_vm5, %v36182_v12  ;;  %v41055_v12 = vld [vmem:[#allocation32_spill] sm:$0xff] }
 0x649   : > { %30805 = vmatmul.mubr.msk.f32.gmra.mrb[66].mxu0 %vm5559_vm5, %v36184_v13  ;;  %v41056_v13 = vld [vmem:[#allocation34_spill] sm:$0xff] }
 0x64a   : > { %30807 = vmatprep.mubr.msk.f32.mxu0 %vm5559_vm5, %v36196_v2  ;;  %v41057_v2 = vld [vmem:[#allocation35_spill] sm:$0xff] }
 0x64d   : > { %30808 = vmatmul.mubr.msk.f32.gmra.mrb[68].mxu0 %vm5559_vm5, %v36198_v24  ;;  %v41058_v24 = vld [vmem:[#allocation38_spill] sm:$0xff] }
 0x64e   : > { %30810 = vmatprep.mubr.msk.f32.mxu0 %vm5559_vm5, %v36210_v7  ;;  %v41060_v7 = vld [vmem:[#allocation45_spill] sm:$0xff] }
 0x651   : > { %30811 = vmatmul.mubr.msk.f32.gmra.mrb[70].mxu0 %vm5559_vm5, %v36212_v49  ;;  %v41061_v49 = vld [vmem:[#allocation47_spill] sm:$0xff] }
 0x652   : > { %30813 = vmatprep.mubr.msk.f32.mxu0 %vm5559_vm5, %v36224_v59 }
 0x655   : > { %30814 = vmatmul.mubr.msk.f32.gmra.mrb[72].mxu0 %vm5559_vm5, %v36226_v33  ;;  %v12030_v33 = vld [vmem:[#allocation2 + $0x18] sm:$0xff] }
 0x656   : > { %30816 = vmatprep.mubr.msk.f32.mxu0 %vm5559_vm5, %v36238_v22  ;;  %v12058_v37 = vmax.f32 %v12030_v33, 0.0  ;;  %v36857_v22 = vld [vmem:[%s40490_s4 + $0x10] sm:$0xff] }
 0x659   : > { %30817 = vmatmul.mubr.msk.f32.gmra.mrb[74].mxu0 %vm5559_vm5, %v36240_v44 }
 0x65a   : > { %30819 = vmatprep.mubr.msk.f32.mxu0 %vm5559_vm5, %v36251_v9 }
 0x65d   : > { %30820 = vmatmul.mubr.msk.f32.gmra.mrb[76].mxu0 %vm5559_vm5, %v36253_v28 }
 0x65e   : > { %30822 = vmatprep.mubr.msk.f32.mxu0 %vm5559_vm5, %v36261_v61  ;;  %v11860_v61 = vld [vmem:[%s34113_s27] sm:$0xff] }
 0x661   : > { %30823 = vmatmul.mubr.msk.f32.gmra.mrb[78].mxu0 %vm5559_vm5, %v36263_v19 }
 0x662   : > { %30825 = vmatprep.mubr.msk.f32.mxu0 %vm5559_vm5, %v36610_v29 }
 0x665   : > { %30826 = vmatmul.mubr.msk.f32.gmra.mrb[80].mxu0 %vm5559_vm5, %v41046_v42  ;;  %v11869_v42 = vld [vmem:[%s34113_s27 + $0x48] sm:$0xff] }
 0x666   : > { %30828 = vmatprep.mubr.msk.f32.mxu0 %vm5559_vm5, %v11192_v48 }
 0x669   : > { %30829 = vmatmul.mubr.msk.f32.gmra.mrb[82].mxu0 %vm5559_vm5, %v11193_v40 }
 0x66a   : > { %30833 = vmatprep.mubr.msk.f32.mxu0 %vm5559_vm5, %v41047_v11 }
 0x66d   : > { %30834 = vmatmul.mubr.msk.f32.vlgmr.msra.gmra.mrb[56].mxu0 %vm5559_vm5, %v41048_v47 }
 0x66e   : > { %30836 = vmatprep.mubr.msk.f32.mxu0 %vm5559_vm5, %v41049_v62 }
 0x671   : > { %30837 = vmatmul.mubr.msk.f32.gmra.mrb[58].mxu0 %vm5559_vm5, %v41050_v53  ;;  %v11868_v53 = vld [vmem:[%s34113_s27 + $0x40] sm:$0xff] }
 0x672   : > { %30839 = vmatprep.mubr.msk.f32.mxu0 %vm5559_vm5, %v41051_v16 }
 0x675   : > { %30840 = vmatmul.mubr.msk.f32.gmra.mrb[60].mxu0 %vm5559_vm5, %v41052_v41 }
 0x676   : > { %30842 = vmatprep.mubr.msk.f32.mxu0 %vm5559_vm5, %v41053_v17 }
 0x679   : > { %30843 = vmatmul.mubr.msk.f32.gmra.mrb[62].mxu0 %vm5559_vm5, %v41054_v27 }
 0x67a   : > { %30845 = vmatprep.mubr.msk.f32.mxu0 %vm5559_vm5, %v41055_v12 }
 0x67d   : > { %30846 = vmatmul.mubr.msk.f32.gmra.mrb[64].mxu0 %vm5559_vm5, %v41056_v13 }
 0x67e   : > { %30848 = vmatprep.mubr.msk.f32.mxu0 %vm5559_vm5, %v41057_v2  ;;  %v11871_v2 = vld [vmem:[%s34113_s27 + $0x58] sm:$0xff] }
 0x681   : > { %30849 = vmatmul.mubr.msk.f32.gmra.mrb[66].mxu0 %vm5559_vm5, %v41037_v57 }
 0x682   : > { %30851 = vmatprep.mubr.msk.f32.mxu0 %vm5559_vm5, %v41058_v24 }
 0x685   : > { %30852 = vmatmul.mubr.msk.f32.gmra.mrb[68].mxu0 %vm5559_vm5, %v41039_v21 }
 0x686   : > { %30854 = vmatprep.mubr.msk.f32.mxu0 %vm5559_vm5, %v41040_v26 }
 0x689   : > { %30855 = vmatmul.mubr.msk.f32.gmra.mrb[70].mxu0 %vm5559_vm5, %v41041_v63 }
 0x68a   : > { %30857 = vmatprep.mubr.msk.f32.mxu0 %vm5559_vm5, %v41059_v60 }
 0x68d   : > { %30858 = vmatmul.mubr.msk.f32.gmra.mrb[72].mxu0 %vm5559_vm5, %v41043_v30  ;;  %v11539_v30 = vld [vmem:[#allocation2 + $0x101] sm:$0xff] }
 0x68e   : > { %30860 = vmatprep.mubr.msk.f32.mxu0 %vm5559_vm5, %v41060_v7 }
 0x691   : > { %30861 = vmatmul.mubr.msk.f32.gmra.mrb[74].mxu0 %vm5559_vm5, %v36472_v15  ;;  %v11540_v15 = vld [vmem:[#allocation2 + $0x109] sm:$0xff] }
 0x692   : > { %30863 = vmatprep.mubr.msk.f32.mxu0 %vm5559_vm5, %v41045_v25  ;;  %v11866_v25 = vld [vmem:[%s34113_s27 + $0x30] sm:$0xff] }
 0x695   : > { %30864 = vmatmul.mubr.msk.f32.gmra.mrb[76].mxu0 %vm5559_vm5, %v36480_v35  ;;  %v12029_v35 = vld [vmem:[#allocation2 + $0x10] sm:$0xff] }
 0x696   : > { %30866 = vmatprep.mubr.msk.f32.mxu0 %vm5559_vm5, %v41061_v49  ;;  %v12057_v59 = vmax.f32 %v12029_v35, 0.0 }
 0x698   : > { %30877 = vmatprep.mubr.msk.f32.mxu1 %vm5559_vm5, %v12057_v59 }
 0x699   : > { %30867 = vmatmul.mubr.msk.f32.gmra.mrb[78].mxu0 %vm5559_vm5, %v36488_v23  ;;  %v12028_v23 = vld [vmem:[%s40490_s4] sm:$0xff]  ;;  %30878 = vmatmul.mubr.msk.f32.vlgmr.msra.gmra.mrb[28].mxu1 %vm5559_vm5, %v12058_v37 }
 0x69a   : > { %30869 = vmatprep.mubr.msk.f32.mxu0 %vm5559_vm5, %v36673_v55  ;;  %30919 = vmatprep.subr.mxu1 %v12028_v23 }
 0x69b   : > { %30920 = vmatpush3.msra.mxu1 %v12028_v23 }
 0x69c   : > { %30963 = vmatprep.subr.mxu1 %v36857_v22 }
 0x69d   : > { %30870 = vmatmul.mubr.msk.f32.gmra.mrb[80].mxu0 %vm5559_vm5, %v36677_v45 }
 0x69e   : > { %30872 = vmatprep.mubr.msk.f32.mxu0 %vm5559_vm5, %v11539_v30  ;;  %v11870_v30 = vld [vmem:[%s34113_s27 + $0x50] sm:$0xff] }
 0x6a1   : > { %30873 = vmatmul.mubr.msk.f32.gmra.mrb[82].mxu0 %vm5559_vm5, %v11540_v15 }
 0x740   : > { %v30835_v44 = vpop.f32.mrb[56].mxu0 }
 0x741   : > { %v11889_v9 = vadd.f32 %v30835_v44, %v11861_v4  ;;  %v11693_v28 = vpop.f32.mrb[57].mxu0  ;;  %v11873_v44 = vld [vmem:[%s34113_s27 + $0x68] sm:$0xff] }
 0x742   : > { %v11888_v19 = vadd.f32 %v11860_v61, %v11693_v28 }
 0x743   : > { %v11917_v0 = vsel %vm35194_vm6, %v11889_v9, 0.0 }
 0x744   : > { %11945 = vst.msk [vmem:[#allocation2 + $0x28] sm:$0xff] %vm5559_vm5, %v11917_v0  ;;  %11944 = vst.msk [vmem:[#allocation2 + $0x20] sm:$0xff] %vm5559_vm5, %v11888_v19  ;;  %v30838_v43 = vpop.f32.mrb[58].mxu0  ;;  %v11872_v19 = vld [vmem:[%s34113_s27 + $0x60] sm:$0xff] }
 0x745   : > { %v11891_v6 = vadd.f32 %v30838_v43, %v11863_v32  ;;  %v11703_v18 = vpop.f32.mrb[59].mxu0 }
 0x746   : > { %v11890_v36 = vadd.f32 %v11862_v58, %v11703_v18  ;;  %v11875_v58 = vld [vmem:[%s34113_s27 + $0x78] sm:$0xff] }
 0x747   : > { %v11919_v38 = vsel %vm35205_vm7, %v11891_v6, 0.0 }
 0x748   : > { %11947 = vst.msk [vmem:[#allocation2 + $0x38] sm:$0xff] %vm5559_vm5, %v11919_v38  ;;  %11946 = vst.msk [vmem:[#allocation2 + $0x30] sm:$0xff] %vm5559_vm5, %v11890_v36  ;;  %v30841_v31 = vpop.f32.mrb[60].mxu0 }
 0x749   : > { %v11893_v54 = vadd.f32 %v30841_v31, %v11865_v39  ;;  %v11713_v14 = vpop.f32.mrb[61].mxu0  ;;  %v11874_v39 = vld [vmem:[%s34113_s27 + $0x70] sm:$0xff] }
 0x74a   : > { %v11892_v10 = vadd.f32 %v11864_v34, %v11713_v14 }
 0x74b   : > { %v11921_v51 = vsel %vm35214_vm8, %v11893_v54, 0.0  ;;  %v36876_v55 = vld [vmem:[#allocation2 + $0x20] sm:$0xff]  ;;  %v36878_v45 = vld [vmem:[#allocation2 + $0x28] sm:$0xff] }
 0x74c   : > { %11949 = vst.msk [vmem:[#allocation2 + $0x48] sm:$0xff] %vm5559_vm5, %v11921_v51  ;;  %11948 = vst.msk [vmem:[#allocation2 + $0x40] sm:$0xff] %vm5559_vm5, %v11892_v10  ;;  %v30844_v57 = vpop.f32.mrb[62].mxu0  ;;  %v40662_v5 = vmax.f32 %v36876_v55, 0.0  ;;  %v40661_v29 = vmax.f32 %v36878_v45, 0.0 }
 0x74d   : > { %v11895_v21 = vadd.f32 %v30844_v57, %v11867_v8  ;;  %v11723_v56 = vpop.f32.mrb[63].mxu0  ;;  %v11877_v57 = vld [vmem:[%s34113_s27 + $0x88] sm:$0xff] }
 0x74e   : > { %v11894_v26 = vadd.f32 %v11866_v25, %v11723_v56  ;;  %30880 = vmatprep.mubr.msk.f32.mxu1 %vm5559_vm5, %v40662_v5  ;;  %v37226_v5 = vld [vmem:[%s40490_s4 + $0x20] sm:$0xff] }
 0x74f   : > { %v11923_v3 = vsel %vm35234_vm9, %v11895_v21, 0.0  ;;  %30881 = vmatmul.mubr.msk.f32.gmra.mrb[30].mxu1 %vm5559_vm5, %v40661_v29  ;;  %v36894_v50 = vld [vmem:[#allocation2 + $0x30] sm:$0xff]  ;;  %v36896_v52 = vld [vmem:[#allocation2 + $0x38] sm:$0xff] }
 0x750   : > { %11951 = vst.msk [vmem:[#allocation2 + $0x58] sm:$0xff] %vm5559_vm5, %v11923_v3  ;;  %11950 = vst.msk [vmem:[#allocation2 + $0x50] sm:$0xff] %vm5559_vm5, %v11894_v26  ;;  %v30847_v48 = vpop.f32.mrb[64].mxu0  ;;  %v40660_v40 = vmax.f32 %v36894_v50, 0.0  ;;  %v40659_v11 = vmax.f32 %v36896_v52, 0.0  ;;  %v11876_v26 = vld [vmem:[%s34113_s27 + $0x80] sm:$0xff] }
 0x751   : > { %v11897_v47 = vadd.f32 %v30847_v48, %v11869_v42  ;;  %v11733_v62 = vpop.f32.mrb[65].mxu0  ;;  %v37221_v29 = vld [vmem:[#allocation2 + $0x29] sm:$0xff] }
 0x752   : > { %v11896_v16 = vadd.f32 %v11868_v53, %v11733_v62  ;;  %30883 = vmatprep.mubr.msk.f32.mxu1 %vm5559_vm5, %v40660_v40  ;;  %v11879_v53 = vld [vmem:[%s34113_s27 + $0x98] sm:$0xff]  ;;  %v37217_v40 = vld [vmem:[#allocation2 + $0x21] sm:$0xff]  ;;  %41077 = vst [vmem:[#allocation40_spill] sm:$0xff] %v37221_v29 }
 0x753   : > { %v11925_v17 = vsel %vm35249_vm10, %v11897_v47, 0.0  ;;  %30884 = vmatmul.mubr.msk.f32.gmra.mrb[32].mxu1 %vm5559_vm5, %v40659_v11  ;;  %v36912_v27 = vld [vmem:[#allocation2 + $0x40] sm:$0xff]  ;;  %v36914_v12 = vld [vmem:[#allocation2 + $0x48] sm:$0xff] }
 0x754   : > { %11953 = vst.msk [vmem:[#allocation2 + $0x68] sm:$0xff] %vm5559_vm5, %v11925_v17  ;;  %11952 = vst.msk [vmem:[#allocation2 + $0x60] sm:$0xff] %vm5559_vm5, %v11896_v16  ;;  %v30850_v13 = vpop.f32.mrb[66].mxu0  ;;  %v40658_v24 = vmax.f32 %v36912_v27, 0.0  ;;  %v40657_v60 = vmax.f32 %v36914_v12, 0.0  ;;  %v12666_v11 = vld [vmem:[#allocation2 + $0x19] sm:$0xff] }
 0x755   : > { %v11899_v7 = vadd.f32 %v30850_v13, %v11871_v2  ;;  %v11743_v49 = vpop.f32.mrb[67].mxu0  ;;  %v11878_v2 = vld [vmem:[%s34113_s27 + $0x90] sm:$0xff] }
 0x756   : > { %v11898_v15 = vadd.f32 %v11870_v30, %v11743_v49  ;;  %30886 = vmatprep.mubr.msk.f32.mxu1 %vm5559_vm5, %v40658_v24 }
 0x757   : > { %v11927_v59 = vsel %vm35268_vm11, %v11899_v7, 0.0  ;;  %30887 = vmatmul.mubr.msk.f32.gmra.mrb[34].mxu1 %vm5559_vm5, %v40657_v60  ;;  %v36930_v33 = vld [vmem:[#allocation2 + $0x50] sm:$0xff]  ;;  %v36932_v37 = vld [vmem:[#allocation2 + $0x58] sm:$0xff] }
 0x758   : > { %11955 = vst.msk [vmem:[#allocation2 + $0x78] sm:$0xff] %vm5559_vm5, %v11927_v59  ;;  %11954 = vst.msk [vmem:[#allocation2 + $0x70] sm:$0xff] %vm5559_vm5, %v11898_v15  ;;  %v30853_v23 = vpop.f32.mrb[68].mxu0  ;;  %v40656_v4 = vmax.f32 %v36930_v33, 0.0  ;;  %v40655_v9 = vmax.f32 %v36932_v37, 0.0 }
 0x759   : > { %v11901_v28 = vadd.f32 %v30853_v23, %v11873_v44  ;;  %v11753_v61 = vpop.f32.mrb[69].mxu0  ;;  %v11881_v23 = vld [vmem:[%s34113_s27 + $0xa8] sm:$0xff] }
 0x75a   : > { %v11900_v46 = vadd.f32 %v11872_v19, %v11753_v61  ;;  %30889 = vmatprep.mubr.msk.f32.mxu1 %vm5559_vm5, %v40656_v4  ;;  %v12665_v4 = vld [vmem:[#allocation2 + $0x11] sm:$0xff] }
 0x75b   : > { %v11929_v43 = vsel %vm35297_vm12, %v11901_v28, 0.0  ;;  %30890 = vmatmul.mubr.msk.f32.gmra.mrb[36].mxu1 %vm5559_vm5, %v40655_v9  ;;  %v36948_v32 = vld [vmem:[#allocation2 + $0x60] sm:$0xff]  ;;  %v36950_v6 = vld [vmem:[#allocation2 + $0x68] sm:$0xff] }
 0x75c   : > { %11957 = vst.msk [vmem:[#allocation2 + $0x88] sm:$0xff] %vm5559_vm5, %v11929_v43  ;;  %11956 = vst.msk [vmem:[#allocation2 + $0x80] sm:$0xff] %vm5559_vm5, %v11900_v46  ;;  %v30856_v18 = vpop.f32.mrb[70].mxu0  ;;  %v40654_v36 = vmax.f32 %v36948_v32, 0.0  ;;  %v40653_v20 = vmax.f32 %v36950_v6, 0.0  ;;  %v11880_v46 = vld [vmem:[%s34113_s27 + $0xa0] sm:$0xff] }
 0x75d   : > { %v11903_v38 = vadd.f32 %v30856_v18, %v11875_v58  ;;  %v11763_v31 = vpop.f32.mrb[71].mxu0 }
 0x75e   : > { %v11902_v54 = vadd.f32 %v11874_v39, %v11763_v31  ;;  %30892 = vmatprep.mubr.msk.f32.mxu1 %vm5559_vm5, %v40654_v36  ;;  %v11883_v39 = vld [vmem:[%s34113_s27 + $0xb8] sm:$0xff] }
 0x75f   : > { %v11931_v34 = vsel %vm35318_vm13, %v11903_v38, 0.0  ;;  %30893 = vmatmul.mubr.msk.f32.gmra.mrb[38].mxu1 %vm5559_vm5, %v40653_v20  ;;  %v36966_v10 = vld [vmem:[#allocation2 + $0x70] sm:$0xff]  ;;  %v36968_v1 = vld [vmem:[#allocation2 + $0x78] sm:$0xff] }
 0x760   : > { %11959 = vst.msk [vmem:[#allocation2 + $0x98] sm:$0xff] %vm5559_vm5, %v11931_v34  ;;  %11958 = vst.msk [vmem:[#allocation2 + $0x90] sm:$0xff] %vm5559_vm5, %v11902_v54  ;;  %v30859_v51 = vpop.f32.mrb[72].mxu0  ;;  %v40652_v8 = vmax.f32 %v36966_v10, 0.0  ;;  %v40651_v21 = vmax.f32 %v36968_v1, 0.0 }
 0x761   : > { %v11905_v56 = vadd.f32 %v30859_v51, %v11877_v57  ;;  %v11773_v25 = vpop.f32.mrb[73].mxu0  ;;  %v11882_v57 = vld [vmem:[%s34113_s27 + $0xb0] sm:$0xff] }
 0x762   : > { %v11904_v63 = vadd.f32 %v11876_v26, %v11773_v25  ;;  %30895 = vmatprep.mubr.msk.f32.mxu1 %vm5559_vm5, %v40652_v8 }
 0x763   : > { %v11933_v48 = vsel %vm35335_vm14, %v11905_v56, 0.0  ;;  %30896 = vmatmul.mubr.msk.f32.gmra.mrb[40].mxu1 %vm5559_vm5, %v40651_v21  ;;  %v36984_v42 = vld [vmem:[#allocation2 + $0x80] sm:$0xff]  ;;  %v36986_v47 = vld [vmem:[#allocation2 + $0x88] sm:$0xff] }
 0x764   : > { %11961 = vst.msk [vmem:[#allocation2 + $0xa8] sm:$0xff] %vm5559_vm5, %v11933_v48  ;;  %11960 = vst.msk [vmem:[#allocation2 + $0xa0] sm:$0xff] %vm5559_vm5, %v11904_v63  ;;  %v30862_v62 = vpop.f32.mrb[74].mxu0  ;;  %v40650_v16 = vmax.f32 %v36984_v42, 0.0  ;;  %v40649_v41 = vmax.f32 %v36986_v47, 0.0 }
 0x765   : > { %v11907_v17 = vadd.f32 %v30862_v62, %v11879_v53  ;;  %v11783_v13 = vpop.f32.mrb[75].mxu0  ;;  %v11885_v62 = vld [vmem:[%s34113_s27 + $0xc8] sm:$0xff] }
 0x766   : > { %v11906_v7 = vadd.f32 %v11878_v2, %v11783_v13  ;;  %30898 = vmatprep.mubr.msk.f32.mxu1 %vm5559_vm5, %v40650_v16 }
 0x767   : > { %v11935_v30 = vsel %vm35363_vm15, %v11907_v17, 0.0  ;;  %30899 = vmatmul.mubr.msk.f32.gmra.mrb[42].mxu1 %vm5559_vm5, %v40649_v41  ;;  %v37002_v15 = vld [vmem:[#allocation2 + $0x90] sm:$0xff]  ;;  %v37004_v35 = vld [vmem:[#allocation2 + $0x98] sm:$0xff] }
 0x768   : > { %11963 = vst.msk [vmem:[#allocation2 + $0xb8] sm:$0xff] %vm5559_vm5, %v11935_v30  ;;  %11962 = vst.msk [vmem:[#allocation2 + $0xb0] sm:$0xff] %vm5559_vm5, %v11906_v7  ;;  %v30865_v59 = vpop.f32.mrb[76].mxu0  ;;  %v40648_v44 = vmax.f32 %v37002_v15, 0.0  ;;  %v40647_v28 = vmax.f32 %v37004_v35, 0.0  ;;  %v11884_v7 = vld [vmem:[%s34113_s27 + $0xc0] sm:$0xff] }
 0x769   : > { %v11909_v61 = vadd.f32 %v30865_v59, %v11881_v23  ;;  %v11793_v19 = vpop.f32.mrb[77].mxu0 }
 0x76a   : > { %v11908_v0 = vadd.f32 %v11880_v46, %v11793_v19  ;;  %30901 = vmatprep.mubr.msk.f32.mxu1 %vm5559_vm5, %v40648_v44  ;;  %v11887_v46 = vld [vmem:[%s34113_s27 + $0xd8] sm:$0xff] }
 0x76b   : > { %v11937_v18 = vsel %vm35384_vm0, %v11909_v61, 0.0  ;;  %30902 = vmatmul.mubr.msk.f32.gmra.mrb[44].mxu1 %vm5559_vm5, %v40647_v28  ;;  %v37020_v58 = vld [vmem:[#allocation2 + $0xa0] sm:$0xff]  ;;  %v37022_v38 = vld [vmem:[#allocation2 + $0xa8] sm:$0xff]  ;;  %v11989_v28 = vld [vmem:[#allocation2 + $0x97] sm:$0xff] }
 0x76c   : > { %11965 = vst.msk [vmem:[#allocation2 + $0xc8] sm:$0xff] %vm5559_vm5, %v11937_v18  ;;  %11964 = vst.msk [vmem:[#allocation2 + $0xc0] sm:$0xff] %vm5559_vm5, %v11908_v0  ;;  %v30868_v31 = vpop.f32.mrb[78].mxu0  ;;  %v40646_v54 = vmax.f32 %v37020_v58, 0.0  ;;  %v40645_v14 = vmax.f32 %v37022_v38, 0.0  ;;  %v11991_v41 = vld [vmem:[#allocation2 + $0xa7] sm:$0xff] }
 0x76d   : > { %v11911_v34 = vadd.f32 %v30868_v31, %v11883_v39  ;;  %v11803_v51 = vpop.f32.mrb[79].mxu0  ;;  %v11886_v39 = vld [vmem:[%s34113_s27 + $0xd0] sm:$0xff] }
 0x76e   : > { %v11910_v56 = vadd.f32 %v11882_v57, %v11803_v51  ;;  %30904 = vmatprep.mubr.msk.f32.mxu1 %vm5559_vm5, %v40646_v54 }
 0x76f   : > { %v11939_v26 = vsel %vm35412_vm1, %v11911_v34, 0.0  ;;  %30905 = vmatmul.mubr.msk.f32.gmra.mrb[46].mxu1 %vm5559_vm5, %v40645_v14  ;;  %v37038_v63 = vld [vmem:[#allocation2 + $0xb0] sm:$0xff]  ;;  %v37040_v3 = vld [vmem:[#allocation2 + $0xb8] sm:$0xff]  ;;  %v11987_v14 = vld [vmem:[#allocation2 + $0x87] sm:$0xff] }
 0x770   : > { %11967 = vst.msk [vmem:[#allocation2 + $0xd8] sm:$0xff] %vm5559_vm5, %v11939_v26  ;;  %11966 = vst.msk [vmem:[#allocation2 + $0xd0] sm:$0xff] %vm5559_vm5, %v11910_v56  ;;  %v30871_v48 = vpop.f32.mrb[80].mxu0  ;;  %v40644_v53 = vmax.f32 %v37038_v63, 0.0  ;;  %v40643_v17 = vmax.f32 %v37040_v3, 0.0  ;;  %v11993_v21 = vld [vmem:[#allocation2 + $0xb7] sm:$0xff] }
 0x771   : > { %v11913_v13 = vadd.f32 %v30871_v48, %v11885_v62  ;;  %v11813_v2 = vpop.f32.mrb[81].mxu0  ;;  %v11972_v62 = vld [vmem:[#allocation2 + $0xf] sm:$0xff] }
 0x772   : > { %v11912_v49 = vadd.f32 %v11884_v7, %v11813_v2  ;;  %30907 = vmatprep.mubr.msk.f32.mxu1 %vm5559_vm5, %v40644_v53  ;;  %v12000_v30 = vmax.f32 %v11972_v62, 0.0  ;;  %v11977_v62 = vld [vmem:[#allocation2 + $0x37] sm:$0xff] }
 0x773   : > { %v11941_v59 = vsel %vm35444_vm2, %v11913_v13, 0.0  ;;  %30908 = vmatmul.mubr.msk.f32.gmra.mrb[48].mxu1 %vm5559_vm5, %v40643_v17  ;;  %v37056_v23 = vld [vmem:[#allocation2 + $0xc0] sm:$0xff]  ;;  %v37058_v61 = vld [vmem:[#allocation2 + $0xc8] sm:$0xff]  ;;  %v11985_v17 = vld [vmem:[#allocation2 + $0x77] sm:$0xff] }
 0x774   : > { %11969 = vst.msk [vmem:[#allocation2 + $0xe8] sm:$0xff] %vm5559_vm5, %v11941_v59  ;;  %11968 = vst.msk [vmem:[#allocation2 + $0xe0] sm:$0xff] %vm5559_vm5, %v11912_v49  ;;  %v30874_v19 = vpop.f32.mrb[82].mxu0  ;;  %v40642_v0 = vmax.f32 %v37056_v23, 0.0  ;;  %v40641_v43 = vmax.f32 %v37058_v61, 0.0  ;;  %v11973_v59 = vld [vmem:[#allocation2 + $0x17] sm:$0xff] }
 0x775   : > { %v11915_v18 = vadd.f32 %v30874_v19, %v11887_v46  ;;  %v11823_v31 = vpop.f32.mrb[83].mxu0  ;;  %v12001_v19 = vmax.f32 %v11973_v59, 0.0  ;;  %v37100_v46 = vld [vmem:[#allocation2 + $0x1f] sm:$0xff]  ;;  %v37125_v59 = vmax.f32 %v11977_v62, 0.0  ;;  %v11995_v20 = vld [vmem:[#allocation2 + $0xc7] sm:$0xff] }
 0x776   : > { %v11914_v34 = vadd.f32 %v11886_v39, %v11823_v31  ;;  %30910 = vmatprep.mubr.msk.f32.mxu1 %vm5559_vm5, %v40642_v0  ;;  %v37104_v31 = vld [vmem:[#allocation2 + $0x27] sm:$0xff]  ;;  %v37109_v39 = vld [vmem:[%s40490_s4 + $0x18] sm:$0xff] }
 0x777   : > { %v11943_v57 = vsel %vm35468_vm3, %v11915_v18, 0.0  ;;  %30911 = vmatmul.mubr.msk.f32.gmra.mrb[50].mxu1 %vm5559_vm5, %v40641_v43  ;;  %v37074_v56 = vld [vmem:[#allocation2 + $0xd0] sm:$0xff]  ;;  %v37076_v25 = vld [vmem:[#allocation2 + $0xd8] sm:$0xff]  ;;  %v40665_v18 = vmax.f32 %v37100_v46, 0.0  ;;  %v40664_v51 = vmax.f32 %v37104_v31, 0.0  ;;  %v11983_v43 = vld [vmem:[#allocation2 + $0x67] sm:$0xff] }
 0x778   : > { %11971 = vst.msk [vmem:[#allocation2 + $0xf8] sm:$0xff] %vm5559_vm5, %v11943_v57  ;;  %11970 = vst.msk [vmem:[#allocation2 + $0xf0] sm:$0xff] %vm5559_vm5, %v11914_v34  ;;  %v40640_v26 = vmax.f32 %v37074_v56, 0.0  ;;  %v40639_v48 = vmax.f32 %v37076_v25, 0.0  ;;  %v11976_v34 = vld [vmem:[#allocation2 + $0x2f] sm:$0xff]  ;;  %v11982_v62 = vld [vmem:[#allocation2 + $0x5f] sm:$0xff] }
 0x779   : > { %v37118_v57 = vmax.f32 %v11976_v34, 0.0  ;;  %v11997_v9 = vld [vmem:[#allocation2 + $0xd7] sm:$0xff] }
 0x77a   : > { %30913 = vmatprep.mubr.msk.f32.mxu1 %vm5559_vm5, %v40640_v26  ;;  %v37143_v26 = vmax.f32 %v11982_v62, 0.0  ;;  %v37157_v62 = vmax.f32 %v11985_v17, 0.0  ;;  %v11990_v17 = vld [vmem:[#allocation2 + $0x9f] sm:$0xff] }
 0x77b   : > { %30914 = vmatmul.mubr.msk.f32.gmra.mrb[52].mxu1 %vm5559_vm5, %v40639_v48  ;;  %v37088_v13 = vld [vmem:[#allocation2 + $0xe0] sm:$0xff]  ;;  %v37090_v2 = vld [vmem:[#allocation2 + $0xe8] sm:$0xff]  ;;  %v11981_v48 = vld [vmem:[#allocation2 + $0x57] sm:$0xff]  ;;  %v37175_v44 = vmax.f32 %v11990_v17, 0.0  ;;  %v37189_v17 = vmax.f32 %v11993_v21, 0.0 }
 0x77c   : > { %v40638_v7 = vmax.f32 %v37088_v13, 0.0  ;;  %v40637_v49 = vmax.f32 %v37090_v2, 0.0  ;;  %v11998_v21 = vld [vmem:[#allocation2 + $0xdf] sm:$0xff]  ;;  %v11999_v24 = vld [vmem:[#allocation2 + $0xe7] sm:$0xff] }
 0x77d   : > { %v37207_v60 = vmax.f32 %v11998_v21, 0.0  ;;  %v40663_v21 = vmax.f32 %v37217_v40, 0.0 }
 0x77e   : > { %30916 = vmatprep.mubr.msk.f32.mxu1 %vm5559_vm5, %v40638_v7 }
 0x77f   : > { %30917 = vmatmul.mubr.msk.f32.gmra.mrb[54].mxu1 %vm5559_vm5, %v40637_v49  ;;  %v11980_v49 = vld [vmem:[#allocation2 + $0x4f] sm:$0xff] }
 0x780   : > { %30921 = vmatprep.mubr.msk.f32.mxu1 %vm5559_vm5, %v12000_v30  ;;  %v11978_v30 = vld [vmem:[#allocation2 + $0x3f] sm:$0xff]  ;;  %v37135_v7 = vmax.f32 %v11980_v49, 0.0  ;;  %v37149_v49 = vmax.f32 %v11983_v43, 0.0  ;;  %v11988_v43 = vld [vmem:[#allocation2 + $0x8f] sm:$0xff] }
 0x781   : > { %v37167_v54 = vmax.f32 %v11988_v43, 0.0  ;;  %v37181_v43 = vmax.f32 %v11991_v41, 0.0  ;;  %v11996_v41 = vld [vmem:[#allocation2 + $0xcf] sm:$0xff] }
 0x782   : > { %v37199_v36 = vmax.f32 %v11996_v41, 0.0  ;;  %v37213_v41 = vmax.f32 %v11999_v24, 0.0  ;;  %v37229_v24 = vld [vmem:[#allocation2 + $0x31] sm:$0xff] }
 0x783   : > { %30922 = vmatmul.mubr.msk.f32.vlgmr.msra.gmra.mrb[28].mxu1 %vm5559_vm5, %v12001_v19  ;;  %v37127_v19 = vmax.f32 %v11978_v30, 0.0  ;;  %v37141_v30 = vmax.f32 %v11981_v48, 0.0  ;;  %v11986_v48 = vld [vmem:[#allocation2 + $0x7f] sm:$0xff]  ;;  %41078 = vst [vmem:[#allocation41_spill] sm:$0xff] %v37229_v24 }
 0x784   : > { %30924 = vmatprep.mubr.msk.f32.mxu1 %vm5559_vm5, %v40665_v18  ;;  %30964 = vmatpush3.msra.mxu1 %v36857_v22  ;;  %v11979_v22 = vld [vmem:[#allocation2 + $0x47] sm:$0xff]  ;;  %v37159_v53 = vmax.f32 %v11986_v48, 0.0  ;;  %v37173_v48 = vmax.f32 %v11989_v28, 0.0  ;;  %v11994_v28 = vld [vmem:[#allocation2 + $0xbf] sm:$0xff]  ;;  %41076 = vst [vmem:[#allocation37_spill] sm:$0xff] %v37213_v41  ;;  %v37255_v18 = vld [vmem:[#allocation2 + $0x51] sm:$0xff] }
 0x785   : > { %31007 = vmatprep.subr.mxu1 %v37109_v39  ;;  %v37133_v34 = vmax.f32 %v11979_v22, 0.0  ;;  %v11984_v22 = vld [vmem:[#allocation2 + $0x6f] sm:$0xff]  ;;  %v37191_v8 = vmax.f32 %v11994_v28, 0.0  ;;  %v37205_v28 = vmax.f32 %v11997_v9, 0.0  ;;  %v12694_v9 = vmax.f32 %v12666_v11, 0.0  ;;  %41082 = vst [vmem:[#allocation48_spill] sm:$0xff] %v37255_v18 }
 0x786   : > { %v37151_v0 = vmax.f32 %v11984_v22, 0.0  ;;  %v37165_v22 = vmax.f32 %v11987_v14, 0.0  ;;  %v11992_v14 = vld [vmem:[#allocation2 + $0xaf] sm:$0xff]  ;;  %v40666_v11 = vmax.f32 %v37221_v29, 0.0  ;;  %v37267_v29 = vld [vmem:[#allocation2 + $0x61] sm:$0xff] }
 0x787   : > { %30925 = vmatmul.mubr.msk.f32.gmra.mrb[56].mxu1 %vm5559_vm5, %v40664_v51  ;;  %v37183_v16 = vmax.f32 %v11992_v14, 0.0  ;;  %v37197_v14 = vmax.f32 %v11995_v20, 0.0  ;;  %v12693_v20 = vmax.f32 %v12665_v4, 0.0  ;;  %v40667_v4 = vmax.f32 %v37229_v24, 0.0  ;;  %v37250_v51 = vld [vmem:[#allocation2 + $0x49] sm:$0xff]  ;;  %v37262_v24 = vld [vmem:[#allocation2 + $0x59] sm:$0xff] }
 0x788   : > { %30927 = vmatprep.mubr.msk.f32.mxu1 %vm5559_vm5, %v37118_v57  ;;  %41081 = vst [vmem:[#allocation46_spill] sm:$0xff] %v37250_v51  ;;  %41083 = vst [vmem:[#allocation11_spill] sm:$0xff] %v37262_v24 }
 0x789   : > { %41084 = vst [vmem:[#allocation13_spill] sm:$0xff] %v37267_v29 }
 0x78b   : > { %30928 = vmatmul.mubr.msk.f32.gmra.mrb[32].mxu1 %vm5559_vm5, %v37125_v59 }
 0x78c   : > { %30930 = vmatprep.mubr.msk.f32.mxu1 %vm5559_vm5, %v37127_v19 }
 0x78f   : > { %30931 = vmatmul.mubr.msk.f32.gmra.mrb[58].mxu1 %vm5559_vm5, %v37133_v34 }
 0x790   : > { %30933 = vmatprep.mubr.msk.f32.mxu1 %vm5559_vm5, %v37135_v7 }
 0x793   : > { %30934 = vmatmul.mubr.msk.f32.gmra.mrb[36].mxu1 %vm5559_vm5, %v37141_v30 }
 0x794   : > { %30936 = vmatprep.mubr.msk.f32.mxu1 %vm5559_vm5, %v37143_v26 }
 0x797   : > { %30937 = vmatmul.mubr.msk.f32.gmra.mrb[60].mxu1 %vm5559_vm5, %v37149_v49 }
 0x798   : > { %30939 = vmatprep.mubr.msk.f32.mxu1 %vm5559_vm5, %v37151_v0 }
 0x79b   : > { %30940 = vmatmul.mubr.msk.f32.gmra.mrb[40].mxu1 %vm5559_vm5, %v37157_v62 }
 0x79c   : > { %30942 = vmatprep.mubr.msk.f32.mxu1 %vm5559_vm5, %v37159_v53 }
 0x79f   : > { %30943 = vmatmul.mubr.msk.f32.gmra.mrb[62].mxu1 %vm5559_vm5, %v37165_v22 }
 0x7a0   : > { %30945 = vmatprep.mubr.msk.f32.mxu1 %vm5559_vm5, %v37167_v54 }
 0x7a3   : > { %30946 = vmatmul.mubr.msk.f32.gmra.mrb[44].mxu1 %vm5559_vm5, %v37173_v48 }
 0x7a4   : > { %30948 = vmatprep.mubr.msk.f32.mxu1 %vm5559_vm5, %v37175_v44 }
 0x7a7   : > { %30949 = vmatmul.mubr.msk.f32.gmra.mrb[64].mxu1 %vm5559_vm5, %v37181_v43 }
 0x7a8   : > { %30951 = vmatprep.mubr.msk.f32.mxu1 %vm5559_vm5, %v37183_v16 }
 0x7ab   : > { %30952 = vmatmul.mubr.msk.f32.gmra.mrb[48].mxu1 %vm5559_vm5, %v37189_v17 }
 0x7ac   : > { %30954 = vmatprep.mubr.msk.f32.mxu1 %vm5559_vm5, %v37191_v8 }
 0x7af   : > { %30955 = vmatmul.mubr.msk.f32.gmra.mrb[66].mxu1 %vm5559_vm5, %v37197_v14 }
 0x7b0   : > { %30957 = vmatprep.mubr.msk.f32.mxu1 %vm5559_vm5, %v37199_v36 }
 0x7b3   : > { %30958 = vmatmul.mubr.msk.f32.gmra.mrb[52].mxu1 %vm5559_vm5, %v37205_v28 }
 0x7b4   : > { %30960 = vmatprep.mubr.msk.f32.mxu1 %vm5559_vm5, %v37207_v60 }
 0x7b7   : > { %30961 = vmatmul.mubr.msk.f32.gmra.mrb[68].mxu1 %vm5559_vm5, %v37213_v41 }
 0x7b8   : > { %30965 = vmatprep.mubr.msk.f32.mxu1 %vm5559_vm5, %v12693_v20  ;;  %v37238_v20 = vld [vmem:[#allocation2 + $0x39] sm:$0xff] }
 0x7b9   : > { %41079 = vst [vmem:[#allocation42_spill] sm:$0xff] %v37238_v20 }
 0x7bb   : > { %30966 = vmatmul.mubr.msk.f32.vlgmr.msra.gmra.mrb[28].mxu1 %vm5559_vm5, %v12694_v9  ;;  %v37243_v9 = vld [vmem:[#allocation2 + $0x41] sm:$0xff] }
 0x7bc   : > { %30968 = vmatprep.mubr.msk.f32.mxu1 %vm5559_vm5, %v40663_v21  ;;  %31008 = vmatpush3.msra.mxu1 %v37109_v39  ;;  %41080 = vst [vmem:[#allocation44_spill] sm:$0xff] %v37243_v9  ;;  %v40670_v39 = vmax.f32 %v37238_v20, 0.0  ;;  %v40671_v21 = vmax.f32 %v37243_v9, 0.0  ;;  %v37274_v9 = vld [vmem:[#allocation2 + $0x69] sm:$0xff]  ;;  %v37279_v20 = vld [vmem:[#allocation2 + $0x71] sm:$0xff] }
 0x7bd   : > { %31051 = vmatprep.subr.mxu1 %v37226_v5  ;;  %41085 = vst [vmem:[#allocation14_spill] sm:$0xff] %v37274_v9  ;;  %41086 = vst [vmem:[#allocation21_spill] sm:$0xff] %v37279_v20 }
 0x7bf   : > { %30969 = vmatmul.mubr.msk.f32.gmra.mrb[70].mxu1 %vm5559_vm5, %v40666_v11  ;;  %v40674_v11 = vmax.f32 %v37250_v51, 0.0  ;;  %v37291_v51 = vld [vmem:[#allocation2 + $0x81] sm:$0xff] }
 0x7c0   : > { %30971 = vmatprep.mubr.msk.f32.mxu1 %vm5559_vm5, %v40667_v4  ;;  %v40675_v4 = vmax.f32 %v37255_v18, 0.0  ;;  %v37286_v18 = vld [vmem:[#allocation2 + $0x79] sm:$0xff]  ;;  %41088 = vst [vmem:[#allocation27_spill] sm:$0xff] %v37291_v51 }
 0x7c1   : > { %41087 = vst [vmem:[#allocation23_spill] sm:$0xff] %v37286_v18 }
 0x7c3   : > { %30972 = vmatmul.mubr.msk.f32.gmra.mrb[32].mxu1 %vm5559_vm5, %v40670_v39  ;;  %v40678_v39 = vmax.f32 %v37262_v24, 0.0  ;;  %v37303_v24 = vld [vmem:[#allocation2 + $0x91] sm:$0xff] }
 0x7c4   : > { %30974 = vmatprep.mubr.msk.f32.mxu1 %vm5559_vm5, %v40671_v21  ;;  %v40679_v21 = vmax.f32 %v37267_v29, 0.0  ;;  %v37298_v29 = vld [vmem:[#allocation2 + $0x89] sm:$0xff]  ;;  %41090 = vst [vmem:[#allocation31_spill] sm:$0xff] %v37303_v24 }
 0x7c5   : > { %41089 = vst [vmem:[#allocation28_spill] sm:$0xff] %v37298_v29 }
 0x7c7   : > { %30975 = vmatmul.mubr.msk.f32.gmra.mrb[72].mxu1 %vm5559_vm5, %v40674_v11  ;;  %v40682_v11 = vmax.f32 %v37274_v9, 0.0  ;;  %v37315_v9 = vld [vmem:[#allocation2 + $0xa1] sm:$0xff] }
 0x7c8   : > { %30977 = vmatprep.mubr.msk.f32.mxu1 %vm5559_vm5, %v40675_v4  ;;  %v40683_v4 = vmax.f32 %v37279_v20, 0.0  ;;  %v37310_v20 = vld [vmem:[#allocation2 + $0x99] sm:$0xff]  ;;  %41092 = vst [vmem:[#allocation34_spill] sm:$0xff] %v37315_v9 }
 0x7c9   : > { %41091 = vst [vmem:[#allocation32_spill] sm:$0xff] %v37310_v20 }
 0x7cb   : > { %30978 = vmatmul.mubr.msk.f32.gmra.mrb[36].mxu1 %vm5559_vm5, %v40678_v39  ;;  %v40686_v39 = vmax.f32 %v37286_v18, 0.0  ;;  %v37327_v18 = vld [vmem:[#allocation2 + $0xb1] sm:$0xff] }
 0x7cc   : > { %30980 = vmatprep.mubr.msk.f32.mxu1 %vm5559_vm5, %v40679_v21  ;;  %v40687_v21 = vmax.f32 %v37291_v51, 0.0  ;;  %v37322_v51 = vld [vmem:[#allocation2 + $0xa9] sm:$0xff]  ;;  %41094 = vst [vmem:[#allocation38_spill] sm:$0xff] %v37327_v18 }
 0x7cd   : > { %41093 = vst [vmem:[#allocation35_spill] sm:$0xff] %v37322_v51 }
 0x7cf   : > { %30981 = vmatmul.mubr.msk.f32.gmra.mrb[74].mxu1 %vm5559_vm5, %v40682_v11  ;;  %v40690_v11 = vmax.f32 %v37298_v29, 0.0  ;;  %v37339_v29 = vld [vmem:[#allocation2 + $0xc1] sm:$0xff] }
 0x7d0   : > { %30983 = vmatprep.mubr.msk.f32.mxu1 %vm5559_vm5, %v40683_v4  ;;  %v40691_v4 = vmax.f32 %v37303_v24, 0.0  ;;  %v37334_v24 = vld [vmem:[#allocation2 + $0xb9] sm:$0xff]  ;;  %41095 = vst [vmem:[#allocation43_spill] sm:$0xff] %v37339_v29 }
 0x7d3   : > { %30984 = vmatmul.mubr.msk.f32.gmra.mrb[40].mxu1 %vm5559_vm5, %v40686_v39  ;;  %v40694_v39 = vmax.f32 %v37310_v20, 0.0  ;;  %v37351_v20 = vld [vmem:[#allocation2 + $0xd1] sm:$0xff] }
 0x7d4   : > { %30986 = vmatprep.mubr.msk.f32.mxu1 %vm5559_vm5, %v40687_v21  ;;  %v40695_v21 = vmax.f32 %v37315_v9, 0.0  ;;  %v37346_v9 = vld [vmem:[#allocation2 + $0xc9] sm:$0xff] }
 0x7d7   : > { %30987 = vmatmul.mubr.msk.f32.gmra.mrb[76].mxu1 %vm5559_vm5, %v40690_v11  ;;  %v40698_v11 = vmax.f32 %v37322_v51, 0.0  ;;  %v37363_v51 = vld [vmem:[#allocation2 + $0xe1] sm:$0xff] }
 0x7d8   : > { %30989 = vmatprep.mubr.msk.f32.mxu1 %vm5559_vm5, %v40691_v4  ;;  %v40699_v4 = vmax.f32 %v37327_v18, 0.0  ;;  %v37358_v18 = vld [vmem:[#allocation2 + $0xd9] sm:$0xff] }
 0x7d9   : > { %41096 = vst [vmem:[#allocation45_spill] sm:$0xff] %v37358_v18 }
 0x7db   : > { %30990 = vmatmul.mubr.msk.f32.gmra.mrb[44].mxu1 %vm5559_vm5, %v40694_v39  ;;  %v40702_v39 = vmax.f32 %v37334_v24, 0.0 }
 0x7dc   : > { %30992 = vmatprep.mubr.msk.f32.mxu1 %vm5559_vm5, %v40695_v21  ;;  %v40703_v21 = vmax.f32 %v37339_v29, 0.0  ;;  %v37370_v29 = vld [vmem:[#allocation2 + $0xe9] sm:$0xff] }
 0x7df   : > { %30993 = vmatmul.mubr.msk.f32.gmra.mrb[78].mxu1 %vm5559_vm5, %v40698_v11  ;;  %v40705_v11 = vmax.f32 %v37346_v9, 0.0 }
 0x7e0   : > { %30995 = vmatprep.mubr.msk.f32.mxu1 %vm5559_vm5, %v40699_v4  ;;  %v40706_v4 = vmax.f32 %v37351_v20, 0.0 }
 0x7e3   : > { %30996 = vmatmul.mubr.msk.f32.gmra.mrb[48].mxu1 %vm5559_vm5, %v40702_v39  ;;  %v40708_v39 = vmax.f32 %v37358_v18, 0.0  ;;  %v26762_v18 = vld [vmem:[%s40490_s4 + $0x28] sm:$0xff] }
 0x7e4   : > { %30998 = vmatprep.mubr.msk.f32.mxu1 %vm5559_vm5, %v40703_v21  ;;  %v40710_v21 = vmax.f32 %v37363_v51, 0.0 }
 0x7e7   : > { %30999 = vmatmul.mubr.msk.f32.gmra.mrb[80].mxu1 %vm5559_vm5, %v40705_v11  ;;  %v40709_v11 = vmax.f32 %v37370_v29, 0.0 }
 0x7e8   : > { %31001 = vmatprep.mubr.msk.f32.mxu1 %vm5559_vm5, %v40706_v4  ;;  %v41097_v4 = vmax.f32 %v37100_v46, 0.0 }
 0x7eb   : > { %31002 = vmatmul.mubr.msk.f32.gmra.mrb[52].mxu1 %vm5559_vm5, %v40708_v39  ;;  %v41098_v39 = vmax.f32 %v37104_v31, 0.0 }
 0x7ec   : > { %31004 = vmatprep.mubr.msk.f32.mxu1 %vm5559_vm5, %v40710_v21 }
 0x7ef   : > { %31005 = vmatmul.mubr.msk.f32.gmra.mrb[82].mxu1 %vm5559_vm5, %v40709_v11 }
 0x7f0   : > { %31009 = vmatprep.mubr.msk.f32.mxu1 %vm5559_vm5, %v41097_v4  ;;  %v37441_v4 = vld [vmem:[#allocation2 + $0xf7] sm:$0xff] }
 0x7f1   : > { %v13095_v11 = vmax.f32 %v37441_v4, 0.0  ;;  %v14544_v4 = vld [vmem:[#allocation2 + $0x50] sm:$0xff] }
 0x7f3   : > { %31010 = vmatmul.mubr.msk.f32.vlgmr.msra.gmra.mrb[28].mxu1 %vm5559_vm5, %v41098_v39 }
 0x7f4   : > { %31012 = vmatprep.mubr.msk.f32.mxu1 %vm5559_vm5, %v37118_v57  ;;  %31052 = vmatpush3.msra.mxu1 %v37226_v5  ;;  %v37436_v5 = vld [vmem:[#allocation2 + $0xef] sm:$0xff] }
 0x7f5   : > { %31095 = vmatprep.subr.mxu1 %v26762_v18  ;;  %41099 = vst [vmem:[#allocation47_spill] sm:$0xff] %v37436_v5  ;;  %v40713_v31 = vmax.f32 %v37436_v5, 0.0  ;;  %v41101_v5 = vmax.f32 %v36878_v45, 0.0  ;;  %v41105_v45 = vmax.f32 %v36914_v12, 0.0  ;;  %v41110_v12 = vmax.f32 %v36966_v10, 0.0 }
 0x7f6   : > { %v41115_v10 = vmax.f32 %v37004_v35, 0.0  ;;  %v41120_v35 = vmax.f32 %v37056_v23, 0.0  ;;  %v41124_v23 = vmax.f32 %v37088_v13, 0.0  ;;  %v41126_v13 = vmax.f32 %v37217_v40, 0.0 }
 0x7f7   : > { %31013 = vmatmul.mubr.msk.f32.gmra.mrb[84].mxu1 %vm5559_vm5, %v37125_v59 }
 0x7f8   : > { %31015 = vmatprep.mubr.msk.f32.mxu1 %vm5559_vm5, %v37127_v19 }
 0x7fb   : > { %31016 = vmatmul.mubr.msk.f32.gmra.mrb[32].mxu1 %vm5559_vm5, %v37133_v34 }
 0x7fc   : > { %31018 = vmatprep.mubr.msk.f32.mxu1 %vm5559_vm5, %v37135_v7 }
 0x7ff   : > { %31019 = vmatmul.mubr.msk.f32.gmra.mrb[86].mxu1 %vm5559_vm5, %v37141_v30 }
 0x800   : > { %31021 = vmatprep.mubr.msk.f32.mxu1 %vm5559_vm5, %v37143_v26 }
 0x803   : > { %31022 = vmatmul.mubr.msk.f32.gmra.mrb[36].mxu1 %vm5559_vm5, %v37149_v49 }
 0x804   : > { %31024 = vmatprep.mubr.msk.f32.mxu1 %vm5559_vm5, %v37151_v0 }
 0x807   : > { %31025 = vmatmul.mubr.msk.f32.gmra.mrb[88].mxu1 %vm5559_vm5, %v37157_v62 }
 0x808   : > { %31027 = vmatprep.mubr.msk.f32.mxu1 %vm5559_vm5, %v37159_v53 }
 0x80b   : > { %31028 = vmatmul.mubr.msk.f32.gmra.mrb[40].mxu1 %vm5559_vm5, %v37165_v22 }
 0x80c   : > { %31030 = vmatprep.mubr.msk.f32.mxu1 %vm5559_vm5, %v37167_v54 }
 0x80f   : > { %31031 = vmatmul.mubr.msk.f32.gmra.mrb[90].mxu1 %vm5559_vm5, %v37173_v48 }
 0x810   : > { %31033 = vmatprep.mubr.msk.f32.mxu1 %vm5559_vm5, %v37175_v44 }
 0x813   : > { %31034 = vmatmul.mubr.msk.f32.gmra.mrb[44].mxu1 %vm5559_vm5, %v37181_v43 }
 0x814   : > { %31036 = vmatprep.mubr.msk.f32.mxu1 %vm5559_vm5, %v37183_v16 }
 0x817   : > { %31037 = vmatmul.mubr.msk.f32.gmra.mrb[92].mxu1 %vm5559_vm5, %v37189_v17 }
 0x818   : > { %31039 = vmatprep.mubr.msk.f32.mxu1 %vm5559_vm5, %v37191_v8 }
 0x81b   : > { %31040 = vmatmul.mubr.msk.f32.gmra.mrb[48].mxu1 %vm5559_vm5, %v37197_v14 }
 0x81c   : > { %31042 = vmatprep.mubr.msk.f32.mxu1 %vm5559_vm5, %v37199_v36 }
 0x81f   : > { %31043 = vmatmul.mubr.msk.f32.gmra.mrb[94].mxu1 %vm5559_vm5, %v37205_v28 }
 0x820   : > { %31045 = vmatprep.mubr.msk.f32.mxu1 %vm5559_vm5, %v37207_v60 }
 0x822   : > { %v30882_v46 = vpop.f32.mrb[30].mxu1 }
 0x823   : > { %v12247_v39 = vpop.f32.mrb[31].mxu1  ;;  %31046 = vmatmul.mubr.msk.f32.gmra.mrb[52].mxu1 %vm5559_vm5, %v37213_v41  ;;  %v41100_v46 = vmax.f32 %v36876_v55, 0.0  ;;  %v41103_v55 = vmax.f32 %v36896_v52, 0.0  ;;  %v41108_v52 = vmax.f32 %v36948_v32, 0.0 }
 0x824   : > { %31048 = vmatprep.mubr.msk.f32.mxu1 %vm5559_vm5, %v40713_v31  ;;  %v26791_v39 = vld [vmem:[%s40490_s4 + $0x30] sm:$0xff]  ;;  %v41102_v31 = vmax.f32 %v36894_v50, 0.0  ;;  %v41106_v50 = vmax.f32 %v36930_v33, 0.0  ;;  %v41111_v33 = vmax.f32 %v36968_v1, 0.0  ;;  %v41116_v1 = vmax.f32 %v37020_v58, 0.0 }
 0x827   : > { %31049 = vmatmul.mubr.msk.f32.gmra.mrb[96].mxu1 %vm5559_vm5, %v13095_v11 }
 0x828   : > { %31053 = vmatprep.mubr.msk.f32.mxu1 %vm5559_vm5, %v41100_v46 }
 0x82a   : > { %v30888_v21 = vpop.f32.mrb[34].mxu1 }
 0x82b   : > { %v12267_v41 = vpop.f32.mrb[35].mxu1  ;;  %31054 = vmatmul.mubr.msk.f32.vlgmr.msra.gmra.mrb[28].mxu1 %vm5559_vm5, %v41101_v5  ;;  %v41104_v21 = vmax.f32 %v36912_v27, 0.0 }
 0x82c   : > { %31056 = vmatprep.mubr.msk.f32.mxu1 %vm5559_vm5, %v41102_v31  ;;  %31096 = vmatpush3.msra.mxu1 %v26762_v18  ;;  %v41107_v18 = vmax.f32 %v36932_v37, 0.0  ;;  %v41109_v31 = vmax.f32 %v36950_v6, 0.0  ;;  %v41112_v37 = vmax.f32 %v36984_v42, 0.0  ;;  %v41114_v6 = vmax.f32 %v37002_v15, 0.0 }
 0x82d   : > { %31139 = vmatprep.subr.mxu1 %v26791_v39  ;;  %v41119_v15 = vmax.f32 %v37040_v3, 0.0  ;;  %v37527_v3 = vld [vmem:[#allocation2 + $0xf0] sm:$0xff] }
 0x82f   : > { %31057 = vmatmul.mubr.msk.f32.gmra.mrb[98].mxu1 %vm5559_vm5, %v41103_v55 }
 0x830   : > { %31059 = vmatprep.mubr.msk.f32.mxu1 %vm5559_vm5, %v41104_v21  ;;  %v41113_v21 = vmax.f32 %v36986_v47, 0.0  ;;  %v41118_v47 = vmax.f32 %v37038_v63, 0.0  ;;  %v41123_v63 = vmax.f32 %v37076_v25, 0.0 }
 0x832   : > { %v30894_v46 = vpop.f32.mrb[38].mxu1 }
 0x833   : > { %v12287_v41 = vpop.f32.mrb[39].mxu1  ;;  %31060 = vmatmul.mubr.msk.f32.gmra.mrb[32].mxu1 %vm5559_vm5, %v41105_v45 }
 0x834   : > { %31062 = vmatprep.mubr.msk.f32.mxu1 %vm5559_vm5, %v41106_v50  ;;  %v41117_v41 = vmax.f32 %v37022_v38, 0.0  ;;  %v41121_v50 = vmax.f32 %v37058_v61, 0.0  ;;  %v41122_v38 = vmax.f32 %v37074_v56, 0.0  ;;  %v37533_v61 = vld [vmem:[#allocation2 + $0xf8] sm:$0xff]  ;;  %v41125_v56 = vmax.f32 %v37090_v2, 0.0 }
 0x835   : > { %v13470_v25 = vmax.f32 %v37533_v61, 0.0  ;;  %v26820_v2 = vld [vmem:[%s40490_s4 + $0x38] sm:$0xff] }
 0x836   : > { %v14919_v61 = vld [vmem:[#allocation2 + $0x51] sm:$0xff] }
 0x837   : > { %31063 = vmatmul.mubr.msk.f32.gmra.mrb[100].mxu1 %vm5559_vm5, %v41107_v18 }
 0x838   : > { %31065 = vmatprep.mubr.msk.f32.mxu1 %vm5559_vm5, %v41108_v52  ;;  %v13469_v52 = vmax.f32 %v37527_v3, 0.0 }
 0x83a   : > { %v30900_v27 = vpop.f32.mrb[42].mxu1 }
 0x83b   : > { %v12307_v5 = vpop.f32.mrb[43].mxu1  ;;  %31066 = vmatmul.mubr.msk.f32.gmra.mrb[36].mxu1 %vm5559_vm5, %v41109_v31 }
 0x83c   : > { %31068 = vmatprep.mubr.msk.f32.mxu1 %vm5559_vm5, %v41110_v12  ;;  %v41127_v12 = vld [vmem:[#allocation40_spill] sm:$0xff] }
 0x83f   : > { %31069 = vmatmul.mubr.msk.f32.gmra.mrb[102].mxu1 %vm5559_vm5, %v41111_v33  ;;  %v41128_v33 = vmax.f32 %v41127_v12, 0.0 }
 0x840   : > { %31071 = vmatprep.mubr.msk.f32.mxu1 %vm5559_vm5, %v41112_v37  ;;  %v41129_v37 = vld [vmem:[#allocation41_spill] sm:$0xff] }
 0x842   : > { %v30906_v32 = vpop.f32.mrb[46].mxu1 }
 0x843   : > { %v12327_v55 = vpop.f32.mrb[47].mxu1  ;;  %31072 = vmatmul.mubr.msk.f32.gmra.mrb[40].mxu1 %vm5559_vm5, %v41113_v21  ;;  %v41130_v32 = vmax.f32 %v41129_v37, 0.0  ;;  %v41133_v21 = vld [vmem:[#allocation44_spill] sm:$0xff] }
 0x844   : > { %31074 = vmatprep.mubr.msk.f32.mxu1 %vm5559_vm5, %v41114_v6  ;;  %v41131_v55 = vld [vmem:[#allocation42_spill] sm:$0xff]  ;;  %v41134_v6 = vmax.f32 %v41133_v21, 0.0 }
 0x845   : > { %v41132_v40 = vmax.f32 %v41131_v55, 0.0 }
 0x847   : > { %31075 = vmatmul.mubr.msk.f32.gmra.mrb[104].mxu1 %vm5559_vm5, %v41115_v10 }
 0x848   : > { %31077 = vmatprep.mubr.msk.f32.mxu1 %vm5559_vm5, %v41116_v1 }
 0x84a   : > { %v30912_v42 = vpop.f32.mrb[50].mxu1 }
 0x84b   : > { %v12347_v46 = vpop.f32.mrb[51].mxu1  ;;  %31078 = vmatmul.mubr.msk.f32.gmra.mrb[44].mxu1 %vm5559_vm5, %v41117_v41  ;;  %v41135_v42 = vld [vmem:[#allocation46_spill] sm:$0xff]  ;;  %v41137_v41 = vld [vmem:[#allocation48_spill] sm:$0xff] }
 0x84c   : > { %31080 = vmatprep.mubr.msk.f32.mxu1 %vm5559_vm5, %v41118_v47  ;;  %v41136_v46 = vmax.f32 %v41135_v42, 0.0  ;;  %v41138_v47 = vmax.f32 %v41137_v41, 0.0 }
 0x84f   : > { %31081 = vmatmul.mubr.msk.f32.gmra.mrb[106].mxu1 %vm5559_vm5, %v41119_v15 }
 0x850   : > { %31083 = vmatprep.mubr.msk.f32.mxu1 %vm5559_vm5, %v41120_v35  ;;  %v41141_v35 = vld [vmem:[#allocation13_spill] sm:$0xff] }
 0x852   : > { %v30918_v58 = vpop.f32.mrb[54].mxu1 }
 0x853   : > { %v12367_v45 = vpop.f32.mrb[55].mxu1  ;;  %31084 = vmatmul.mubr.msk.f32.gmra.mrb[48].mxu1 %vm5559_vm5, %v41121_v50  ;;  %v41142_v58 = vmax.f32 %v41141_v35, 0.0  ;;  %v41164_v35 = vld [vmem:[#allocation43_spill] sm:$0xff] }
 0x854   : > { %31086 = vmatprep.mubr.msk.f32.mxu1 %vm5559_vm5, %v41122_v38  ;;  %v41143_v38 = vld [vmem:[#allocation14_spill] sm:$0xff] }
 0x857   : > { %31087 = vmatmul.mubr.msk.f32.gmra.mrb[108].mxu1 %vm5559_vm5, %v41123_v63  ;;  %v41144_v63 = vmax.f32 %v41143_v38, 0.0  ;;  %v41166_v38 = vmax.f32 %v37346_v9, 0.0  ;;  %v37626_v9 = vld [vmem:[#allocation2 + $0xf9] sm:$0xff] }
 0x858   : > { %31089 = vmatprep.mubr.msk.f32.mxu1 %vm5559_vm5, %v41124_v23  ;;  %v41145_v23 = vld [vmem:[#allocation21_spill] sm:$0xff] }
 0x85a   : > { %v30926_v18 = vpop.f32.mrb[56].mxu1 }
 0x85b   : > { %v12536_v27 = vpop.f32.mrb[57].mxu1  ;;  %31090 = vmatmul.mubr.msk.f32.gmra.mrb[52].mxu1 %vm5559_vm5, %v41125_v56  ;;  %v41146_v18 = vmax.f32 %v41145_v23, 0.0  ;;  %v41168_v23 = vld [vmem:[#allocation45_spill] sm:$0xff] }
 0x85c   : > { %31092 = vmatprep.mubr.msk.f32.mxu1 %vm5559_vm5, %v13469_v52  ;;  %v41147_v27 = vld [vmem:[#allocation23_spill] sm:$0xff] }
 0x85d   : > { %v41148_v56 = vmax.f32 %v41147_v27, 0.0  ;;  %v41170_v27 = vmax.f32 %v37363_v51, 0.0 }
 0x85f   : > { %31093 = vmatmul.mubr.msk.f32.gmra.mrb[110].mxu1 %vm5559_vm5, %v13470_v25 }
 0x860   : > { %31097 = vmatprep.mubr.msk.f32.mxu1 %vm5559_vm5, %v41126_v13  ;;  %v41149_v13 = vld [vmem:[#allocation27_spill] sm:$0xff] }
 0x862   : > { %v30932_v5 = vpop.f32.mrb[58].mxu1 }
 0x863   : > { %v12556_v31 = vpop.f32.mrb[59].mxu1  ;;  %31098 = vmatmul.mubr.msk.f32.vlgmr.msra.gmra.mrb[28].mxu1 %vm5559_vm5, %v41128_v33  ;;  %v41150_v5 = vmax.f32 %v41149_v13, 0.0  ;;  %v41151_v33 = vld [vmem:[#allocation28_spill] sm:$0xff] }
 0x864   : > { %31100 = vmatprep.mubr.msk.f32.mxu1 %vm5559_vm5, %v41130_v32  ;;  %31140 = vmatpush3.msra.mxu1 %v26791_v39  ;;  %v41139_v39 = vld [vmem:[#allocation11_spill] sm:$0xff]  ;;  %v41152_v37 = vmax.f32 %v41151_v33, 0.0 }
 0x865   : > { %31183 = vmatprep.subr.mxu1 %v26820_v2  ;;  %v41140_v15 = vmax.f32 %v41139_v39, 0.0  ;;  %v41153_v32 = vld [vmem:[#allocation31_spill] sm:$0xff] }
 0x866   : > { %v41154_v55 = vmax.f32 %v41153_v32, 0.0  ;;  %v14543_v32 = vld [vmem:[#allocation2 + $0x48] sm:$0xff] }
 0x867   : > { %31101 = vmatmul.mubr.msk.f32.gmra.mrb[112].mxu1 %vm5559_vm5, %v41132_v40  ;;  %v41155_v40 = vld [vmem:[#allocation32_spill] sm:$0xff] }
 0x868   : > { %31103 = vmatprep.mubr.msk.f32.mxu1 %vm5559_vm5, %v41134_v6  ;;  %v41156_v21 = vmax.f32 %v41155_v40, 0.0  ;;  %v41157_v6 = vld [vmem:[#allocation34_spill] sm:$0xff]  ;;  %v14572_v40 = vmax.f32 %v14544_v4, 0.0 }
 0x86a   : > { %v30938_v10 = vpop.f32.mrb[60].mxu1 }
 0x86b   : > { %v12576_v1 = vpop.f32.mrb[61].mxu1  ;;  %31104 = vmatmul.mubr.msk.f32.gmra.mrb[32].mxu1 %vm5559_vm5, %v41136_v46  ;;  %v41158_v10 = vmax.f32 %v41157_v6, 0.0  ;;  %v41159_v46 = vld [vmem:[#allocation35_spill] sm:$0xff]  ;;  %v14546_v6 = vld [vmem:[#allocation2 + $0x60] sm:$0xff] }
 0x86c   : > { %31106 = vmatprep.mubr.msk.f32.mxu1 %vm5559_vm5, %v41138_v47  ;;  %v41160_v41 = vmax.f32 %v41159_v46, 0.0  ;;  %v41161_v47 = vld [vmem:[#allocation38_spill] sm:$0xff] }
 0x86d   : > { %v41162_v39 = vmax.f32 %v41161_v47, 0.0  ;;  %v14547_v46 = vld [vmem:[#allocation2 + $0x68] sm:$0xff]  ;;  %v14548_v47 = vld [vmem:[#allocation2 + $0x70] sm:$0xff] }
 0x86f   : > { %31107 = vmatmul.mubr.msk.f32.gmra.mrb[114].mxu1 %vm5559_vm5, %v41140_v15  ;;  %v41163_v15 = vmax.f32 %v37334_v24, 0.0  ;;  %v37620_v24 = vld [vmem:[#allocation2 + $0xf1] sm:$0xff] }
 0x870   : > { %31109 = vmatprep.mubr.msk.f32.mxu1 %vm5559_vm5, %v41142_v58  ;;  %v41165_v58 = vmax.f32 %v41164_v35, 0.0  ;;  %v13844_v13 = vmax.f32 %v37620_v24, 0.0  ;;  %v14549_v35 = vld [vmem:[#allocation2 + $0x78] sm:$0xff]  ;;  %v15405_v24 = vld [vmem:[#allocation3 + $0x10] sm:$0xff] }
 0x871   : > { %31275 = vmatprep.mubr.msk.f32.mxu0 %vm15346_vm4, %v15405_v24 }
 0x872   : > { %v30944_v45 = vpop.f32.mrb[62].mxu1 }
 0x873   : > { %v12596_v50 = vpop.f32.mrb[63].mxu1  ;;  %31110 = vmatmul.mubr.msk.f32.gmra.mrb[36].mxu1 %vm5559_vm5, %v41144_v63  ;;  %v41167_v63 = vmax.f32 %v37351_v20, 0.0  ;;  %v41171_v20 = vmax.f32 %v37370_v29, 0.0  ;;  %v26849_v29 = vld [vmem:[%s40490_s4 + $0x40] sm:$0xff] }
 0x874   : > { %31112 = vmatprep.mubr.msk.f32.mxu1 %vm5559_vm5, %v41146_v18  ;;  %v41169_v18 = vmax.f32 %v41168_v23, 0.0 }
 0x877   : > { %31113 = vmatmul.mubr.msk.f32.gmra.mrb[116].mxu1 %vm5559_vm5, %v41148_v56 }
 0x878   : > { %31115 = vmatprep.mubr.msk.f32.mxu1 %vm5559_vm5, %v41150_v5 }
 0x87a   : > { %v30950_v31 = vpop.f32.mrb[64].mxu1 }
 0x87b   : > { %v12616_v12 = vpop.f32.mrb[65].mxu1  ;;  %31116 = vmatmul.mubr.msk.f32.gmra.mrb[40].mxu1 %vm5559_vm5, %v41152_v37  ;;  %v13845_v31 = vmax.f32 %v37626_v9, 0.0  ;;  %v15404_v9 = vld [vmem:[%s40491_s5 + $0x8] sm:$0xff] }
 0x87c   : > { %31118 = vmatprep.mubr.msk.f32.mxu1 %vm5559_vm5, %v41154_v55 }
 0x87f   : > { %31119 = vmatmul.mubr.msk.f32.gmra.mrb[118].mxu1 %vm5559_vm5, %v41156_v21  ;;  %v14545_v21 = vld [vmem:[#allocation2 + $0x58] sm:$0xff] }
 0x880   : > { %31121 = vmatprep.mubr.msk.f32.mxu1 %vm5559_vm5, %v41158_v10  ;;  %v14573_v10 = vmax.f32 %v14545_v21, 0.0  ;;  %v14916_v21 = vld [vmem:[#allocation2 + $0x39] sm:$0xff] }
 0x881   : > { %v14944_v3 = vmax.f32 %v14916_v21, 0.0 }
 0x882   : > { %v30956_v1 = vpop.f32.mrb[66].mxu1 }
 0x883   : > { %v12636_v42 = vpop.f32.mrb[67].mxu1  ;;  %31122 = vmatmul.mubr.msk.f32.gmra.mrb[44].mxu1 %vm5559_vm5, %v41160_v41 }
 0x884   : > { %31124 = vmatprep.mubr.msk.f32.mxu1 %vm5559_vm5, %v41162_v39  ;;  %v14574_v42 = vmax.f32 %v14546_v6, 0.0  ;;  %v14575_v39 = vmax.f32 %v14547_v46, 0.0  ;;  %v14917_v6 = vld [vmem:[#allocation2 + $0x41] sm:$0xff]  ;;  %v14947_v46 = vmax.f32 %v14919_v61, 0.0 }
 0x887   : > { %31125 = vmatmul.mubr.msk.f32.gmra.mrb[120].mxu1 %vm5559_vm5, %v41163_v15  ;;  %v14576_v15 = vmax.f32 %v14548_v47, 0.0  ;;  %v14921_v47 = vld [vmem:[#allocation2 + $0x61] sm:$0xff] }
 0x888   : > { %31127 = vmatprep.mubr.msk.f32.mxu1 %vm5559_vm5, %v41165_v58  ;;  %v14550_v58 = vld [vmem:[#allocation2 + $0x80] sm:$0xff] }
 0x88a   : > { %v30962_v45 = vpop.f32.mrb[68].mxu1 }
 0x88b   : > { %v12656_v50 = vpop.f32.mrb[69].mxu1  ;;  %31128 = vmatmul.mubr.msk.f32.gmra.mrb[48].mxu1 %vm5559_vm5, %v41166_v38  ;;  %v14577_v45 = vmax.f32 %v14549_v35, 0.0  ;;  %v14578_v38 = vmax.f32 %v14550_v58, 0.0  ;;  %v14949_v35 = vmax.f32 %v14921_v47, 0.0  ;;  %v14922_v58 = vld [vmem:[#allocation2 + $0x69] sm:$0xff] }
 0x88c   : > { %31130 = vmatprep.mubr.msk.f32.mxu1 %vm5559_vm5, %v41167_v63  ;;  %v14551_v63 = vld [vmem:[#allocation2 + $0x88] sm:$0xff] }
 0x88f   : > { %31131 = vmatmul.mubr.msk.f32.gmra.mrb[122].mxu1 %vm5559_vm5, %v41169_v18  ;;  %v14552_v18 = vld [vmem:[#allocation2 + $0x90] sm:$0xff] }
 0x890   : > { %31133 = vmatprep.mubr.msk.f32.mxu1 %vm5559_vm5, %v41170_v27  ;;  %v14579_v27 = vmax.f32 %v14551_v63, 0.0 }
 0x892   : > { %v30970_v56 = vpop.f32.mrb[70].mxu1 }
 0x893   : > { %v12883_v5 = vpop.f32.mrb[71].mxu1  ;;  %31134 = vmatmul.mubr.msk.f32.gmra.mrb[52].mxu1 %vm5559_vm5, %v41171_v20  ;;  %v14580_v56 = vmax.f32 %v14552_v18, 0.0  ;;  %v14554_v20 = vld [vmem:[#allocation2 + $0xa0] sm:$0xff] }
 0x894   : > { %31136 = vmatprep.mubr.msk.f32.mxu1 %vm5559_vm5, %v13844_v13  ;;  %v14553_v5 = vld [vmem:[#allocation2 + $0x98] sm:$0xff]  ;;  %v14925_v18 = vld [vmem:[#allocation2 + $0x81] sm:$0xff] }
 0x897   : > { %31137 = vmatmul.mubr.msk.f32.gmra.mrb[124].mxu1 %vm5559_vm5, %v13845_v31 }
 0x898   : > { %31141 = vmatprep.mubr.msk.f32.mxu1 %vm5559_vm5, %v37118_v57 }
 0x89a   : > { %v30976_v51 = vpop.f32.mrb[72].mxu1 }
 0x89b   : > { %v12903_v12 = vpop.f32.mrb[73].mxu1  ;;  %31142 = vmatmul.mubr.msk.f32.vlgmr.msra.gmra.mrb[28].mxu1 %vm5559_vm5, %v37125_v59  ;;  %v14581_v51 = vmax.f32 %v14553_v5, 0.0  ;;  %v14953_v5 = vmax.f32 %v14925_v18, 0.0 }
 0x89c   : > { %31144 = vmatprep.mubr.msk.f32.mxu1 %vm5559_vm5, %v37127_v19  ;;  %31184 = vmatpush3.msra.mxu1 %v26820_v2  ;;  %v14582_v12 = vmax.f32 %v14554_v20, 0.0  ;;  %v14926_v20 = vld [vmem:[#allocation2 + $0x89] sm:$0xff] }
 0x89d   : > { %31227 = vmatprep.subr.mxu1 %v26849_v29 }
 0x89f   : > { %31145 = vmatmul.mubr.msk.f32.gmra.mrb[126].mxu1 %vm5559_vm5, %v37133_v34  ;;  %v14191_v34 = vld [vmem:[#allocation2 + $0xff] sm:$0xff] }
 0x8a0   : > { %31147 = vmatprep.mubr.msk.f32.mxu1 %vm5559_vm5, %v37135_v7 }
 0x8a2   : > { %v30982_v57 = vpop.f32.mrb[74].mxu1 }
 0x8a3   : > { %v12923_v33 = vpop.f32.mrb[75].mxu1  ;;  %31148 = vmatmul.mubr.msk.f32.gmra.mrb[32].mxu1 %vm5559_vm5, %v37141_v30  ;;  %v41173_v30 = vld [vmem:[#allocation47_spill] sm:$0xff]  ;;  %v14555_v57 = vld [vmem:[#allocation2 + $0xa8] sm:$0xff] }
 0x8a4   : > { %31150 = vmatprep.mubr.msk.f32.mxu1 %vm5559_vm5, %v37143_v26 }
 0x8a7   : > { %31151 = vmatmul.mubr.msk.f32.gmra.mrb[128].mxu1 %vm5559_vm5, %v37149_v49  ;;  %v14192_v49 = vld [vmem:[#allocation2 + $0x107] sm:$0xff] }
 0x8a8   : > { %31153 = vmatprep.mubr.msk.f32.mxu1 %vm5559_vm5, %v37151_v0 }
 0x8aa   : > { %v30988_v59 = vpop.f32.mrb[76].mxu1 }
 0x8ab   : > { %v12943_v19 = vpop.f32.mrb[77].mxu1  ;;  %31154 = vmatmul.mubr.msk.f32.gmra.mrb[36].mxu1 %vm5559_vm5, %v37157_v62  ;;  %v14556_v59 = vld [vmem:[#allocation2 + $0xb0] sm:$0xff] }
 0x8ac   : > { %31156 = vmatprep.mubr.msk.f32.mxu1 %vm5559_vm5, %v37159_v53  ;;  %v14583_v19 = vmax.f32 %v14555_v57, 0.0 }
 0x8af   : > { %31157 = vmatmul.mubr.msk.f32.gmra.mrb[130].mxu1 %vm5559_vm5, %v37165_v22  ;;  %v14219_v22 = vmax.f32 %v14191_v34, 0.0 }
 0x8b0   : > { %31159 = vmatprep.mubr.msk.f32.mxu1 %vm5559_vm5, %v37167_v54 }
 0x8b2   : > { %v30994_v26 = vpop.f32.mrb[78].mxu1 }
 0x8b3   : > { %v12963_v7 = vpop.f32.mrb[79].mxu1  ;;  %31160 = vmatmul.mubr.msk.f32.gmra.mrb[40].mxu1 %vm5559_vm5, %v37173_v48  ;;  %v14220_v48 = vmax.f32 %v14192_v49, 0.0  ;;  %v14584_v26 = vmax.f32 %v14556_v59, 0.0  ;;  %v14929_v59 = vld [vmem:[#allocation2 + $0xa1] sm:$0xff] }
 0x8b4   : > { %31162 = vmatprep.mubr.msk.f32.mxu1 %vm5559_vm5, %v37175_v44  ;;  %v14557_v7 = vld [vmem:[#allocation2 + $0xb8] sm:$0xff] }
 0x8b7   : > { %31163 = vmatmul.mubr.msk.f32.gmra.mrb[132].mxu1 %vm5559_vm5, %v37181_v43  ;;  %v14540_v43 = vld [vmem:[#allocation2 + $0x30] sm:$0xff] }
 0x8b8   : > { %31165 = vmatprep.mubr.msk.f32.mxu1 %vm5559_vm5, %v37183_v16  ;;  %v41172_v16 = vld [vmem:[#allocation37_spill] sm:$0xff] }
 0x8ba   : > { %v31000_v53 = vpop.f32.mrb[80].mxu1 }
 0x8bb   : > { %v12983_v0 = vpop.f32.mrb[81].mxu1  ;;  %31166 = vmatmul.mubr.msk.f32.gmra.mrb[44].mxu1 %vm5559_vm5, %v37189_v17  ;;  %v14541_v17 = vld [vmem:[#allocation2 + $0x38] sm:$0xff]  ;;  %v14558_v53 = vld [vmem:[#allocation2 + $0xc0] sm:$0xff] }
 0x8bc   : > { %31168 = vmatprep.mubr.msk.f32.mxu1 %vm5559_vm5, %v37191_v8  ;;  %v41174_v8 = vmax.f32 %v41173_v30, 0.0  ;;  %v14585_v0 = vmax.f32 %v14557_v7, 0.0  ;;  %v14560_v30 = vld [vmem:[#allocation2 + $0xd0] sm:$0xff]  ;;  %v14957_v7 = vmax.f32 %v14929_v59, 0.0  ;;  %v26936_v59 = vld [vmem:[%s40491_s5 + $0x20] sm:$0xff] }
 0x8bd   : > { %v14588_v49 = vmax.f32 %v14560_v30, 0.0  ;;  %v14933_v30 = vld [vmem:[#allocation2 + $0xc1] sm:$0xff] }
 0x8bf   : > { %31169 = vmatmul.mubr.msk.f32.gmra.mrb[134].mxu1 %vm5559_vm5, %v37197_v14  ;;  %v14542_v14 = vld [vmem:[#allocation2 + $0x40] sm:$0xff] }
 0x8c0   : > { %31171 = vmatprep.mubr.msk.f32.mxu1 %vm5559_vm5, %v37199_v36  ;;  %v14570_v37 = vmax.f32 %v14542_v14, 0.0 }
 0x8c2   : > { %v31006_v44 = vpop.f32.mrb[82].mxu1 }
 0x8c3   : > { %v13003_v54 = vpop.f32.mrb[83].mxu1  ;;  %31172 = vmatmul.mubr.msk.f32.gmra.mrb[48].mxu1 %vm5559_vm5, %v37205_v28  ;;  %v14569_v28 = vmax.f32 %v14541_v17, 0.0 }
 0x8c4   : > { %31174 = vmatprep.mubr.msk.f32.mxu1 %vm5559_vm5, %v37207_v60  ;;  %v14568_v60 = vmax.f32 %v14540_v43, 0.0  ;;  %v14586_v54 = vmax.f32 %v14558_v53, 0.0  ;;  %v14930_v53 = vld [vmem:[#allocation2 + $0xa9] sm:$0xff] }
 0x8c7   : > { %31175 = vmatmul.mubr.msk.f32.gmra.mrb[136].mxu1 %vm5559_vm5, %v41172_v16  ;;  %v14559_v16 = vld [vmem:[#allocation2 + $0xc8] sm:$0xff] }
 0x8c8   : > { %31177 = vmatprep.mubr.msk.f32.mxu1 %vm5559_vm5, %v41174_v8  ;;  %v14587_v8 = vmax.f32 %v14559_v16, 0.0 }
 0x8ca   : > { %v31014_v62 = vpop.f32.mrb[84].mxu1 }
 0x8cb   : > { %v13258_v36 = vpop.f32.mrb[85].mxu1  ;;  %31178 = vmatmul.mubr.msk.f32.gmra.mrb[52].mxu1 %vm5559_vm5, %v13095_v11  ;;  %v14571_v11 = vmax.f32 %v14543_v32, 0.0  ;;  %v14561_v62 = vld [vmem:[#allocation2 + $0xd8] sm:$0xff] }
 0x8cc   : > { %31180 = vmatprep.mubr.msk.f32.mxu1 %vm5559_vm5, %v14219_v22  ;;  %v14562_v22 = vld [vmem:[#allocation2 + $0xe0] sm:$0xff]  ;;  %v14589_v36 = vmax.f32 %v14561_v62, 0.0  ;;  %v14961_v62 = vmax.f32 %v14933_v30, 0.0 }
 0x8cd   : > { %v14590_v43 = vmax.f32 %v14562_v22, 0.0  ;;  %v14934_v22 = vld [vmem:[#allocation2 + $0xc9] sm:$0xff] }
 0x8cf   : > { %31181 = vmatmul.mubr.msk.f32.gmra.mrb[138].mxu1 %vm5559_vm5, %v14220_v48 }
 0x8d0   : > { %31185 = vmatprep.mubr.msk.f32.mxu1 %vm5559_vm5, %v14568_v60  ;;  %v14563_v60 = vld [vmem:[#allocation2 + $0xe8] sm:$0xff] }
 0x8d1   : > { %v14591_v14 = vmax.f32 %v14563_v60, 0.0  ;;  %v26879_v60 = vld [vmem:[%s40491_s5 + $0x18] sm:$0xff] }
 0x8d2   : > { %v31020_v2 = vpop.f32.mrb[86].mxu1 }
 0x8d3   : > { %v13278_v55 = vpop.f32.mrb[87].mxu1  ;;  %31186 = vmatmul.mubr.msk.f32.vlgmr.msra.gmra.mrb[28].mxu1 %vm5559_vm5, %v14569_v28  ;;  %v14566_v28 = vld [vmem:[#allocation2 + $0x100] sm:$0xff] }
 0x8d4   : > { %31188 = vmatprep.mubr.msk.f32.mxu1 %vm5559_vm5, %v14570_v37  ;;  %31228 = vmatpush3.msra.mxu1 %v26849_v29  ;;  %v14594_v2 = vmax.f32 %v14566_v28, 0.0  ;;  %v14567_v37 = vld [vmem:[#allocation2 + $0x108] sm:$0xff] }
 0x8d5   : > { %v14595_v4 = vmax.f32 %v14567_v37, 0.0  ;;  %v14937_v37 = vld [vmem:[#allocation2 + $0xe1] sm:$0xff] }
 0x8d7   : > { %31189 = vmatmul.mubr.msk.f32.gmra.mrb[140].mxu1 %vm5559_vm5, %v14571_v11  ;;  %v14915_v11 = vld [vmem:[#allocation2 + $0x31] sm:$0xff] }
 0x8d8   : > { %31191 = vmatprep.mubr.msk.f32.mxu1 %vm5559_vm5, %v14572_v40  ;;  %v14943_v40 = vmax.f32 %v14915_v11, 0.0  ;;  %v14938_v11 = vld [vmem:[#allocation2 + $0xe9] sm:$0xff] }
 0x8d9   : > { %v14966_v21 = vmax.f32 %v14938_v11, 0.0 }
 0x8da   : > { %v31026_v1 = vpop.f32.mrb[88].mxu1 }
 0x8db   : > { %v13298_v41 = vpop.f32.mrb[89].mxu1  ;;  %31192 = vmatmul.mubr.msk.f32.gmra.mrb[32].mxu1 %vm5559_vm5, %v14573_v10  ;;  %v14945_v10 = vmax.f32 %v14917_v6, 0.0  ;;  %v14918_v1 = vld [vmem:[#allocation2 + $0x49] sm:$0xff] }
 0x8dc   : > { %31194 = vmatprep.mubr.msk.f32.mxu1 %vm5559_vm5, %v14574_v42  ;;  %v14920_v41 = vld [vmem:[#allocation2 + $0x59] sm:$0xff] }
 0x8df   : > { %31195 = vmatmul.mubr.msk.f32.gmra.mrb[142].mxu1 %vm5559_vm5, %v14575_v39  ;;  %v14948_v39 = vmax.f32 %v14920_v41, 0.0 }
 0x8e0   : > { %31197 = vmatprep.mubr.msk.f32.mxu1 %vm5559_vm5, %v14576_v15 }
 0x8e2   : > { %v31032_v50 = vpop.f32.mrb[90].mxu1 }
 0x8e3   : > { %v13318_v23 = vpop.f32.mrb[91].mxu1  ;;  %31198 = vmatmul.mubr.msk.f32.gmra.mrb[36].mxu1 %vm5559_vm5, %v14577_v45  ;;  %v14923_v50 = vld [vmem:[#allocation2 + $0x71] sm:$0xff] }
 0x8e4   : > { %31200 = vmatprep.mubr.msk.f32.mxu1 %vm5559_vm5, %v14578_v38  ;;  %v14950_v38 = vmax.f32 %v14922_v58, 0.0  ;;  %v14951_v63 = vmax.f32 %v14923_v50, 0.0  ;;  %v14924_v23 = vld [vmem:[#allocation2 + $0x79] sm:$0xff] }
 0x8e7   : > { %31201 = vmatmul.mubr.msk.f32.gmra.mrb[144].mxu1 %vm5559_vm5, %v14579_v27  ;;  %v14952_v27 = vmax.f32 %v14924_v23, 0.0 }
 0x8e8   : > { %31203 = vmatprep.mubr.msk.f32.mxu1 %vm5559_vm5, %v14580_v56 }
 0x8ea   : > { %v31038_v29 = vpop.f32.mrb[92].mxu1 }
 0x8eb   : > { %v13338_v33 = vpop.f32.mrb[93].mxu1  ;;  %31204 = vmatmul.mubr.msk.f32.gmra.mrb[40].mxu1 %vm5559_vm5, %v14581_v51  ;;  %v14927_v29 = vld [vmem:[#allocation2 + $0x91] sm:$0xff] }
 0x8ec   : > { %31206 = vmatprep.mubr.msk.f32.mxu1 %vm5559_vm5, %v14582_v12  ;;  %v14954_v12 = vmax.f32 %v14926_v20, 0.0  ;;  %v14955_v57 = vmax.f32 %v14927_v29, 0.0  ;;  %v14928_v33 = vld [vmem:[#allocation2 + $0x99] sm:$0xff] }
 0x8ef   : > { %31207 = vmatmul.mubr.msk.f32.gmra.mrb[146].mxu1 %vm5559_vm5, %v14583_v19  ;;  %v14956_v19 = vmax.f32 %v14928_v33, 0.0 }
 0x8f0   : > { %31209 = vmatprep.mubr.msk.f32.mxu1 %vm5559_vm5, %v14584_v26 }
 0x8f2   : > { %v31044_v44 = vpop.f32.mrb[94].mxu1 }
 0x8f3   : > { %v13358_v34 = vpop.f32.mrb[95].mxu1  ;;  %31210 = vmatmul.mubr.msk.f32.gmra.mrb[44].mxu1 %vm5559_vm5, %v14585_v0  ;;  %v14931_v44 = vld [vmem:[#allocation2 + $0xb1] sm:$0xff] }
 0x8f4   : > { %31212 = vmatprep.mubr.msk.f32.mxu1 %vm5559_vm5, %v14586_v54  ;;  %v14958_v54 = vmax.f32 %v14930_v53, 0.0  ;;  %v14959_v16 = vmax.f32 %v14931_v44, 0.0  ;;  %v14932_v34 = vld [vmem:[#allocation2 + $0xb9] sm:$0xff] }
 0x8f7   : > { %31213 = vmatmul.mubr.msk.f32.gmra.mrb[148].mxu1 %vm5559_vm5, %v14587_v8  ;;  %v14960_v8 = vmax.f32 %v14932_v34, 0.0 }
 0x8f8   : > { %31215 = vmatprep.mubr.msk.f32.mxu1 %vm5559_vm5, %v14588_v49 }
 0x8fa   : > { %v31050_v48 = vpop.f32.mrb[96].mxu1 }
 0x8fb   : > { %v13378_v17 = vpop.f32.mrb[97].mxu1  ;;  %31216 = vmatmul.mubr.msk.f32.gmra.mrb[48].mxu1 %vm5559_vm5, %v14589_v36  ;;  %v14935_v48 = vld [vmem:[#allocation2 + $0xd1] sm:$0xff] }
 0x8fc   : > { %31218 = vmatprep.mubr.msk.f32.mxu1 %vm5559_vm5, %v14590_v43  ;;  %v26878_v43 = vld [vmem:[%s40491_s5 + $0x10] sm:$0xff]  ;;  %v14963_v28 = vmax.f32 %v14935_v48, 0.0 }
 0x8fd   : > { %v32639_v17 = vpack.c.bf16 %v26879_v60, %v26878_v43  ;;  %v41175_v43 = vld [vmem:[#allocation17_spill] sm:$0xff] }
 0x8fe   : > { %v935_v60 = vand.u32 31, %v41175_v43 }
 0x8ff   : > { %31219 = vmatmul.mubr.msk.f32.gmra.mrb[150].mxu1 %vm5559_vm5, %v14591_v14  ;;  %v14962_v14 = vmax.f32 %v14934_v22, 0.0  ;;  %32640 = vmatprep.subr.bf16.mxu0 %v32639_v17 }
 0x900   : > { %31221 = vmatprep.mubr.msk.f32.mxu1 %vm5559_vm5, %v13469_v52  ;;  %32642 = vmatpush3.bf16.msra.mxu0 %v32639_v17  ;;  %v1299_v17 = vand.u32 1, %v935_v60  ;;  %vm1261_vm6 = vcmp.lt.s32.totalorder %v935_v60, 14 }
 0x902   : > { %v31058_v32 = vpop.f32.mrb[98].mxu1  ;;  %vm1625_vm7 = vcmp.eq.s32.totalorder %v1299_v17, 0 }
 0x903   : > { %v13633_v55 = vpop.f32.mrb[99].mxu1  ;;  %31222 = vmatmul.mubr.msk.f32.gmra.mrb[52].mxu1 %vm5559_vm5, %v13470_v25  ;;  %v14946_v25 = vmax.f32 %v14918_v1, 0.0  ;;  %vm37818_vm8 = vmand %vm1261_vm6, %vm1625_vm7 }
 0x904   : > { %31224 = vmatprep.mubr.msk.f32.mxu1 %vm5559_vm5, %v14594_v2  ;;  %v14936_v2 = vld [vmem:[#allocation2 + $0xd9] sm:$0xff] }
 0x905   : > { %v14964_v32 = vmax.f32 %v14936_v2, 0.0 }
 0x907   : > { %31225 = vmatmul.mubr.msk.f32.gmra.mrb[152].mxu1 %vm5559_vm5, %v14595_v4  ;;  %v14965_v4 = vmax.f32 %v14937_v37, 0.0 }
 0x908   : > { %31229 = vmatprep.mubr.msk.f32.mxu1 %vm5559_vm5, %v14943_v40 }
 0x90a   : > { %v31064_v52 = vpop.f32.mrb[100].mxu1 }
 0x90b   : > { %v13653_v42 = vpop.f32.mrb[101].mxu1  ;;  %31230 = vmatmul.mubr.msk.f32.vlgmr.msra.gmra.mrb[28].mxu1 %vm5559_vm5, %v14944_v3 }
 0x90c   : > { %31232 = vmatprep.mubr.msk.f32.mxu1 %vm5559_vm5, %v14945_v10 }
 0x90f   : > { %31233 = vmatmul.mubr.msk.f32.gmra.mrb[154].mxu1 %vm5559_vm5, %v14946_v25 }
 0x910   : > { %31235 = vmatprep.mubr.msk.f32.mxu1 %vm5559_vm5, %v14947_v46 }
 0x912   : > { %v31070_v15 = vpop.f32.mrb[102].mxu1 }
 0x913   : > { %v13673_v45 = vpop.f32.mrb[103].mxu1  ;;  %31236 = vmatmul.mubr.msk.f32.gmra.mrb[32].mxu1 %vm5559_vm5, %v14948_v39  ;;  %v15406_v15 = vld [vmem:[#allocation3 + $0x18] sm:$0xff] }
 0x914   : > { %31238 = vmatprep.mubr.msk.f32.mxu1 %vm5559_vm5, %v14949_v35  ;;  %31276 = vmatmul.mubr.msk.f32.vlgmr.msra.gmra.mrb[84].mxu0 %vm15346_vm4, %v15406_v15  ;;  %v40714_v35 = vmov 0.0   ;;  %v15407_v45 = vld [vmem:[#allocation3 + $0x20] sm:$0xff]  ;;  %v41185_v15 = vmov 0 }
 0x915   : > { %15349 = vst.msk [vmem:[#allocation3 + $0x40] sm:$0xff] %vm15346_vm4, %v40714_v35  ;;  %15350 = vst.msk [vmem:[#allocation3 + $0x48] sm:$0xff] %vm15346_vm4, %v40714_v35  ;;  %31278 = vmatprep.mubr.msk.f32.mxu0 %vm15346_vm4, %v15407_v45 }
 0x916   : > { %15353 = vst.msk [vmem:[#allocation3 + $0x60] sm:$0xff] %vm15346_vm4, %v40714_v35  ;;  %15354 = vst.msk [vmem:[#allocation3 + $0x68] sm:$0xff] %vm15346_vm4, %v40714_v35 }
 0x917   : > { %31239 = vmatmul.mubr.msk.f32.gmra.mrb[156].mxu1 %vm5559_vm5, %v14950_v38  ;;  %15357 = vst.msk [vmem:[#allocation3 + $0x80] sm:$0xff] %vm15346_vm4, %v40714_v35  ;;  %15358 = vst.msk [vmem:[#allocation3 + $0x88] sm:$0xff] %vm15346_vm4, %v40714_v35  ;;  %v15408_v38 = vld [vmem:[#allocation3 + $0x28] sm:$0xff] }
 0x918   : > { %31241 = vmatprep.mubr.msk.f32.mxu1 %vm5559_vm5, %v14951_v63  ;;  %15361 = vst.msk [vmem:[#allocation3 + $0xa0] sm:$0xff] %vm15346_vm4, %v40714_v35  ;;  %15362 = vst.msk [vmem:[#allocation3 + $0xa8] sm:$0xff] %vm15346_vm4, %v40714_v35  ;;  %31279 = vmatmul.mubr.msk.f32.gmra.mrb[86].mxu0 %vm15346_vm4, %v15408_v38 }
 0x919   : > { %15365 = vst.msk [vmem:[#allocation3 + $0xc0] sm:$0xff] %vm15346_vm4, %v40714_v35  ;;  %15366 = vst.msk [vmem:[#allocation3 + $0xc8] sm:$0xff] %vm15346_vm4, %v40714_v35 }
 0x91a   : > { %v31076_v56 = vpop.f32.mrb[104].mxu1  ;;  %15369 = vst.msk [vmem:[#allocation3 + $0xe0] sm:$0xff] %vm15346_vm4, %v40714_v35  ;;  %15370 = vst.msk [vmem:[#allocation3 + $0xe8] sm:$0xff] %vm15346_vm4, %v40714_v35 }
 0x91b   : > { %v13693_v51 = vpop.f32.mrb[105].mxu1  ;;  %31242 = vmatmul.mubr.msk.f32.gmra.mrb[36].mxu1 %vm5559_vm5, %v14952_v27  ;;  %15373 = vst.msk [vmem:[#allocation3 + $0x100] sm:$0xff] %vm15346_vm4, %v40714_v35  ;;  %15374 = vst.msk [vmem:[#allocation3 + $0x108] sm:$0xff] %vm15346_vm4, %v40714_v35 }
 0x91c   : > { %31244 = vmatprep.mubr.msk.f32.mxu1 %vm5559_vm5, %v14953_v5  ;;  %v37841_v38 = vld [vmem:[#allocation3 + $0x40] sm:$0xff] }
 0x91d   : > { %v37895_v60 = vld [vmem:[#allocation3 + $0x60] sm:$0xff] }
 0x91f   : > { %31245 = vmatmul.mubr.msk.f32.gmra.mrb[158].mxu1 %vm5559_vm5, %v14954_v12 }
 0x920   : > { %31247 = vmatprep.mubr.msk.f32.mxu1 %vm5559_vm5, %v14955_v57 }
 0x921   : > { %v38074_v43 = vld [vmem:[#allocation3 + $0xe6] sm:$0xff] }
 0x922   : > { %v31082_v26 = vpop.f32.mrb[106].mxu1  ;;  %41229 = vst [vmem:[#allocation31_spill] sm:$0xff] %v38074_v43 }
 0x923   : > { %v13713_v0 = vpop.f32.mrb[107].mxu1  ;;  %31248 = vmatmul.mubr.msk.f32.gmra.mrb[40].mxu1 %vm5559_vm5, %v14956_v19  ;;  %v26937_v19 = vld [vmem:[%s40491_s5 + $0x28] sm:$0xff] }
 0x924   : > { %31250 = vmatprep.mubr.msk.f32.mxu1 %vm5559_vm5, %v14957_v7  ;;  %v37809_v26 = vpack.c.bf16 %v26937_v19, %v26936_v59 }
 0x927   : > { %31251 = vmatmul.mubr.msk.f32.gmra.mrb[160].mxu1 %vm5559_vm5, %v14958_v54 }
 0x928   : > { %31253 = vmatprep.mubr.msk.f32.mxu1 %vm5559_vm5, %v14959_v16 }
 0x92a   : > { %v31088_v49 = vpop.f32.mrb[108].mxu1 }
 0x92b   : > { %v13733_v36 = vpop.f32.mrb[109].mxu1  ;;  %31254 = vmatmul.mubr.msk.f32.gmra.mrb[44].mxu1 %vm5559_vm5, %v14960_v8 }
 0x92c   : > { %31256 = vmatprep.mubr.msk.f32.mxu1 %vm5559_vm5, %v14961_v62 }
 0x92f   : > { %31257 = vmatmul.mubr.msk.f32.gmra.mrb[162].mxu1 %vm5559_vm5, %v14962_v14  ;;  %v41176_v14 = vld [vmem:[#allocation15_spill] sm:$0xff] }
 0x930   : > { %31259 = vmatprep.mubr.msk.f32.mxu1 %vm5559_vm5, %v14963_v28  ;;  %v928_v28 = vand.u32 31, %v41176_v14  ;;  %v536_v11 = vadd.s32 32, %v41176_v14  ;;  %v37833_v24 = vadd.s32 64, %v41176_v14 }
 0x932   : > { %v31094_v55 = vpop.f32.mrb[110].mxu1  ;;  %41184 = vst [vmem:[#allocation5_spill] sm:$0xff] %v37833_v24  ;;  %v984_v45 = vand.u32 31, %v37833_v24 }
 0x933   : > { %v13753_v40 = vpop.f32.mrb[111].mxu1  ;;  %31260 = vmatmul.mubr.msk.f32.gmra.mrb[48].mxu1 %vm5559_vm5, %v14964_v32  ;;  %v37814_v32 = vand.u32 1, %v928_v28  ;;  %v41178_v55 = vld [vmem:[#allocation18_spill] sm:$0xff] }
 0x934   : > { %31262 = vmatprep.mubr.msk.f32.mxu1 %vm5559_vm5, %v14965_v4  ;;  %v963_v4 = vand.u32 31, %v41178_v55  ;;  %v41179_v40 = vmov 0  ;;  %v37867_v19 = vand.u32 1, %v984_v45  ;;  %v37904_v55 = vadd.s32 128, %v41176_v14 }
 0x935   : > { %41177 = vst [vmem:[#allocation20_spill] sm:$0xff] %v37814_v32  ;;  %v41180_v40 = vsel %vm37818_vm8, 4294967295, %v41179_v40  ;;  %vm1624_vm9 = vcmp.eq.s32.totalorder %v37814_v32, 0  ;;  %v15378_v32 = vld [vmem:[#allocation3 + $0x26] sm:$0xff] }
 0x936   : > { %41181 = vst [vmem:[#allocation22_spill] sm:$0xff] %v41180_v40  ;;  %vm1265_vm10 = vcmp.lt.s32.totalorder %v963_v4, 14  ;;  %41189 = vst [vmem:[#allocation8_spill] sm:$0xff] %v37867_v19  ;;  %vm1632_vm1 = vcmp.eq.s32.totalorder %v37867_v19, 0  ;;  %v15377_v19 = vld [vmem:[#allocation3 + $0x1e] sm:$0xff] }
 0x937   : > { %31263 = vmatmul.mubr.msk.f32.gmra.mrb[164].mxu1 %vm5559_vm5, %v14966_v21  ;;  %41197 = vst [vmem:[#allocation16_spill] sm:$0xff] %v37904_v55 }
 0x938   : > { %31265 = vmatprep.mubr.msk.f32.mxu1 %vm5559_vm5, %v13844_v13  ;;  %v15403_v13 = vld [vmem:[%s40491_s5] sm:$0xff] }
 0x93a   : > { %v31102_v6 = vpop.f32.mrb[112].mxu1 }
 0x93b   : > { %v14008_v3 = vpop.f32.mrb[113].mxu1  ;;  %31266 = vmatmul.mubr.msk.f32.gmra.mrb[52].mxu1 %vm5559_vm5, %v13845_v31  ;;  %v32643_v31 = vpack.c.bf16 %v15404_v9, %v15403_v13 }
 0x93d   : > { %32644 = vmatprep.subr.bf16.mxu0 %v32643_v31 }
 0x93e   : > { %32646 = vmatpush3.bf16.msra.mxu0 %v32643_v31 }
 0x93f   : > { %32648 = vmatprep.subr.bf16.mxu0 %v37809_v26 }
 0x942   : > { %v31108_v52 = vpop.f32.mrb[114].mxu1 }
 0x943   : > { %v14028_v10 = vpop.f32.mrb[115].mxu1  ;;  %v1327_v52 = vand.u32 1, %v963_v4 }
 0x944   : > { %v956_v10 = vand.u32 31, %v536_v11 }
 0x945   : > { %vm1629_vm11 = vcmp.eq.s32.totalorder %v1327_v52, 0 }
 0x946   : > { %vm37835_vm12 = vmand %vm1265_vm10, %vm1629_vm11 }
 0x947   : > { %v41186_v15 = vsel %vm37835_vm12, 4294967295, %v41185_v15 }
 0x948   : > { %41187 = vst [vmem:[#allocation6_spill] sm:$0xff] %v41186_v15 }
 0x94a   : > { %v31114_v1 = vpop.f32.mrb[116].mxu1 }
 0x94b   : > { %v14048_v42 = vpop.f32.mrb[117].mxu1 }
 0x952   : > { %v31120_v61 = vpop.f32.mrb[118].mxu1 }
 0x953   : > { %v14068_v25 = vpop.f32.mrb[119].mxu1 }
 0x95a   : > { %v31126_v46 = vpop.f32.mrb[120].mxu1 }
 0x95b   : > { %v14088_v41 = vpop.f32.mrb[121].mxu1 }
 0x95c   : > { %v37829_v41 = vand.u32 1, %v956_v10 }
 0x95e   : > { %41182 = vst [vmem:[#allocation24_spill] sm:$0xff] %v37829_v41  ;;  %vm1628_vm13 = vcmp.eq.s32.totalorder %v37829_v41, 0 }
 0x962   : > { %v31132_v47 = vpop.f32.mrb[122].mxu1 }
 0x963   : > { %v14108_v39 = vpop.f32.mrb[123].mxu1  ;;  %v41183_v47 = vld [vmem:[#allocation25_spill] sm:$0xff] }
 0x964   : > { %v991_v39 = vand.u32 31, %v41183_v47 }
 0x966   : > { %vm1269_vm14 = vcmp.lt.s32.totalorder %v991_v39, 14 }
 0x96a   : > { %v31138_v58 = vpop.f32.mrb[124].mxu1 }
 0x96b   : > { %v14128_v50 = vpop.f32.mrb[125].mxu1  ;;  %v1355_v58 = vand.u32 1, %v991_v39 }
 0x96d   : > { %vm1633_vm15 = vcmp.eq.s32.totalorder %v1355_v58, 0 }
 0x96e   : > { %vm37875_vm0 = vmand %vm1269_vm14, %vm1633_vm15 }
 0x972   : > { %v31146_v63 = vpop.f32.mrb[126].mxu1 }
 0x973   : > { %v14383_v23 = vpop.f32.mrb[127].mxu1  ;;  %v37843_v63 = vld [vmem:[#allocation3 + $0x46] sm:$0xff] }
 0x97a   : > { %v31152_v18 = vpop.f32.mrb[128].mxu1 }
 0x97b   : > { %v14403_v27 = vpop.f32.mrb[129].mxu1 }
 0x982   : > { %v31158_v56 = vpop.f32.mrb[130].mxu1 }
 0x983   : > { %v14423_v5 = vpop.f32.mrb[131].mxu1  ;;  %v37851_v56 = vld [vmem:[#allocation3 + $0x42] sm:$0xff] }
 0x98a   : > { %v31164_v20 = vpop.f32.mrb[132].mxu1 }
 0x98b   : > { %v14443_v51 = vpop.f32.mrb[133].mxu1 }
 0x992   : > { %v31170_v29 = vpop.f32.mrb[134].mxu1 }
 0x993   : > { %v14463_v12 = vpop.f32.mrb[135].mxu1  ;;  %v41188_v29 = vld [vmem:[#allocation7_spill] sm:$0xff] }
 0x994   : > { %v1019_v12 = vand.u32 31, %v41188_v29 }
 0x996   : > { %vm37884_vm2 = vcmp.lt.s32.totalorder %v1019_v12, 14 }
 0x99a   : > { %v31176_v57 = vpop.f32.mrb[136].mxu1 }
 0x99b   : > { %v14483_v33 = vpop.f32.mrb[137].mxu1  ;;  %v544_v57 = vadd.s32 96, %v41176_v14 }
 0x9a2   : > { %v31182_v7 = vpop.f32.mrb[138].mxu1 }
 0x9a3   : > { %v14503_v53 = vpop.f32.mrb[139].mxu1  ;;  %v37873_v7 = vld [vmem:[#allocation3 + $0x48] sm:$0xff] }
 0x9a4   : > { %v41190_v53 = vmov 0 }
 0x9a5   : > { %v41191_v53 = vsel %vm37875_vm0, 4294967295, %v41190_v53 }
 0x9a6   : > { %41192 = vst [vmem:[#allocation10_spill] sm:$0xff] %v41191_v53 }
 0x9aa   : > { %v31190_v0 = vpop.f32.mrb[140].mxu1 }
 0x9ab   : > { %v14758_v44 = vpop.f32.mrb[141].mxu1 }
 0x9ac   : > { %v1383_v44 = vand.u32 1, %v1019_v12 }
 0x9ae   : > { %vm1637_vm3 = vcmp.eq.s32.totalorder %v1383_v44, 0 }
 0x9af   : > { %vm37921_vm6 = vmand %vm37884_vm2, %vm1637_vm3 }
 0x9b2   : > { %v31196_v54 = vpop.f32.mrb[142].mxu1 }
 0x9b3   : > { %v14778_v16 = vpop.f32.mrb[143].mxu1  ;;  %v1012_v54 = vand.u32 31, %v544_v57 }
 0x9ba   : > { %v31202_v34 = vpop.f32.mrb[144].mxu1 }
 0x9bb   : > { %v14798_v30 = vpop.f32.mrb[145].mxu1 }
 0x9c2   : > { %v31208_v8 = vpop.f32.mrb[146].mxu1 }
 0x9c3   : > { %v14818_v49 = vpop.f32.mrb[147].mxu1 }
 0x9c4   : > { %v37970_v49 = vld [vmem:[#allocation3 + $0xa0] sm:$0xff] }
 0x9c5   : > { %41206 = vst [vmem:[#allocation36_spill] sm:$0xff] %v37970_v49 }
 0x9ca   : > { %v31214_v62 = vpop.f32.mrb[148].mxu1 }
 0x9cb   : > { %v14838_v22 = vpop.f32.mrb[149].mxu1 }
 0x9d2   : > { %v31220_v36 = vpop.f32.mrb[150].mxu1 }
 0x9d3   : > { %v14858_v48 = vpop.f32.mrb[151].mxu1 }
 0x9d4   : > { %v37893_v48 = vand.u32 1, %v1012_v54 }
 0x9d6   : > { %41195 = vst [vmem:[#allocation12_spill] sm:$0xff] %v37893_v48  ;;  %vm1636_vm7 = vcmp.eq.s32.totalorder %v37893_v48, 0 }
 0x9da   : > { %v31226_v2 = vpop.f32.mrb[152].mxu1 }
 0x9db   : > { %v14878_v37 = vpop.f32.mrb[153].mxu1  ;;  %v41196_v2 = vld [vmem:[#allocation9_spill] sm:$0xff] }
 0x9dc   : > { %v1047_v37 = vand.u32 31, %v41196_v2  ;;  %v41221_v2 = vmov 0.0  }
 0x9de   : > { %v31231_v21 = vpop.f32.mrb[28].mxu1  ;;  %vm1277_vm10 = vcmp.lt.s32.totalorder %v1047_v37, 14 }
 0x9df   : > { %v15291_v6 = vmax.f32 %v31231_v21, 0.0  ;;  %v15123_v3 = vpop.f32.mrb[29].mxu1  ;;  %v37916_v21 = vld [vmem:[#allocation3 + $0x68] sm:$0xff] }
 0x9e0   : > { %v15290_v1 = vmax.f32 %v15123_v3, 0.0 }
 0x9e1   : > { %v15319_v42 = vsel %vm37818_vm8, %v15291_v6, 0.0  ;;  %v41198_v6 = vmov 0 }
 0x9e2   : > { %15348 = vst.msk [vmem:[#allocation3 + $0x38] sm:$0xff] %vm15346_vm4, %v15319_v42  ;;  %v15318_v61 = vsel %vm1624_vm9, %v15290_v1, 0.0  ;;  %v31234_v25 = vpop.f32.mrb[154].mxu1  ;;  %v41199_v6 = vsel %vm37921_vm6, 4294967295, %v41198_v6  ;;  %v1411_v1 = vand.u32 1, %v1047_v37  ;;  %v1040_v42 = vand.u32 31, %v37904_v55 }
 0x9e3   : > { %15347 = vst.msk [vmem:[#allocation3 + $0x30] sm:$0xff] %vm15346_vm4, %v15318_v61  ;;  %v15133_v46 = vpop.f32.mrb[155].mxu1  ;;  %41200 = vst [vmem:[#allocation26_spill] sm:$0xff] %v41199_v6  ;;  %v37929_v25 = vld [vmem:[#allocation3 + $0x80] sm:$0xff]  ;;  %v15376_v6 = vld [vmem:[#allocation3 + $0x16] sm:$0xff] }
 0x9e4   : > { %v37931_v46 = vld [vmem:[#allocation3 + $0x86] sm:$0xff]  ;;  %vm1641_vm11 = vcmp.eq.s32.totalorder %v1411_v1, 0  ;;  %v37955_v57 = vand.u32 1, %v1040_v42 }
 0x9e5   : > { %vm37963_vm14 = vmand %vm1277_vm10, %vm1641_vm11 }
 0x9e6   : > { %v31237_v13 = vpop.f32.mrb[32].mxu1  ;;  %41202 = vst [vmem:[#allocation29_spill] sm:$0xff] %v37955_v57  ;;  %vm40720_vm15 = vcmp.eq.s32.totalorder %v37955_v57, 0 }
 0x9e7   : > { %v15295_v9 = vmax.f32 %v31237_v13, 0.0  ;;  %v15143_v31 = vpop.f32.mrb[33].mxu1 }
 0x9e8   : > { %v15294_v50 = vmax.f32 %v15143_v31, 0.0  ;;  %v37939_v31 = vld [vmem:[#allocation3 + $0x82] sm:$0xff] }
 0x9e9   : > { %v15323_v23 = vsel %vm37835_vm12, %v15295_v9, 0.0  ;;  %v37847_v18 = vld [vmem:[#allocation3 + $0x3e] sm:$0xff] }
 0x9ea   : > { %v37849_v27 = vld [vmem:[#allocation3 + $0x3a] sm:$0xff]  ;;  %15352 = vst.msk [vmem:[#allocation3 + $0x58] sm:$0xff] %vm15346_vm4, %v15323_v23  ;;  %v15322_v5 = vsel %vm1628_vm13, %v15294_v50, 0.0  ;;  %v31240_v20 = vpop.f32.mrb[156].mxu1  ;;  %v37856_v51 = vld [vmem:[#allocation3 + $0x30] sm:$0xff] }
 0x9eb   : > { %18826 = vst.msk [vmem:[#allocation3 + $0x40] sm:$0xff] %vm15346_vm4, %v40714_v35  ;;  %15351 = vst.msk [vmem:[#allocation3 + $0x50] sm:$0xff] %vm15346_vm4, %v15322_v5  ;;  %v15153_v33 = vpop.f32.mrb[157].mxu1  ;;  %31281 = vmatprep.mubr.msk.f32.mxu0 %vm15346_vm4, %v37856_v51  ;;  %v37865_v59 = vld [vmem:[#allocation3 + $0x38] sm:$0xff]  ;;  %v41201_v23 = vld [vmem:[#allocation19_spill] sm:$0xff]  ;;  %v552_v20 = vadd.s32 160, %v41176_v14 }
 0x9ec   : > { %31282 = vmatmul.mubr.msk.f32.gmra.mrb[88].mxu0 %vm15346_vm4, %v37865_v59  ;;  %v1075_v5 = vand.u32 31, %v41201_v23  ;;  %v37961_v33 = vld [vmem:[#allocation3 + $0x88] sm:$0xff] }
 0x9ed   : > { %31284 = vmatprep.mubr.msk.f32.mxu0 %vm15346_vm4, %v37841_v38 }
 0x9ee   : > { %v31243_v0 = vpop.f32.mrb[36].mxu1  ;;  %v1439_v54 = vand.u32 1, %v1075_v5  ;;  %vm37987_vm2 = vcmp.lt.s32.totalorder %v1075_v5, 14  ;;  %v38002_v5 = vadd.s32 192, %v41176_v14  ;;  %v38072_v14 = vld [vmem:[#allocation3 + $0xe0] sm:$0xff] }
 0x9ef   : > { %v15299_v16 = vmax.f32 %v31243_v0, 0.0  ;;  %v15163_v34 = vpop.f32.mrb[37].mxu1  ;;  %v41203_v0 = vmov 0  ;;  %41228 = vst [vmem:[#allocation28_spill] sm:$0xff] %v38072_v14 }
 0x9f0   : > { %v15298_v30 = vmax.f32 %v15163_v34, 0.0  ;;  %31285 = vmatmul.mubr.msk.f32.gmra.mrb[90].mxu0 %vm15346_vm4, %v37873_v7  ;;  %v41204_v0 = vsel %vm37963_vm14, 4294967295, %v41203_v0  ;;  %vm1645_vm3 = vcmp.eq.s32.totalorder %v1439_v54, 0  ;;  %41212 = vst [vmem:[#allocation41_spill] sm:$0xff] %v38002_v5  ;;  %v38029_v54 = vld [vmem:[#allocation3 + $0xc6] sm:$0xff] }
 0x9f1   : > { %v15327_v8 = vsel %vm37875_vm0, %v15299_v16, 0.0  ;;  %v37900_v28 = vld [vmem:[#allocation3 + $0x58] sm:$0xff]  ;;  %41205 = vst [vmem:[#allocation33_spill] sm:$0xff] %v41204_v0  ;;  %v1068_v16 = vand.u32 31, %v552_v20  ;;  %vm38019_vm10 = vmand %vm37987_vm2, %vm1645_vm3  ;;  %v38082_v0 = vld [vmem:[#allocation3 + $0xe2] sm:$0xff] }
 0x9f2   : > { %15356 = vst.msk [vmem:[#allocation3 + $0x78] sm:$0xff] %vm15346_vm4, %v15327_v8  ;;  %v15326_v62 = vsel %vm1632_vm1, %v15298_v30, 0.0  ;;  %v31246_v22 = vpop.f32.mrb[158].mxu1  ;;  %v37891_v36 = vld [vmem:[#allocation3 + $0x50] sm:$0xff] }
 0x9f3   : > { %15355 = vst.msk [vmem:[#allocation3 + $0x70] sm:$0xff] %vm15346_vm4, %v15326_v62  ;;  %v15173_v17 = vpop.f32.mrb[159].mxu1  ;;  %31287 = vmatprep.mubr.msk.f32.mxu0 %vm15346_vm4, %v37891_v36  ;;  %v37906_v4 = vld [vmem:[#allocation3 + $0x4e] sm:$0xff]  ;;  %v37972_v62 = vld [vmem:[#allocation3 + $0xa6] sm:$0xff] }
 0x9f4   : > { %v37908_v11 = vld [vmem:[#allocation3 + $0x4a] sm:$0xff]  ;;  %31288 = vmatmul.mubr.msk.f32.gmra.mrb[92].mxu0 %vm15346_vm4, %v37900_v28 }
 0x9f5   : > { %18827 = vst.msk [vmem:[#allocation3 + $0x48] sm:$0xff] %vm15346_vm4, %v40714_v35  ;;  %31290 = vmatprep.mubr.msk.f32.mxu0 %vm15346_vm4, %v37895_v60 }
 0x9f6   : > { %v31249_v3 = vpop.f32.mrb[40].mxu1 }
 0x9f7   : > { %v15303_v52 = vmax.f32 %v31249_v3, 0.0  ;;  %v15183_v10 = vpop.f32.mrb[41].mxu1  ;;  %v37980_v3 = vld [vmem:[#allocation3 + $0xa2] sm:$0xff] }
 0x9f8   : > { %v15302_v61 = vmax.f32 %v15183_v10, 0.0  ;;  %31291 = vmatmul.mubr.msk.f32.gmra.mrb[94].mxu0 %vm15346_vm4, %v37916_v21 }
 0x9f9   : > { %v15331_v39 = vsel %vm37921_vm6, %v15303_v52, 0.0  ;;  %v37935_v13 = vld [vmem:[#allocation3 + $0x7e] sm:$0xff] }
 0x9fa   : > { %v37937_v9 = vld [vmem:[#allocation3 + $0x7a] sm:$0xff]  ;;  %15360 = vst.msk [vmem:[#allocation3 + $0x98] sm:$0xff] %vm15346_vm4, %v15331_v39  ;;  %v15330_v58 = vsel %vm1636_vm7, %v15302_v61, 0.0  ;;  %v31252_v45 = vpop.f32.mrb[160].mxu1  ;;  %v37944_v50 = vld [vmem:[#allocation3 + $0x70] sm:$0xff]  ;;  %v37991_v61 = vand.u32 1, %v1068_v16 }
 0x9fb   : > { %18834 = vst.msk [vmem:[#allocation3 + $0x80] sm:$0xff] %vm15346_vm4, %v40714_v35  ;;  %15359 = vst.msk [vmem:[#allocation3 + $0x90] sm:$0xff] %vm15346_vm4, %v15330_v58  ;;  %v15193_v29 = vpop.f32.mrb[161].mxu1  ;;  %31293 = vmatprep.mubr.msk.f32.mxu0 %vm15346_vm4, %v37944_v50  ;;  %v37953_v12 = vld [vmem:[#allocation3 + $0x78] sm:$0xff]  ;;  %v41211_v45 = vld [vmem:[#allocation30_spill] sm:$0xff]  ;;  %v41214_v16 = vmov 0 }
 0x9fc   : > { %31294 = vmatmul.mubr.msk.f32.gmra.mrb[96].mxu0 %vm15346_vm4, %v37953_v12  ;;  %41210 = vst [vmem:[#allocation40_spill] sm:$0xff] %v37991_v61  ;;  %v1103_v23 = vand.u32 31, %v41211_v45  ;;  %v41215_v16 = vsel %vm38019_vm10, 4294967295, %v41214_v16  ;;  %vm40719_vm11 = vcmp.eq.s32.totalorder %v37991_v61, 0  ;;  %v38037_v45 = vld [vmem:[#allocation3 + $0xc2] sm:$0xff] }
 0x9fd   : > { %31296 = vmatprep.mubr.msk.f32.mxu0 %vm15346_vm4, %v37929_v25  ;;  %41216 = vst [vmem:[#allocation44_spill] sm:$0xff] %v41215_v16  ;;  %41219 = vst [vmem:[#allocation11_spill] sm:$0xff] %v38037_v45 }
 0x9fe   : > { %v31255_v44 = vpop.f32.mrb[44].mxu1  ;;  %vm1285_vm2 = vcmp.lt.s32.totalorder %v1103_v23, 14 }
 0x9ff   : > { %v15307_v34 = vmax.f32 %v31255_v44, 0.0  ;;  %v15203_v30 = vpop.f32.mrb[45].mxu1  ;;  %v38014_v44 = vld [vmem:[#allocation3 + $0xa8] sm:$0xff] }
 0xa00   : > { %v15306_v8 = vmax.f32 %v15203_v30, 0.0  ;;  %31297 = vmatmul.mubr.msk.f32.gmra.mrb[98].mxu0 %vm15346_vm4, %v37961_v33  ;;  %41213 = vst [vmem:[#allocation42_spill] sm:$0xff] %v38014_v44 }
 0xa01   : > { %v15335_v22 = vsel %vm37963_vm14, %v15307_v34, 0.0  ;;  %v37976_v17 = vld [vmem:[#allocation3 + $0x9e] sm:$0xff] }
 0xa02   : > { %v37978_v37 = vld [vmem:[#allocation3 + $0x9a] sm:$0xff]  ;;  %15364 = vst.msk [vmem:[#allocation3 + $0xb8] sm:$0xff] %vm15346_vm4, %v15335_v22  ;;  %v15334_v52 = vsel %vm40720_vm15, %v15306_v8, 0.0  ;;  %v31258_v10 = vpop.f32.mrb[162].mxu1  ;;  %v37985_v1 = vld [vmem:[#allocation3 + $0x90] sm:$0xff]  ;;  %v1467_v22 = vand.u32 1, %v1103_v23 }
 0xa03   : > { %41207 = vst [vmem:[#allocation39_spill] sm:$0xff] %v37978_v37  ;;  %18838 = vst.msk [vmem:[#allocation3 + $0xa0] sm:$0xff] %vm15346_vm4, %v40714_v35  ;;  %v15213_v39 = vpop.f32.mrb[163].mxu1  ;;  %31299 = vmatprep.mubr.msk.f32.mxu0 %vm15346_vm4, %v37985_v1  ;;  %v37998_v58 = vld [vmem:[#allocation3 + $0x98] sm:$0xff]  ;;  %v38004_v20 = vld [vmem:[#allocation3 + $0x8e] sm:$0xff] }
 0xa04   : > { %15363 = vst.msk [vmem:[#allocation3 + $0xb0] sm:$0xff] %vm15346_vm4, %v15334_v52  ;;  %v38006_v29 = vld [vmem:[#allocation3 + $0x8a] sm:$0xff]  ;;  %31300 = vmatmul.mubr.msk.f32.gmra.mrb[100].mxu0 %vm15346_vm4, %v37998_v58  ;;  %v1096_v52 = vand.u32 31, %v38002_v5  ;;  %v38027_v39 = vld [vmem:[#allocation3 + $0xc0] sm:$0xff]  ;;  %vm1649_vm3 = vcmp.eq.s32.totalorder %v1467_v22, 0  ;;  %v38167_v40 = vld [vmem:[#allocation3 + $0x96] sm:$0xff] }
 0xa05   : > { %18835 = vst.msk [vmem:[#allocation3 + $0x88] sm:$0xff] %vm15346_vm4, %v40714_v35  ;;  %31302 = vmatprep.mubr.msk.f32.mxu0 %vm15346_vm4, %v37970_v49  ;;  %41217 = vst [vmem:[#allocation46_spill] sm:$0xff] %v38027_v39  ;;  %v38063_v23 = vld [vmem:[#allocation3 + $0xc8] sm:$0xff]  ;;  %v38205_v49 = vld [vmem:[#allocation3 + $0x32] sm:$0xff] }
 0xa06   : > { %v31261_v34 = vpop.f32.mrb[48].mxu1  ;;  %41224 = vst [vmem:[#allocation23_spill] sm:$0xff] %v38063_v23 }
 0xa07   : > { %v15311_v30 = vmax.f32 %v31261_v34, 0.0  ;;  %v15223_v8 = vpop.f32.mrb[49].mxu1 }
 0xa08   : > { %v15310_v10 = vmax.f32 %v15223_v8, 0.0  ;;  %31303 = vmatmul.mubr.msk.f32.gmra.mrb[102].mxu0 %vm15346_vm4, %v38014_v44  ;;  %v16017_v44 = vld [vmem:[#allocation3 + $0x2a] sm:$0xff] }
 0xa09   : > { %v15339_v42 = vsel %vm38019_vm10, %v15311_v30, 0.0  ;;  %v38033_v35 = vld [vmem:[#allocation3 + $0xbe] sm:$0xff] }
 0xa0a   : > { %v38035_v34 = vld [vmem:[#allocation3 + $0xba] sm:$0xff]  ;;  %15368 = vst.msk [vmem:[#allocation3 + $0xd8] sm:$0xff] %vm15346_vm4, %v15339_v42  ;;  %v15338_v8 = vsel %vm40719_vm11, %v15310_v10, 0.0  ;;  %v31264_v5 = vpop.f32.mrb[164].mxu1  ;;  %v38051_v42 = vand.u32 1, %v1096_v52  ;;  %vm38065_vm11 = vmand %vm1285_vm2, %vm1649_vm3  ;;  %v41225_v10 = vmov 0 }
 0xa0b   : > { %41218 = vst [vmem:[#allocation48_spill] sm:$0xff] %v38035_v34  ;;  %v38042_v55 = vld [vmem:[#allocation3 + $0xb0] sm:$0xff]  ;;  %18842 = vst.msk [vmem:[#allocation3 + $0xc0] sm:$0xff] %vm15346_vm4, %v41221_v2  ;;  %v15233_v30 = vpop.f32.mrb[165].mxu1  ;;  %v38049_v24 = vld [vmem:[#allocation3 + $0xb8] sm:$0xff]  ;;  %v41226_v10 = vsel %vm38065_vm11, 4294967295, %v41225_v10 }
 0xa0c   : > { %41220 = vst [vmem:[#allocation13_spill] sm:$0xff] %v38042_v55  ;;  %15367 = vst.msk [vmem:[#allocation3 + $0xd0] sm:$0xff] %vm15346_vm4, %v15338_v8  ;;  %31305 = vmatprep.mubr.msk.f32.mxu0 %vm15346_vm4, %v38042_v55  ;;  %v38053_v47 = vld [vmem:[#allocation3 + $0xae] sm:$0xff]  ;;  %vm1648_vm15 = vcmp.eq.s32.totalorder %v38051_v42, 0 }
 0xa0d   : > { %41222 = vst [vmem:[#allocation14_spill] sm:$0xff] %v38049_v24  ;;  %41223 = vst [vmem:[#allocation21_spill] sm:$0xff] %v38051_v42  ;;  %v38055_v5 = vld [vmem:[#allocation3 + $0xaa] sm:$0xff]  ;;  %31306 = vmatmul.mubr.msk.f32.gmra.mrb[104].mxu0 %vm15346_vm4, %v38049_v24  ;;  %v26967_v42 = vld [vmem:[%s40491_s5 + $0x38] sm:$0xff] }
 0xa0e   : > { %18839 = vst.msk [vmem:[#allocation3 + $0xa8] sm:$0xff] %vm15346_vm4, %v41221_v2  ;;  %31308 = vmatprep.mubr.msk.f32.mxu0 %vm15346_vm4, %v38027_v39  ;;  %41227 = vst [vmem:[#allocation27_spill] sm:$0xff] %v41226_v10  ;;  %v31267_v22 = vpop.f32.mrb[52].mxu1  ;;  %v16015_v39 = vld [vmem:[#allocation3 + $0x1a] sm:$0xff]  ;;  %v16016_v24 = vld [vmem:[#allocation3 + $0x22] sm:$0xff] }
 0xa0f   : > { %v15315_v52 = vmax.f32 %v31267_v22, 0.0  ;;  %v15243_v8 = vpop.f32.mrb[53].mxu1 }
 0xa10   : > { %v15314_v30 = vmax.f32 %v15243_v8, 0.0 }
 0xa11   : > { %31309 = vmatmul.mubr.msk.f32.gmra.mrb[106].mxu0 %vm15346_vm4, %v38063_v23  ;;  %v15343_v61 = vsel %vm38065_vm11, %v15315_v52, 0.0  ;;  %v38078_v16 = vld [vmem:[#allocation3 + $0xde] sm:$0xff]  ;;  %v26997_v23 = vld [vmem:[%s40491_s5 + $0x48] sm:$0xff] }
 0xa12   : > { %41230 = vst [vmem:[#allocation32_spill] sm:$0xff] %v38078_v16  ;;  %v38080_v57 = vld [vmem:[#allocation3 + $0xda] sm:$0xff]  ;;  %15372 = vst.msk [vmem:[#allocation3 + $0xf8] sm:$0xff] %vm15346_vm4, %v15343_v61  ;;  %v15342_v22 = vsel %vm1648_vm15, %v15314_v30, 0.0  ;;  %v38106_v61 = vld [vmem:[#allocation3 + $0xe8] sm:$0xff] }
 0xa13   : > { %v38087_v8 = vld [vmem:[#allocation3 + $0xd0] sm:$0xff]  ;;  %18846 = vst.msk [vmem:[#allocation3 + $0xe0] sm:$0xff] %vm15346_vm4, %v41221_v2  ;;  %15371 = vst.msk [vmem:[#allocation3 + $0xf0] sm:$0xff] %vm15346_vm4, %v15342_v22  ;;  %v38094_v52 = vld [vmem:[#allocation3 + $0xd8] sm:$0xff] }
 0xa14   : > { %41231 = vst [vmem:[#allocation34_spill] sm:$0xff] %v38087_v8  ;;  %31311 = vmatprep.mubr.msk.f32.mxu0 %vm15346_vm4, %v38087_v8  ;;  %41232 = vst [vmem:[#allocation35_spill] sm:$0xff] %v38094_v52  ;;  %v38096_v10 = vld [vmem:[#allocation3 + $0xce] sm:$0xff]  ;;  %v26996_v8 = vld [vmem:[%s40491_s5 + $0x40] sm:$0xff] }
 0xa15   : > { %v38098_v48 = vld [vmem:[#allocation3 + $0xca] sm:$0xff]  ;;  %31312 = vmatmul.mubr.msk.f32.gmra.mrb[108].mxu0 %vm15346_vm4, %v38094_v52  ;;  %41233 = vst [vmem:[#allocation38_spill] sm:$0xff] %v38106_v61  ;;  %v38177_v52 = vld [vmem:[#allocation3 + $0xb6] sm:$0xff]  ;;  %v32655_v55 = vpack.c.bf16 %v26997_v23, %v26996_v8 }
 0xa16   : > { %18843 = vst.msk [vmem:[#allocation3 + $0xc8] sm:$0xff] %vm15346_vm4, %v41221_v2  ;;  %31314 = vmatprep.mubr.msk.f32.mxu0 %vm15346_vm4, %v38072_v14  ;;  %v15375_v30 = vld [vmem:[#allocation3 + $0xe] sm:$0xff] }
 0xa17   : > { %v26966_v22 = vld [vmem:[%s40491_s5 + $0x30] sm:$0xff] }
 0xa18   : > { %v32651_v53 = vpack.c.bf16 %v26967_v42, %v26966_v22  ;;  %v38131_v42 = vld [vmem:[#allocation3 + $0x36] sm:$0xff] }
 0xa19   : > { %31315 = vmatmul.mubr.msk.f32.gmra.mrb[110].mxu0 %vm15346_vm4, %v38106_v61  ;;  %v38157_v22 = vld [vmem:[#allocation3 + $0x76] sm:$0xff]  ;;  %v31280_v61 = vpop.f32.mrb[86].mxu0 }
 0xa1a   : > { %31321 = vmatprep.mubr.msk.f32.mxu0 %vm15346_vm4, %v15375_v30  ;;  %v38117_v41 = vld [vmem:[#allocation3 + $0xea] sm:$0xff]  ;;  %v15596_v14 = vpop.f32.mrb[87].mxu0  ;;  %v38187_v61 = vld [vmem:[#allocation3 + $0xd6] sm:$0xff] }
 0xa1b   : > { %v38119_v15 = vld [vmem:[#allocation3 + $0xee] sm:$0xff] }
 0xa1c   : > { %41234 = vst [vmem:[#allocation43_spill] sm:$0xff] %v38119_v15  ;;  %18847 = vst.msk [vmem:[#allocation3 + $0xe8] sm:$0xff] %vm15346_vm4, %v41221_v2  ;;  %v38127_v30 = vld [vmem:[#allocation3 + $0x2e] sm:$0xff] }
 0xa1d   : > { %31322 = vmatmul.mubr.msk.f32.vlgmr.msra.gmra.mrb[84].mxu0 %vm15346_vm4, %v15376_v6  ;;  %v38153_v6 = vld [vmem:[#allocation3 + $0x6e] sm:$0xff] }
 0xa1e   : > { %32650 = vmatpush3.bf16.msra.mxu0 %v37809_v26  ;;  %31324 = vmatprep.mubr.msk.f32.mxu0 %vm15346_vm4, %v15377_v19  ;;  %v38141_v26 = vld [vmem:[#allocation3 + $0x56] sm:$0xff]  ;;  %v38149_v19 = vld [vmem:[#allocation3 + $0x66] sm:$0xff] }
 0xa1f   : > { %32652 = vmatprep.subr.bf16.mxu0 %v32651_v53  ;;  %v16014_v14 = vld [vmem:[#allocation3 + $0x12] sm:$0xff] }
 0xa20   : > { %v38231_v23 = vld [vmem:[#allocation3 + $0x72] sm:$0xff] }
 0xa21   : > { %31325 = vmatmul.mubr.msk.f32.gmra.mrb[112].mxu0 %vm15346_vm4, %v15378_v32  ;;  %v38145_v32 = vld [vmem:[#allocation3 + $0x5e] sm:$0xff]  ;;  %v38241_v8 = vld [vmem:[#allocation3 + $0x92] sm:$0xff] }
 0xa22   : > { %31327 = vmatprep.mubr.msk.f32.mxu0 %vm15346_vm4, %v38127_v30 }
 0xa25   : > { %31328 = vmatmul.mubr.msk.f32.gmra.mrb[88].mxu0 %vm15346_vm4, %v38131_v42 }
 0xa26   : > { %31330 = vmatprep.mubr.msk.f32.mxu0 %vm15346_vm4, %v37847_v18 }
 0xa29   : > { %31331 = vmatmul.mubr.msk.f32.gmra.mrb[114].mxu0 %vm15346_vm4, %v37843_v63 }
 0xa2a   : > { %31333 = vmatprep.mubr.msk.f32.mxu0 %vm15346_vm4, %v37906_v4 }
 0xa2d   : > { %31334 = vmatmul.mubr.msk.f32.gmra.mrb[92].mxu0 %vm15346_vm4, %v38141_v26 }
 0xa2e   : > { %31336 = vmatprep.mubr.msk.f32.mxu0 %vm15346_vm4, %v38145_v32 }
 0xa31   : > { %31337 = vmatmul.mubr.msk.f32.gmra.mrb[116].mxu0 %vm15346_vm4, %v38149_v19 }
 0xa32   : > { %31339 = vmatprep.mubr.msk.f32.mxu0 %vm15346_vm4, %v38153_v6 }
 0xa35   : > { %31340 = vmatmul.mubr.msk.f32.gmra.mrb[96].mxu0 %vm15346_vm4, %v38157_v22 }
 0xa36   : > { %31342 = vmatprep.mubr.msk.f32.mxu0 %vm15346_vm4, %v37935_v13 }
 0xa39   : > { %31343 = vmatmul.mubr.msk.f32.gmra.mrb[118].mxu0 %vm15346_vm4, %v37931_v46 }
 0xa3a   : > { %31345 = vmatprep.mubr.msk.f32.mxu0 %vm15346_vm4, %v38004_v20 }
 0xa3d   : > { %31346 = vmatmul.mubr.msk.f32.gmra.mrb[100].mxu0 %vm15346_vm4, %v38167_v40 }
 0xa3e   : > { %31348 = vmatprep.mubr.msk.f32.mxu0 %vm15346_vm4, %v37976_v17 }
 0xa41   : > { %31349 = vmatmul.mubr.msk.f32.gmra.mrb[120].mxu0 %vm15346_vm4, %v37972_v62 }
 0xa42   : > { %31351 = vmatprep.mubr.msk.f32.mxu0 %vm15346_vm4, %v38053_v47 }
 0xa45   : > { %31352 = vmatmul.mubr.msk.f32.gmra.mrb[104].mxu0 %vm15346_vm4, %v38177_v52 }
 0xa46   : > { %31354 = vmatprep.mubr.msk.f32.mxu0 %vm15346_vm4, %v38033_v35 }
 0xa49   : > { %31355 = vmatmul.mubr.msk.f32.gmra.mrb[122].mxu0 %vm15346_vm4, %v38029_v54 }
 0xa4a   : > { %31357 = vmatprep.mubr.msk.f32.mxu0 %vm15346_vm4, %v38096_v10 }
 0xa4d   : > { %31358 = vmatmul.mubr.msk.f32.gmra.mrb[108].mxu0 %vm15346_vm4, %v38187_v61 }
 0xa4e   : > { %31360 = vmatprep.mubr.msk.f32.mxu0 %vm15346_vm4, %v38078_v16 }
 0xa51   : > { %31361 = vmatmul.mubr.msk.f32.gmra.mrb[124].mxu0 %vm15346_vm4, %v38074_v43 }
 0xa52   : > { %31367 = vmatprep.mubr.msk.f32.mxu0 %vm15346_vm4, %v16014_v14  ;;  %v38251_v14 = vld [vmem:[#allocation3 + $0xb2] sm:$0xff] }
 0xa55   : > { %31368 = vmatmul.mubr.msk.f32.vlgmr.msra.gmra.mrb[84].mxu0 %vm15346_vm4, %v16015_v39  ;;  %v38227_v39 = vld [vmem:[#allocation3 + $0x6a] sm:$0xff] }
 0xa56   : > { %32654 = vmatpush3.bf16.msra.mxu0 %v32651_v53  ;;  %31370 = vmatprep.mubr.msk.f32.mxu0 %vm15346_vm4, %v16016_v24  ;;  %v38215_v53 = vld [vmem:[#allocation3 + $0x52] sm:$0xff]  ;;  %v38219_v24 = vld [vmem:[#allocation3 + $0x62] sm:$0xff] }
 0xa57   : > { %32656 = vmatprep.subr.bf16.mxu0 %v32655_v55 }
 0xa59   : > { %31371 = vmatmul.mubr.msk.f32.gmra.mrb[126].mxu0 %vm15346_vm4, %v16017_v44  ;;  %v38221_v44 = vld [vmem:[#allocation3 + $0x5a] sm:$0xff] }
 0xa5a   : > { %31373 = vmatprep.mubr.msk.f32.mxu0 %vm15346_vm4, %v38205_v49 }
 0xa5d   : > { %31374 = vmatmul.mubr.msk.f32.gmra.mrb[88].mxu0 %vm15346_vm4, %v37849_v27 }
 0xa5e   : > { %31376 = vmatprep.mubr.msk.f32.mxu0 %vm15346_vm4, %v37851_v56 }
 0xa61   : > { %31377 = vmatmul.mubr.msk.f32.gmra.mrb[128].mxu0 %vm15346_vm4, %v37908_v11 }
 0xa62   : > { %31379 = vmatprep.mubr.msk.f32.mxu0 %vm15346_vm4, %v38215_v53 }
 0xa65   : > { %31380 = vmatmul.mubr.msk.f32.gmra.mrb[92].mxu0 %vm15346_vm4, %v38221_v44 }
 0xa66   : > { %31382 = vmatprep.mubr.msk.f32.mxu0 %vm15346_vm4, %v38219_v24 }
 0xa69   : > { %31383 = vmatmul.mubr.msk.f32.gmra.mrb[130].mxu0 %vm15346_vm4, %v38227_v39 }
 0xa6a   : > { %31385 = vmatprep.mubr.msk.f32.mxu0 %vm15346_vm4, %v38231_v23 }
 0xa6d   : > { %31386 = vmatmul.mubr.msk.f32.gmra.mrb[96].mxu0 %vm15346_vm4, %v37937_v9 }
 0xa6e   : > { %31388 = vmatprep.mubr.msk.f32.mxu0 %vm15346_vm4, %v37939_v31 }
 0xa71   : > { %31389 = vmatmul.mubr.msk.f32.gmra.mrb[132].mxu0 %vm15346_vm4, %v38006_v29 }
 0xa72   : > { %31391 = vmatprep.mubr.msk.f32.mxu0 %vm15346_vm4, %v38241_v8 }
 0xa75   : > { %31392 = vmatmul.mubr.msk.f32.gmra.mrb[100].mxu0 %vm15346_vm4, %v37978_v37  ;;  %v38261_v37 = vld [vmem:[#allocation3 + $0xd2] sm:$0xff] }
 0xa76   : > { %31394 = vmatprep.mubr.msk.f32.mxu0 %vm15346_vm4, %v37980_v3  ;;  %41235 = vst [vmem:[#allocation45_spill] sm:$0xff] %v38261_v37 }
 0xa79   : > { %31395 = vmatmul.mubr.msk.f32.gmra.mrb[134].mxu0 %vm15346_vm4, %v38055_v5 }
 0xa7a   : > { %31397 = vmatprep.mubr.msk.f32.mxu0 %vm15346_vm4, %v38251_v14 }
 0xa7d   : > { %31398 = vmatmul.mubr.msk.f32.gmra.mrb[104].mxu0 %vm15346_vm4, %v38035_v34  ;;  %v27026_v34 = vld [vmem:[%s40491_s5 + $0x50] sm:$0xff] }
 0xa7e   : > { %31400 = vmatprep.mubr.msk.f32.mxu0 %vm15346_vm4, %v38037_v45  ;;  %v27027_v45 = vld [vmem:[%s40491_s5 + $0x58] sm:$0xff] }
 0xa81   : > { %31401 = vmatmul.mubr.msk.f32.gmra.mrb[136].mxu0 %vm15346_vm4, %v38098_v48 }
 0xa82   : > { %31403 = vmatprep.mubr.msk.f32.mxu0 %vm15346_vm4, %v38261_v37  ;;  %v32659_v37 = vpack.c.bf16 %v27027_v45, %v27026_v34  ;;  %v38319_v45 = vld [vmem:[#allocation3 + $0x100] sm:$0xff] }
 0xa83   : > { %41238 = vst [vmem:[#allocation18_spill] sm:$0xff] %v38319_v45  ;;  %v38321_v34 = vld [vmem:[#allocation3 + $0x102] sm:$0xff] }
 0xa85   : > { %31404 = vmatmul.mubr.msk.f32.gmra.mrb[108].mxu0 %vm15346_vm4, %v38080_v57 }
 0xa86   : > { %31406 = vmatprep.mubr.msk.f32.mxu0 %vm15346_vm4, %v38082_v0 }
 0xa89   : > { %31407 = vmatmul.mubr.msk.f32.gmra.mrb[138].mxu0 %vm15346_vm4, %v38117_v41 }
 0xa8a   : > { %31413 = vmatprep.mubr.msk.f32.mxu0 %vm15346_vm4, %v38127_v30  ;;  %v38339_v30 = vld [vmem:[#allocation3 + $0xf6] sm:$0xff] }
 0xa8b   : > { %41239 = vst [vmem:[#allocation7_spill] sm:$0xff] %v38339_v30 }
 0xa8d   : > { %31414 = vmatmul.mubr.msk.f32.vlgmr.msra.gmra.mrb[84].mxu0 %vm15346_vm4, %v38131_v42  ;;  %v27056_v42 = vld [vmem:[%s40491_s5 + $0x60] sm:$0xff] }
 0xa8e   : > { %31416 = vmatprep.mubr.msk.f32.mxu0 %vm15346_vm4, %v37847_v18  ;;  %32658 = vmatpush3.bf16.msra.mxu0 %v32655_v55  ;;  %v38313_v18 = vld [vmem:[#allocation3 + $0xfa] sm:$0xff]  ;;  %v38317_v55 = vld [vmem:[#allocation3 + $0x106] sm:$0xff] }
 0xa8f   : > { %32660 = vmatprep.subr.bf16.mxu0 %v32659_v37  ;;  %41237 = vst [vmem:[#allocation47_spill] sm:$0xff] %v38317_v55 }
 0xa91   : > { %31417 = vmatmul.mubr.msk.f32.gmra.mrb[140].mxu0 %vm15346_vm4, %v37843_v63  ;;  %v38311_v63 = vld [vmem:[#allocation3 + $0xfe] sm:$0xff] }
 0xa92   : > { %31419 = vmatprep.mubr.msk.f32.mxu0 %vm15346_vm4, %v37906_v4  ;;  %41236 = vst [vmem:[#allocation37_spill] sm:$0xff] %v38311_v63  ;;  %18850 = vst.msk [vmem:[#allocation3 + $0x100] sm:$0xff] %vm15346_vm4, %v41221_v2 }
 0xa95   : > { %31420 = vmatmul.mubr.msk.f32.gmra.mrb[88].mxu0 %vm15346_vm4, %v38141_v26 }
 0xa96   : > { %31422 = vmatprep.mubr.msk.f32.mxu0 %vm15346_vm4, %v38145_v32 }
 0xa99   : > { %31423 = vmatmul.mubr.msk.f32.gmra.mrb[142].mxu0 %vm15346_vm4, %v38149_v19 }
 0xa9a   : > { %31425 = vmatprep.mubr.msk.f32.mxu0 %vm15346_vm4, %v38153_v6 }
 0xa9d   : > { %31426 = vmatmul.mubr.msk.f32.gmra.mrb[92].mxu0 %vm15346_vm4, %v38157_v22 }
 0xa9e   : > { %31428 = vmatprep.mubr.msk.f32.mxu0 %vm15346_vm4, %v37935_v13 }
 0xaa1   : > { %31429 = vmatmul.mubr.msk.f32.gmra.mrb[144].mxu0 %vm15346_vm4, %v37931_v46 }
 0xaa2   : > { %31431 = vmatprep.mubr.msk.f32.mxu0 %vm15346_vm4, %v38004_v20 }
 0xaa5   : > { %31432 = vmatmul.mubr.msk.f32.gmra.mrb[96].mxu0 %vm15346_vm4, %v38167_v40 }
 0xaa6   : > { %31434 = vmatprep.mubr.msk.f32.mxu0 %vm15346_vm4, %v37976_v17 }
 0xaa9   : > { %31435 = vmatmul.mubr.msk.f32.gmra.mrb[146].mxu0 %vm15346_vm4, %v37972_v62 }
 0xaaa   : > { %31437 = vmatprep.mubr.msk.f32.mxu0 %vm15346_vm4, %v38053_v47 }
 0xaad   : > { %31438 = vmatmul.mubr.msk.f32.gmra.mrb[100].mxu0 %vm15346_vm4, %v38177_v52 }
 0xaae   : > { %31440 = vmatprep.mubr.msk.f32.mxu0 %vm15346_vm4, %v38033_v35 }
 0xab1   : > { %31441 = vmatmul.mubr.msk.f32.gmra.mrb[148].mxu0 %vm15346_vm4, %v38029_v54 }
 0xab2   : > { %31443 = vmatprep.mubr.msk.f32.mxu0 %vm15346_vm4, %v38096_v10 }
 0xab5   : > { %31444 = vmatmul.mubr.msk.f32.gmra.mrb[104].mxu0 %vm15346_vm4, %v38187_v61 }
 0xab6   : > { %31446 = vmatprep.mubr.msk.f32.mxu0 %vm15346_vm4, %v38078_v16  ;;  %v27057_v16 = vld [vmem:[%s40491_s5 + $0x68] sm:$0xff] }
 0xab9   : > { %31447 = vmatmul.mubr.msk.f32.gmra.mrb[150].mxu0 %vm15346_vm4, %v38074_v43 }
 0xaba   : > { %31449 = vmatprep.mubr.msk.f32.mxu0 %vm15346_vm4, %v38119_v15  ;;  %v32663_v15 = vpack.c.bf16 %v27057_v16, %v27056_v42  ;;  %v41245_v16 = vld [vmem:[#allocation14_spill] sm:$0xff] }
 0xabd   : > { %31450 = vmatmul.mubr.msk.f32.gmra.mrb[108].mxu0 %vm15346_vm4, %v38339_v30 }
 0xabe   : > { %31452 = vmatprep.mubr.msk.f32.mxu0 %vm15346_vm4, %v38311_v63 }
 0xac1   : > { %31453 = vmatmul.mubr.msk.f32.gmra.mrb[152].mxu0 %vm15346_vm4, %v38317_v55 }
 0xac2   : > { %31459 = vmatprep.mubr.msk.f32.mxu0 %vm15346_vm4, %v37856_v51 }
 0xac3   : > { %v31286_v43 = vpop.f32.mrb[90].mxu0 }
 0xac4   : > { %v15616_v30 = vpop.f32.mrb[91].mxu0 }
 0xac5   : > { %31460 = vmatmul.mubr.msk.f32.vlgmr.msra.gmra.mrb[84].mxu0 %vm15346_vm4, %v37865_v59  ;;  %v41248_v30 = vld [vmem:[#allocation34_spill] sm:$0xff] }
 0xac6   : > { %32662 = vmatpush3.bf16.msra.mxu0 %v32659_v37  ;;  %31462 = vmatprep.mubr.msk.f32.mxu0 %vm15346_vm4, %v37841_v38 }
 0xac7   : > { %32664 = vmatprep.subr.bf16.mxu0 %v32663_v15 }
 0xac9   : > { %31463 = vmatmul.mubr.msk.f32.gmra.mrb[154].mxu0 %vm15346_vm4, %v37873_v7  ;;  %v41240_v7 = vld [vmem:[#allocation36_spill] sm:$0xff] }
 0xaca   : > { %31465 = vmatprep.mubr.msk.f32.mxu0 %vm15346_vm4, %v37891_v36  ;;  %v41241_v36 = vld [vmem:[#allocation42_spill] sm:$0xff] }
 0xacb   : > { %v31292_v55 = vpop.f32.mrb[94].mxu0 }
 0xacc   : > { %v15636_v63 = vpop.f32.mrb[95].mxu0  ;;  %v41247_v55 = vld [vmem:[#allocation23_spill] sm:$0xff] }
 0xacd   : > { %31466 = vmatmul.mubr.msk.f32.gmra.mrb[88].mxu0 %vm15346_vm4, %v37900_v28  ;;  %v41246_v63 = vld [vmem:[#allocation46_spill] sm:$0xff] }
 0xace   : > { %31468 = vmatprep.mubr.msk.f32.mxu0 %vm15346_vm4, %v37895_v60  ;;  %v41242_v60 = vld [vmem:[#allocation13_spill] sm:$0xff] }
 0xad1   : > { %31469 = vmatmul.mubr.msk.f32.gmra.mrb[156].mxu0 %vm15346_vm4, %v37916_v21  ;;  %v38387_v21 = vld [vmem:[#allocation3 + $0x108] sm:$0xff] }
 0xad2   : > { %31471 = vmatprep.mubr.msk.f32.mxu0 %vm15346_vm4, %v37944_v50  ;;  %41243 = vst [vmem:[#allocation19_spill] sm:$0xff] %v38387_v21  ;;  %v38389_v50 = vld [vmem:[#allocation3 + $0x10a] sm:$0xff] }
 0xad3   : > { %v31298_v43 = vpop.f32.mrb[98].mxu0  ;;  %41244 = vst [vmem:[#allocation36_spill] sm:$0xff] %v38389_v50 }
 0xad4   : > { %v15656_v38 = vpop.f32.mrb[99].mxu0 }
 0xad5   : > { %31472 = vmatmul.mubr.msk.f32.gmra.mrb[92].mxu0 %vm15346_vm4, %v37953_v12  ;;  %v38391_v12 = vld [vmem:[#allocation3 + $0x10e] sm:$0xff] }
 0xad6   : > { %31474 = vmatprep.mubr.msk.f32.mxu0 %vm15346_vm4, %v37929_v25  ;;  %18851 = vst.msk [vmem:[#allocation3 + $0x108] sm:$0xff] %vm15346_vm4, %v41221_v2  ;;  %v41249_v38 = vld [vmem:[#allocation35_spill] sm:$0xff] }
 0xad9   : > { %31475 = vmatmul.mubr.msk.f32.gmra.mrb[158].mxu0 %vm15346_vm4, %v37961_v33 }
 0xada   : > { %31477 = vmatprep.mubr.msk.f32.mxu0 %vm15346_vm4, %v37985_v1 }
 0xadb   : > { %v31304_v51 = vpop.f32.mrb[102].mxu0 }
 0xadc   : > { %v15676_v59 = vpop.f32.mrb[103].mxu0  ;;  %v41250_v51 = vld [vmem:[#allocation28_spill] sm:$0xff] }
 0xadd   : > { %31478 = vmatmul.mubr.msk.f32.gmra.mrb[96].mxu0 %vm15346_vm4, %v37998_v58  ;;  %v38407_v59 = vld [vmem:[#allocation3 + $0x60] sm:$0xff] }
 0xade   : > { %31480 = vmatprep.mubr.msk.f32.mxu0 %vm15346_vm4, %v41240_v7  ;;  %18830 = vst.msk [vmem:[#allocation3 + $0x60] sm:$0xff] %vm15346_vm4, %v41221_v2 }
 0xae1   : > { %31481 = vmatmul.mubr.msk.f32.gmra.mrb[160].mxu0 %vm15346_vm4, %v41241_v36 }
 0xae2   : > { %31483 = vmatprep.mubr.msk.f32.mxu0 %vm15346_vm4, %v41242_v60 }
 0xae4   : > { %v31310_v28 = vpop.f32.mrb[106].mxu0 }
 0xae5   : > { %v15696_v37 = vpop.f32.mrb[107].mxu0  ;;  %31484 = vmatmul.mubr.msk.f32.gmra.mrb[100].mxu0 %vm15346_vm4, %v41245_v16  ;;  %v38409_v28 = vld [vmem:[#allocation3 + $0x68] sm:$0xff] }
 0xae6   : > { %31486 = vmatprep.mubr.msk.f32.mxu0 %vm15346_vm4, %v41246_v63  ;;  %18831 = vst.msk [vmem:[#allocation3 + $0x68] sm:$0xff] %vm15346_vm4, %v41221_v2  ;;  %v41251_v37 = vld [vmem:[#allocation38_spill] sm:$0xff]  ;;  %v27086_v2 = vld [vmem:[%s40491_s5 + $0x70] sm:$0xff] }
 0xae9   : > { %31487 = vmatmul.mubr.msk.f32.gmra.mrb[162].mxu0 %vm15346_vm4, %v41247_v55 }
 0xaea   : > { %31489 = vmatprep.mubr.msk.f32.mxu0 %vm15346_vm4, %v41248_v30 }
 0xaec   : > { %v31316_v42 = vpop.f32.mrb[110].mxu0 }
 0xaed   : > { %v15716_v43 = vpop.f32.mrb[111].mxu0  ;;  %31490 = vmatmul.mubr.msk.f32.gmra.mrb[104].mxu0 %vm15346_vm4, %v41249_v38  ;;  %v38417_v42 = vld [vmem:[#allocation3 + $0xf0] sm:$0xff] }
 0xaee   : > { %31492 = vmatprep.mubr.msk.f32.mxu0 %vm15346_vm4, %v41250_v51  ;;  %v38421_v51 = vld [vmem:[#allocation3 + $0xf8] sm:$0xff] }
 0xaef   : > { %41252 = vst [vmem:[#allocation42_spill] sm:$0xff] %v38421_v51 }
 0xaf1   : > { %31493 = vmatmul.mubr.msk.f32.gmra.mrb[164].mxu0 %vm15346_vm4, %v41251_v37  ;;  %v27087_v37 = vld [vmem:[%s40491_s5 + $0x78] sm:$0xff] }
 0xaf2   : > { %31495 = vmatprep.mubr.msk.f32.mxu0 %vm15346_vm4, %v38417_v42 }
 0xaf4   : > { %v31326_v43 = vpop.f32.mrb[112].mxu0 }
 0xaf5   : > { %v15885_v38 = vpop.f32.mrb[113].mxu0  ;;  %31496 = vmatmul.mubr.msk.f32.gmra.mrb[108].mxu0 %vm15346_vm4, %v38421_v51 }
 0xaf6   : > { %31498 = vmatprep.mubr.msk.f32.mxu0 %vm15346_vm4, %v38319_v45  ;;  %v32667_v38 = vpack.c.bf16 %v27087_v37, %v27086_v2  ;;  %v41256_v37 = vld [vmem:[#allocation45_spill] sm:$0xff] }
 0xaf9   : > { %31499 = vmatmul.mubr.msk.f32.gmra.mrb[166].mxu0 %vm15346_vm4, %v38387_v21 }
 0xafa   : > { %31505 = vmatprep.mubr.msk.f32.mxu0 %vm15346_vm4, %v38205_v49 }
 0xafc   : > { %v31332_v43 = vpop.f32.mrb[114].mxu0 }
 0xafd   : > { %v15905_v51 = vpop.f32.mrb[115].mxu0  ;;  %31506 = vmatmul.mubr.msk.f32.vlgmr.msra.gmra.mrb[84].mxu0 %vm15346_vm4, %v37849_v27 }
 0xafe   : > { %32666 = vmatpush3.bf16.msra.mxu0 %v32663_v15  ;;  %31508 = vmatprep.mubr.msk.f32.mxu0 %vm15346_vm4, %v37851_v56  ;;  %v41255_v51 = vld [vmem:[#allocation11_spill] sm:$0xff] }
 0xaff   : > { %32668 = vmatprep.subr.bf16.mxu0 %v32667_v38 }
 0xb01   : > { %31509 = vmatmul.mubr.msk.f32.gmra.mrb[168].mxu0 %vm15346_vm4, %v37908_v11  ;;  %v41253_v11 = vld [vmem:[#allocation39_spill] sm:$0xff] }
 0xb02   : > { %31511 = vmatprep.mubr.msk.f32.mxu0 %vm15346_vm4, %v38215_v53 }
 0xb04   : > { %v31338_v21 = vpop.f32.mrb[116].mxu0 }
 0xb05   : > { %v15925_v45 = vpop.f32.mrb[117].mxu0  ;;  %31512 = vmatmul.mubr.msk.f32.gmra.mrb[88].mxu0 %vm15346_vm4, %v38221_v44  ;;  %v41254_v21 = vld [vmem:[#allocation48_spill] sm:$0xff] }
 0xb06   : > { %31514 = vmatprep.mubr.msk.f32.mxu0 %vm15346_vm4, %v38219_v24 }
 0xb09   : > { %31515 = vmatmul.mubr.msk.f32.gmra.mrb[170].mxu0 %vm15346_vm4, %v38227_v39 }
 0xb0a   : > { %31517 = vmatprep.mubr.msk.f32.mxu0 %vm15346_vm4, %v38231_v23 }
 0xb0c   : > { %v31344_v15 = vpop.f32.mrb[118].mxu0 }
 0xb0d   : > { %v15945_v27 = vpop.f32.mrb[119].mxu0  ;;  %31518 = vmatmul.mubr.msk.f32.gmra.mrb[92].mxu0 %vm15346_vm4, %v37937_v9 }
 0xb0e   : > { %31520 = vmatprep.mubr.msk.f32.mxu0 %vm15346_vm4, %v37939_v31  ;;  %v38483_v27 = vld [vmem:[#allocation3 + $0xf2] sm:$0xff] }
 0xb11   : > { %31521 = vmatmul.mubr.msk.f32.gmra.mrb[172].mxu0 %vm15346_vm4, %v38006_v29 }
 0xb12   : > { %31523 = vmatprep.mubr.msk.f32.mxu0 %vm15346_vm4, %v38241_v8 }
 0xb14   : > { %v31350_v56 = vpop.f32.mrb[120].mxu0 }
 0xb15   : > { %v15965_v2 = vpop.f32.mrb[121].mxu0  ;;  %31524 = vmatmul.mubr.msk.f32.gmra.mrb[96].mxu0 %vm15346_vm4, %v41253_v11 }
 0xb16   : > { %31526 = vmatprep.mubr.msk.f32.mxu0 %vm15346_vm4, %v37980_v3 }
 0xb19   : > { %31527 = vmatmul.mubr.msk.f32.gmra.mrb[174].mxu0 %vm15346_vm4, %v38055_v5 }
 0xb1a   : > { %31529 = vmatprep.mubr.msk.f32.mxu0 %vm15346_vm4, %v38251_v14 }
 0xb1c   : > { %v31356_v49 = vpop.f32.mrb[122].mxu0 }
 0xb1d   : > { %v15985_v45 = vpop.f32.mrb[123].mxu0  ;;  %31530 = vmatmul.mubr.msk.f32.gmra.mrb[100].mxu0 %vm15346_vm4, %v41254_v21  ;;  %v27116_v49 = vld [vmem:[%s40491_s5 + $0x80] sm:$0xff] }
 0xb1e   : > { %31532 = vmatprep.mubr.msk.f32.mxu0 %vm15346_vm4, %v41255_v51  ;;  %v27117_v45 = vld [vmem:[%s40491_s5 + $0x88] sm:$0xff] }
 0xb21   : > { %31533 = vmatmul.mubr.msk.f32.gmra.mrb[176].mxu0 %vm15346_vm4, %v38098_v48 }
 0xb22   : > { %31535 = vmatprep.mubr.msk.f32.mxu0 %vm15346_vm4, %v41256_v37 }
 0xb24   : > { %v31362_v43 = vpop.f32.mrb[124].mxu0 }
 0xb25   : > { %v16005_v15 = vpop.f32.mrb[125].mxu0  ;;  %31536 = vmatmul.mubr.msk.f32.gmra.mrb[104].mxu0 %vm15346_vm4, %v38080_v57  ;;  %v32671_v43 = vpack.c.bf16 %v27117_v45, %v27116_v49  ;;  %v17755_v45 = vld [vmem:[#allocation3 + $0x58] sm:$0xff] }
 0xb26   : > { %31538 = vmatprep.mubr.msk.f32.mxu0 %vm15346_vm4, %v38082_v0 }
 0xb29   : > { %31539 = vmatmul.mubr.msk.f32.gmra.mrb[178].mxu0 %vm15346_vm4, %v38117_v41 }
 0xb2a   : > { %31541 = vmatprep.mubr.msk.f32.mxu0 %vm15346_vm4, %v38483_v27 }
 0xb2c   : > { %v31372_v56 = vpop.f32.mrb[126].mxu0 }
 0xb2d   : > { %v16205_v2 = vpop.f32.mrb[127].mxu0  ;;  %31542 = vmatmul.mubr.msk.f32.gmra.mrb[108].mxu0 %vm15346_vm4, %v38313_v18 }
 0xb2e   : > { %31544 = vmatprep.mubr.msk.f32.mxu0 %vm15346_vm4, %v38321_v34 }
 0xb31   : > { %31545 = vmatmul.mubr.msk.f32.gmra.mrb[180].mxu0 %vm15346_vm4, %v38389_v50 }
 0xb32   : > { %31551 = vmatprep.mubr.msk.f32.mxu0 %vm15346_vm4, %v37906_v4 }
 0xb34   : > { %v31378_v15 = vpop.f32.mrb[128].mxu0 }
 0xb35   : > { %v16225_v56 = vpop.f32.mrb[129].mxu0  ;;  %31552 = vmatmul.mubr.msk.f32.vlgmr.msra.gmra.mrb[84].mxu0 %vm15346_vm4, %v38141_v26 }
 0xb36   : > { %31554 = vmatprep.mubr.msk.f32.mxu0 %vm15346_vm4, %v38145_v32  ;;  %32670 = vmatpush3.bf16.msra.mxu0 %v32667_v38  ;;  %v17754_v38 = vld [vmem:[#allocation3 + $0x50] sm:$0xff] }
 0xb37   : > { %32672 = vmatprep.subr.bf16.mxu0 %v32671_v43  ;;  %v17758_v56 = vld [vmem:[#allocation3 + $0x70] sm:$0xff] }
 0xb39   : > { %31555 = vmatmul.mubr.msk.f32.gmra.mrb[182].mxu0 %vm15346_vm4, %v38149_v19  ;;  %v17431_v19 = vld [vmem:[#allocation3 + $0x116] sm:$0xff] }
 0xb3a   : > { %31557 = vmatprep.mubr.msk.f32.mxu0 %vm15346_vm4, %v38153_v6  ;;  %v17432_v6 = vld [vmem:[#allocation3 + $0x11e] sm:$0xff] }
 0xb3c   : > { %v31384_v2 = vpop.f32.mrb[130].mxu0 }
 0xb3d   : > { %v16245_v50 = vpop.f32.mrb[131].mxu0  ;;  %31558 = vmatmul.mubr.msk.f32.gmra.mrb[88].mxu0 %vm15346_vm4, %v38157_v22 }
 0xb3e   : > { %31560 = vmatprep.mubr.msk.f32.mxu0 %vm15346_vm4, %v37935_v13  ;;  %v17433_v50 = vld [vmem:[#allocation3 + $0x126] sm:$0xff] }
 0xb41   : > { %31561 = vmatmul.mubr.msk.f32.gmra.mrb[184].mxu0 %vm15346_vm4, %v37931_v46 }
 0xb42   : > { %31563 = vmatprep.mubr.msk.f32.mxu0 %vm15346_vm4, %v38004_v20 }
 0xb44   : > { %v31390_v4 = vpop.f32.mrb[132].mxu0 }
 0xb45   : > { %v16265_v26 = vpop.f32.mrb[133].mxu0  ;;  %31564 = vmatmul.mubr.msk.f32.gmra.mrb[92].mxu0 %vm15346_vm4, %v38167_v40  ;;  %v17759_v4 = vld [vmem:[#allocation3 + $0x78] sm:$0xff] }
 0xb46   : > { %31566 = vmatprep.mubr.msk.f32.mxu0 %vm15346_vm4, %v37976_v17  ;;  %v41259_v17 = vld [vmem:[#allocation43_spill] sm:$0xff] }
 0xb49   : > { %31567 = vmatmul.mubr.msk.f32.gmra.mrb[186].mxu0 %vm15346_vm4, %v37972_v62  ;;  %v41258_v62 = vld [vmem:[#allocation31_spill] sm:$0xff] }
 0xb4a   : > { %31569 = vmatprep.mubr.msk.f32.mxu0 %vm15346_vm4, %v38053_v47  ;;  %v41257_v47 = vld [vmem:[#allocation32_spill] sm:$0xff] }
 0xb4c   : > { %v31396_v13 = vpop.f32.mrb[134].mxu0 }
 0xb4d   : > { %v16285_v32 = vpop.f32.mrb[135].mxu0  ;;  %31570 = vmatmul.mubr.msk.f32.gmra.mrb[96].mxu0 %vm15346_vm4, %v38177_v52  ;;  %v41262_v52 = vld [vmem:[#allocation47_spill] sm:$0xff] }
 0xb4e   : > { %31572 = vmatprep.mubr.msk.f32.mxu0 %vm15346_vm4, %v38033_v35  ;;  %v41268_v13 = vld [vmem:[#allocation19_spill] sm:$0xff]  ;;  %v17779_v32 = vld [vmem:[#allocation3 + $0x118] sm:$0xff] }
 0xb51   : > { %31573 = vmatmul.mubr.msk.f32.gmra.mrb[188].mxu0 %vm15346_vm4, %v38029_v54  ;;  %v41260_v54 = vld [vmem:[#allocation7_spill] sm:$0xff] }
 0xb52   : > { %31575 = vmatprep.mubr.msk.f32.mxu0 %vm15346_vm4, %v38096_v10  ;;  %v41261_v10 = vld [vmem:[#allocation37_spill] sm:$0xff] }
 0xb54   : > { %v31402_v40 = vpop.f32.mrb[136].mxu0 }
 0xb55   : > { %v16305_v46 = vpop.f32.mrb[137].mxu0  ;;  %31576 = vmatmul.mubr.msk.f32.gmra.mrb[100].mxu0 %vm15346_vm4, %v38187_v61  ;;  %v17780_v40 = vld [vmem:[#allocation3 + $0x120] sm:$0xff] }
 0xb56   : > { %31578 = vmatprep.mubr.msk.f32.mxu0 %vm15346_vm4, %v41257_v47 }
 0xb59   : > { %31579 = vmatmul.mubr.msk.f32.gmra.mrb[190].mxu0 %vm15346_vm4, %v41258_v62 }
 0xb5a   : > { %31581 = vmatprep.mubr.msk.f32.mxu0 %vm15346_vm4, %v41259_v17 }
 0xb5c   : > { %v31408_v35 = vpop.f32.mrb[138].mxu0 }
 0xb5d   : > { %v16325_v20 = vpop.f32.mrb[139].mxu0  ;;  %31582 = vmatmul.mubr.msk.f32.gmra.mrb[104].mxu0 %vm15346_vm4, %v41260_v54  ;;  %v18455_v54 = vld [vmem:[#allocation2 + $0x48] sm:$0xff] }
 0xb5e   : > { %31584 = vmatprep.mubr.msk.f32.mxu0 %vm15346_vm4, %v41261_v10 }
 0xb61   : > { %31585 = vmatmul.mubr.msk.f32.gmra.mrb[192].mxu0 %vm15346_vm4, %v41262_v52  ;;  %v18456_v52 = vld [vmem:[#allocation2 + $0x50] sm:$0xff] }
 0xb62   : > { %31587 = vmatprep.mubr.msk.f32.mxu0 %vm15346_vm4, %v38391_v12  ;;  %v18478_v12 = vld [vmem:[%s40492_s6] sm:$0xff] }
 0xb64   : > { %v31418_v22 = vpop.f32.mrb[140].mxu0 }
 0xb65   : > { %v16553_v61 = vpop.f32.mrb[141].mxu0  ;;  %31588 = vmatmul.mubr.msk.f32.gmra.mrb[108].mxu0 %vm15346_vm4, %v17431_v19  ;;  %v18457_v19 = vld [vmem:[#allocation2 + $0x58] sm:$0xff] }
 0xb66   : > { %31590 = vmatprep.mubr.msk.f32.mxu0 %vm15346_vm4, %v17432_v6  ;;  %v18458_v6 = vld [vmem:[#allocation2 + $0x60] sm:$0xff]  ;;  %v18459_v61 = vld [vmem:[#allocation2 + $0x68] sm:$0xff] }
 0xb69   : > { %31591 = vmatmul.mubr.msk.f32.gmra.mrb[194].mxu0 %vm15346_vm4, %v17433_v50 }
 0xb6a   : > { %31597 = vmatprep.mubr.msk.f32.mxu0 %vm15346_vm4, %v17754_v38  ;;  %v18460_v38 = vld [vmem:[#allocation2 + $0x70] sm:$0xff] }
 0xb6c   : > { %v31424_v49 = vpop.f32.mrb[142].mxu0 }
 0xb6d   : > { %v16573_v15 = vpop.f32.mrb[143].mxu0  ;;  %31598 = vmatmul.mubr.msk.f32.vlgmr.msra.gmra.mrb[84].mxu0 %vm15346_vm4, %v17755_v45  ;;  %v18461_v49 = vld [vmem:[#allocation2 + $0x78] sm:$0xff]  ;;  %v18462_v45 = vld [vmem:[#allocation2 + $0x80] sm:$0xff] }
 0xb6e   : > { %32674 = vmatpush3.bf16.msra.mxu0 %v32671_v43  ;;  %31600 = vmatprep.mubr.msk.f32.mxu0 %vm15346_vm4, %v38407_v59  ;;  %v18463_v15 = vld [vmem:[#allocation2 + $0x88] sm:$0xff] }
 0xb6f   : > { %31685 = vmatprep.subr.mxu0 %v18478_v12 }
 0xb71   : > { %31601 = vmatmul.mubr.msk.f32.gmra.mrb[196].mxu0 %vm15346_vm4, %v38409_v28 }
 0xb72   : > { %31603 = vmatprep.mubr.msk.f32.mxu0 %vm15346_vm4, %v17758_v56 }
 0xb74   : > { %v31430_v2 = vpop.f32.mrb[144].mxu0 }
 0xb75   : > { %v16593_v26 = vpop.f32.mrb[145].mxu0  ;;  %31604 = vmatmul.mubr.msk.f32.gmra.mrb[88].mxu0 %vm15346_vm4, %v17759_v4  ;;  %v18464_v2 = vld [vmem:[#allocation2 + $0x90] sm:$0xff]  ;;  %v18465_v4 = vld [vmem:[#allocation2 + $0x98] sm:$0xff] }
 0xb76   : > { %31606 = vmatprep.mubr.msk.f32.mxu0 %vm15346_vm4, %v37929_v25  ;;  %v18466_v26 = vld [vmem:[#allocation2 + $0xa0] sm:$0xff] }
 0xb79   : > { %31607 = vmatmul.mubr.msk.f32.gmra.mrb[198].mxu0 %vm15346_vm4, %v37961_v33 }
 0xb7a   : > { %31609 = vmatprep.mubr.msk.f32.mxu0 %vm15346_vm4, %v37985_v1 }
 0xb7c   : > { %v31436_v59 = vpop.f32.mrb[146].mxu0 }
 0xb7d   : > { %v16613_v43 = vpop.f32.mrb[147].mxu0  ;;  %31610 = vmatmul.mubr.msk.f32.gmra.mrb[92].mxu0 %vm15346_vm4, %v37998_v58  ;;  %v41263_v58 = vld [vmem:[#allocation35_spill] sm:$0xff] }
 0xb7e   : > { %31612 = vmatprep.mubr.msk.f32.mxu0 %vm15346_vm4, %v41240_v7  ;;  %v41264_v7 = vld [vmem:[#allocation28_spill] sm:$0xff]  ;;  %v18467_v43 = vld [vmem:[#allocation2 + $0xa8] sm:$0xff] }
 0xb81   : > { %31613 = vmatmul.mubr.msk.f32.gmra.mrb[200].mxu0 %vm15346_vm4, %v41241_v36  ;;  %v41265_v36 = vld [vmem:[#allocation38_spill] sm:$0xff] }
 0xb82   : > { %31615 = vmatprep.mubr.msk.f32.mxu0 %vm15346_vm4, %v41242_v60 }
 0xb84   : > { %v31442_v25 = vpop.f32.mrb[148].mxu0 }
 0xb85   : > { %v16633_v28 = vpop.f32.mrb[149].mxu0  ;;  %31616 = vmatmul.mubr.msk.f32.gmra.mrb[96].mxu0 %vm15346_vm4, %v41245_v16 }
 0xb86   : > { %31618 = vmatprep.mubr.msk.f32.mxu0 %vm15346_vm4, %v41246_v63  ;;  %v41266_v63 = vld [vmem:[#allocation42_spill] sm:$0xff]  ;;  %v18468_v28 = vld [vmem:[#allocation2 + $0xb0] sm:$0xff] }
 0xb89   : > { %31619 = vmatmul.mubr.msk.f32.gmra.mrb[202].mxu0 %vm15346_vm4, %v41247_v55  ;;  %v41267_v55 = vld [vmem:[#allocation18_spill] sm:$0xff] }
 0xb8a   : > { %31621 = vmatprep.mubr.msk.f32.mxu0 %vm15346_vm4, %v41248_v30  ;;  %v17778_v30 = vld [vmem:[#allocation3 + $0x110] sm:$0xff] }
 0xb8c   : > { %v31448_v33 = vpop.f32.mrb[150].mxu0 }
 0xb8d   : > { %v16653_v1 = vpop.f32.mrb[151].mxu0  ;;  %31622 = vmatmul.mubr.msk.f32.gmra.mrb[100].mxu0 %vm15346_vm4, %v41263_v58  ;;  %v27174_v33 = vld [vmem:[%s40493_s7 + $0x10] sm:$0xff] }
 0xb8e   : > { %31624 = vmatprep.mubr.msk.f32.mxu0 %vm15346_vm4, %v41264_v7  ;;  %v27175_v1 = vld [vmem:[%s40493_s7 + $0x18] sm:$0xff] }
 0xb8f   : > { %v32675_v58 = vpack.c.bf16 %v27175_v1, %v27174_v33  ;;  %v18469_v7 = vld [vmem:[#allocation2 + $0xb8] sm:$0xff] }
 0xb91   : > { %31625 = vmatmul.mubr.msk.f32.gmra.mrb[204].mxu0 %vm15346_vm4, %v41265_v36  ;;  %32676 = vmatprep.subr.bf16.mxu1 %v32675_v58  ;;  %v18470_v36 = vld [vmem:[#allocation2 + $0xc0] sm:$0xff] }
 0xb92   : > { %31627 = vmatprep.mubr.msk.f32.mxu0 %vm15346_vm4, %v38417_v42  ;;  %v17781_v42 = vld [vmem:[#allocation3 + $0x128] sm:$0xff]  ;;  %32678 = vmatpush3.bf16.msra.mxu1 %v32675_v58 }
 0xb94   : > { %v31454_v60 = vpop.f32.mrb[152].mxu0 }
 0xb95   : > { %v16673_v16 = vpop.f32.mrb[153].mxu0  ;;  %31628 = vmatmul.mubr.msk.f32.gmra.mrb[104].mxu0 %vm15346_vm4, %v41266_v63 }
 0xb96   : > { %31630 = vmatprep.mubr.msk.f32.mxu0 %vm15346_vm4, %v41267_v55  ;;  %v18471_v16 = vld [vmem:[#allocation2 + $0xc8] sm:$0xff]  ;;  %v18472_v55 = vld [vmem:[#allocation2 + $0xd0] sm:$0xff] }
 0xb99   : > { %31631 = vmatmul.mubr.msk.f32.gmra.mrb[206].mxu0 %vm15346_vm4, %v41268_v13  ;;  %v18474_v13 = vld [vmem:[#allocation2 + $0xe0] sm:$0xff] }
 0xb9a   : > { %31633 = vmatprep.mubr.msk.f32.mxu0 %vm15346_vm4, %v17778_v30  ;;  %v18473_v30 = vld [vmem:[#allocation2 + $0xd8] sm:$0xff] }
 0xb9c   : > { %v31464_v46 = vpop.f32.mrb[154].mxu0 }
 0xb9d   : > { %v16901_v47 = vpop.f32.mrb[155].mxu0  ;;  %31634 = vmatmul.mubr.msk.f32.gmra.mrb[108].mxu0 %vm15346_vm4, %v17779_v32 }
 0xb9e   : > { %31636 = vmatprep.mubr.msk.f32.mxu0 %vm15346_vm4, %v17780_v40  ;;  %v18475_v40 = vld [vmem:[#allocation2 + $0xe8] sm:$0xff]  ;;  %v18476_v47 = vld [vmem:[#allocation2 + $0xf0] sm:$0xff] }
 0xba1   : > { %31637 = vmatmul.mubr.msk.f32.gmra.mrb[208].mxu0 %vm15346_vm4, %v17781_v42  ;;  %v18477_v42 = vld [vmem:[#allocation2 + $0xf8] sm:$0xff] }
 0xba2   : > { %31643 = vmatprep.mubr.msk.f32.mxu0 %vm15346_vm4, %v38215_v53 }
 0xba4   : > { %v31470_v62 = vpop.f32.mrb[156].mxu0 }
 0xba5   : > { %v16921_v17 = vpop.f32.mrb[157].mxu0  ;;  %31644 = vmatmul.mubr.msk.f32.vlgmr.msra.gmra.mrb[84].mxu0 %vm15346_vm4, %v38221_v44 }
 0xba6   : > { %31686 = vmatpush3.msra.mxu0 %v18478_v12  ;;  %31646 = vmatprep.mubr.msk.f32.mxu0 %vm15346_vm4, %v38219_v24 }
 0xba9   : > { %31647 = vmatmul.mubr.msk.f32.gmra.mrb[210].mxu0 %vm15346_vm4, %v38227_v39  ;;  %v41269_v39 = vld [vmem:[#allocation36_spill] sm:$0xff] }
 0xbaa   : > { %31649 = vmatprep.mubr.msk.f32.mxu0 %vm15346_vm4, %v38231_v23 }
 0xbac   : > { %v31476_v35 = vpop.f32.mrb[158].mxu0 }
 0xbad   : > { %v16941_v20 = vpop.f32.mrb[159].mxu0  ;;  %31650 = vmatmul.mubr.msk.f32.gmra.mrb[88].mxu0 %vm15346_vm4, %v37937_v9 }
 0xbae   : > { %31652 = vmatprep.mubr.msk.f32.mxu0 %vm15346_vm4, %v37939_v31 }
 0xbb1   : > { %31653 = vmatmul.mubr.msk.f32.gmra.mrb[212].mxu0 %vm15346_vm4, %v38006_v29 }
 0xbb2   : > { %31655 = vmatprep.mubr.msk.f32.mxu0 %vm15346_vm4, %v38241_v8  ;;  %v18129_v8 = vld [vmem:[#allocation3 + $0x12a] sm:$0xff] }
 0xbb4   : > { %v31482_v53 = vpop.f32.mrb[160].mxu0 }
 0xbb5   : > { %v16961_v24 = vpop.f32.mrb[161].mxu0  ;;  %31656 = vmatmul.mubr.msk.f32.gmra.mrb[92].mxu0 %vm15346_vm4, %v41253_v11 }
 0xbb6   : > { %31658 = vmatprep.mubr.msk.f32.mxu0 %vm15346_vm4, %v37980_v3 }
 0xbb9   : > { %31659 = vmatmul.mubr.msk.f32.gmra.mrb[214].mxu0 %vm15346_vm4, %v38055_v5 }
 0xbba   : > { %31661 = vmatprep.mubr.msk.f32.mxu0 %vm15346_vm4, %v38251_v14  ;;  %v18450_v14 = vld [vmem:[#allocation2 + $0x20] sm:$0xff] }
 0xbbc   : > { %v31488_v9 = vpop.f32.mrb[162].mxu0 }
 0xbbd   : > { %v16981_v31 = vpop.f32.mrb[163].mxu0  ;;  %31662 = vmatmul.mubr.msk.f32.gmra.mrb[96].mxu0 %vm15346_vm4, %v41254_v21  ;;  %v18452_v21 = vld [vmem:[#allocation2 + $0x30] sm:$0xff] }
 0xbbe   : > { %31664 = vmatprep.mubr.msk.f32.mxu0 %vm15346_vm4, %v41255_v51  ;;  %v18453_v51 = vld [vmem:[#allocation2 + $0x38] sm:$0xff] }
 0xbc1   : > { %31665 = vmatmul.mubr.msk.f32.gmra.mrb[216].mxu0 %vm15346_vm4, %v38098_v48  ;;  %v18126_v48 = vld [vmem:[#allocation3 + $0x112] sm:$0xff] }
 0xbc2   : > { %31667 = vmatprep.mubr.msk.f32.mxu0 %vm15346_vm4, %v41256_v37  ;;  %v18454_v37 = vld [vmem:[#allocation2 + $0x40] sm:$0xff] }
 0xbc4   : > { %v31494_v3 = vpop.f32.mrb[164].mxu0 }
 0xbc5   : > { %v17001_v29 = vpop.f32.mrb[165].mxu0  ;;  %31668 = vmatmul.mubr.msk.f32.gmra.mrb[100].mxu0 %vm15346_vm4, %v38080_v57  ;;  %v18127_v57 = vld [vmem:[#allocation3 + $0x11a] sm:$0xff] }
 0xbc6   : > { %31670 = vmatprep.mubr.msk.f32.mxu0 %vm15346_vm4, %v38082_v0  ;;  %v18128_v0 = vld [vmem:[#allocation3 + $0x122] sm:$0xff] }
 0xbc7   : > { %v14941_v3 = vld [vmem:[#allocation2 + $0x101] sm:$0xff] }
 0xbc8   : > { %v14969_v29 = vmax.f32 %v14941_v3, 0.0 }
 0xbc9   : > { %31671 = vmatmul.mubr.msk.f32.gmra.mrb[218].mxu0 %vm15346_vm4, %v38117_v41 }
 0xbca   : > { %31673 = vmatprep.mubr.msk.f32.mxu0 %vm15346_vm4, %v38483_v27  ;;  %31268 = vmatprep.mubr.msk.f32.mxu1 %vm5559_vm5, %v14969_v29 }
 0xbcc   : > { %v31500_v5 = vpop.f32.mrb[166].mxu0 }
 0xbcd   : > { %v17021_v44 = vpop.f32.mrb[167].mxu0  ;;  %31674 = vmatmul.mubr.msk.f32.gmra.mrb[104].mxu0 %vm15346_vm4, %v38313_v18  ;;  %v14942_v5 = vld [vmem:[#allocation2 + $0x109] sm:$0xff] }
 0xbce   : > { %31676 = vmatprep.mubr.msk.f32.mxu0 %vm15346_vm4, %v38321_v34  ;;  %v18451_v34 = vld [vmem:[#allocation2 + $0x28] sm:$0xff] }
 0xbd1   : > { %31677 = vmatmul.mubr.msk.f32.gmra.mrb[220].mxu0 %vm15346_vm4, %v41269_v39 }
 0xbd2   : > { %31679 = vmatprep.mubr.msk.f32.mxu0 %vm15346_vm4, %v18126_v48  ;;  %v14970_v48 = vmax.f32 %v14942_v5, 0.0 }
 0xbd4   : > { %v31510_v41 = vpop.f32.mrb[168].mxu0  ;;  %31269 = vmatmul.mubr.msk.f32.gmra.mrb[166].mxu1 %vm5559_vm5, %v14970_v48 }
 0xbd5   : > { %v17249_v23 = vpop.f32.mrb[169].mxu0  ;;  %31680 = vmatmul.mubr.msk.f32.gmra.mrb[108].mxu0 %vm15346_vm4, %v18127_v57  ;;  %v18910_v57 = vld [vmem:[#allocation3 + $0x10] sm:$0xff]  ;;  %v18908_v41 = vld [vmem:[%s40493_s7] sm:$0xff] }
 0xbd6   : > { %31682 = vmatprep.mubr.msk.f32.mxu0 %vm15346_vm4, %v18128_v0  ;;  %v18911_v0 = vld [vmem:[#allocation3 + $0x18] sm:$0xff]  ;;  %v18938_v23 = vmax.f32 %v18910_v57, 0.0 }
 0xbd8   : > { %31733 = vmatprep.mubr.msk.f32.mxu1 %vm15346_vm4, %v18938_v23 }
 0xbd9   : > { %31683 = vmatmul.mubr.msk.f32.gmra.mrb[222].mxu0 %vm15346_vm4, %v18129_v8  ;;  %v18939_v8 = vmax.f32 %v18911_v0, 0.0 }
 0xbda   : > { %31687 = vmatprep.mubr.msk.f32.mxu0 %vm5559_vm5, %v18450_v14  ;;  %v18909_v14 = vld [vmem:[%s40493_s7 + $0x8] sm:$0xff] }
 0xbdb   : > { %31734 = vmatmul.mubr.msk.f32.vlgmr.msra.gmra.mrb[168].mxu1 %vm15346_vm4, %v18939_v8 }
 0xbdc   : > { %v31516_v18 = vpop.f32.mrb[170].mxu0 }
 0xbdd   : > { %v17269_v11 = vpop.f32.mrb[171].mxu0  ;;  %31688 = vmatmul.mubr.msk.f32.vlgmr.msra.gmra.mrb[84].mxu0 %vm5559_vm5, %v18451_v34  ;;  %v32679_v18 = vpack.c.bf16 %v18909_v14, %v18908_v41  ;;  %v18912_v34 = vld [vmem:[#allocation3 + $0x20] sm:$0xff] }
 0xbde   : > { %31690 = vmatprep.mubr.msk.f32.mxu0 %vm5559_vm5, %v18452_v21  ;;  %v18913_v11 = vld [vmem:[#allocation3 + $0x28] sm:$0xff]  ;;  %v38743_v14 = vld [vmem:[#allocation3 + $0x60] sm:$0xff] }
 0xbdf   : > { %32680 = vmatprep.subr.bf16.mxu1 %v32679_v18 }
 0xbe0   : > { %32682 = vmatpush3.bf16.msra.mxu1 %v32679_v18 }
 0xbe1   : > { %31691 = vmatmul.mubr.msk.f32.gmra.mrb[224].mxu0 %vm5559_vm5, %v18453_v51  ;;  %v18940_v51 = vmax.f32 %v18912_v34, 0.0 }
 0xbe2   : > { %31693 = vmatprep.mubr.msk.f32.mxu0 %vm5559_vm5, %v18454_v37  ;;  %v18941_v37 = vmax.f32 %v18913_v11, 0.0 }
 0xbe3   : > { %31736 = vmatprep.mubr.msk.f32.mxu1 %vm15346_vm4, %v18940_v51  ;;  %v38850_v51 = vld [vmem:[#allocation3 + $0xc8] sm:$0xff] }
 0xbe4   : > { %v31522_v27 = vpop.f32.mrb[172].mxu0  ;;  %31737 = vmatmul.mubr.msk.f32.gmra.mrb[170].mxu1 %vm15346_vm4, %v18941_v37 }
 0xbe5   : > { %v17289_v10 = vpop.f32.mrb[173].mxu0  ;;  %31694 = vmatmul.mubr.msk.f32.gmra.mrb[88].mxu0 %vm5559_vm5, %v18455_v54 }
 0xbe6   : > { %31696 = vmatprep.mubr.msk.f32.mxu0 %vm5559_vm5, %v18456_v52 }
 0xbe9   : > { %31697 = vmatmul.mubr.msk.f32.gmra.mrb[226].mxu0 %vm5559_vm5, %v18457_v19 }
 0xbea   : > { %31699 = vmatprep.mubr.msk.f32.mxu0 %vm5559_vm5, %v18458_v6 }
 0xbec   : > { %v31528_v22 = vpop.f32.mrb[174].mxu0 }
 0xbed   : > { %v17309_v50 = vpop.f32.mrb[175].mxu0  ;;  %31700 = vmatmul.mubr.msk.f32.gmra.mrb[92].mxu0 %vm5559_vm5, %v18459_v61 }
 0xbee   : > { %31702 = vmatprep.mubr.msk.f32.mxu0 %vm5559_vm5, %v18460_v38 }
 0xbf1   : > { %31703 = vmatmul.mubr.msk.f32.gmra.mrb[228].mxu0 %vm5559_vm5, %v18461_v49 }
 0xbf2   : > { %31705 = vmatprep.mubr.msk.f32.mxu0 %vm5559_vm5, %v18462_v45 }
 0xbf4   : > { %v31534_v12 = vpop.f32.mrb[176].mxu0 }
 0xbf5   : > { %v17329_v56 = vpop.f32.mrb[177].mxu0  ;;  %31706 = vmatmul.mubr.msk.f32.gmra.mrb[96].mxu0 %vm5559_vm5, %v18463_v15  ;;  %v27232_v15 = vld [vmem:[%s40493_s7 + $0x20] sm:$0xff] }
 0xbf6   : > { %31708 = vmatprep.mubr.msk.f32.mxu0 %vm5559_vm5, %v18464_v2  ;;  %v27233_v56 = vld [vmem:[%s40493_s7 + $0x28] sm:$0xff] }
 0xbf7   : > { %v38707_v2 = vpack.c.bf16 %v27233_v56, %v27232_v15 }
 0xbf9   : > { %31709 = vmatmul.mubr.msk.f32.gmra.mrb[230].mxu0 %vm5559_vm5, %v18465_v4  ;;  %32684 = vmatprep.subr.bf16.mxu1 %v38707_v2 }
 0xbfa   : > { %31711 = vmatprep.mubr.msk.f32.mxu0 %vm5559_vm5, %v18466_v26 }
 0xbfc   : > { %v31540_v59 = vpop.f32.mrb[178].mxu0 }
 0xbfd   : > { %v17349_v25 = vpop.f32.mrb[179].mxu0  ;;  %31712 = vmatmul.mubr.msk.f32.gmra.mrb[100].mxu0 %vm5559_vm5, %v18467_v43 }
 0xbfe   : > { %31714 = vmatprep.mubr.msk.f32.mxu0 %vm5559_vm5, %v18468_v28 }
 0xc01   : > { %31715 = vmatmul.mubr.msk.f32.gmra.mrb[232].mxu0 %vm5559_vm5, %v18469_v7 }
 0xc02   : > { %31717 = vmatprep.mubr.msk.f32.mxu0 %vm5559_vm5, %v18470_v36 }
 0xc04   : > { %v31546_v60 = vpop.f32.mrb[180].mxu0 }
 0xc05   : > { %v17369_v63 = vpop.f32.mrb[181].mxu0  ;;  %31718 = vmatmul.mubr.msk.f32.gmra.mrb[104].mxu0 %vm5559_vm5, %v18471_v16 }
 0xc06   : > { %31720 = vmatprep.mubr.msk.f32.mxu0 %vm5559_vm5, %v18472_v55 }
 0xc09   : > { %31721 = vmatmul.mubr.msk.f32.gmra.mrb[234].mxu0 %vm5559_vm5, %v18473_v30 }
 0xc0a   : > { %31723 = vmatprep.mubr.msk.f32.mxu0 %vm5559_vm5, %v18474_v13 }
 0xc0c   : > { %v31556_v32 = vpop.f32.mrb[182].mxu0 }
 0xc0d   : > { %v17597_v46 = vpop.f32.mrb[183].mxu0  ;;  %31724 = vmatmul.mubr.msk.f32.gmra.mrb[108].mxu0 %vm5559_vm5, %v18475_v40 }
 0xc0e   : > { %31726 = vmatprep.mubr.msk.f32.mxu0 %vm5559_vm5, %v18476_v47  ;;  %v38820_v47 = vld [vmem:[#allocation3 + $0xa8] sm:$0xff] }
 0xc11   : > { %31727 = vmatmul.mubr.msk.f32.gmra.mrb[236].mxu0 %vm5559_vm5, %v18477_v42 }
 0xc14   : > { %v31562_v62 = vpop.f32.mrb[184].mxu0 }
 0xc15   : > { %v17617_v17 = vpop.f32.mrb[185].mxu0 }
 0xc1c   : > { %v31568_v35 = vpop.f32.mrb[186].mxu0 }
 0xc1d   : > { %v17637_v20 = vpop.f32.mrb[187].mxu0 }
 0xc1e   : > { %v38716_v20 = vld [vmem:[#allocation3 + $0x40] sm:$0xff] }
 0xc1f   : > { %v40796_v48 = vmax.f32 %v38716_v20, 0.0 }
 0xc24   : > { %v31574_v53 = vpop.f32.mrb[188].mxu0 }
 0xc25   : > { %v17657_v24 = vpop.f32.mrb[189].mxu0 }
 0xc2c   : > { %v31580_v9 = vpop.f32.mrb[190].mxu0 }
 0xc2d   : > { %v17677_v31 = vpop.f32.mrb[191].mxu0 }
 0xc34   : > { %v31586_v44 = vpop.f32.mrb[192].mxu0 }
 0xc35   : > { %v17697_v39 = vpop.f32.mrb[193].mxu0 }
 0xc36   : > { %v38730_v39 = vld [vmem:[#allocation3 + $0x48] sm:$0xff] }
 0xc37   : > { %v40795_v23 = vmax.f32 %v38730_v39, 0.0 }
 0xc3c   : > { %v31592_v21 = vpop.f32.mrb[194].mxu0 }
 0xc3d   : > { %v17717_v27 = vpop.f32.mrb[195].mxu0 }
 0xc44   : > { %v31602_v54 = vpop.f32.mrb[196].mxu0 }
 0xc45   : > { %v17945_v10 = vpop.f32.mrb[197].mxu0 }
 0xc46   : > { %v40792_v10 = vmax.f32 %v38743_v14, 0.0 }
 0xc4c   : > { %v31608_v52 = vpop.f32.mrb[198].mxu0 }
 0xc4d   : > { %v17965_v19 = vpop.f32.mrb[199].mxu0  ;;  %v38760_v52 = vld [vmem:[#allocation3 + $0x68] sm:$0xff] }
 0xc54   : > { %v31614_v6 = vpop.f32.mrb[200].mxu0 }
 0xc55   : > { %v17985_v22 = vpop.f32.mrb[201].mxu0 }
 0xc5c   : > { %v31620_v61 = vpop.f32.mrb[202].mxu0 }
 0xc5d   : > { %v18005_v50 = vpop.f32.mrb[203].mxu0  ;;  %v40791_v61 = vmax.f32 %v38760_v52, 0.0 }
 0xc64   : > { %v31626_v38 = vpop.f32.mrb[204].mxu0 }
 0xc65   : > { %v18025_v49 = vpop.f32.mrb[205].mxu0  ;;  %v38773_v38 = vld [vmem:[#allocation3 + $0x80] sm:$0xff] }
 0xc6c   : > { %v31632_v45 = vpop.f32.mrb[206].mxu0 }
 0xc6d   : > { %v18045_v12 = vpop.f32.mrb[207].mxu0 }
 0xc74   : > { %v31638_v4 = vpop.f32.mrb[208].mxu0 }
 0xc75   : > { %v18065_v26 = vpop.f32.mrb[209].mxu0 }
 0xc7c   : > { %v31648_v59 = vpop.f32.mrb[210].mxu0 }
 0xc7d   : > { %v18293_v43 = vpop.f32.mrb[211].mxu0 }
 0xc7e   : > { %v40788_v43 = vmax.f32 %v38773_v38, 0.0 }
 0xc84   : > { %v31654_v25 = vpop.f32.mrb[212].mxu0 }
 0xc85   : > { %v18313_v28 = vpop.f32.mrb[213].mxu0  ;;  %v38790_v25 = vld [vmem:[#allocation3 + $0x88] sm:$0xff] }
 0xc8c   : > { %v31660_v33 = vpop.f32.mrb[214].mxu0 }
 0xc8d   : > { %v18333_v1 = vpop.f32.mrb[215].mxu0 }
 0xc94   : > { %v31666_v58 = vpop.f32.mrb[216].mxu0 }
 0xc95   : > { %v18353_v7 = vpop.f32.mrb[217].mxu0  ;;  %v40787_v58 = vmax.f32 %v38790_v25, 0.0 }
 0xc9c   : > { %v31672_v36 = vpop.f32.mrb[218].mxu0 }
 0xc9d   : > { %v18373_v60 = vpop.f32.mrb[219].mxu0  ;;  %v38803_v36 = vld [vmem:[#allocation3 + $0xa0] sm:$0xff] }
 0xca4   : > { %v31678_v16 = vpop.f32.mrb[220].mxu0 }
 0xca5   : > { %v18393_v63 = vpop.f32.mrb[221].mxu0 }
 0xcac   : > { %v31684_v55 = vpop.f32.mrb[222].mxu0 }
 0xcad   : > { %v18413_v30 = vpop.f32.mrb[223].mxu0 }
 0xcae   : > { %v41279_v30 = vld [vmem:[#allocation29_spill] sm:$0xff] }
 0xcaf   : > { %vm41280_vm5 = vcmp.eq.s32.totalorder %v41279_v30, 0  ;;  %v38880_v30 = vld [vmem:[#allocation3 + $0xe8] sm:$0xff] }
 0xcb0   : > { %v31689_v13 = vpop.f32.mrb[84].mxu0 }
 0xcb1   : > { %v18797_v40 = vsel %vm37818_vm8, %v31689_v13, 0.0  ;;  %v18629_v46 = vpop.f32.mrb[85].mxu0 }
 0xcb2   : > { %18825 = vst.msk [vmem:[#allocation3 + $0x38] sm:$0xff] %vm15346_vm4, %v18797_v40  ;;  %v18796_v42 = vsel %vm1624_vm9, %v18629_v46, 0.0  ;;  %v40784_v46 = vmax.f32 %v38803_v36, 0.0  ;;  %vm22235_vm9 = vcmask 261120  }
 0xcb3   : > { %18824 = vst.msk [vmem:[#allocation3 + $0x30] sm:$0xff] %vm15346_vm4, %v18796_v42 }
 0xcb4   : > { %v31692_v62 = vpop.f32.mrb[224].mxu0 }
 0xcb5   : > { %v18639_v17 = vpop.f32.mrb[225].mxu0 }
 0xcb8   : > { %v31695_v35 = vpop.f32.mrb[88].mxu0 }
 0xcb9   : > { %v18801_v24 = vsel %vm37835_vm12, %v31695_v35, 0.0  ;;  %v18649_v9 = vpop.f32.mrb[89].mxu0  ;;  %v38720_v31 = vld [vmem:[#allocation3 + $0x38] sm:$0xff]  ;;  %v40783_v35 = vmax.f32 %v38820_v47, 0.0 }
 0xcba   : > { %18829 = vst.msk [vmem:[#allocation3 + $0x58] sm:$0xff] %vm15346_vm4, %v18801_v24  ;;  %v18800_v29 = vsel %vm1628_vm13, %v18649_v9, 0.0  ;;  %v38725_v5 = vld [vmem:[#allocation3 + $0x30] sm:$0xff]  ;;  %v40797_v0 = vmax.f32 %v38720_v31, 0.0  ;;  %v38833_v24 = vld [vmem:[#allocation3 + $0xc0] sm:$0xff]  ;;  %v40775_v9 = vmax.f32 %v38880_v30, 0.0 }
 0xcbb   : > { %18828 = vst.msk [vmem:[#allocation3 + $0x50] sm:$0xff] %vm15346_vm4, %v18800_v29  ;;  %v40798_v44 = vmax.f32 %v38725_v5, 0.0 }
 0xcbc   : > { %v31698_v57 = vpop.f32.mrb[226].mxu0 }
 0xcbd   : > { %v18659_v41 = vpop.f32.mrb[227].mxu0  ;;  %31739 = vmatprep.mubr.msk.f32.mxu1 %vm15346_vm4, %v40798_v44 }
 0xcbe   : > { %31740 = vmatmul.mubr.msk.f32.gmra.mrb[172].mxu1 %vm15346_vm4, %v40797_v0  ;;  %v41282_v41 = vld [vmem:[#allocation40_spill] sm:$0xff] }
 0xcbf   : > { %31742 = vmatprep.mubr.msk.f32.mxu1 %vm15346_vm4, %v40796_v48  ;;  %vm41283_vm8 = vcmp.eq.s32.totalorder %v41282_v41, 0  ;;  %v18854_v41 = vld [vmem:[#allocation3 + $0x1e] sm:$0xff]  ;;  %v39024_v0 = vld [vmem:[#allocation3 + $0x32] sm:$0xff] }
 0xcc0   : > { %v31701_v8 = vpop.f32.mrb[92].mxu0 }
 0xcc1   : > { %v18805_v34 = vsel %vm37875_vm0, %v31701_v8, 0.0  ;;  %v18669_v11 = vpop.f32.mrb[93].mxu0  ;;  %v38747_v21 = vld [vmem:[#allocation3 + $0x58] sm:$0xff] }
 0xcc2   : > { %18833 = vst.msk [vmem:[#allocation3 + $0x78] sm:$0xff] %vm15346_vm4, %v18805_v34  ;;  %v18804_v37 = vsel %vm1632_vm1, %v18669_v11, 0.0  ;;  %31743 = vmatmul.mubr.msk.f32.gmra.mrb[174].mxu1 %vm15346_vm4, %v40795_v23  ;;  %v38755_v27 = vld [vmem:[#allocation3 + $0x50] sm:$0xff]  ;;  %v40793_v6 = vmax.f32 %v38747_v21, 0.0  ;;  %v40780_v11 = vmax.f32 %v38833_v24, 0.0  ;;  %v27292_v23 = vld [vmem:[%s40493_s7 + $0x40] sm:$0xff] }
 0xcc3   : > { %18832 = vst.msk [vmem:[#allocation3 + $0x70] sm:$0xff] %vm15346_vm4, %v18804_v37  ;;  %v40794_v54 = vmax.f32 %v38755_v27, 0.0 }
 0xcc4   : > { %v31704_v19 = vpop.f32.mrb[228].mxu0 }
 0xcc5   : > { %v18679_v22 = vpop.f32.mrb[229].mxu0  ;;  %31745 = vmatprep.mubr.msk.f32.mxu1 %vm15346_vm4, %v40794_v54  ;;  %v19549_v54 = vld [vmem:[#allocation3 + $0x22] sm:$0xff] }
 0xcc6   : > { %31746 = vmatmul.mubr.msk.f32.gmra.mrb[176].mxu1 %vm15346_vm4, %v40793_v6  ;;  %v19548_v6 = vld [vmem:[#allocation3 + $0x1a] sm:$0xff] }
 0xcc7   : > { %31748 = vmatprep.mubr.msk.f32.mxu1 %vm15346_vm4, %v40792_v10 }
 0xcc8   : > { %v31707_v50 = vpop.f32.mrb[96].mxu0 }
 0xcc9   : > { %v18809_v45 = vsel %vm37921_vm6, %v31707_v50, 0.0  ;;  %v18689_v12 = vpop.f32.mrb[97].mxu0  ;;  %v38777_v15 = vld [vmem:[#allocation3 + $0x78] sm:$0xff]  ;;  %v40779_v50 = vmax.f32 %v38850_v51, 0.0 }
 0xcca   : > { %18837 = vst.msk [vmem:[#allocation3 + $0x98] sm:$0xff] %vm15346_vm4, %v18809_v45  ;;  %v18808_v4 = vsel %vm1636_vm7, %v18689_v12, 0.0  ;;  %31749 = vmatmul.mubr.msk.f32.gmra.mrb[178].mxu1 %vm15346_vm4, %v40791_v61  ;;  %v38785_v26 = vld [vmem:[#allocation3 + $0x70] sm:$0xff]  ;;  %v40789_v33 = vmax.f32 %v38777_v15, 0.0  ;;  %v38863_v45 = vld [vmem:[#allocation3 + $0xe0] sm:$0xff] }
 0xccb   : > { %18836 = vst.msk [vmem:[#allocation3 + $0x90] sm:$0xff] %vm15346_vm4, %v18808_v4  ;;  %v40790_v59 = vmax.f32 %v38785_v26, 0.0  ;;  %v18855_v12 = vld [vmem:[#allocation3 + $0x26] sm:$0xff]  ;;  %v19547_v61 = vld [vmem:[#allocation3 + $0x12] sm:$0xff] }
 0xccc   : > { %v31710_v28 = vpop.f32.mrb[230].mxu0 }
 0xccd   : > { %v18699_v1 = vpop.f32.mrb[231].mxu0  ;;  %31751 = vmatprep.mubr.msk.f32.mxu1 %vm15346_vm4, %v40790_v59 }
 0xcce   : > { %31752 = vmatmul.mubr.msk.f32.gmra.mrb[180].mxu1 %vm15346_vm4, %v40789_v33  ;;  %v38906_v1 = vld [vmem:[#allocation3 + $0x2e] sm:$0xff] }
 0xccf   : > { %31754 = vmatprep.mubr.msk.f32.mxu1 %vm15346_vm4, %v40788_v43 }
 0xcd0   : > { %v31713_v7 = vpop.f32.mrb[100].mxu0 }
 0xcd1   : > { %v18813_v16 = vsel %vm37963_vm14, %v31713_v7, 0.0  ;;  %v18709_v63 = vpop.f32.mrb[101].mxu0  ;;  %v38807_v55 = vld [vmem:[#allocation3 + $0x98] sm:$0xff] }
 0xcd2   : > { %18841 = vst.msk [vmem:[#allocation3 + $0xb8] sm:$0xff] %vm15346_vm4, %v18813_v16  ;;  %v18812_v13 = vsel %vm41280_vm5, %v18709_v63, 0.0  ;;  %31755 = vmatmul.mubr.msk.f32.gmra.mrb[182].mxu1 %vm15346_vm4, %v40787_v58  ;;  %v38815_v32 = vld [vmem:[#allocation3 + $0x90] sm:$0xff]  ;;  %v40785_v62 = vmax.f32 %v38807_v55, 0.0  ;;  %v40776_v63 = vmax.f32 %v38863_v45, 0.0 }
 0xcd3   : > { %18840 = vst.msk [vmem:[#allocation3 + $0xb0] sm:$0xff] %vm15346_vm4, %v18812_v13  ;;  %v40786_v40 = vmax.f32 %v38815_v32, 0.0 }
 0xcd4   : > { %v31716_v42 = vpop.f32.mrb[232].mxu0 }
 0xcd5   : > { %v18719_v17 = vpop.f32.mrb[233].mxu0  ;;  %31757 = vmatprep.mubr.msk.f32.mxu1 %vm15346_vm4, %v40786_v40 }
 0xcd6   : > { %31758 = vmatmul.mubr.msk.f32.gmra.mrb[184].mxu1 %vm15346_vm4, %v40785_v62  ;;  %v18852_v17 = vld [vmem:[#allocation3 + $0xe] sm:$0xff] }
 0xcd7   : > { %31760 = vmatprep.mubr.msk.f32.mxu1 %vm15346_vm4, %v40784_v46 }
 0xcd8   : > { %v31719_v53 = vpop.f32.mrb[104].mxu0 }
 0xcd9   : > { %v18817_v3 = vsel %vm38019_vm10, %v31719_v53, 0.0  ;;  %v18729_v29 = vpop.f32.mrb[105].mxu0  ;;  %v38837_v57 = vld [vmem:[#allocation3 + $0xb8] sm:$0xff] }
 0xcda   : > { %18845 = vst.msk [vmem:[#allocation3 + $0xd8] sm:$0xff] %vm15346_vm4, %v18817_v3  ;;  %v18816_v8 = vsel %vm41283_vm8, %v18729_v29, 0.0  ;;  %31761 = vmatmul.mubr.msk.f32.gmra.mrb[186].mxu1 %vm15346_vm4, %v40783_v35  ;;  %v38845_v18 = vld [vmem:[#allocation3 + $0xb0] sm:$0xff]  ;;  %v40781_v19 = vmax.f32 %v38837_v57, 0.0  ;;  %v18880_v3 = vmax.f32 %v18852_v17, 0.0  ;;  %v38915_v17 = vld [vmem:[#allocation3 + $0x3e] sm:$0xff] }
 0xcdb   : > { %18844 = vst.msk [vmem:[#allocation3 + $0xd0] sm:$0xff] %vm15346_vm4, %v18816_v8  ;;  %v40782_v34 = vmax.f32 %v38845_v18, 0.0  ;;  %v18853_v29 = vld [vmem:[#allocation3 + $0x16] sm:$0xff]  ;;  %v18872_v62 = vld [vmem:[#allocation3 + $0xae] sm:$0xff]  ;;  %v18874_v40 = vld [vmem:[#allocation3 + $0xbe] sm:$0xff] }
 0xcdc   : > { %v31722_v37 = vpop.f32.mrb[234].mxu0  ;;  %v27262_v8 = vld [vmem:[%s40493_s7 + $0x30] sm:$0xff] }
 0xcdd   : > { %v18739_v22 = vpop.f32.mrb[235].mxu0  ;;  %31763 = vmatprep.mubr.msk.f32.mxu1 %vm15346_vm4, %v40782_v34  ;;  %v27263_v37 = vld [vmem:[%s40493_s7 + $0x38] sm:$0xff]  ;;  %v31270_v34 = vpop.f32.mrb[166].mxu1 }
 0xcde   : > { %31764 = vmatmul.mubr.msk.f32.gmra.mrb[188].mxu1 %vm15346_vm4, %v40781_v19  ;;  %v18881_v22 = vmax.f32 %v18853_v29, 0.0  ;;  %v18869_v19 = vld [vmem:[#allocation3 + $0x96] sm:$0xff]  ;;  %v15253_v35 = vpop.f32.mrb[167].mxu1  ;;  %v38980_v34 = vmax.f32 %v18872_v62, 0.0 }
 0xcdf   : > { %31766 = vmatprep.mubr.msk.f32.mxu1 %vm15346_vm4, %v40780_v11  ;;  %v38970_v46 = vmax.f32 %v18869_v19, 0.0  ;;  %v18873_v35 = vld [vmem:[#allocation3 + $0xb6] sm:$0xff]  ;;  %v31738_v19 = vpop.f32.mrb[170].mxu1 }
 0xce0   : > { %v31725_v49 = vpop.f32.mrb[108].mxu0  ;;  %v19129_v58 = vpop.f32.mrb[171].mxu1  ;;  %v38986_v43 = vmax.f32 %v18873_v35, 0.0 }
 0xce1   : > { %v18821_v56 = vsel %vm38065_vm11, %v31725_v49, 0.0  ;;  %v18749_v4 = vpop.f32.mrb[109].mxu0  ;;  %v38867_v28 = vld [vmem:[#allocation3 + $0xd8] sm:$0xff]  ;;  %v18882_v49 = vmax.f32 %v18854_v41, 0.0  ;;  %v18860_v41 = vld [vmem:[#allocation3 + $0x4e] sm:$0xff] }
 0xce2   : > { %18849 = vst.msk [vmem:[#allocation3 + $0xf8] sm:$0xff] %vm15346_vm4, %v18821_v56  ;;  %v18820_v7 = vsel %vm1648_vm15, %v18749_v4, 0.0  ;;  %31767 = vmatmul.mubr.msk.f32.gmra.mrb[190].mxu1 %vm15346_vm4, %v40779_v50  ;;  %v38875_v60 = vld [vmem:[#allocation3 + $0xd0] sm:$0xff]  ;;  %v40777_v42 = vmax.f32 %v38867_v28, 0.0  ;;  %v38903_v56 = vpack.c.bf16 %v27263_v37, %v27262_v8  ;;  %v18883_v4 = vmax.f32 %v18855_v12, 0.0  ;;  %v18878_v58 = vld [vmem:[#allocation3 + $0xde] sm:$0xff] }
 0xce3   : > { %18848 = vst.msk [vmem:[#allocation3 + $0xf0] sm:$0xff] %vm15346_vm4, %v18820_v7  ;;  %v40778_v16 = vmax.f32 %v38875_v60, 0.0  ;;  %v40807_v7 = vmax.f32 %v38906_v1, 0.0  ;;  %v38931_v8 = vmax.f32 %v18860_v41, 0.0  ;;  %v18861_v37 = vld [vmem:[#allocation3 + $0x56] sm:$0xff]  ;;  %v18864_v41 = vld [vmem:[#allocation3 + $0x6e] sm:$0xff] }
 0xce4   : > { %v31728_v13 = vpop.f32.mrb[236].mxu0  ;;  %v38938_v12 = vmax.f32 %v18861_v37, 0.0  ;;  %v18867_v37 = vld [vmem:[#allocation3 + $0x86] sm:$0xff]  ;;  %v18876_v33 = vld [vmem:[#allocation3 + $0xce] sm:$0xff]  ;;  %v18877_v19 = vld [vmem:[#allocation3 + $0xd6] sm:$0xff] }
 0xce5   : > { %v18759_v53 = vpop.f32.mrb[237].mxu0  ;;  %31769 = vmatprep.mubr.msk.f32.mxu1 %vm15346_vm4, %v40778_v16  ;;  %v38912_v13 = vld [vmem:[#allocation3 + $0x36] sm:$0xff]  ;;  %v18866_v16 = vld [vmem:[#allocation3 + $0x7e] sm:$0xff]  ;;  %v38996_v59 = vmax.f32 %v18876_v33, 0.0  ;;  %v39002_v35 = vmax.f32 %v18877_v19, 0.0  ;;  %v19575_v33 = vmax.f32 %v19547_v61, 0.0 }
 0xce6   : > { %31770 = vmatmul.mubr.msk.f32.gmra.mrb[192].mxu1 %vm15346_vm4, %v40777_v42  ;;  %v38920_v53 = vld [vmem:[#allocation3 + $0x46] sm:$0xff]  ;;  %v18865_v42 = vld [vmem:[#allocation3 + $0x76] sm:$0xff]  ;;  %v38956_v50 = vmax.f32 %v18866_v16, 0.0 }
 0xce7   : > { %31772 = vmatprep.mubr.msk.f32.mxu1 %vm15346_vm4, %v40776_v63  ;;  %v40799_v29 = vmax.f32 %v38920_v53, 0.0  ;;  %v38948_v63 = vmax.f32 %v18864_v41, 0.0  ;;  %v18868_v41 = vld [vmem:[#allocation3 + $0x8e] sm:$0xff]  ;;  %v18871_v16 = vld [vmem:[#allocation3 + $0xa6] sm:$0xff] }
 0xce8   : > { %v38964_v11 = vmax.f32 %v18868_v41, 0.0  ;;  %v38976_v41 = vmax.f32 %v18871_v16, 0.0  ;;  %v38988_v16 = vmax.f32 %v18874_v40, 0.0  ;;  %v18879_v40 = vld [vmem:[#allocation3 + $0xe6] sm:$0xff] }
 0xce9   : > { %v39008_v10 = vmax.f32 %v18879_v40, 0.0  ;;  %v27293_v19 = vld [vmem:[%s40493_s7 + $0x48] sm:$0xff]  ;;  %v19577_v40 = vmax.f32 %v19549_v54, 0.0 }
 0xcea   : > { %31773 = vmatmul.mubr.msk.f32.gmra.mrb[194].mxu1 %vm15346_vm4, %v40775_v9  ;;  %v39021_v48 = vpack.c.bf16 %v27293_v19, %v27292_v23  ;;  %v19550_v61 = vld [vmem:[#allocation3 + $0x2a] sm:$0xff]  ;;  %v39045_v19 = vld [vmem:[#allocation3 + $0x52] sm:$0xff] }
 0xceb   : > { %31779 = vmatprep.mubr.msk.f32.mxu1 %vm15346_vm4, %v18880_v3  ;;  %v40803_v3 = vmax.f32 %v38915_v17, 0.0  ;;  %v19578_v44 = vmax.f32 %v19550_v61, 0.0  ;;  %v39054_v61 = vld [vmem:[#allocation3 + $0x5a] sm:$0xff] }
 0xcec   : > { %41287 = vst [vmem:[#allocation14_spill] sm:$0xff] %v39054_v61 }
 0xcee   : > { %31780 = vmatmul.mubr.msk.f32.vlgmr.msra.gmra.mrb[168].mxu1 %vm15346_vm4, %v18881_v22  ;;  %v18862_v22 = vld [vmem:[#allocation3 + $0x5e] sm:$0xff] }
 0xcef   : > { %32686 = vmatpush3.bf16.msra.mxu1 %v38707_v2  ;;  %31782 = vmatprep.mubr.msk.f32.mxu1 %vm15346_vm4, %v18882_v49  ;;  %v40805_v2 = vmax.f32 %v38912_v13, 0.0  ;;  %v18863_v49 = vld [vmem:[#allocation3 + $0x66] sm:$0xff] }
 0xcf0   : > { %32688 = vmatprep.subr.bf16.mxu1 %v38903_v56  ;;  %v38944_v9 = vmax.f32 %v18863_v49, 0.0  ;;  %v38960_v49 = vmax.f32 %v18867_v37, 0.0 }
 0xcf2   : > { %31783 = vmatmul.mubr.msk.f32.gmra.mrb[196].mxu1 %vm15346_vm4, %v18883_v4  ;;  %v38940_v4 = vmax.f32 %v18862_v22, 0.0  ;;  %v38954_v22 = vmax.f32 %v18865_v42, 0.0  ;;  %v18870_v42 = vld [vmem:[#allocation3 + $0x9e] sm:$0xff] }
 0xcf3   : > { %31785 = vmatprep.mubr.msk.f32.mxu1 %vm15346_vm4, %v40807_v7  ;;  %v38972_v37 = vmax.f32 %v18870_v42, 0.0  ;;  %v18875_v42 = vld [vmem:[#allocation3 + $0xc6] sm:$0xff]  ;;  %v39078_v7 = vld [vmem:[#allocation3 + $0x7a] sm:$0xff] }
 0xcf4   : > { %v38992_v62 = vmax.f32 %v18875_v42, 0.0  ;;  %v39004_v42 = vmax.f32 %v18878_v58, 0.0  ;;  %v19576_v58 = vmax.f32 %v19548_v6, 0.0  ;;  %v40802_v6 = vmax.f32 %v39024_v0, 0.0  ;;  %41291 = vst [vmem:[#allocation39_spill] sm:$0xff] %v39078_v7 }
 0xcf6   : > { %31786 = vmatmul.mubr.msk.f32.gmra.mrb[198].mxu1 %vm15346_vm4, %v40805_v2  ;;  %v39075_v2 = vld [vmem:[#allocation3 + $0x82] sm:$0xff] }
 0xcf7   : > { %31788 = vmatprep.mubr.msk.f32.mxu1 %vm15346_vm4, %v40803_v3  ;;  %v39069_v3 = vld [vmem:[#allocation3 + $0x72] sm:$0xff]  ;;  %41290 = vst [vmem:[#allocation34_spill] sm:$0xff] %v39075_v2 }
 0xcf8   : > { %41289 = vst [vmem:[#allocation23_spill] sm:$0xff] %v39069_v3 }
 0xcfa   : > { %31789 = vmatmul.mubr.msk.f32.gmra.mrb[200].mxu1 %vm15346_vm4, %v40799_v29  ;;  %v39028_v29 = vld [vmem:[#allocation3 + $0x42] sm:$0xff] }
 0xcfb   : > { %31791 = vmatprep.mubr.msk.f32.mxu1 %vm15346_vm4, %v38931_v8  ;;  %v40801_v23 = vmax.f32 %v39028_v29, 0.0 }
 0xcfe   : > { %31792 = vmatmul.mubr.msk.f32.gmra.mrb[176].mxu1 %vm15346_vm4, %v38938_v12 }
 0xcff   : > { %31794 = vmatprep.mubr.msk.f32.mxu1 %vm15346_vm4, %v38940_v4 }
 0xd02   : > { %31795 = vmatmul.mubr.msk.f32.gmra.mrb[202].mxu1 %vm15346_vm4, %v38944_v9 }
 0xd03   : > { %31797 = vmatprep.mubr.msk.f32.mxu1 %vm15346_vm4, %v38948_v63 }
 0xd06   : > { %31798 = vmatmul.mubr.msk.f32.gmra.mrb[204].mxu1 %vm15346_vm4, %v38954_v22 }
 0xd07   : > { %31800 = vmatprep.mubr.msk.f32.mxu1 %vm15346_vm4, %v38956_v50 }
 0xd0a   : > { %31801 = vmatmul.mubr.msk.f32.gmra.mrb[206].mxu1 %vm15346_vm4, %v38960_v49 }
 0xd0b   : > { %31803 = vmatprep.mubr.msk.f32.mxu1 %vm15346_vm4, %v38964_v11 }
 0xd0e   : > { %31804 = vmatmul.mubr.msk.f32.gmra.mrb[184].mxu1 %vm15346_vm4, %v38970_v46 }
 0xd0f   : > { %31806 = vmatprep.mubr.msk.f32.mxu1 %vm15346_vm4, %v38972_v37 }
 0xd12   : > { %31807 = vmatmul.mubr.msk.f32.gmra.mrb[208].mxu1 %vm15346_vm4, %v38976_v41 }
 0xd13   : > { %31809 = vmatprep.mubr.msk.f32.mxu1 %vm15346_vm4, %v38980_v34 }
 0xd16   : > { %31810 = vmatmul.mubr.msk.f32.gmra.mrb[210].mxu1 %vm15346_vm4, %v38986_v43 }
 0xd17   : > { %31812 = vmatprep.mubr.msk.f32.mxu1 %vm15346_vm4, %v38988_v16 }
 0xd1a   : > { %31813 = vmatmul.mubr.msk.f32.gmra.mrb[212].mxu1 %vm15346_vm4, %v38992_v62 }
 0xd1b   : > { %31815 = vmatprep.mubr.msk.f32.mxu1 %vm15346_vm4, %v38996_v59 }
 0xd1e   : > { %31816 = vmatmul.mubr.msk.f32.gmra.mrb[192].mxu1 %vm15346_vm4, %v39002_v35 }
 0xd1f   : > { %31818 = vmatprep.mubr.msk.f32.mxu1 %vm15346_vm4, %v39004_v42 }
 0xd22   : > { %31819 = vmatmul.mubr.msk.f32.gmra.mrb[214].mxu1 %vm15346_vm4, %v39008_v10 }
 0xd23   : > { %31825 = vmatprep.mubr.msk.f32.mxu1 %vm15346_vm4, %v19575_v33  ;;  %v39032_v33 = vld [vmem:[#allocation3 + $0x3a] sm:$0xff] }
 0xd24   : > { %v40800_v54 = vmax.f32 %v39032_v33, 0.0 }
 0xd26   : > { %31826 = vmatmul.mubr.msk.f32.vlgmr.msra.gmra.mrb[168].mxu1 %vm15346_vm4, %v19576_v58  ;;  %v39051_v58 = vld [vmem:[#allocation3 + $0x62] sm:$0xff] }
 0xd27   : > { %32690 = vmatpush3.bf16.msra.mxu1 %v38903_v56  ;;  %31828 = vmatprep.mubr.msk.f32.mxu1 %vm15346_vm4, %v19577_v40  ;;  %v39040_v56 = vld [vmem:[#allocation3 + $0x4a] sm:$0xff]  ;;  %41286 = vst [vmem:[#allocation13_spill] sm:$0xff] %v39051_v58  ;;  %v40806_v40 = vmax.f32 %v39045_v19, 0.0 }
 0xd28   : > { %32692 = vmatprep.subr.bf16.mxu1 %v39021_v48 }
 0xd2a   : > { %31829 = vmatmul.mubr.msk.f32.gmra.mrb[216].mxu1 %vm15346_vm4, %v19578_v44  ;;  %v40804_v44 = vmax.f32 %v39040_v56, 0.0 }
 0xd2b   : > { %31831 = vmatprep.mubr.msk.f32.mxu1 %vm15346_vm4, %v40802_v6  ;;  %v39064_v6 = vld [vmem:[#allocation3 + $0x6a] sm:$0xff] }
 0xd2c   : > { %41288 = vst [vmem:[#allocation46_spill] sm:$0xff] %v39064_v6 }
 0xd2e   : > { %31832 = vmatmul.mubr.msk.f32.gmra.mrb[218].mxu1 %vm15346_vm4, %v40800_v54  ;;  %v40809_v54 = vmax.f32 %v39051_v58, 0.0  ;;  %v39088_v58 = vld [vmem:[#allocation3 + $0x8a] sm:$0xff] }
 0xd2f   : > { %31834 = vmatprep.mubr.msk.f32.mxu1 %vm15346_vm4, %v40801_v23  ;;  %v40808_v23 = vmax.f32 %v39054_v61, 0.0  ;;  %41292 = vst [vmem:[#allocation48_spill] sm:$0xff] %v39088_v58  ;;  %v39093_v61 = vld [vmem:[#allocation3 + $0x92] sm:$0xff] }
 0xd30   : > { %41293 = vst [vmem:[#allocation11_spill] sm:$0xff] %v39093_v61 }
 0xd32   : > { %31835 = vmatmul.mubr.msk.f32.gmra.mrb[220].mxu1 %vm15346_vm4, %v40804_v44  ;;  %v40812_v44 = vmax.f32 %v39064_v6, 0.0  ;;  %v39102_v6 = vld [vmem:[#allocation3 + $0x9a] sm:$0xff] }
 0xd33   : > { %31837 = vmatprep.mubr.msk.f32.mxu1 %vm15346_vm4, %v40806_v40  ;;  %v40814_v40 = vmax.f32 %v39069_v3, 0.0  ;;  %v39099_v3 = vld [vmem:[#allocation3 + $0xa2] sm:$0xff]  ;;  %41295 = vst [vmem:[#allocation32_spill] sm:$0xff] %v39102_v6 }
 0xd34   : > { %41294 = vst [vmem:[#allocation45_spill] sm:$0xff] %v39099_v3 }
 0xd36   : > { %31838 = vmatmul.mubr.msk.f32.gmra.mrb[176].mxu1 %vm15346_vm4, %v40808_v23  ;;  %v40817_v23 = vmax.f32 %v39075_v2, 0.0  ;;  %v39112_v2 = vld [vmem:[#allocation3 + $0xaa] sm:$0xff] }
 0xd37   : > { %31840 = vmatprep.mubr.msk.f32.mxu1 %vm15346_vm4, %v40809_v54  ;;  %v40816_v54 = vmax.f32 %v39078_v7, 0.0  ;;  %41296 = vst [vmem:[#allocation31_spill] sm:$0xff] %v39112_v2  ;;  %v39117_v7 = vld [vmem:[#allocation3 + $0xb2] sm:$0xff] }
 0xd38   : > { %41297 = vst [vmem:[#allocation43_spill] sm:$0xff] %v39117_v7 }
 0xd3a   : > { %31841 = vmatmul.mubr.msk.f32.gmra.mrb[222].mxu1 %vm15346_vm4, %v40812_v44  ;;  %v40820_v44 = vmax.f32 %v39088_v58, 0.0  ;;  %v39126_v58 = vld [vmem:[#allocation3 + $0xba] sm:$0xff] }
 0xd3b   : > { %31843 = vmatprep.mubr.msk.f32.mxu1 %vm15346_vm4, %v40814_v40  ;;  %v40822_v40 = vmax.f32 %v39093_v61, 0.0  ;;  %v39123_v61 = vld [vmem:[#allocation3 + $0xc2] sm:$0xff] }
 0xd3c   : > { %41298 = vst [vmem:[#allocation7_spill] sm:$0xff] %v39123_v61 }
 0xd3e   : > { %31844 = vmatmul.mubr.msk.f32.gmra.mrb[224].mxu1 %vm15346_vm4, %v40816_v54  ;;  %v40825_v54 = vmax.f32 %v39099_v3, 0.0  ;;  %v39136_v3 = vld [vmem:[#allocation3 + $0xca] sm:$0xff] }
 0xd3f   : > { %31846 = vmatprep.mubr.msk.f32.mxu1 %vm15346_vm4, %v40817_v23  ;;  %v40824_v23 = vmax.f32 %v39102_v6, 0.0  ;;  %v39141_v6 = vld [vmem:[#allocation3 + $0xd2] sm:$0xff] }
 0xd40   : > { %41299 = vst [vmem:[#allocation37_spill] sm:$0xff] %v39141_v6 }
 0xd42   : > { %31847 = vmatmul.mubr.msk.f32.gmra.mrb[226].mxu1 %vm15346_vm4, %v40820_v44  ;;  %v40828_v44 = vmax.f32 %v39112_v2, 0.0  ;;  %v39150_v2 = vld [vmem:[#allocation3 + $0xda] sm:$0xff] }
 0xd43   : > { %31849 = vmatprep.mubr.msk.f32.mxu1 %vm15346_vm4, %v40822_v40  ;;  %v40830_v40 = vmax.f32 %v39117_v7, 0.0  ;;  %v39147_v7 = vld [vmem:[#allocation3 + $0xe2] sm:$0xff]  ;;  %41301 = vst [vmem:[#allocation35_spill] sm:$0xff] %v39150_v2 }
 0xd44   : > { %41300 = vst [vmem:[#allocation47_spill] sm:$0xff] %v39147_v7 }
 0xd46   : > { %31850 = vmatmul.mubr.msk.f32.gmra.mrb[184].mxu1 %vm15346_vm4, %v40824_v23  ;;  %v40833_v23 = vmax.f32 %v39123_v61, 0.0  ;;  %v39160_v61 = vld [vmem:[#allocation3 + $0xea] sm:$0xff] }
 0xd47   : > { %31852 = vmatprep.mubr.msk.f32.mxu1 %vm15346_vm4, %v40825_v54  ;;  %v40832_v54 = vmax.f32 %v39126_v58, 0.0  ;;  %41302 = vst [vmem:[#allocation28_spill] sm:$0xff] %v39160_v61 }
 0xd4a   : > { %31853 = vmatmul.mubr.msk.f32.gmra.mrb[228].mxu1 %vm15346_vm4, %v40828_v44  ;;  %v40835_v44 = vmax.f32 %v39136_v3, 0.0 }
 0xd4b   : > { %31855 = vmatprep.mubr.msk.f32.mxu1 %vm15346_vm4, %v40830_v40  ;;  %v40836_v40 = vmax.f32 %v39141_v6, 0.0  ;;  %v27323_v6 = vld [vmem:[%s40493_s7 + $0x58] sm:$0xff] }
 0xd4e   : > { %31856 = vmatmul.mubr.msk.f32.gmra.mrb[230].mxu1 %vm15346_vm4, %v40832_v54  ;;  %v40840_v54 = vmax.f32 %v39147_v7, 0.0 }
 0xd4f   : > { %31858 = vmatprep.mubr.msk.f32.mxu1 %vm15346_vm4, %v40833_v23  ;;  %v40838_v23 = vmax.f32 %v39150_v2, 0.0  ;;  %v41305_v2 = vmax.f32 %v38915_v17, 0.0  ;;  %v39236_v17 = vld [vmem:[#allocation3 + $0xfe] sm:$0xff] }
 0xd50   : > { %41308 = vst [vmem:[#allocation42_spill] sm:$0xff] %v39236_v17 }
 0xd52   : > { %31859 = vmatmul.mubr.msk.f32.gmra.mrb[232].mxu1 %vm15346_vm4, %v40835_v44  ;;  %v40845_v44 = vmax.f32 %v39160_v61, 0.0  ;;  %v41306_v61 = vmax.f32 %v38920_v53, 0.0  ;;  %v39241_v53 = vld [vmem:[#allocation3 + $0x106] sm:$0xff] }
 0xd53   : > { %31861 = vmatprep.mubr.msk.f32.mxu1 %vm15346_vm4, %v40836_v40  ;;  %v27322_v40 = vld [vmem:[%s40493_s7 + $0x50] sm:$0xff] }
 0xd54   : > { %v32695_v7 = vpack.c.bf16 %v27323_v6, %v27322_v40  ;;  %v40846_v6 = vmax.f32 %v39236_v17, 0.0  ;;  %v27352_v40 = vld [vmem:[%s40493_s7 + $0x60] sm:$0xff]  ;;  %v41310_v17 = vmax.f32 %v38720_v31, 0.0  ;;  %v41314_v31 = vmax.f32 %v38747_v21, 0.0 }
 0xd55   : > { %v41318_v21 = vmax.f32 %v38777_v15, 0.0  ;;  %v41323_v15 = vmax.f32 %v38803_v36, 0.0  ;;  %v41327_v36 = vmax.f32 %v38833_v24, 0.0  ;;  %v41331_v24 = vmax.f32 %v38863_v45, 0.0 }
 0xd56   : > { %31862 = vmatmul.mubr.msk.f32.gmra.mrb[192].mxu1 %vm15346_vm4, %v40838_v23  ;;  %v41303_v23 = vmax.f32 %v38906_v1, 0.0 }
 0xd57   : > { %31864 = vmatprep.mubr.msk.f32.mxu1 %vm15346_vm4, %v40840_v54  ;;  %v41304_v54 = vmax.f32 %v38912_v13, 0.0  ;;  %v39232_v13 = vld [vmem:[#allocation3 + $0xf6] sm:$0xff] }
 0xd58   : > { %41307 = vst [vmem:[#allocation38_spill] sm:$0xff] %v39232_v13 }
 0xd5a   : > { %31865 = vmatmul.mubr.msk.f32.gmra.mrb[234].mxu1 %vm15346_vm4, %v40845_v44 }
 0xd5b   : > { %31871 = vmatprep.mubr.msk.f32.mxu1 %vm15346_vm4, %v41303_v23  ;;  %v19978_v23 = vmax.f32 %v39241_v53, 0.0 }
 0xd5e   : > { %31872 = vmatmul.mubr.msk.f32.vlgmr.msra.gmra.mrb[168].mxu1 %vm15346_vm4, %v41304_v54 }
 0xd5f   : > { %31874 = vmatprep.mubr.msk.f32.mxu1 %vm15346_vm4, %v41305_v2  ;;  %32694 = vmatpush3.bf16.msra.mxu1 %v39021_v48  ;;  %v39227_v48 = vld [vmem:[#allocation3 + $0xee] sm:$0xff]  ;;  %v40844_v2 = vmax.f32 %v39232_v13, 0.0  ;;  %v41311_v13 = vmax.f32 %v38716_v20, 0.0  ;;  %v41315_v20 = vmax.f32 %v38743_v14, 0.0  ;;  %v41319_v14 = vmax.f32 %v38773_v38, 0.0 }
 0xd60   : > { %32696 = vmatprep.subr.bf16.mxu1 %v32695_v7  ;;  %v40843_v1 = vmax.f32 %v39227_v48, 0.0 }
 0xd62   : > { %31875 = vmatmul.mubr.msk.f32.gmra.mrb[236].mxu1 %vm15346_vm4, %v41306_v61  ;;  %v27353_v61 = vld [vmem:[%s40493_s7 + $0x68] sm:$0xff] }
 0xd63   : > { %31877 = vmatprep.mubr.msk.f32.mxu1 %vm15346_vm4, %v38931_v8  ;;  %v39264_v44 = vpack.c.bf16 %v27353_v61, %v27352_v40  ;;  %v41320_v61 = vmax.f32 %v38790_v25, 0.0  ;;  %v41324_v25 = vmax.f32 %v38820_v47, 0.0  ;;  %v41329_v47 = vmax.f32 %v38875_v60, 0.0 }
 0xd64   : > { %v41332_v60 = vmax.f32 %v38880_v30, 0.0 }
 0xd66   : > { %31878 = vmatmul.mubr.msk.f32.gmra.mrb[238].mxu1 %vm15346_vm4, %v38938_v12 }
 0xd67   : > { %31880 = vmatprep.mubr.msk.f32.mxu1 %vm15346_vm4, %v38940_v4 }
 0xd6a   : > { %31881 = vmatmul.mubr.msk.f32.gmra.mrb[240].mxu1 %vm15346_vm4, %v38944_v9 }
 0xd6b   : > { %31883 = vmatprep.mubr.msk.f32.mxu1 %vm15346_vm4, %v38948_v63 }
 0xd6e   : > { %31884 = vmatmul.mubr.msk.f32.gmra.mrb[176].mxu1 %vm15346_vm4, %v38954_v22 }
 0xd6f   : > { %31886 = vmatprep.mubr.msk.f32.mxu1 %vm15346_vm4, %v38956_v50 }
 0xd72   : > { %31887 = vmatmul.mubr.msk.f32.gmra.mrb[242].mxu1 %vm15346_vm4, %v38960_v49 }
 0xd73   : > { %31889 = vmatprep.mubr.msk.f32.mxu1 %vm15346_vm4, %v38964_v11 }
 0xd76   : > { %31890 = vmatmul.mubr.msk.f32.gmra.mrb[244].mxu1 %vm15346_vm4, %v38970_v46 }
 0xd77   : > { %31892 = vmatprep.mubr.msk.f32.mxu1 %vm15346_vm4, %v38972_v37 }
 0xd7a   : > { %31893 = vmatmul.mubr.msk.f32.gmra.mrb[246].mxu1 %vm15346_vm4, %v38976_v41 }
 0xd7b   : > { %31895 = vmatprep.mubr.msk.f32.mxu1 %vm15346_vm4, %v38980_v34 }
 0xd7e   : > { %31896 = vmatmul.mubr.msk.f32.gmra.mrb[184].mxu1 %vm15346_vm4, %v38986_v43 }
 0xd7f   : > { %31898 = vmatprep.mubr.msk.f32.mxu1 %vm15346_vm4, %v38988_v16 }
 0xd82   : > { %31899 = vmatmul.mubr.msk.f32.gmra.mrb[248].mxu1 %vm15346_vm4, %v38992_v62 }
 0xd83   : > { %31901 = vmatprep.mubr.msk.f32.mxu1 %vm15346_vm4, %v38996_v59 }
 0xd86   : > { %31902 = vmatmul.mubr.msk.f32.gmra.mrb[250].mxu1 %vm15346_vm4, %v39002_v35 }
 0xd87   : > { %31904 = vmatprep.mubr.msk.f32.mxu1 %vm15346_vm4, %v39004_v42 }
 0xd8a   : > { %31905 = vmatmul.mubr.msk.f32.gmra.mrb[252].mxu1 %vm15346_vm4, %v39008_v10 }
 0xd8b   : > { %31907 = vmatprep.mubr.msk.f32.mxu1 %vm15346_vm4, %v40843_v1 }
 0xd8e   : > { %31908 = vmatmul.mubr.msk.f32.gmra.mrb[192].mxu1 %vm15346_vm4, %v40844_v2  ;;  %v41309_v2 = vmax.f32 %v38725_v5, 0.0  ;;  %v41313_v5 = vmax.f32 %v38755_v27, 0.0  ;;  %v41317_v27 = vmax.f32 %v38785_v26, 0.0 }
 0xd8f   : > { %31910 = vmatprep.mubr.msk.f32.mxu1 %vm15346_vm4, %v40846_v6 }
 0xd91   : > { %v31741_v54 = vpop.f32.mrb[172].mxu1 }
 0xd92   : > { %v19139_v1 = vpop.f32.mrb[173].mxu1  ;;  %31911 = vmatmul.mubr.msk.f32.gmra.mrb[254].mxu1 %vm15346_vm4, %v19978_v23 }
 0xd93   : > { %31917 = vmatprep.mubr.msk.f32.mxu1 %vm15346_vm4, %v41309_v2  ;;  %v41312_v1 = vmax.f32 %v38730_v39, 0.0  ;;  %v41316_v39 = vmax.f32 %v38760_v52, 0.0  ;;  %v41321_v52 = vmax.f32 %v38815_v32, 0.0  ;;  %v41325_v32 = vmax.f32 %v38845_v18, 0.0 }
 0xd95   : > { %v31744_v54 = vpop.f32.mrb[174].mxu1 }
 0xd96   : > { %v19149_v6 = vpop.f32.mrb[175].mxu1  ;;  %31918 = vmatmul.mubr.msk.f32.vlgmr.msra.gmra.mrb[168].mxu1 %vm15346_vm4, %v41310_v17 }
 0xd97   : > { %32698 = vmatpush3.bf16.msra.mxu1 %v32695_v7  ;;  %31920 = vmatprep.mubr.msk.f32.mxu1 %vm15346_vm4, %v41311_v13 }
 0xd98   : > { %32700 = vmatprep.subr.bf16.mxu1 %v39264_v44 }
 0xd9a   : > { %31921 = vmatmul.mubr.msk.f32.gmra.mrb[14].mxu1 %vm15346_vm4, %v41312_v1  ;;  %v41322_v1 = vmax.f32 %v38807_v55, 0.0  ;;  %v41326_v55 = vmax.f32 %v38837_v57, 0.0  ;;  %v39330_v57 = vld [vmem:[#allocation3 + $0xf0] sm:$0xff] }
 0xd9b   : > { %31923 = vmatprep.mubr.msk.f32.mxu1 %vm15346_vm4, %v41313_v5 }
 0xd9d   : > { %v31750_v2 = vpop.f32.mrb[178].mxu1 }
 0xd9e   : > { %v19169_v6 = vpop.f32.mrb[179].mxu1  ;;  %31924 = vmatmul.mubr.msk.f32.gmra.mrb[16].mxu1 %vm15346_vm4, %v41314_v31  ;;  %v41328_v31 = vmax.f32 %v38850_v51, 0.0  ;;  %v20351_v51 = vmax.f32 %v39330_v57, 0.0 }
 0xd9f   : > { %31926 = vmatprep.mubr.msk.f32.mxu1 %vm15346_vm4, %v41315_v20 }
 0xda1   : > { %v31753_v7 = vpop.f32.mrb[180].mxu1 }
 0xda2   : > { %v19179_v13 = vpop.f32.mrb[181].mxu1  ;;  %31927 = vmatmul.mubr.msk.f32.gmra.mrb[18].mxu1 %vm15346_vm4, %v41316_v39  ;;  %v41330_v7 = vmax.f32 %v38867_v28, 0.0  ;;  %v39338_v39 = vld [vmem:[#allocation3 + $0xf8] sm:$0xff] }
 0xda3   : > { %31929 = vmatprep.mubr.msk.f32.mxu1 %vm15346_vm4, %v41317_v27  ;;  %v39335_v13 = vld [vmem:[#allocation3 + $0x100] sm:$0xff]  ;;  %v39347_v27 = vld [vmem:[#allocation3 + $0x108] sm:$0xff]  ;;  %v20352_v45 = vmax.f32 %v39338_v39, 0.0 }
 0xda4   : > { %v20353_v28 = vmax.f32 %v39335_v13, 0.0  ;;  %v20354_v30 = vmax.f32 %v39347_v27, 0.0  ;;  %v21803_v13 = vld [vmem:[#allocation3 + $0x52] sm:$0xff] }
 0xda5   : > { %v31756_v17 = vpop.f32.mrb[182].mxu1 }
 0xda6   : > { %v19189_v40 = vpop.f32.mrb[183].mxu1  ;;  %31930 = vmatmul.mubr.msk.f32.gmra.mrb[176].mxu1 %vm15346_vm4, %v41318_v21 }
 0xda7   : > { %31932 = vmatprep.mubr.msk.f32.mxu1 %vm15346_vm4, %v41319_v14  ;;  %v27382_v14 = vld [vmem:[%s40493_s7 + $0x70] sm:$0xff] }
 0xdaa   : > { %31933 = vmatmul.mubr.msk.f32.gmra.mrb[20].mxu1 %vm15346_vm4, %v41320_v61  ;;  %v27383_v61 = vld [vmem:[%s40493_s7 + $0x78] sm:$0xff] }
 0xdab   : > { %31935 = vmatprep.mubr.msk.f32.mxu1 %vm15346_vm4, %v41321_v52 }
 0xdad   : > { %v31762_v26 = vpop.f32.mrb[186].mxu1 }
 0xdae   : > { %v19209_v54 = vpop.f32.mrb[187].mxu1  ;;  %31936 = vmatmul.mubr.msk.f32.gmra.mrb[22].mxu1 %vm15346_vm4, %v41322_v1  ;;  %v41333_v26 = vmax.f32 %v39024_v0, 0.0  ;;  %v41336_v0 = vmax.f32 %v39040_v56, 0.0 }
 0xdaf   : > { %31938 = vmatprep.mubr.msk.f32.mxu1 %vm15346_vm4, %v41323_v15  ;;  %v39369_v54 = vpack.c.bf16 %v27383_v61, %v27382_v14  ;;  %v41352_v14 = vld [vmem:[#allocation11_spill] sm:$0xff] }
 0xdb0   : > { %v41353_v61 = vmax.f32 %v41352_v14, 0.0  ;;  %v41372_v14 = vld [vmem:[#allocation28_spill] sm:$0xff] }
 0xdb1   : > { %v31765_v38 = vpop.f32.mrb[188].mxu1 }
 0xdb2   : > { %v19219_v5 = vpop.f32.mrb[189].mxu1  ;;  %31939 = vmatmul.mubr.msk.f32.gmra.mrb[24].mxu1 %vm15346_vm4, %v41324_v25  ;;  %v41334_v38 = vmax.f32 %v39032_v33, 0.0  ;;  %v41337_v25 = vmax.f32 %v39045_v19, 0.0 }
 0xdb3   : > { %31941 = vmatprep.mubr.msk.f32.mxu1 %vm15346_vm4, %v41325_v32  ;;  %v41335_v5 = vmax.f32 %v39028_v29, 0.0 }
 0xdb5   : > { %v31768_v2 = vpop.f32.mrb[190].mxu1 }
 0xdb6   : > { %v19229_v6 = vpop.f32.mrb[191].mxu1  ;;  %31942 = vmatmul.mubr.msk.f32.gmra.mrb[184].mxu1 %vm15346_vm4, %v41326_v55  ;;  %v41338_v2 = vld [vmem:[#allocation14_spill] sm:$0xff] }
 0xdb7   : > { %31944 = vmatprep.mubr.msk.f32.mxu1 %vm15346_vm4, %v41327_v36  ;;  %v41339_v6 = vmax.f32 %v41338_v2, 0.0  ;;  %v41360_v2 = vld [vmem:[#allocation43_spill] sm:$0xff] }
 0xdba   : > { %31945 = vmatmul.mubr.msk.f32.gmra.mrb[26].mxu1 %vm15346_vm4, %v41328_v31  ;;  %v41342_v31 = vld [vmem:[#allocation46_spill] sm:$0xff] }
 0xdbb   : > { %31947 = vmatprep.mubr.msk.f32.mxu1 %vm15346_vm4, %v41329_v47  ;;  %v41343_v56 = vmax.f32 %v41342_v31, 0.0  ;;  %v41344_v47 = vld [vmem:[#allocation23_spill] sm:$0xff] }
 0xdbc   : > { %v41345_v19 = vmax.f32 %v41344_v47, 0.0  ;;  %v41366_v47 = vld [vmem:[#allocation37_spill] sm:$0xff] }
 0xdbd   : > { %v31774_v18 = vpop.f32.mrb[194].mxu1 }
 0xdbe   : > { %v19249_v20 = vpop.f32.mrb[195].mxu1  ;;  %31948 = vmatmul.mubr.msk.f32.gmra.mrb[0].mxu1 %vm15346_vm4, %v41330_v7  ;;  %v41346_v7 = vld [vmem:[#allocation39_spill] sm:$0xff] }
 0xdbf   : > { %31950 = vmatprep.mubr.msk.f32.mxu1 %vm15346_vm4, %v41331_v24  ;;  %v41347_v24 = vmax.f32 %v41346_v7, 0.0  ;;  %v41368_v7 = vld [vmem:[#allocation35_spill] sm:$0xff] }
 0xdc2   : > { %31951 = vmatmul.mubr.msk.f32.gmra.mrb[2].mxu1 %vm15346_vm4, %v41332_v60  ;;  %v41348_v60 = vld [vmem:[#allocation34_spill] sm:$0xff] }
 0xdc3   : > { %31953 = vmatprep.mubr.msk.f32.mxu1 %vm15346_vm4, %v20351_v51 }
 0xdc5   : > { %v31784_v17 = vpop.f32.mrb[196].mxu1 }
 0xdc6   : > { %v19418_v40 = vpop.f32.mrb[197].mxu1  ;;  %31954 = vmatmul.mubr.msk.f32.gmra.mrb[192].mxu1 %vm15346_vm4, %v20352_v45  ;;  %v41349_v17 = vmax.f32 %v41348_v60, 0.0  ;;  %v41370_v60 = vld [vmem:[#allocation47_spill] sm:$0xff] }
 0xdc7   : > { %31956 = vmatprep.mubr.msk.f32.mxu1 %vm15346_vm4, %v20353_v28  ;;  %v41350_v40 = vld [vmem:[#allocation48_spill] sm:$0xff] }
 0xdc9   : > { %v31787_v21 = vpop.f32.mrb[198].mxu1 }
 0xdca   : > { %v19428_v52 = vpop.f32.mrb[199].mxu1  ;;  %31957 = vmatmul.mubr.msk.f32.gmra.mrb[4].mxu1 %vm15346_vm4, %v20354_v30  ;;  %v41351_v21 = vmax.f32 %v41350_v40, 0.0  ;;  %v39441_v40 = vld [vmem:[#allocation3 + $0x102] sm:$0xff] }
 0xdcb   : > { %31963 = vmatprep.mubr.msk.f32.mxu1 %vm15346_vm4, %v41333_v26 }
 0xdcd   : > { %v31790_v1 = vpop.f32.mrb[200].mxu1 }
 0xdce   : > { %v19438_v15 = vpop.f32.mrb[201].mxu1  ;;  %31964 = vmatmul.mubr.msk.f32.vlgmr.msra.gmra.mrb[168].mxu1 %vm15346_vm4, %v41334_v38  ;;  %v41354_v1 = vld [vmem:[#allocation32_spill] sm:$0xff]  ;;  %v41356_v38 = vld [vmem:[#allocation45_spill] sm:$0xff] }
 0xdcf   : > { %32702 = vmatpush3.bf16.msra.mxu1 %v39264_v44  ;;  %31966 = vmatprep.mubr.msk.f32.mxu1 %vm15346_vm4, %v41335_v5  ;;  %v41340_v44 = vld [vmem:[#allocation13_spill] sm:$0xff]  ;;  %v41355_v15 = vmax.f32 %v41354_v1, 0.0  ;;  %v41357_v5 = vmax.f32 %v41356_v38, 0.0 }
 0xdd0   : > { %32704 = vmatprep.subr.bf16.mxu1 %v39369_v54  ;;  %v41341_v29 = vmax.f32 %v41340_v44, 0.0 }
 0xdd2   : > { %31967 = vmatmul.mubr.msk.f32.gmra.mrb[6].mxu1 %vm15346_vm4, %v41336_v0 }
 0xdd3   : > { %31969 = vmatprep.mubr.msk.f32.mxu1 %vm15346_vm4, %v41337_v25 }
 0xdd5   : > { %v31796_v32 = vpop.f32.mrb[202].mxu1 }
 0xdd6   : > { %v19458_v33 = vpop.f32.mrb[203].mxu1  ;;  %31970 = vmatmul.mubr.msk.f32.gmra.mrb[8].mxu1 %vm15346_vm4, %v41339_v6  ;;  %v41358_v32 = vld [vmem:[#allocation31_spill] sm:$0xff]  ;;  %v41361_v6 = vmax.f32 %v41360_v2, 0.0 }
 0xdd7   : > { %31972 = vmatprep.mubr.msk.f32.mxu1 %vm15346_vm4, %v41341_v29  ;;  %v41359_v33 = vmax.f32 %v41358_v32, 0.0  ;;  %v27413_v32 = vld [vmem:[%s40493_s7 + $0x88] sm:$0xff] }
 0xdd9   : > { %v31799_v55 = vpop.f32.mrb[204].mxu1 }
 0xdda   : > { %v19468_v36 = vpop.f32.mrb[205].mxu1  ;;  %31973 = vmatmul.mubr.msk.f32.gmra.mrb[10].mxu1 %vm15346_vm4, %v41343_v56  ;;  %v41362_v55 = vmax.f32 %v39126_v58, 0.0  ;;  %v41365_v56 = vmax.f32 %v39136_v3, 0.0  ;;  %v39436_v58 = vld [vmem:[#allocation3 + $0xf2] sm:$0xff] }
 0xddb   : > { %31975 = vmatprep.mubr.msk.f32.mxu1 %vm15346_vm4, %v41345_v19  ;;  %v41363_v36 = vld [vmem:[#allocation7_spill] sm:$0xff]  ;;  %v41367_v19 = vmax.f32 %v41366_v47, 0.0  ;;  %v20727_v3 = vmax.f32 %v39436_v58, 0.0 }
 0xddc   : > { %v41364_v31 = vmax.f32 %v41363_v36, 0.0  ;;  %v21077_v36 = vld [vmem:[#allocation3 + $0x11e] sm:$0xff] }
 0xddd   : > { %v31802_v18 = vpop.f32.mrb[206].mxu1 }
 0xdde   : > { %v19478_v20 = vpop.f32.mrb[207].mxu1  ;;  %31976 = vmatmul.mubr.msk.f32.gmra.mrb[176].mxu1 %vm15346_vm4, %v41347_v24  ;;  %v41369_v24 = vmax.f32 %v41368_v7, 0.0 }
 0xddf   : > { %31978 = vmatprep.mubr.msk.f32.mxu1 %vm15346_vm4, %v41349_v17  ;;  %v41371_v17 = vmax.f32 %v41370_v60, 0.0  ;;  %v21428_v60 = vld [vmem:[#allocation3 + $0x58] sm:$0xff] }
 0xde2   : > { %31979 = vmatmul.mubr.msk.f32.gmra.mrb[12].mxu1 %vm15346_vm4, %v41351_v21  ;;  %v39444_v21 = vld [vmem:[#allocation3 + $0xfa] sm:$0xff] }
 0xde3   : > { %31981 = vmatprep.mubr.msk.f32.mxu1 %vm15346_vm4, %v41353_v61  ;;  %v41373_v61 = vmax.f32 %v41372_v14, 0.0  ;;  %v20728_v1 = vmax.f32 %v39444_v21, 0.0  ;;  %v21456_v14 = vmax.f32 %v21428_v60, 0.0 }
 0xde5   : > { %v31808_v52 = vpop.f32.mrb[208].mxu1 }
 0xde6   : > { %v19498_v26 = vpop.f32.mrb[209].mxu1  ;;  %31982 = vmatmul.mubr.msk.f32.gmra.mrb[30].mxu1 %vm15346_vm4, %v41355_v15  ;;  %v20729_v52 = vmax.f32 %v39441_v40, 0.0  ;;  %v27444_v40 = vld [vmem:[%s40494_s8 + $0x30] sm:$0xff] }
 0xde7   : > { %31984 = vmatprep.mubr.msk.f32.mxu1 %vm15346_vm4, %v41357_v5  ;;  %v39453_v26 = vld [vmem:[#allocation3 + $0x10a] sm:$0xff] }
 0xde8   : > { %v20730_v5 = vmax.f32 %v39453_v26, 0.0 }
 0xde9   : > { %v31811_v0 = vpop.f32.mrb[210].mxu1 }
 0xdea   : > { %v19508_v25 = vpop.f32.mrb[211].mxu1  ;;  %31985 = vmatmul.mubr.msk.f32.gmra.mrb[34].mxu1 %vm15346_vm4, %v41359_v33 }
 0xdeb   : > { %31987 = vmatprep.mubr.msk.f32.mxu1 %vm15346_vm4, %v41361_v6  ;;  %v27412_v25 = vld [vmem:[%s40493_s7 + $0x80] sm:$0xff] }
 0xdec   : > { %v39474_v2 = vpack.c.bf16 %v27413_v32, %v27412_v25  ;;  %v21433_v25 = vld [vmem:[#allocation3 + $0x80] sm:$0xff] }
 0xded   : > { %v31814_v44 = vpop.f32.mrb[212].mxu1 }
 0xdee   : > { %v19518_v29 = vpop.f32.mrb[213].mxu1  ;;  %31988 = vmatmul.mubr.msk.f32.gmra.mrb[184].mxu1 %vm15346_vm4, %v41362_v55 }
 0xdef   : > { %31990 = vmatprep.mubr.msk.f32.mxu1 %vm15346_vm4, %v41364_v31  ;;  %v21078_v31 = vld [vmem:[#allocation3 + $0x126] sm:$0xff] }
 0xdf2   : > { %31991 = vmatmul.mubr.msk.f32.gmra.mrb[38].mxu1 %vm15346_vm4, %v41365_v56 }
 0xdf3   : > { %31993 = vmatprep.mubr.msk.f32.mxu1 %vm15346_vm4, %v41367_v19  ;;  %v21106_v19 = vmax.f32 %v21078_v31, 0.0  ;;  %v21443_v31 = vld [vmem:[#allocation3 + $0xd0] sm:$0xff] }
 0xdf5   : > { %v31820_v18 = vpop.f32.mrb[214].mxu1 }
 0xdf6   : > { %v19538_v20 = vpop.f32.mrb[215].mxu1  ;;  %31994 = vmatmul.mubr.msk.f32.gmra.mrb[42].mxu1 %vm15346_vm4, %v41369_v24  ;;  %v21427_v18 = vld [vmem:[#allocation3 + $0x50] sm:$0xff] }
 0xdf7   : > { %31996 = vmatprep.mubr.msk.f32.mxu1 %vm15346_vm4, %v41371_v17  ;;  %v21429_v20 = vld [vmem:[#allocation3 + $0x60] sm:$0xff]  ;;  %v21455_v24 = vmax.f32 %v21427_v18, 0.0  ;;  %v21430_v17 = vld [vmem:[#allocation3 + $0x68] sm:$0xff]  ;;  %v21444_v18 = vld [vmem:[#allocation3 + $0xd8] sm:$0xff] }
 0xdf8   : > { %v21472_v60 = vmax.f32 %v21444_v18, 0.0 }
 0xdfa   : > { %31997 = vmatmul.mubr.msk.f32.gmra.mrb[46].mxu1 %vm15346_vm4, %v41373_v61 }
 0xdfb   : > { %31999 = vmatprep.mubr.msk.f32.mxu1 %vm15346_vm4, %v20727_v3 }
 0xdfd   : > { %v31830_v15 = vpop.f32.mrb[216].mxu1 }
 0xdfe   : > { %v19766_v38 = vpop.f32.mrb[217].mxu1  ;;  %32000 = vmatmul.mubr.msk.f32.gmra.mrb[192].mxu1 %vm15346_vm4, %v20728_v1 }
 0xdff   : > { %32002 = vmatprep.mubr.msk.f32.mxu1 %vm15346_vm4, %v20729_v52  ;;  %v21458_v38 = vmax.f32 %v21430_v17, 0.0 }
 0xe01   : > { %v31833_v0 = vpop.f32.mrb[218].mxu1 }
 0xe02   : > { %v19776_v33 = vpop.f32.mrb[219].mxu1  ;;  %32003 = vmatmul.mubr.msk.f32.gmra.mrb[50].mxu1 %vm15346_vm4, %v20730_v5  ;;  %v21431_v0 = vld [vmem:[#allocation3 + $0x70] sm:$0xff] }
 0xe03   : > { %32009 = vmatprep.mubr.msk.f32.mxu1 %vm15346_vm4, %v38931_v8  ;;  %v21459_v32 = vmax.f32 %v21431_v0, 0.0  ;;  %v21432_v33 = vld [vmem:[#allocation3 + $0x78] sm:$0xff] }
 0xe04   : > { %v21452_v0 = vld [vmem:[#allocation3 + $0x118] sm:$0xff] }
 0xe05   : > { %v31836_v6 = vpop.f32.mrb[220].mxu1  ;;  %v21480_v57 = vmax.f32 %v21452_v0, 0.0  ;;  %v21821_v0 = vld [vmem:[#allocation3 + $0xe2] sm:$0xff] }
 0xe06   : > { %v19786_v44 = vpop.f32.mrb[221].mxu1  ;;  %32010 = vmatmul.mubr.msk.f32.vlgmr.msra.gmra.mrb[168].mxu1 %vm15346_vm4, %v38938_v12  ;;  %v21461_v6 = vmax.f32 %v21433_v25, 0.0  ;;  %v21453_v25 = vld [vmem:[#allocation3 + $0x120] sm:$0xff] }
 0xe07   : > { %32012 = vmatprep.mubr.msk.f32.mxu1 %vm15346_vm4, %v38940_v4  ;;  %32706 = vmatpush3.bf16.msra.mxu1 %v39369_v54  ;;  %v21434_v44 = vld [vmem:[#allocation3 + $0x88] sm:$0xff] }
 0xe08   : > { %32708 = vmatprep.subr.bf16.mxu1 %v39474_v2 }
 0xe0a   : > { %32013 = vmatmul.mubr.msk.f32.gmra.mrb[54].mxu1 %vm15346_vm4, %v38944_v9 }
 0xe0b   : > { %32015 = vmatprep.mubr.msk.f32.mxu1 %vm15346_vm4, %v38948_v63 }
 0xe0d   : > { %v31842_v8 = vpop.f32.mrb[222].mxu1 }
 0xe0e   : > { %v19806_v29 = vpop.f32.mrb[223].mxu1  ;;  %32016 = vmatmul.mubr.msk.f32.gmra.mrb[56].mxu1 %vm15346_vm4, %v38954_v22  ;;  %v21460_v8 = vmax.f32 %v21432_v33, 0.0 }
 0xe0f   : > { %32018 = vmatprep.mubr.msk.f32.mxu1 %vm15346_vm4, %v38956_v50 }
 0xe11   : > { %v31845_v12 = vpop.f32.mrb[224].mxu1 }
 0xe12   : > { %v19816_v4 = vpop.f32.mrb[225].mxu1  ;;  %32019 = vmatmul.mubr.msk.f32.gmra.mrb[58].mxu1 %vm15346_vm4, %v38960_v49 }
 0xe13   : > { %32021 = vmatprep.mubr.msk.f32.mxu1 %vm15346_vm4, %v38964_v11  ;;  %v21462_v4 = vmax.f32 %v21434_v44, 0.0  ;;  %v21831_v44 = vmax.f32 %v21803_v13, 0.0  ;;  %v21822_v13 = vld [vmem:[#allocation3 + $0xea] sm:$0xff] }
 0xe15   : > { %v31848_v9 = vpop.f32.mrb[226].mxu1 }
 0xe16   : > { %v19826_v54 = vpop.f32.mrb[227].mxu1  ;;  %32022 = vmatmul.mubr.msk.f32.gmra.mrb[176].mxu1 %vm15346_vm4, %v38970_v46  ;;  %v21435_v9 = vld [vmem:[#allocation3 + $0x90] sm:$0xff] }
 0xe17   : > { %32024 = vmatprep.mubr.msk.f32.mxu1 %vm15346_vm4, %v38972_v37  ;;  %v21075_v37 = vld [vmem:[#allocation3 + $0x10e] sm:$0xff] }
 0xe1a   : > { %32025 = vmatmul.mubr.msk.f32.gmra.mrb[60].mxu1 %vm15346_vm4, %v38976_v41 }
 0xe1b   : > { %32027 = vmatprep.mubr.msk.f32.mxu1 %vm15346_vm4, %v38980_v34 }
 0xe1d   : > { %v31854_v50 = vpop.f32.mrb[228].mxu1 }
 0xe1e   : > { %v19846_v63 = vpop.f32.mrb[229].mxu1  ;;  %32028 = vmatmul.mubr.msk.f32.gmra.mrb[62].mxu1 %vm15346_vm4, %v38986_v43  ;;  %v41374_v43 = vmax.f32 %v39227_v48, 0.0  ;;  %v21105_v48 = vmax.f32 %v21077_v36, 0.0  ;;  %v21463_v50 = vmax.f32 %v21435_v9, 0.0 }
 0xe1f   : > { %32030 = vmatprep.mubr.msk.f32.mxu1 %vm15346_vm4, %v38988_v16  ;;  %v41375_v16 = vld [vmem:[#allocation38_spill] sm:$0xff]  ;;  %v21436_v63 = vld [vmem:[#allocation3 + $0x98] sm:$0xff] }
 0xe21   : > { %v31857_v11 = vpop.f32.mrb[230].mxu1 }
 0xe22   : > { %v19856_v22 = vpop.f32.mrb[231].mxu1  ;;  %32031 = vmatmul.mubr.msk.f32.gmra.mrb[64].mxu1 %vm15346_vm4, %v38992_v62  ;;  %v41377_v62 = vld [vmem:[#allocation42_spill] sm:$0xff] }
 0xe23   : > { %32033 = vmatprep.mubr.msk.f32.mxu1 %vm15346_vm4, %v38996_v59  ;;  %v41376_v59 = vmax.f32 %v41375_v16, 0.0  ;;  %v41378_v55 = vmax.f32 %v41377_v62, 0.0  ;;  %v21441_v16 = vld [vmem:[#allocation3 + $0xc0] sm:$0xff]  ;;  %v21440_v62 = vld [vmem:[#allocation3 + $0xb8] sm:$0xff] }
 0xe25   : > { %v31860_v46 = vpop.f32.mrb[232].mxu1 }
 0xe26   : > { %v19866_v49 = vpop.f32.mrb[233].mxu1  ;;  %32034 = vmatmul.mubr.msk.f32.gmra.mrb[184].mxu1 %vm15346_vm4, %v39002_v35  ;;  %v21103_v35 = vmax.f32 %v21075_v37, 0.0  ;;  %v21438_v46 = vld [vmem:[#allocation3 + $0xa8] sm:$0xff] }
 0xe27   : > { %32036 = vmatprep.mubr.msk.f32.mxu1 %vm15346_vm4, %v39004_v42  ;;  %v21076_v42 = vld [vmem:[#allocation3 + $0x116] sm:$0xff]  ;;  %v21464_v49 = vmax.f32 %v21436_v63, 0.0 }
 0xe2a   : > { %32037 = vmatmul.mubr.msk.f32.gmra.mrb[66].mxu1 %vm15346_vm4, %v39008_v10  ;;  %v21104_v10 = vmax.f32 %v21076_v42, 0.0  ;;  %v21468_v42 = vmax.f32 %v21440_v62, 0.0 }
 0xe2b   : > { %32039 = vmatprep.mubr.msk.f32.mxu1 %vm15346_vm4, %v41374_v43 }
 0xe2d   : > { %v31866_v41 = vpop.f32.mrb[234].mxu1 }
 0xe2e   : > { %v19886_v34 = vpop.f32.mrb[235].mxu1  ;;  %32040 = vmatmul.mubr.msk.f32.gmra.mrb[68].mxu1 %vm15346_vm4, %v41376_v59  ;;  %v21466_v41 = vmax.f32 %v21438_v46, 0.0 }
 0xe2f   : > { %32042 = vmatprep.mubr.msk.f32.mxu1 %vm15346_vm4, %v41378_v55  ;;  %v21439_v34 = vld [vmem:[#allocation3 + $0xb0] sm:$0xff]  ;;  %v21469_v55 = vmax.f32 %v21441_v16, 0.0  ;;  %v21813_v16 = vld [vmem:[#allocation3 + $0xa2] sm:$0xff] }
 0xe30   : > { %v21467_v59 = vmax.f32 %v21439_v34, 0.0 }
 0xe32   : > { %32043 = vmatmul.mubr.msk.f32.gmra.mrb[70].mxu1 %vm15346_vm4, %v19978_v23  ;;  %v21457_v23 = vmax.f32 %v21429_v20, 0.0 }
 0xe33   : > { %32045 = vmatprep.mubr.msk.f32.mxu1 %vm15346_vm4, %v21103_v35  ;;  %v21442_v35 = vld [vmem:[#allocation3 + $0xc8] sm:$0xff] }
 0xe35   : > { %v31876_v56 = vpop.f32.mrb[236].mxu1 }
 0xe36   : > { %v20142_v47 = vpop.f32.mrb[237].mxu1  ;;  %32046 = vmatmul.mubr.msk.f32.gmra.mrb[192].mxu1 %vm15346_vm4, %v21104_v10  ;;  %v21445_v56 = vld [vmem:[#allocation3 + $0xe0] sm:$0xff] }
 0xe37   : > { %32048 = vmatprep.mubr.msk.f32.mxu1 %vm15346_vm4, %v21105_v48  ;;  %v21470_v48 = vmax.f32 %v21442_v35, 0.0 }
 0xe39   : > { %v31879_v7 = vpop.f32.mrb[238].mxu1 }
 0xe3a   : > { %v20152_v53 = vpop.f32.mrb[239].mxu1  ;;  %32049 = vmatmul.mubr.msk.f32.gmra.mrb[72].mxu1 %vm15346_vm4, %v21106_v19  ;;  %v21471_v19 = vmax.f32 %v21443_v31, 0.0  ;;  %v21473_v7 = vmax.f32 %v21445_v56, 0.0  ;;  %v21815_v56 = vld [vmem:[#allocation3 + $0xb2] sm:$0xff] }
 0xe3b   : > { %32055 = vmatprep.mubr.msk.f32.mxu1 %vm15346_vm4, %v21455_v24  ;;  %v21446_v24 = vld [vmem:[#allocation3 + $0xe8] sm:$0xff]  ;;  %v21843_v18 = vmax.f32 %v21815_v56, 0.0 }
 0xe3c   : > { %v21474_v17 = vmax.f32 %v21446_v24, 0.0  ;;  %v22299_v56 = vld [vmem:[#allocation4 + $0x28] sm:$0xff] }
 0xe3d   : > { %v31882_v61 = vpop.f32.mrb[240].mxu1 }
 0xe3e   : > { %v20162_v15 = vpop.f32.mrb[241].mxu1  ;;  %32056 = vmatmul.mubr.msk.f32.vlgmr.msra.gmra.mrb[168].mxu1 %vm15346_vm4, %v21456_v14  ;;  %v21451_v14 = vld [vmem:[#allocation3 + $0x110] sm:$0xff] }
 0xe3f   : > { %32710 = vmatpush3.bf16.msra.mxu1 %v39474_v2  ;;  %32058 = vmatprep.mubr.msk.f32.mxu1 %vm15346_vm4, %v21457_v23  ;;  %v21437_v2 = vld [vmem:[#allocation3 + $0xa0] sm:$0xff] }
 0xe40   : > { %v21465_v22 = vmax.f32 %v21437_v2, 0.0  ;;  %v21807_v2 = vld [vmem:[#allocation3 + $0x72] sm:$0xff] }
 0xe41   : > { %v21835_v63 = vmax.f32 %v21807_v2, 0.0 }
 0xe42   : > { %32059 = vmatmul.mubr.msk.f32.gmra.mrb[74].mxu1 %vm15346_vm4, %v21458_v38  ;;  %v21479_v38 = vmax.f32 %v21451_v14, 0.0  ;;  %v27442_v14 = vld [vmem:[%s40494_s8 + $0x20] sm:$0xff] }
 0xe43   : > { %32061 = vmatprep.mubr.msk.f32.mxu1 %vm15346_vm4, %v21459_v32  ;;  %v21454_v32 = vld [vmem:[#allocation3 + $0x128] sm:$0xff] }
 0xe45   : > { %v31888_v29 = vpop.f32.mrb[242].mxu1 }
 0xe46   : > { %v20182_v12 = vpop.f32.mrb[243].mxu1  ;;  %32062 = vmatmul.mubr.msk.f32.gmra.mrb[76].mxu1 %vm15346_vm4, %v21460_v8  ;;  %v21804_v8 = vld [vmem:[#allocation3 + $0x5a] sm:$0xff] }
 0xe47   : > { %32064 = vmatprep.mubr.msk.f32.mxu1 %vm15346_vm4, %v21461_v6  ;;  %v21832_v29 = vmax.f32 %v21804_v8, 0.0 }
 0xe49   : > { %v31891_v54 = vpop.f32.mrb[244].mxu1 }
 0xe4a   : > { %v20192_v11 = vpop.f32.mrb[245].mxu1  ;;  %32065 = vmatmul.mubr.msk.f32.gmra.mrb[78].mxu1 %vm15346_vm4, %v21462_v4  ;;  %v21806_v4 = vld [vmem:[#allocation3 + $0x6a] sm:$0xff] }
 0xe4b   : > { %32067 = vmatprep.mubr.msk.f32.mxu1 %vm15346_vm4, %v21463_v50  ;;  %v21834_v54 = vmax.f32 %v21806_v4, 0.0  ;;  %v21809_v50 = vld [vmem:[#allocation3 + $0x82] sm:$0xff]  ;;  %v21808_v11 = vld [vmem:[#allocation3 + $0x7a] sm:$0xff] }
 0xe4c   : > { %v21836_v46 = vmax.f32 %v21808_v11, 0.0 }
 0xe4d   : > { %v31894_v43 = vpop.f32.mrb[246].mxu1 }
 0xe4e   : > { %v20202_v37 = vpop.f32.mrb[247].mxu1  ;;  %32068 = vmatmul.mubr.msk.f32.gmra.mrb[176].mxu1 %vm15346_vm4, %v21464_v49  ;;  %v21810_v43 = vld [vmem:[#allocation3 + $0x8a] sm:$0xff] }
 0xe4f   : > { %32070 = vmatprep.mubr.msk.f32.mxu1 %vm15346_vm4, %v21465_v22  ;;  %v21837_v22 = vmax.f32 %v21809_v50, 0.0  ;;  %v21838_v34 = vmax.f32 %v21810_v43, 0.0 }
 0xe52   : > { %32071 = vmatmul.mubr.msk.f32.gmra.mrb[80].mxu1 %vm15346_vm4, %v21466_v41  ;;  %v21811_v41 = vld [vmem:[#allocation3 + $0x92] sm:$0xff] }
 0xe53   : > { %32073 = vmatprep.mubr.msk.f32.mxu1 %vm15346_vm4, %v21467_v59  ;;  %v21839_v62 = vmax.f32 %v21811_v41, 0.0 }
 0xe55   : > { %v31900_v36 = vpop.f32.mrb[248].mxu1 }
 0xe56   : > { %v20222_v10 = vpop.f32.mrb[249].mxu1  ;;  %32074 = vmatmul.mubr.msk.f32.gmra.mrb[82].mxu1 %vm15346_vm4, %v21468_v42  ;;  %v21841_v42 = vmax.f32 %v21813_v16, 0.0  ;;  %v22297_v16 = vld [vmem:[#allocation4 + $0x18] sm:$0xff] }
 0xe57   : > { %32076 = vmatprep.mubr.msk.f32.mxu1 %vm15346_vm4, %v21469_v55  ;;  %v21812_v55 = vld [vmem:[#allocation3 + $0x9a] sm:$0xff] }
 0xe58   : > { %v21840_v36 = vmax.f32 %v21812_v55, 0.0  ;;  %v22293_v55 = vld [vmem:[%s40494_s8 + $0x8] sm:$0xff] }
 0xe59   : > { %v31903_v47 = vpop.f32.mrb[250].mxu1 }
 0xe5a   : > { %v20232_v20 = vpop.f32.mrb[251].mxu1  ;;  %32077 = vmatmul.mubr.msk.f32.gmra.mrb[84].mxu1 %vm15346_vm4, %v21470_v48  ;;  %v21814_v48 = vld [vmem:[#allocation3 + $0xaa] sm:$0xff] }
 0xe5b   : > { %32079 = vmatprep.mubr.msk.f32.mxu1 %vm15346_vm4, %v21471_v19  ;;  %v21842_v47 = vmax.f32 %v21814_v48, 0.0  ;;  %v21817_v19 = vld [vmem:[#allocation3 + $0xc2] sm:$0xff]  ;;  %v21816_v20 = vld [vmem:[#allocation3 + $0xba] sm:$0xff] }
 0xe5c   : > { %v21844_v24 = vmax.f32 %v21816_v20, 0.0 }
 0xe5d   : > { %v31906_v53 = vpop.f32.mrb[252].mxu1 }
 0xe5e   : > { %v20242_v23 = vpop.f32.mrb[253].mxu1  ;;  %32080 = vmatmul.mubr.msk.f32.gmra.mrb[184].mxu1 %vm15346_vm4, %v21472_v60  ;;  %v21818_v53 = vld [vmem:[#allocation3 + $0xca] sm:$0xff] }
 0xe5f   : > { %32082 = vmatprep.mubr.msk.f32.mxu1 %vm15346_vm4, %v21473_v7  ;;  %v21845_v7 = vmax.f32 %v21817_v19, 0.0  ;;  %v22301_v19 = vld [vmem:[#allocation4 + $0x38] sm:$0xff] }
 0xe62   : > { %32083 = vmatmul.mubr.msk.f32.gmra.mrb[86].mxu1 %vm15346_vm4, %v21474_v17  ;;  %v21819_v17 = vld [vmem:[#allocation3 + $0xd2] sm:$0xff] }
 0xe63   : > { %32085 = vmatprep.mubr.msk.f32.mxu1 %vm15346_vm4, %v20351_v51  ;;  %v21481_v51 = vmax.f32 %v21453_v25, 0.0 }
 0xe65   : > { %v31912_v61 = vpop.f32.mrb[254].mxu1 }
 0xe66   : > { %v20262_v15 = vpop.f32.mrb[255].mxu1  ;;  %32086 = vmatmul.mubr.msk.f32.gmra.mrb[88].mxu1 %vm15346_vm4, %v20352_v45  ;;  %v21482_v45 = vmax.f32 %v21454_v32, 0.0  ;;  %v27443_v61 = vld [vmem:[%s40494_s8 + $0x28] sm:$0xff] }
 0xe67   : > { %32088 = vmatprep.mubr.msk.f32.mxu1 %vm15346_vm4, %v20353_v28  ;;  %v21805_v28 = vld [vmem:[#allocation3 + $0x62] sm:$0xff]  ;;  %v32711_v15 = vpack.c.bf16 %v27443_v61, %v27442_v14  ;;  %v22294_v14 = vld [vmem:[%s40494_s8 + $0x10] sm:$0xff]  ;;  %v22295_v61 = vld [vmem:[%s40494_s8 + $0x18] sm:$0xff] }
 0xe69   : > { %32712 = vmatprep.subr.bf16.mxu1 %v32711_v15 }
 0xe6a   : > { %32089 = vmatmul.mubr.msk.f32.gmra.mrb[90].mxu1 %vm15346_vm4, %v20354_v30  ;;  %v21833_v30 = vmax.f32 %v21805_v28, 0.0 }
 0xe6b   : > { %32091 = vmatprep.mubr.msk.f32.mxu1 %vm15346_vm4, %v21479_v38  ;;  %v21846_v38 = vmax.f32 %v21818_v53, 0.0 }
 0xe6d   : > { %v31922_v33 = vpop.f32.mrb[14].mxu1 }
 0xe6e   : > { %v20518_v39 = vpop.f32.mrb[15].mxu1  ;;  %32092 = vmatmul.mubr.msk.f32.gmra.mrb[192].mxu1 %vm15346_vm4, %v21480_v57  ;;  %v21847_v57 = vmax.f32 %v21819_v17, 0.0  ;;  %v21849_v33 = vmax.f32 %v21821_v0, 0.0 }
 0xe6f   : > { %32094 = vmatprep.mubr.msk.f32.mxu1 %vm15346_vm4, %v21481_v51  ;;  %v21820_v51 = vld [vmem:[#allocation3 + $0xda] sm:$0xff] }
 0xe70   : > { %v21848_v39 = vmax.f32 %v21820_v51, 0.0 }
 0xe71   : > { %v31925_v6 = vpop.f32.mrb[16].mxu1 }
 0xe72   : > { %v20528_v27 = vpop.f32.mrb[17].mxu1  ;;  %32095 = vmatmul.mubr.msk.f32.gmra.mrb[92].mxu1 %vm15346_vm4, %v21482_v45  ;;  %v21850_v6 = vmax.f32 %v21822_v13, 0.0 }
 0xe73   : > { %32101 = vmatprep.mubr.msk.f32.mxu1 %vm15346_vm4, %v21831_v44  ;;  %v21827_v44 = vld [vmem:[#allocation3 + $0x112] sm:$0xff] }
 0xe75   : > { %v31928_v12 = vpop.f32.mrb[18].mxu1 }
 0xe76   : > { %v20538_v9 = vpop.f32.mrb[19].mxu1  ;;  %32102 = vmatmul.mubr.msk.f32.vlgmr.msra.gmra.mrb[168].mxu1 %vm15346_vm4, %v21832_v29  ;;  %v21828_v29 = vld [vmem:[#allocation3 + $0x11a] sm:$0xff] }
 0xe77   : > { %32104 = vmatprep.mubr.msk.f32.mxu1 %vm15346_vm4, %v21833_v30  ;;  %32714 = vmatpush3.bf16.msra.mxu1 %v32711_v15  ;;  %v21855_v30 = vmax.f32 %v21827_v44, 0.0  ;;  %v21856_v58 = vmax.f32 %v21828_v29, 0.0  ;;  %v32723_v15 = vpack.c.bf16 %v22295_v61, %v22294_v14 }
 0xe7a   : > { %32105 = vmatmul.mubr.msk.f32.gmra.mrb[94].mxu1 %vm15346_vm4, %v21834_v54 }
 0xe7b   : > { %32107 = vmatprep.mubr.msk.f32.mxu1 %vm15346_vm4, %v21835_v63 }
 0xe7d   : > { %v31934_v49 = vpop.f32.mrb[20].mxu1 }
 0xe7e   : > { %v20558_v37 = vpop.f32.mrb[21].mxu1  ;;  %32108 = vmatmul.mubr.msk.f32.gmra.mrb[96].mxu1 %vm15346_vm4, %v21836_v46  ;;  %v21830_v46 = vld [vmem:[#allocation3 + $0x12a] sm:$0xff] }
 0xe7f   : > { %32110 = vmatprep.mubr.msk.f32.mxu1 %vm15346_vm4, %v21837_v22  ;;  %v21829_v22 = vld [vmem:[#allocation3 + $0x122] sm:$0xff]  ;;  %v21858_v43 = vmax.f32 %v21830_v46, 0.0 }
 0xe80   : > { %v21857_v49 = vmax.f32 %v21829_v22, 0.0 }
 0xe81   : > { %v31937_v59 = vpop.f32.mrb[22].mxu1 }
 0xe82   : > { %v20568_v35 = vpop.f32.mrb[23].mxu1  ;;  %32111 = vmatmul.mubr.msk.f32.gmra.mrb[98].mxu1 %vm15346_vm4, %v21838_v34  ;;  %v22296_v34 = vld [vmem:[#allocation4 + $0x10] sm:$0xff]  ;;  %v22292_v59 = vld [vmem:[%s40494_s8] sm:$0xff] }
 0xe83   : > { %32113 = vmatprep.mubr.msk.f32.mxu1 %vm15346_vm4, %v21839_v62  ;;  %v41379_v62 = vmov 0.0   ;;  %v32719_v35 = vpack.c.bf16 %v22293_v55, %v22292_v59 }
 0xe84   : > { %22238 = vst.msk [vmem:[#allocation4 + $0x60] sm:$0xff] %vm22235_vm9, %v41379_v62  ;;  %22239 = vst.msk [vmem:[#allocation4 + $0x68] sm:$0xff] %vm22235_vm9, %v41379_v62 }
 0xe85   : > { %v31940_v10 = vpop.f32.mrb[24].mxu1  ;;  %22240 = vst.msk [vmem:[#allocation4 + $0x70] sm:$0xff] %vm22235_vm9, %v41379_v62  ;;  %22241 = vst.msk [vmem:[#allocation4 + $0x78] sm:$0xff] %vm22235_vm9, %v41379_v62 }
 0xe86   : > { %v20578_v31 = vpop.f32.mrb[25].mxu1  ;;  %32114 = vmatmul.mubr.msk.f32.gmra.mrb[176].mxu1 %vm15346_vm4, %v21840_v36  ;;  %22242 = vst.msk [vmem:[#allocation4 + $0x80] sm:$0xff] %vm22235_vm9, %v41379_v62  ;;  %22243 = vst.msk [vmem:[#allocation4 + $0x88] sm:$0xff] %vm22235_vm9, %v41379_v62 }
 0xe87   : > { %32116 = vmatprep.mubr.msk.f32.mxu1 %vm15346_vm4, %v21841_v42  ;;  %22246 = vst.msk [vmem:[#allocation4 + $0xa0] sm:$0xff] %vm22235_vm9, %v41379_v62  ;;  %22247 = vst.msk [vmem:[#allocation4 + $0xa8] sm:$0xff] %vm22235_vm9, %v41379_v62  ;;  %v22298_v31 = vld [vmem:[#allocation4 + $0x20] sm:$0xff] }
 0xe88   : > { %22248 = vst.msk [vmem:[#allocation4 + $0xb0] sm:$0xff] %vm22235_vm9, %v41379_v62  ;;  %22249 = vst.msk [vmem:[#allocation4 + $0xb8] sm:$0xff] %vm22235_vm9, %v41379_v62 }
 0xe89   : > { %22250 = vst.msk [vmem:[#allocation4 + $0xc0] sm:$0xff] %vm22235_vm9, %v41379_v62  ;;  %22251 = vst.msk [vmem:[#allocation4 + $0xc8] sm:$0xff] %vm22235_vm9, %v41379_v62 }
 0xe8a   : > { %32117 = vmatmul.mubr.msk.f32.gmra.mrb[100].mxu1 %vm15346_vm4, %v21842_v47  ;;  %22254 = vst.msk [vmem:[#allocation4 + $0xe0] sm:$0xff] %vm22235_vm9, %v41379_v62  ;;  %22255 = vst.msk [vmem:[#allocation4 + $0xe8] sm:$0xff] %vm22235_vm9, %v41379_v62  ;;  %v22300_v47 = vld [vmem:[#allocation4 + $0x30] sm:$0xff] }
 0xe8b   : > { %32119 = vmatprep.mubr.msk.f32.mxu1 %vm15346_vm4, %v21843_v18  ;;  %22256 = vst.msk [vmem:[#allocation4 + $0xf0] sm:$0xff] %vm22235_vm9, %v41379_v62  ;;  %22257 = vst.msk [vmem:[#allocation4 + $0xf8] sm:$0xff] %vm22235_vm9, %v41379_v62  ;;  %v22302_v18 = vld [vmem:[#allocation4 + $0x40] sm:$0xff] }
 0xe8c   : > { %22258 = vst.msk [vmem:[#allocation4 + $0x100] sm:$0xff] %vm22235_vm9, %v41379_v62  ;;  %22259 = vst.msk [vmem:[#allocation4 + $0x108] sm:$0xff] %vm22235_vm9, %v41379_v62  ;;  %v39694_v61 = vld [vmem:[#allocation4 + $0x60] sm:$0xff] }
 0xe8d   : > { %v31946_v60 = vpop.f32.mrb[26].mxu1  ;;  %22262 = vst.msk [vmem:[#allocation4 + $0x120] sm:$0xff] %vm22235_vm9, %v41379_v62  ;;  %22263 = vst.msk [vmem:[#allocation4 + $0x128] sm:$0xff] %vm22235_vm9, %v41379_v62 }
 0xe8e   : > { %v20598_v23 = vpop.f32.mrb[27].mxu1  ;;  %32120 = vmatmul.mubr.msk.f32.gmra.mrb[102].mxu1 %vm15346_vm4, %v21844_v24 }
 0xe8f   : > { %32122 = vmatprep.mubr.msk.f32.mxu1 %vm15346_vm4, %v21845_v7  ;;  %v22303_v7 = vld [vmem:[#allocation4 + $0x48] sm:$0xff] }
 0xe91   : > { %v31949_v25 = vpop.f32.mrb[0].mxu1 }
 0xe92   : > { %v20608_v32 = vpop.f32.mrb[1].mxu1  ;;  %32123 = vmatmul.mubr.msk.f32.gmra.mrb[104].mxu1 %vm15346_vm4, %v21846_v38 }
 0xe93   : > { %32125 = vmatprep.mubr.msk.f32.mxu1 %vm15346_vm4, %v21847_v57 }
 0xe95   : > { %v31952_v45 = vpop.f32.mrb[2].mxu1 }
 0xe96   : > { %v20618_v28 = vpop.f32.mrb[3].mxu1  ;;  %32126 = vmatmul.mubr.msk.f32.gmra.mrb[184].mxu1 %vm15346_vm4, %v21848_v39 }
 0xe97   : > { %32128 = vmatprep.mubr.msk.f32.mxu1 %vm15346_vm4, %v21849_v33  ;;  %v27502_v28 = vld [vmem:[%s40494_s8 + $0x40] sm:$0xff] }
 0xe9a   : > { %32129 = vmatmul.mubr.msk.f32.gmra.mrb[106].mxu1 %vm15346_vm4, %v21850_v6  ;;  %v27503_v6 = vld [vmem:[%s40494_s8 + $0x48] sm:$0xff] }
 0xe9b   : > { %32131 = vmatprep.mubr.msk.f32.mxu1 %vm15346_vm4, %v20727_v3  ;;  %v39683_v44 = vpack.c.bf16 %v27503_v6, %v27502_v28 }
 0xe9d   : > { %v31958_v8 = vpop.f32.mrb[4].mxu1 }
 0xe9e   : > { %v20638_v27 = vpop.f32.mrb[5].mxu1  ;;  %32132 = vmatmul.mubr.msk.f32.gmra.mrb[108].mxu1 %vm15346_vm4, %v20728_v1 }
 0xe9f   : > { %32134 = vmatprep.mubr.msk.f32.mxu1 %vm15346_vm4, %v20729_v52  ;;  %v27445_v52 = vld [vmem:[%s40494_s8 + $0x38] sm:$0xff] }
 0xea0   : > { %v32715_v26 = vpack.c.bf16 %v27445_v52, %v27444_v40 }
 0xea2   : > { %32135 = vmatmul.mubr.msk.f32.gmra.mrb[110].mxu1 %vm15346_vm4, %v20730_v5  ;;  %32716 = vmatprep.subr.bf16.mxu1 %v32715_v26 }
 0xea3   : > { %32137 = vmatprep.mubr.msk.f32.mxu1 %vm15346_vm4, %v21855_v30  ;;  %32718 = vmatpush3.bf16.msra.mxu1 %v32715_v26 }
 0xea4   : > { %32720 = vmatprep.subr.bf16.mxu1 %v32719_v35 }
 0xea5   : > { %v31968_v3 = vpop.f32.mrb[6].mxu1 }
 0xea6   : > { %v20894_v12 = vpop.f32.mrb[7].mxu1  ;;  %32138 = vmatmul.mubr.msk.f32.gmra.mrb[192].mxu1 %vm15346_vm4, %v21856_v58 }
 0xea7   : > { %32140 = vmatprep.mubr.msk.f32.mxu1 %vm15346_vm4, %v21857_v49 }
 0xea9   : > { %v31971_v21 = vpop.f32.mrb[8].mxu1 }
 0xeaa   : > { %v20904_v4 = vpop.f32.mrb[9].mxu1  ;;  %32141 = vmatmul.mubr.msk.f32.gmra.mrb[112].mxu1 %vm15346_vm4, %v21858_v43 }
 0xeab   : > { %32151 = vmatprep.mubr.msk.f32.mxu1 %vm22235_vm9, %v22296_v34  ;;  %v41381_v34 = vld [vmem:[#allocation15_spill] sm:$0xff] }
 0xead   : > { %v31974_v1 = vpop.f32.mrb[10].mxu1 }
 0xeae   : > { %v20914_v5 = vpop.f32.mrb[11].mxu1  ;;  %32152 = vmatmul.mubr.msk.f32.vlgmr.msra.gmra.mrb[114].mxu1 %vm22235_vm9, %v22297_v16  ;;  %v1684_v16 = vand.u32 63, %v41381_v34  ;;  %v39751_v34 = vld [vmem:[#allocation4 + $0xc0] sm:$0xff] }
 0xeaf   : > { %32722 = vmatpush3.bf16.msra.mxu1 %v32719_v35  ;;  %32154 = vmatprep.mubr.msk.f32.mxu1 %vm22235_vm9, %v22298_v31 }
 0xeb0   : > { %32724 = vmatprep.subr.bf16.mxu1 %v32723_v15  ;;  %v2048_v35 = vand.u32 3, %v1684_v16 }
 0xeb2   : > { %32155 = vmatmul.mubr.msk.f32.gmra.mrb[116].mxu1 %vm22235_vm9, %v22299_v56  ;;  %vm2380_vm13 = vcmp.eq.s32.totalorder %v2048_v35, 0 }
 0xeb3   : > { %32157 = vmatprep.mubr.msk.f32.mxu1 %vm22235_vm9, %v22300_v47  ;;  %32726 = vmatpush3.bf16.msra.mxu1 %v32723_v15 }
 0xeb4   : > { %32728 = vmatprep.subr.bf16.mxu1 %v39683_v44 }
 0xeb5   : > { %v31980_v9 = vpop.f32.mrb[12].mxu1 }
 0xeb6   : > { %v20934_v2 = vpop.f32.mrb[13].mxu1  ;;  %32158 = vmatmul.mubr.msk.f32.gmra.mrb[118].mxu1 %vm22235_vm9, %v22301_v19 }
 0xeb7   : > { %32160 = vmatprep.mubr.msk.f32.mxu1 %vm22235_vm9, %v22302_v18 }
 0xeb9   : > { %v31983_v54 = vpop.f32.mrb[30].mxu1 }
 0xeba   : > { %v20944_v50 = vpop.f32.mrb[31].mxu1  ;;  %32161 = vmatmul.mubr.msk.f32.gmra.mrb[120].mxu1 %vm22235_vm9, %v22303_v7 }
 0xebd   : > { %v31986_v63 = vpop.f32.mrb[34].mxu1 }
 0xebe   : > { %v20954_v11 = vpop.f32.mrb[35].mxu1 }
 0xec5   : > { %v31992_v37 = vpop.f32.mrb[38].mxu1 }
 0xec6   : > { %v20974_v41 = vpop.f32.mrb[39].mxu1  ;;  %v41380_v37 = vld [vmem:[#allocation17_spill] sm:$0xff] }
 0xec7   : > { %v1691_v41 = vand.u32 63, %v41380_v37 }
 0xec9   : > { %v31995_v42 = vpop.f32.mrb[42].mxu1  ;;  %v2055_v62 = vand.u32 3, %v1691_v41 }
 0xeca   : > { %v20984_v36 = vpop.f32.mrb[43].mxu1 }
 0xecb   : > { %vm2381_vm12 = vcmp.eq.s32.totalorder %v2055_v62, 0 }
 0xecd   : > { %v31998_v10 = vpop.f32.mrb[46].mxu1 }
 0xece   : > { %v20994_v48 = vpop.f32.mrb[47].mxu1 }
 0xed5   : > { %v32004_v20 = vpop.f32.mrb[50].mxu1 }
 0xed6   : > { %v21014_v24 = vpop.f32.mrb[51].mxu1  ;;  %v41382_v20 = vld [vmem:[#allocation25_spill] sm:$0xff] }
 0xed7   : > { %v1747_v7 = vand.u32 63, %v41382_v20 }
 0xed9   : > { %v2111_v14 = vand.u32 3, %v1747_v7  ;;  %v39776_v7 = vld [vmem:[#allocation4 + $0xe8] sm:$0xff] }
 0xedb   : > { %vm2389_vm0 = vcmp.eq.s32.totalorder %v2111_v14, 0  ;;  %v27504_v14 = vld [vmem:[%s40494_s8 + $0x50] sm:$0xff] }
 0xedd   : > { %v32014_v60 = vpop.f32.mrb[54].mxu1 }
 0xede   : > { %v21270_v53 = vpop.f32.mrb[55].mxu1  ;;  %v41383_v60 = vld [vmem:[#allocation5_spill] sm:$0xff] }
 0xedf   : > { %v1740_v53 = vand.u32 63, %v41383_v60  ;;  %v22264_v60 = vld [vmem:[#allocation4 + $0xc] sm:$0xff] }
 0xee1   : > { %v32017_v23 = vpop.f32.mrb[56].mxu1 }
 0xee2   : > { %v21280_v17 = vpop.f32.mrb[57].mxu1 }
 0xee5   : > { %v32020_v38 = vpop.f32.mrb[58].mxu1 }
 0xee6   : > { %v21290_v0 = vpop.f32.mrb[59].mxu1 }
 0xee7   : > { %v2104_v0 = vand.u32 3, %v1740_v53 }
 0xee9   : > { %vm2388_vm1 = vcmp.eq.s32.totalorder %v2104_v0, 0 }
 0xeed   : > { %v32026_v25 = vpop.f32.mrb[60].mxu1 }
 0xeee   : > { %v21310_v57 = vpop.f32.mrb[61].mxu1  ;;  %v39704_v25 = vld [vmem:[#allocation4 + $0x68] sm:$0xff] }
 0xef1   : > { %v32029_v51 = vpop.f32.mrb[62].mxu1 }
 0xef2   : > { %v21320_v32 = vpop.f32.mrb[63].mxu1  ;;  %v39706_v51 = vld [vmem:[#allocation4 + $0x70] sm:$0xff] }
 0xef5   : > { %v32032_v33 = vpop.f32.mrb[64].mxu1 }
 0xef6   : > { %v21330_v39 = vpop.f32.mrb[65].mxu1 }
 0xefd   : > { %v32038_v45 = vpop.f32.mrb[66].mxu1 }
 0xefe   : > { %v21350_v13 = vpop.f32.mrb[67].mxu1 }
 0xeff   : > { %v39712_v13 = vld [vmem:[#allocation4 + $0x78] sm:$0xff] }
 0xf01   : > { %v32041_v8 = vpop.f32.mrb[68].mxu1 }
 0xf02   : > { %v21360_v27 = vpop.f32.mrb[69].mxu1  ;;  %v39715_v8 = vld [vmem:[#allocation4 + $0x80] sm:$0xff] }
 0xf05   : > { %v32044_v30 = vpop.f32.mrb[70].mxu1 }
 0xf06   : > { %v21370_v29 = vpop.f32.mrb[71].mxu1  ;;  %v39722_v30 = vld [vmem:[#allocation4 + $0x88] sm:$0xff] }
 0xf0d   : > { %v32050_v58 = vpop.f32.mrb[72].mxu1 }
 0xf0e   : > { %v21390_v3 = vpop.f32.mrb[73].mxu1  ;;  %v41384_v58 = vld [vmem:[#allocation9_spill] sm:$0xff] }
 0xf0f   : > { %v1803_v3 = vand.u32 63, %v41384_v58 }
 0xf15   : > { %v32060_v12 = vpop.f32.mrb[74].mxu1 }
 0xf16   : > { %v21646_v21 = vpop.f32.mrb[75].mxu1 }
 0xf17   : > { %v41385_v21 = vld [vmem:[#allocation16_spill] sm:$0xff] }
 0xf19   : > { %v32063_v4 = vpop.f32.mrb[76].mxu1 }
 0xf1a   : > { %v21656_v40 = vpop.f32.mrb[77].mxu1  ;;  %v1796_v4 = vand.u32 63, %v41385_v21 }
 0xf1d   : > { %v32066_v52 = vpop.f32.mrb[78].mxu1 }
 0xf1e   : > { %v21666_v26 = vpop.f32.mrb[79].mxu1 }
 0xf1f   : > { %v2167_v26 = vand.u32 3, %v1803_v3  ;;  %v22269_v3 = vld [vmem:[#allocation4 + $0x34] sm:$0xff] }
 0xf21   : > { %vm2397_vm6 = vcmp.eq.s32.totalorder %v2167_v26, 0  ;;  %v39830_v26 = vld [vmem:[#allocation4 + $0x64] sm:$0xff] }
 0xf25   : > { %v32072_v1 = vpop.f32.mrb[80].mxu1 }
 0xf26   : > { %v21686_v5 = vpop.f32.mrb[81].mxu1  ;;  %v39730_v1 = vld [vmem:[#allocation4 + $0xa0] sm:$0xff] }
 0xf29   : > { %v32075_v9 = vpop.f32.mrb[82].mxu1 }
 0xf2a   : > { %v21696_v2 = vpop.f32.mrb[83].mxu1 }
 0xf2b   : > { %v2160_v2 = vand.u32 3, %v1796_v4 }
 0xf2d   : > { %v32078_v54 = vpop.f32.mrb[84].mxu1  ;;  %vm2396_vm7 = vcmp.eq.s32.totalorder %v2160_v2, 0  ;;  %v39838_v2 = vld [vmem:[#allocation4 + $0x74] sm:$0xff] }
 0xf2e   : > { %v21706_v50 = vpop.f32.mrb[85].mxu1  ;;  %v39740_v54 = vld [vmem:[#allocation4 + $0xa8] sm:$0xff] }
 0xf35   : > { %v32084_v63 = vpop.f32.mrb[86].mxu1 }
 0xf36   : > { %v21726_v11 = vpop.f32.mrb[87].mxu1  ;;  %v39742_v63 = vld [vmem:[#allocation4 + $0xb0] sm:$0xff] }
 0xf39   : > { %v32087_v22 = vpop.f32.mrb[88].mxu1 }
 0xf3a   : > { %v21736_v46 = vpop.f32.mrb[89].mxu1 }
 0xf3d   : > { %v32090_v49 = vpop.f32.mrb[90].mxu1 }
 0xf3e   : > { %v21746_v43 = vpop.f32.mrb[91].mxu1 }
 0xf3f   : > { %v39748_v43 = vld [vmem:[#allocation4 + $0xb8] sm:$0xff] }
 0xf45   : > { %v32096_v59 = vpop.f32.mrb[92].mxu1 }
 0xf46   : > { %v21766_v55 = vpop.f32.mrb[93].mxu1  ;;  %v39758_v59 = vld [vmem:[#allocation4 + $0xc8] sm:$0xff] }
 0xf47   : > { %v41386_v55 = vld [vmem:[#allocation30_spill] sm:$0xff] }
 0xf48   : > { %v1859_v35 = vand.u32 63, %v41386_v55  ;;  %v39870_v55 = vld [vmem:[#allocation4 + $0xb4] sm:$0xff] }
 0xf49   : > { %v32103_v42 = vpop.f32.mrb[168].mxu1 }
 0xf4a   : > { %v22180_v36 = vmax.f32 %v32103_v42, 0.0  ;;  %v22012_v10 = vpop.f32.mrb[169].mxu1 }
 0xf4b   : > { %v22179_v48 = vmax.f32 %v22012_v10, 0.0 }
 0xf4c   : > { %v22208_v31 = vsel %vm2381_vm12, %v22180_v36, 0.0  ;;  %v41387_v36 = vld [vmem:[#allocation41_spill] sm:$0xff] }
 0xf4d   : > { %22237 = vst.msk [vmem:[#allocation4 + $0x58] sm:$0xff] %vm22235_vm9, %v22208_v31  ;;  %v22207_v56 = vsel %vm2380_vm13, %v22179_v48, 0.0  ;;  %v32106_v47 = vpop.f32.mrb[94].mxu1  ;;  %v1852_v10 = vand.u32 63, %v41387_v36 }
 0xf4e   : > { %22236 = vst.msk [vmem:[#allocation4 + $0x50] sm:$0xff] %vm22235_vm9, %v22207_v56  ;;  %v22022_v19 = vpop.f32.mrb[95].mxu1  ;;  %v2223_v56 = vand.u32 3, %v1859_v35  ;;  %v39766_v47 = vld [vmem:[#allocation4 + $0xe0] sm:$0xff] }
 0xf4f   : > { %v2216_v20 = vand.u32 3, %v1852_v10  ;;  %v39872_v35 = vld [vmem:[#allocation4 + $0xbc] sm:$0xff] }
 0xf50   : > { %vm2405_vm14 = vcmp.eq.s32.totalorder %v2223_v56, 0  ;;  %v39894_v56 = vld [vmem:[#allocation4 + $0xe4] sm:$0xff] }
 0xf51   : > { %v32109_v18 = vpop.f32.mrb[96].mxu1  ;;  %vm2404_vm15 = vcmp.eq.s32.totalorder %v2216_v20, 0  ;;  %v27537_v20 = vld [vmem:[%s40494_s8 + $0x78] sm:$0xff] }
 0xf52   : > { %v22032_v24 = vpop.f32.mrb[97].mxu1 }
 0xf54   : > { %v39698_v38 = vld [vmem:[#allocation4 + $0x58] sm:$0xff] }
 0xf55   : > { %v32112_v23 = vpop.f32.mrb[98].mxu1  ;;  %v39692_v17 = vld [vmem:[#allocation4 + $0x50] sm:$0xff] }
 0xf56   : > { %v22042_v15 = vpop.f32.mrb[99].mxu1  ;;  %32163 = vmatprep.mubr.msk.f32.mxu1 %vm22235_vm9, %v39692_v17  ;;  %v39818_v21 = vld [vmem:[#allocation4 + $0x4c] sm:$0xff]  ;;  %v39822_v4 = vld [vmem:[#allocation4 + $0x54] sm:$0xff] }
 0xf57   : > { %32164 = vmatmul.mubr.msk.f32.gmra.mrb[122].mxu1 %vm22235_vm9, %v39698_v38  ;;  %v27505_v15 = vld [vmem:[%s40494_s8 + $0x58] sm:$0xff] }
 0xf58   : > { %32166 = vmatprep.mubr.msk.f32.mxu1 %vm22235_vm9, %v39694_v61 }
 0xf59   : > { %v32115_v57 = vpop.f32.mrb[176].mxu1 }
 0xf5a   : > { %v22188_v32 = vmax.f32 %v32115_v57, 0.0  ;;  %v22052_v33 = vpop.f32.mrb[177].mxu1 }
 0xf5b   : > { %v22187_v39 = vmax.f32 %v22052_v33, 0.0  ;;  %32167 = vmatmul.mubr.msk.f32.gmra.mrb[124].mxu1 %vm22235_vm9, %v39704_v25 }
 0xf5c   : > { %v22216_v45 = vsel %vm2389_vm0, %v22188_v32, 0.0  ;;  %32169 = vmatprep.mubr.msk.f32.mxu1 %vm22235_vm9, %v39706_v51  ;;  %v39787_v32 = vld [vmem:[#allocation4 + $0x14] sm:$0xff] }
 0xf5d   : > { %22245 = vst.msk [vmem:[#allocation4 + $0x98] sm:$0xff] %vm22235_vm9, %v22216_v45  ;;  %v22215_v28 = vsel %vm2388_vm1, %v22187_v39, 0.0  ;;  %v32118_v6 = vpop.f32.mrb[100].mxu1  ;;  %v39790_v39 = vld [vmem:[#allocation4 + $0x1c] sm:$0xff]  ;;  %v32731_v45 = vpack.c.bf16 %v27505_v15, %v27504_v14  ;;  %v39962_v14 = vld [vmem:[#allocation4 + $0xec] sm:$0xff] }
 0xf5e   : > { %22244 = vst.msk [vmem:[#allocation4 + $0x90] sm:$0xff] %vm22235_vm9, %v22215_v28  ;;  %v22062_v27 = vpop.f32.mrb[101].mxu1  ;;  %v27534_v28 = vld [vmem:[%s40494_s8 + $0x60] sm:$0xff]  ;;  %v27535_v6 = vld [vmem:[%s40494_s8 + $0x68] sm:$0xff]  ;;  %v27568_v15 = vld [vmem:[%s40494_s8 + $0x90] sm:$0xff] }
 0xf5f   : > { %32170 = vmatmul.mubr.msk.f32.gmra.mrb[126].mxu1 %vm22235_vm9, %v39712_v13  ;;  %v39804_v27 = vld [vmem:[#allocation4 + $0x24] sm:$0xff]  ;;  %v32735_v58 = vpack.c.bf16 %v27535_v6, %v27534_v28  ;;  %v40022_v28 = vld [vmem:[#allocation4 + $0xfc] sm:$0xff] }
 0xf60   : > { %32172 = vmatprep.mubr.msk.f32.mxu1 %vm22235_vm9, %v39715_v8  ;;  %v40028_v6 = vld [vmem:[#allocation4 + $0x104] sm:$0xff] }
 0xf61   : > { %v32121_v29 = vpop.f32.mrb[102].mxu1 }
 0xf62   : > { %v22072_v12 = vpop.f32.mrb[103].mxu1  ;;  %v39806_v29 = vld [vmem:[#allocation4 + $0x2c] sm:$0xff] }
 0xf63   : > { %32173 = vmatmul.mubr.msk.f32.gmra.mrb[128].mxu1 %vm22235_vm9, %v39722_v30  ;;  %v39812_v12 = vld [vmem:[#allocation4 + $0x3c] sm:$0xff] }
 0xf64   : > { %v39734_v9 = vld [vmem:[#allocation4 + $0x98] sm:$0xff] }
 0xf65   : > { %v32124_v40 = vpop.f32.mrb[104].mxu1  ;;  %v39728_v52 = vld [vmem:[#allocation4 + $0x90] sm:$0xff] }
 0xf66   : > { %v22082_v5 = vpop.f32.mrb[105].mxu1  ;;  %32175 = vmatprep.mubr.msk.f32.mxu1 %vm22235_vm9, %v39728_v52  ;;  %v39826_v40 = vld [vmem:[#allocation4 + $0x5c] sm:$0xff] }
 0xf67   : > { %32176 = vmatmul.mubr.msk.f32.gmra.mrb[130].mxu1 %vm22235_vm9, %v39734_v9  ;;  %v39832_v5 = vld [vmem:[#allocation4 + $0x6c] sm:$0xff] }
 0xf68   : > { %32178 = vmatprep.mubr.msk.f32.mxu1 %vm22235_vm9, %v39730_v1 }
 0xf69   : > { %v32127_v50 = vpop.f32.mrb[184].mxu1 }
 0xf6a   : > { %v22196_v11 = vmax.f32 %v32127_v50, 0.0  ;;  %v22092_v22 = vpop.f32.mrb[185].mxu1  ;;  %v39840_v50 = vld [vmem:[#allocation4 + $0x7c] sm:$0xff] }
 0xf6b   : > { %v22195_v46 = vmax.f32 %v22092_v22, 0.0  ;;  %32179 = vmatmul.mubr.msk.f32.gmra.mrb[132].mxu1 %vm22235_vm9, %v39740_v54 }
 0xf6c   : > { %v22224_v49 = vsel %vm2397_vm6, %v22196_v11, 0.0  ;;  %32181 = vmatprep.mubr.msk.f32.mxu1 %vm22235_vm9, %v39742_v63 }
 0xf6d   : > { %22253 = vst.msk [vmem:[#allocation4 + $0xd8] sm:$0xff] %vm22235_vm9, %v22224_v49  ;;  %v22223_v37 = vsel %vm2396_vm7, %v22195_v46, 0.0  ;;  %v32130_v41 = vpop.f32.mrb[106].mxu1  ;;  %v39846_v46 = vld [vmem:[#allocation4 + $0x84] sm:$0xff]  ;;  %v39850_v49 = vld [vmem:[#allocation4 + $0x8c] sm:$0xff] }
 0xf6e   : > { %22252 = vst.msk [vmem:[#allocation4 + $0xd0] sm:$0xff] %vm22235_vm9, %v22223_v37  ;;  %v22102_v16 = vpop.f32.mrb[107].mxu1  ;;  %v39854_v37 = vld [vmem:[#allocation4 + $0x94] sm:$0xff]  ;;  %v39858_v41 = vld [vmem:[#allocation4 + $0x9c] sm:$0xff] }
 0xf6f   : > { %32182 = vmatmul.mubr.msk.f32.gmra.mrb[134].mxu1 %vm22235_vm9, %v39748_v43  ;;  %v39862_v16 = vld [vmem:[#allocation4 + $0xa4] sm:$0xff] }
 0xf70   : > { %32184 = vmatprep.mubr.msk.f32.mxu1 %vm22235_vm9, %v39751_v34 }
 0xf71   : > { %v32133_v62 = vpop.f32.mrb[108].mxu1 }
 0xf72   : > { %v22112_v42 = vpop.f32.mrb[109].mxu1  ;;  %v39864_v62 = vld [vmem:[#allocation4 + $0xac] sm:$0xff] }
 0xf73   : > { %32185 = vmatmul.mubr.msk.f32.gmra.mrb[136].mxu1 %vm22235_vm9, %v39758_v59  ;;  %v39878_v42 = vld [vmem:[#allocation4 + $0xc4] sm:$0xff] }
 0xf74   : > { %v39770_v19 = vld [vmem:[#allocation4 + $0xd8] sm:$0xff] }
 0xf75   : > { %v39764_v48 = vld [vmem:[#allocation4 + $0xd0] sm:$0xff]  ;;  %v32136_v31 = vpop.f32.mrb[110].mxu1 }
 0xf76   : > { %32187 = vmatprep.mubr.msk.f32.mxu1 %vm22235_vm9, %v39764_v48  ;;  %v22122_v18 = vpop.f32.mrb[111].mxu1  ;;  %v39882_v36 = vld [vmem:[#allocation4 + $0xcc] sm:$0xff]  ;;  %v39886_v10 = vld [vmem:[#allocation4 + $0xd4] sm:$0xff]  ;;  %v39890_v31 = vld [vmem:[#allocation4 + $0xdc] sm:$0xff] }
 0xf77   : > { %32188 = vmatmul.mubr.msk.f32.gmra.mrb[138].mxu1 %vm22235_vm9, %v39770_v19  ;;  %v27536_v18 = vld [vmem:[%s40494_s8 + $0x70] sm:$0xff] }
 0xf78   : > { %32190 = vmatprep.mubr.msk.f32.mxu1 %vm22235_vm9, %v39766_v47 }
 0xf79   : > { %v32139_v24 = vpop.f32.mrb[192].mxu1 }
 0xf7a   : > { %v22204_v53 = vmax.f32 %v32139_v24, 0.0  ;;  %v22132_v23 = vpop.f32.mrb[193].mxu1  ;;  %v32739_v24 = vpack.c.bf16 %v27537_v20, %v27536_v18  ;;  %v27632_v20 = vld [vmem:[%s40494_s8 + $0xd0] sm:$0xff] }
 0xf7b   : > { %v22203_v0 = vmax.f32 %v22132_v23, 0.0  ;;  %32191 = vmatmul.mubr.msk.f32.gmra.mrb[140].mxu1 %vm22235_vm9, %v39776_v7 }
 0xf7c   : > { %v22232_v57 = vsel %vm2405_vm14, %v22204_v53, 0.0  ;;  %32201 = vmatprep.mubr.msk.f32.mxu1 %vm22235_vm9, %v22264_v60  ;;  %v27566_v60 = vld [vmem:[%s40494_s8 + $0x80] sm:$0xff]  ;;  %v27567_v53 = vld [vmem:[%s40494_s8 + $0x88] sm:$0xff] }
 0xf7d   : > { %22261 = vst.msk [vmem:[#allocation4 + $0x118] sm:$0xff] %vm22235_vm9, %v22232_v57  ;;  %v22231_v33 = vsel %vm2404_vm15, %v22203_v0, 0.0  ;;  %v32142_v11 = vpop.f32.mrb[112].mxu1  ;;  %v32743_v23 = vpack.c.bf16 %v27567_v53, %v27566_v60  ;;  %v27569_v0 = vld [vmem:[%s40494_s8 + $0x98] sm:$0xff]  ;;  %v27662_v53 = vld [vmem:[%s40494_s8 + $0xe0] sm:$0xff] }
 0xf7e   : > { %22260 = vst.msk [vmem:[#allocation4 + $0x110] sm:$0xff] %vm22235_vm9, %v22231_v33  ;;  %v22142_v22 = vpop.f32.mrb[113].mxu1  ;;  %v32747_v57 = vpack.c.bf16 %v27569_v0, %v27568_v15  ;;  %v27599_v33 = vld [vmem:[%s40494_s8 + $0xa8] sm:$0xff]  ;;  %v27630_v11 = vld [vmem:[%s40494_s8 + $0xc0] sm:$0xff] }
 0xf7f   : > { %32202 = vmatmul.mubr.msk.f32.vlgmr.msra.gmra.mrb[114].mxu1 %vm22235_vm9, %v39787_v32  ;;  %v27631_v22 = vld [vmem:[%s40494_s8 + $0xc8] sm:$0xff]  ;;  %v40258_v0 = vld [vmem:[#allocation4 + $0x13c] sm:$0xff] }
 0xf80   : > { %32730 = vmatpush3.bf16.msra.mxu1 %v39683_v44  ;;  %32204 = vmatprep.mubr.msk.f32.mxu1 %vm22235_vm9, %v39790_v39  ;;  %v22271_v44 = vld [vmem:[#allocation4 + $0x44] sm:$0xff]  ;;  %v32759_v18 = vpack.c.bf16 %v27631_v22, %v27630_v11 }
 0xf81   : > { %32732 = vmatprep.subr.bf16.mxu1 %v32731_v45  ;;  %v25385_v22 = vld [vmem:[%s40495_s9] sm:$0xff] }
 0xf83   : > { %32205 = vmatmul.mubr.msk.f32.gmra.mrb[116].mxu1 %vm22235_vm9, %v39804_v27 }
 0xf84   : > { %32207 = vmatprep.mubr.msk.f32.mxu1 %vm22235_vm9, %v39806_v29  ;;  %32734 = vmatpush3.bf16.msra.mxu1 %v32731_v45  ;;  %v40020_v45 = vld [vmem:[#allocation4 + $0xf4] sm:$0xff] }
 0xf85   : > { %32736 = vmatprep.subr.bf16.mxu1 %v32735_v58 }
 0xf87   : > { %32208 = vmatmul.mubr.msk.f32.gmra.mrb[118].mxu1 %vm22235_vm9, %v22269_v3 }
 0xf88   : > { %32210 = vmatprep.mubr.msk.f32.mxu1 %vm22235_vm9, %v39812_v12 }
 0xf8b   : > { %32211 = vmatmul.mubr.msk.f32.gmra.mrb[120].mxu1 %vm22235_vm9, %v22271_v44 }
 0xf8c   : > { %32213 = vmatprep.mubr.msk.f32.mxu1 %vm22235_vm9, %v39818_v21 }
 0xf8f   : > { %32214 = vmatmul.mubr.msk.f32.gmra.mrb[122].mxu1 %vm22235_vm9, %v39822_v4 }
 0xf90   : > { %32216 = vmatprep.mubr.msk.f32.mxu1 %vm22235_vm9, %v39826_v40 }
 0xf93   : > { %32217 = vmatmul.mubr.msk.f32.gmra.mrb[124].mxu1 %vm22235_vm9, %v39830_v26 }
 0xf94   : > { %32219 = vmatprep.mubr.msk.f32.mxu1 %vm22235_vm9, %v39832_v5 }
 0xf97   : > { %32220 = vmatmul.mubr.msk.f32.gmra.mrb[126].mxu1 %vm22235_vm9, %v39838_v2 }
 0xf98   : > { %32222 = vmatprep.mubr.msk.f32.mxu1 %vm22235_vm9, %v39840_v50 }
 0xf9b   : > { %32223 = vmatmul.mubr.msk.f32.gmra.mrb[128].mxu1 %vm22235_vm9, %v39846_v46 }
 0xf9c   : > { %32225 = vmatprep.mubr.msk.f32.mxu1 %vm22235_vm9, %v39850_v49 }
 0xf9f   : > { %32226 = vmatmul.mubr.msk.f32.gmra.mrb[130].mxu1 %vm22235_vm9, %v39854_v37 }
 0xfa0   : > { %32228 = vmatprep.mubr.msk.f32.mxu1 %vm22235_vm9, %v39858_v41 }
 0xfa3   : > { %32229 = vmatmul.mubr.msk.f32.gmra.mrb[132].mxu1 %vm22235_vm9, %v39862_v16 }
 0xfa4   : > { %32231 = vmatprep.mubr.msk.f32.mxu1 %vm22235_vm9, %v39864_v62 }
 0xfa7   : > { %32232 = vmatmul.mubr.msk.f32.gmra.mrb[134].mxu1 %vm22235_vm9, %v39870_v55 }
 0xfa8   : > { %32234 = vmatprep.mubr.msk.f32.mxu1 %vm22235_vm9, %v39872_v35 }
 0xfab   : > { %32235 = vmatmul.mubr.msk.f32.gmra.mrb[136].mxu1 %vm22235_vm9, %v39878_v42 }
 0xfac   : > { %32237 = vmatprep.mubr.msk.f32.mxu1 %vm22235_vm9, %v39882_v36 }
 0xfaf   : > { %32238 = vmatmul.mubr.msk.f32.gmra.mrb[138].mxu1 %vm22235_vm9, %v39886_v10 }
 0xfb0   : > { %32240 = vmatprep.mubr.msk.f32.mxu1 %vm22235_vm9, %v39890_v31 }
 0xfb3   : > { %32241 = vmatmul.mubr.msk.f32.gmra.mrb[140].mxu1 %vm22235_vm9, %v39894_v56 }
 0xfb4   : > { %32251 = vmatprep.mubr.msk.f32.mxu1 %vm22235_vm9, %v39787_v32  ;;  %v27598_v32 = vld [vmem:[%s40494_s8 + $0xa0] sm:$0xff] }
 0xfb7   : > { %32252 = vmatmul.mubr.msk.f32.vlgmr.msra.gmra.mrb[114].mxu1 %vm22235_vm9, %v39790_v39  ;;  %v32751_v39 = vpack.c.bf16 %v27599_v33, %v27598_v32  ;;  %v40266_v32 = vld [vmem:[#allocation4 + $0x14c] sm:$0xff]  ;;  %v40272_v33 = vld [vmem:[#allocation4 + $0x154] sm:$0xff] }
 0xfb8   : > { %32738 = vmatpush3.bf16.msra.mxu1 %v32735_v58  ;;  %32254 = vmatprep.mubr.msk.f32.mxu1 %vm22235_vm9, %v39804_v27  ;;  %v40032_v27 = vld [vmem:[#allocation4 + $0x10c] sm:$0xff]  ;;  %v40040_v58 = vld [vmem:[#allocation4 + $0x11c] sm:$0xff] }
 0xfb9   : > { %32740 = vmatprep.subr.bf16.mxu1 %v32739_v24 }
 0xfbb   : > { %32255 = vmatmul.mubr.msk.f32.gmra.mrb[116].mxu1 %vm22235_vm9, %v39806_v29  ;;  %v40036_v29 = vld [vmem:[#allocation4 + $0x114] sm:$0xff] }
 0xfbc   : > { %32257 = vmatprep.mubr.msk.f32.mxu1 %vm22235_vm9, %v22269_v3  ;;  %32742 = vmatpush3.bf16.msra.mxu1 %v32739_v24  ;;  %v40044_v3 = vld [vmem:[#allocation4 + $0x124] sm:$0xff]  ;;  %v27633_v24 = vld [vmem:[%s40494_s8 + $0xd8] sm:$0xff] }
 0xfbd   : > { %32744 = vmatprep.subr.bf16.mxu1 %v32743_v23  ;;  %v32763_v60 = vpack.c.bf16 %v27633_v24, %v27632_v20 }
 0xfbf   : > { %32258 = vmatmul.mubr.msk.f32.gmra.mrb[118].mxu1 %vm22235_vm9, %v39812_v12  ;;  %v27600_v12 = vld [vmem:[%s40494_s8 + $0xb0] sm:$0xff] }
 0xfc0   : > { %32260 = vmatprep.mubr.msk.f32.mxu1 %vm22235_vm9, %v22271_v44  ;;  %v27601_v44 = vld [vmem:[%s40494_s8 + $0xb8] sm:$0xff] }
 0xfc3   : > { %32261 = vmatmul.mubr.msk.f32.gmra.mrb[120].mxu1 %vm22235_vm9, %v39818_v21 }
 0xfc4   : > { %32263 = vmatprep.mubr.msk.f32.mxu1 %vm22235_vm9, %v39822_v4 }
 0xfc7   : > { %32264 = vmatmul.mubr.msk.f32.gmra.mrb[122].mxu1 %vm22235_vm9, %v39826_v40 }
 0xfc8   : > { %32266 = vmatprep.mubr.msk.f32.mxu1 %vm22235_vm9, %v39830_v26 }
 0xfcb   : > { %32267 = vmatmul.mubr.msk.f32.gmra.mrb[124].mxu1 %vm22235_vm9, %v39832_v5 }
 0xfcc   : > { %32269 = vmatprep.mubr.msk.f32.mxu1 %vm22235_vm9, %v39838_v2 }
 0xfcf   : > { %32270 = vmatmul.mubr.msk.f32.gmra.mrb[126].mxu1 %vm22235_vm9, %v39840_v50 }
 0xfd0   : > { %32272 = vmatprep.mubr.msk.f32.mxu1 %vm22235_vm9, %v39846_v46 }
 0xfd3   : > { %32273 = vmatmul.mubr.msk.f32.gmra.mrb[128].mxu1 %vm22235_vm9, %v39850_v49 }
 0xfd4   : > { %32275 = vmatprep.mubr.msk.f32.mxu1 %vm22235_vm9, %v39854_v37 }
 0xfd7   : > { %32276 = vmatmul.mubr.msk.f32.gmra.mrb[130].mxu1 %vm22235_vm9, %v39858_v41 }
 0xfd8   : > { %32278 = vmatprep.mubr.msk.f32.mxu1 %vm22235_vm9, %v39862_v16 }
 0xfdb   : > { %32279 = vmatmul.mubr.msk.f32.gmra.mrb[132].mxu1 %vm22235_vm9, %v39864_v62 }
 0xfdc   : > { %32281 = vmatprep.mubr.msk.f32.mxu1 %vm22235_vm9, %v39870_v55 }
 0xfdf   : > { %32282 = vmatmul.mubr.msk.f32.gmra.mrb[134].mxu1 %vm22235_vm9, %v39872_v35 }
 0xfe0   : > { %32284 = vmatprep.mubr.msk.f32.mxu1 %vm22235_vm9, %v39878_v42 }
 0xfe3   : > { %32285 = vmatmul.mubr.msk.f32.gmra.mrb[136].mxu1 %vm22235_vm9, %v39882_v36 }
 0xfe4   : > { %32287 = vmatprep.mubr.msk.f32.mxu1 %vm22235_vm9, %v39886_v10 }
 0xfe7   : > { %32288 = vmatmul.mubr.msk.f32.gmra.mrb[138].mxu1 %vm22235_vm9, %v39890_v31 }
 0xfe8   : > { %32290 = vmatprep.mubr.msk.f32.mxu1 %vm22235_vm9, %v39894_v56 }
 0xfeb   : > { %32291 = vmatmul.mubr.msk.f32.gmra.mrb[140].mxu1 %vm22235_vm9, %v39962_v14 }
 0xfec   : > { %32301 = vmatprep.mubr.msk.f32.mxu1 %vm22235_vm9, %v39818_v21  ;;  %v32755_v21 = vpack.c.bf16 %v27601_v44, %v27600_v12  ;;  %v40280_v12 = vld [vmem:[#allocation4 + $0x164] sm:$0xff]  ;;  %v27696_v44 = vld [vmem:[%s40494_s8 + $0x110] sm:$0xff] }
 0xfef   : > { %32302 = vmatmul.mubr.msk.f32.vlgmr.msra.gmra.mrb[114].mxu1 %vm22235_vm9, %v39822_v4 }
 0xff0   : > { %32304 = vmatprep.mubr.msk.f32.mxu1 %vm22235_vm9, %v39826_v40  ;;  %32746 = vmatpush3.bf16.msra.mxu1 %v32743_v23  ;;  %v27663_v23 = vld [vmem:[%s40494_s8 + $0xe8] sm:$0xff] }
 0xff1   : > { %32748 = vmatprep.subr.bf16.mxu1 %v32747_v57  ;;  %v32767_v15 = vpack.c.bf16 %v27663_v23, %v27662_v53 }
 0xff3   : > { %32305 = vmatmul.mubr.msk.f32.gmra.mrb[116].mxu1 %vm22235_vm9, %v39830_v26 }
 0xff4   : > { %32307 = vmatprep.mubr.msk.f32.mxu1 %vm22235_vm9, %v39832_v5  ;;  %32750 = vmatpush3.bf16.msra.mxu1 %v32747_v57  ;;  %v40264_v57 = vld [vmem:[#allocation4 + $0x144] sm:$0xff] }
 0xff5   : > { %32752 = vmatprep.subr.bf16.mxu1 %v32751_v39 }
 0xff7   : > { %32308 = vmatmul.mubr.msk.f32.gmra.mrb[118].mxu1 %vm22235_vm9, %v39838_v2 }
 0xff8   : > { %32310 = vmatprep.mubr.msk.f32.mxu1 %vm22235_vm9, %v39840_v50 }
 0xffb   : > { %32311 = vmatmul.mubr.msk.f32.gmra.mrb[120].mxu1 %vm22235_vm9, %v39846_v46 }
 0xffc   : > { %32313 = vmatprep.mubr.msk.f32.mxu1 %vm22235_vm9, %v39850_v49 }
 0xfff   : > { %32314 = vmatmul.mubr.msk.f32.gmra.mrb[122].mxu1 %vm22235_vm9, %v39854_v37 }
0x1000   : > { %32316 = vmatprep.mubr.msk.f32.mxu1 %vm22235_vm9, %v39858_v41 }
0x1003   : > { %32317 = vmatmul.mubr.msk.f32.gmra.mrb[124].mxu1 %vm22235_vm9, %v39862_v16 }
0x1004   : > { %32319 = vmatprep.mubr.msk.f32.mxu1 %vm22235_vm9, %v39864_v62 }
0x1007   : > { %32320 = vmatmul.mubr.msk.f32.gmra.mrb[126].mxu1 %vm22235_vm9, %v39870_v55 }
0x1008   : > { %32322 = vmatprep.mubr.msk.f32.mxu1 %vm22235_vm9, %v39872_v35 }
0x100b   : > { %32323 = vmatmul.mubr.msk.f32.gmra.mrb[128].mxu1 %vm22235_vm9, %v39878_v42 }
0x100c   : > { %32325 = vmatprep.mubr.msk.f32.mxu1 %vm22235_vm9, %v39882_v36 }
0x100f   : > { %32326 = vmatmul.mubr.msk.f32.gmra.mrb[130].mxu1 %vm22235_vm9, %v39886_v10 }
0x1010   : > { %32328 = vmatprep.mubr.msk.f32.mxu1 %vm22235_vm9, %v39890_v31 }
0x1013   : > { %32329 = vmatmul.mubr.msk.f32.gmra.mrb[132].mxu1 %vm22235_vm9, %v39894_v56 }
0x1014   : > { %32331 = vmatprep.mubr.msk.f32.mxu1 %vm22235_vm9, %v39962_v14 }
0x1017   : > { %32332 = vmatmul.mubr.msk.f32.gmra.mrb[134].mxu1 %vm22235_vm9, %v40020_v45 }
0x1018   : > { %32334 = vmatprep.mubr.msk.f32.mxu1 %vm22235_vm9, %v40022_v28 }
0x101b   : > { %32335 = vmatmul.mubr.msk.f32.gmra.mrb[136].mxu1 %vm22235_vm9, %v40028_v6 }
0x101c   : > { %32337 = vmatprep.mubr.msk.f32.mxu1 %vm22235_vm9, %v40032_v27 }
0x101f   : > { %32338 = vmatmul.mubr.msk.f32.gmra.mrb[138].mxu1 %vm22235_vm9, %v40036_v29 }
0x1020   : > { %32340 = vmatprep.mubr.msk.f32.mxu1 %vm22235_vm9, %v40040_v58 }
0x1023   : > { %32341 = vmatmul.mubr.msk.f32.gmra.mrb[140].mxu1 %vm22235_vm9, %v40044_v3 }
0x1024   : > { %32351 = vmatprep.mubr.msk.f32.mxu1 %vm22235_vm9, %v39692_v17  ;;  %v40098_v17 = vld [vmem:[#allocation4 + $0xf0] sm:$0xff] }
0x1027   : > { %32352 = vmatmul.mubr.msk.f32.vlgmr.msra.gmra.mrb[114].mxu1 %vm22235_vm9, %v39698_v38  ;;  %v40106_v38 = vld [vmem:[#allocation4 + $0x100] sm:$0xff] }
0x1028   : > { %32754 = vmatpush3.bf16.msra.mxu1 %v32751_v39  ;;  %32354 = vmatprep.mubr.msk.f32.mxu1 %vm22235_vm9, %v39694_v61  ;;  %v40104_v61 = vld [vmem:[#allocation4 + $0xf8] sm:$0xff] }
0x1029   : > { %32756 = vmatprep.subr.bf16.mxu1 %v32755_v21  ;;  %v40274_v39 = vld [vmem:[#allocation4 + $0x15c] sm:$0xff] }
0x102b   : > { %32355 = vmatmul.mubr.msk.f32.gmra.mrb[116].mxu1 %vm22235_vm9, %v39704_v25  ;;  %v40112_v25 = vld [vmem:[#allocation4 + $0x108] sm:$0xff] }
0x102c   : > { %32357 = vmatprep.mubr.msk.f32.mxu1 %vm22235_vm9, %v39706_v51  ;;  %32758 = vmatpush3.bf16.msra.mxu1 %v32755_v21  ;;  %v40116_v51 = vld [vmem:[#allocation4 + $0x110] sm:$0xff]  ;;  %v27697_v21 = vld [vmem:[%s40494_s8 + $0x118] sm:$0xff] }
0x102d   : > { %32760 = vmatprep.subr.bf16.mxu1 %v32759_v18  ;;  %v32779_v11 = vpack.c.bf16 %v27697_v21, %v27696_v44 }
0x102f   : > { %32358 = vmatmul.mubr.msk.f32.gmra.mrb[118].mxu1 %vm22235_vm9, %v39712_v13  ;;  %v40120_v13 = vld [vmem:[#allocation4 + $0x120] sm:$0xff] }
0x1030   : > { %32360 = vmatprep.mubr.msk.f32.mxu1 %vm22235_vm9, %v39715_v8  ;;  %v40122_v8 = vld [vmem:[#allocation4 + $0x118] sm:$0xff] }
0x1033   : > { %32361 = vmatmul.mubr.msk.f32.gmra.mrb[120].mxu1 %vm22235_vm9, %v39722_v30  ;;  %v40128_v30 = vld [vmem:[#allocation4 + $0x128] sm:$0xff] }
0x1034   : > { %32363 = vmatprep.mubr.msk.f32.mxu1 %vm22235_vm9, %v39728_v52 }
0x1037   : > { %32364 = vmatmul.mubr.msk.f32.gmra.mrb[122].mxu1 %vm22235_vm9, %v39734_v9 }
0x1038   : > { %32366 = vmatprep.mubr.msk.f32.mxu1 %vm22235_vm9, %v39730_v1 }
0x103b   : > { %32367 = vmatmul.mubr.msk.f32.gmra.mrb[124].mxu1 %vm22235_vm9, %v39740_v54 }
0x103c   : > { %32369 = vmatprep.mubr.msk.f32.mxu1 %vm22235_vm9, %v39742_v63 }
0x103f   : > { %32370 = vmatmul.mubr.msk.f32.gmra.mrb[126].mxu1 %vm22235_vm9, %v39748_v43 }
0x1040   : > { %32372 = vmatprep.mubr.msk.f32.mxu1 %vm22235_vm9, %v39751_v34 }
0x1043   : > { %32373 = vmatmul.mubr.msk.f32.gmra.mrb[128].mxu1 %vm22235_vm9, %v39758_v59 }
0x1044   : > { %32375 = vmatprep.mubr.msk.f32.mxu1 %vm22235_vm9, %v39764_v48 }
0x1047   : > { %32376 = vmatmul.mubr.msk.f32.gmra.mrb[130].mxu1 %vm22235_vm9, %v39770_v19 }
0x1048   : > { %32378 = vmatprep.mubr.msk.f32.mxu1 %vm22235_vm9, %v39766_v47 }
0x104b   : > { %32379 = vmatmul.mubr.msk.f32.gmra.mrb[132].mxu1 %vm22235_vm9, %v39776_v7 }
0x104c   : > { %32381 = vmatprep.mubr.msk.f32.mxu1 %vm22235_vm9, %v40098_v17 }
0x104f   : > { %32382 = vmatmul.mubr.msk.f32.gmra.mrb[134].mxu1 %vm22235_vm9, %v40104_v61 }
0x1050   : > { %32384 = vmatprep.mubr.msk.f32.mxu1 %vm22235_vm9, %v40106_v38 }
0x1053   : > { %32385 = vmatmul.mubr.msk.f32.gmra.mrb[136].mxu1 %vm22235_vm9, %v40112_v25 }
0x1054   : > { %32387 = vmatprep.mubr.msk.f32.mxu1 %vm22235_vm9, %v40116_v51 }
0x1057   : > { %32388 = vmatmul.mubr.msk.f32.gmra.mrb[138].mxu1 %vm22235_vm9, %v40122_v8 }
0x1058   : > { %32390 = vmatprep.mubr.msk.f32.mxu1 %vm22235_vm9, %v40120_v13 }
0x105b   : > { %32391 = vmatmul.mubr.msk.f32.gmra.mrb[140].mxu1 %vm22235_vm9, %v40128_v30 }
0x105c   : > { %32401 = vmatprep.mubr.msk.f32.mxu1 %vm22235_vm9, %v39822_v4  ;;  %v40198_v4 = vld [vmem:[#allocation4 + $0x12c] sm:$0xff] }
0x105f   : > { %32402 = vmatmul.mubr.msk.f32.vlgmr.msra.gmra.mrb[114].mxu1 %vm22235_vm9, %v39826_v40  ;;  %v27664_v40 = vld [vmem:[%s40494_s8 + $0xf0] sm:$0xff] }
0x1060   : > { %32762 = vmatpush3.bf16.msra.mxu1 %v32759_v18  ;;  %32404 = vmatprep.mubr.msk.f32.mxu1 %vm22235_vm9, %v39830_v26  ;;  %v27665_v26 = vld [vmem:[%s40494_s8 + $0xf8] sm:$0xff]  ;;  %v25386_v18 = vld [vmem:[%s40495_s9 + $0x8] sm:$0xff] }
0x1061   : > { %32764 = vmatprep.subr.bf16.mxu1 %v32763_v60  ;;  %v32783_v20 = vpack.c.bf16 %v25386_v18, %v25385_v22 }
0x1063   : > { %32405 = vmatmul.mubr.msk.f32.gmra.mrb[116].mxu1 %vm22235_vm9, %v39832_v5  ;;  %v32771_v5 = vpack.c.bf16 %v27665_v26, %v27664_v40 }
0x1064   : > { %32407 = vmatprep.mubr.msk.f32.mxu1 %vm22235_vm9, %v39838_v2  ;;  %32766 = vmatpush3.bf16.msra.mxu1 %v32763_v60  ;;  %v27694_v2 = vld [vmem:[%s40494_s8 + $0x100] sm:$0xff] }
0x1065   : > { %32768 = vmatprep.subr.bf16.mxu1 %v32767_v15 }
0x1067   : > { %32408 = vmatmul.mubr.msk.f32.gmra.mrb[118].mxu1 %vm22235_vm9, %v39840_v50  ;;  %v27695_v50 = vld [vmem:[%s40494_s8 + $0x108] sm:$0xff] }
0x1068   : > { %32410 = vmatprep.mubr.msk.f32.mxu1 %vm22235_vm9, %v39846_v46  ;;  %v32775_v46 = vpack.c.bf16 %v27695_v50, %v27694_v2 }
0x106b   : > { %32411 = vmatmul.mubr.msk.f32.gmra.mrb[120].mxu1 %vm22235_vm9, %v39850_v49 }
0x106c   : > { %32413 = vmatprep.mubr.msk.f32.mxu1 %vm22235_vm9, %v39854_v37 }
0x106f   : > { %32414 = vmatmul.mubr.msk.f32.gmra.mrb[122].mxu1 %vm22235_vm9, %v39858_v41 }
0x1070   : > { %32416 = vmatprep.mubr.msk.f32.mxu1 %vm22235_vm9, %v39862_v16 }
0x1073   : > { %32417 = vmatmul.mubr.msk.f32.gmra.mrb[124].mxu1 %vm22235_vm9, %v39864_v62 }
0x1074   : > { %32419 = vmatprep.mubr.msk.f32.mxu1 %vm22235_vm9, %v39870_v55 }
0x1077   : > { %32420 = vmatmul.mubr.msk.f32.gmra.mrb[126].mxu1 %vm22235_vm9, %v39872_v35 }
0x1078   : > { %32422 = vmatprep.mubr.msk.f32.mxu1 %vm22235_vm9, %v39878_v42 }
0x107b   : > { %32423 = vmatmul.mubr.msk.f32.gmra.mrb[128].mxu1 %vm22235_vm9, %v39882_v36 }
0x107c   : > { %32425 = vmatprep.mubr.msk.f32.mxu1 %vm22235_vm9, %v39886_v10 }
0x107f   : > { %32426 = vmatmul.mubr.msk.f32.gmra.mrb[130].mxu1 %vm22235_vm9, %v39890_v31 }
0x1080   : > { %32428 = vmatprep.mubr.msk.f32.mxu1 %vm22235_vm9, %v39894_v56 }
0x1083   : > { %32429 = vmatmul.mubr.msk.f32.gmra.mrb[132].mxu1 %vm22235_vm9, %v39962_v14 }
0x1084   : > { %32431 = vmatprep.mubr.msk.f32.mxu1 %vm22235_vm9, %v40020_v45 }
0x1087   : > { %32432 = vmatmul.mubr.msk.f32.gmra.mrb[134].mxu1 %vm22235_vm9, %v40022_v28 }
0x1088   : > { %32434 = vmatprep.mubr.msk.f32.mxu1 %vm22235_vm9, %v40028_v6 }
0x108b   : > { %32435 = vmatmul.mubr.msk.f32.gmra.mrb[136].mxu1 %vm22235_vm9, %v40032_v27 }
0x108c   : > { %32437 = vmatprep.mubr.msk.f32.mxu1 %vm22235_vm9, %v40036_v29 }
0x108f   : > { %32438 = vmatmul.mubr.msk.f32.gmra.mrb[138].mxu1 %vm22235_vm9, %v40040_v58 }
0x1090   : > { %32440 = vmatprep.mubr.msk.f32.mxu1 %vm22235_vm9, %v40044_v3 }
0x1093   : > { %32441 = vmatmul.mubr.msk.f32.gmra.mrb[140].mxu1 %vm22235_vm9, %v40198_v4 }
0x1094   : > { %32451 = vmatprep.mubr.msk.f32.mxu1 %vm22235_vm9, %v39850_v49  ;;  %v40256_v49 = vld [vmem:[#allocation4 + $0x134] sm:$0xff] }
0x1097   : > { %32452 = vmatmul.mubr.msk.f32.vlgmr.msra.gmra.mrb[114].mxu1 %vm22235_vm9, %v39854_v37 }
0x1098   : > { %32454 = vmatprep.mubr.msk.f32.mxu1 %vm22235_vm9, %v39858_v41  ;;  %32770 = vmatpush3.bf16.msra.mxu1 %v32767_v15 }
0x1099   : > { %32772 = vmatprep.subr.bf16.mxu1 %v32771_v5 }
0x109b   : > { %32455 = vmatmul.mubr.msk.f32.gmra.mrb[116].mxu1 %vm22235_vm9, %v39862_v16 }
0x109c   : > { %32457 = vmatprep.mubr.msk.f32.mxu1 %vm22235_vm9, %v39864_v62  ;;  %32774 = vmatpush3.bf16.msra.mxu1 %v32771_v5 }
0x109d   : > { %32776 = vmatprep.subr.bf16.mxu1 %v32775_v46 }
0x109f   : > { %32458 = vmatmul.mubr.msk.f32.gmra.mrb[118].mxu1 %vm22235_vm9, %v39870_v55 }
0x10a0   : > { %32460 = vmatprep.mubr.msk.f32.mxu1 %vm22235_vm9, %v39872_v35 }
0x10a3   : > { %32461 = vmatmul.mubr.msk.f32.gmra.mrb[120].mxu1 %vm22235_vm9, %v39878_v42 }
0x10a4   : > { %32463 = vmatprep.mubr.msk.f32.mxu1 %vm22235_vm9, %v39882_v36 }
0x10a7   : > { %32464 = vmatmul.mubr.msk.f32.gmra.mrb[122].mxu1 %vm22235_vm9, %v39886_v10 }
0x10a8   : > { %32466 = vmatprep.mubr.msk.f32.mxu1 %vm22235_vm9, %v39890_v31 }
0x10ab   : > { %32467 = vmatmul.mubr.msk.f32.gmra.mrb[124].mxu1 %vm22235_vm9, %v39894_v56 }
0x10ac   : > { %32469 = vmatprep.mubr.msk.f32.mxu1 %vm22235_vm9, %v39962_v14 }
0x10af   : > { %32470 = vmatmul.mubr.msk.f32.gmra.mrb[126].mxu1 %vm22235_vm9, %v40020_v45 }
0x10b0   : > { %32472 = vmatprep.mubr.msk.f32.mxu1 %vm22235_vm9, %v40022_v28 }
0x10b3   : > { %32473 = vmatmul.mubr.msk.f32.gmra.mrb[128].mxu1 %vm22235_vm9, %v40028_v6 }
0x10b4   : > { %32475 = vmatprep.mubr.msk.f32.mxu1 %vm22235_vm9, %v40032_v27 }
0x10b7   : > { %32476 = vmatmul.mubr.msk.f32.gmra.mrb[130].mxu1 %vm22235_vm9, %v40036_v29 }
0x10b8   : > { %32478 = vmatprep.mubr.msk.f32.mxu1 %vm22235_vm9, %v40040_v58 }
0x10bb   : > { %32479 = vmatmul.mubr.msk.f32.gmra.mrb[132].mxu1 %vm22235_vm9, %v40044_v3 }
0x10bc   : > { %32481 = vmatprep.mubr.msk.f32.mxu1 %vm22235_vm9, %v40198_v4 }
0x10bf   : > { %32482 = vmatmul.mubr.msk.f32.gmra.mrb[134].mxu1 %vm22235_vm9, %v40256_v49 }
0x10c0   : > { %32484 = vmatprep.mubr.msk.f32.mxu1 %vm22235_vm9, %v40258_v0 }
0x10c3   : > { %32485 = vmatmul.mubr.msk.f32.gmra.mrb[136].mxu1 %vm22235_vm9, %v40264_v57 }
0x10c4   : > { %32487 = vmatprep.mubr.msk.f32.mxu1 %vm22235_vm9, %v40266_v32 }
0x10c7   : > { %32488 = vmatmul.mubr.msk.f32.gmra.mrb[138].mxu1 %vm22235_vm9, %v40272_v33 }
0x10c8   : > { %32490 = vmatprep.mubr.msk.f32.mxu1 %vm22235_vm9, %v40274_v39 }
0x10cb   : > { %32491 = vmatmul.mubr.msk.f32.gmra.mrb[140].mxu1 %vm22235_vm9, %v40280_v12 }
0x10cc   : > { %32501 = vmatprep.mubr.msk.f32.mxu1 %vm22235_vm9, %v39728_v52  ;;  %v24677_v52 = vld [vmem:[#allocation4 + $0x130] sm:$0xff] }
0x10cf   : > { %32502 = vmatmul.mubr.msk.f32.vlgmr.msra.gmra.mrb[114].mxu1 %vm22235_vm9, %v39734_v9  ;;  %v24679_v9 = vld [vmem:[#allocation4 + $0x140] sm:$0xff] }
0x10d0   : > { %32778 = vmatpush3.bf16.msra.mxu1 %v32775_v46  ;;  %32504 = vmatprep.mubr.msk.f32.mxu1 %vm22235_vm9, %v39730_v1  ;;  %v24678_v1 = vld [vmem:[#allocation4 + $0x138] sm:$0xff] }
0x10d1   : > { %32780 = vmatprep.subr.bf16.mxu1 %v32779_v11 }
0x10d3   : > { %32505 = vmatmul.mubr.msk.f32.gmra.mrb[116].mxu1 %vm22235_vm9, %v39740_v54  ;;  %v24680_v54 = vld [vmem:[#allocation4 + $0x148] sm:$0xff] }
0x10d4   : > { %32507 = vmatprep.mubr.msk.f32.mxu1 %vm22235_vm9, %v39742_v63  ;;  %32782 = vmatpush3.bf16.msra.mxu1 %v32779_v11  ;;  %v24681_v63 = vld [vmem:[#allocation4 + $0x150] sm:$0xff] }
0x10d5   : > { %32784 = vmatprep.subr.bf16.mxu1 %v32783_v20 }
0x10d7   : > { %32508 = vmatmul.mubr.msk.f32.gmra.mrb[118].mxu1 %vm22235_vm9, %v39748_v43  ;;  %v24682_v43 = vld [vmem:[#allocation4 + $0x158] sm:$0xff] }
0x10d8   : > { %32510 = vmatprep.mubr.msk.f32.mxu1 %vm22235_vm9, %v39751_v34  ;;  %v24683_v34 = vld [vmem:[#allocation4 + $0x160] sm:$0xff] }
0x10db   : > { %32511 = vmatmul.mubr.msk.f32.gmra.mrb[120].mxu1 %vm22235_vm9, %v39758_v59  ;;  %v24684_v59 = vld [vmem:[#allocation4 + $0x168] sm:$0xff] }
0x10dc   : > { %32513 = vmatprep.mubr.msk.f32.mxu1 %vm22235_vm9, %v39764_v48  ;;  %v25034_v48 = vld [vmem:[#allocation4 + $0x16c] sm:$0xff] }
0x10df   : > { %32514 = vmatmul.mubr.msk.f32.gmra.mrb[122].mxu1 %vm22235_vm9, %v39770_v19  ;;  %v25359_v19 = vld [vmem:[#allocation3 + $0x40] sm:$0xff] }
0x10e0   : > { %32516 = vmatprep.mubr.msk.f32.mxu1 %vm22235_vm9, %v39766_v47  ;;  %v25357_v47 = vld [vmem:[#allocation3 + $0x30] sm:$0xff] }
0x10e3   : > { %32517 = vmatmul.mubr.msk.f32.gmra.mrb[124].mxu1 %vm22235_vm9, %v39776_v7  ;;  %v25358_v7 = vld [vmem:[#allocation3 + $0x38] sm:$0xff] }
0x10e4   : > { %32519 = vmatprep.mubr.msk.f32.mxu1 %vm22235_vm9, %v40098_v17  ;;  %v25378_v17 = vld [vmem:[#allocation3 + $0xd8] sm:$0xff] }
0x10e7   : > { %32520 = vmatmul.mubr.msk.f32.gmra.mrb[126].mxu1 %vm22235_vm9, %v40104_v61  ;;  %v25380_v61 = vld [vmem:[#allocation3 + $0xe8] sm:$0xff] }
0x10e8   : > { %32522 = vmatprep.mubr.msk.f32.mxu1 %vm22235_vm9, %v40106_v38  ;;  %v25381_v38 = vld [vmem:[#allocation3 + $0xf0] sm:$0xff] }
0x10eb   : > { %32523 = vmatmul.mubr.msk.f32.gmra.mrb[128].mxu1 %vm22235_vm9, %v40112_v25  ;;  %v25383_v25 = vld [vmem:[#allocation3 + $0x100] sm:$0xff] }
0x10ec   : > { %32525 = vmatprep.mubr.msk.f32.mxu1 %vm22235_vm9, %v40116_v51  ;;  %v25382_v51 = vld [vmem:[#allocation3 + $0xf8] sm:$0xff] }
0x10ef   : > { %32526 = vmatmul.mubr.msk.f32.gmra.mrb[130].mxu1 %vm22235_vm9, %v40122_v8 }
0x10f0   : > { %32528 = vmatprep.mubr.msk.f32.mxu1 %vm22235_vm9, %v40120_v13  ;;  %v25384_v13 = vld [vmem:[#allocation3 + $0x108] sm:$0xff] }
0x10f3   : > { %32529 = vmatmul.mubr.msk.f32.gmra.mrb[132].mxu1 %vm22235_vm9, %v40128_v30 }
0x10f4   : > { %32531 = vmatprep.mubr.msk.f32.mxu1 %vm22235_vm9, %v24677_v52 }
0x10f7   : > { %32532 = vmatmul.mubr.msk.f32.gmra.mrb[134].mxu1 %vm22235_vm9, %v24678_v1 }
0x10f8   : > { %32534 = vmatprep.mubr.msk.f32.mxu1 %vm22235_vm9, %v24679_v9 }
0x10fb   : > { %32535 = vmatmul.mubr.msk.f32.gmra.mrb[136].mxu1 %vm22235_vm9, %v24680_v54 }
0x10fc   : > { %32537 = vmatprep.mubr.msk.f32.mxu1 %vm22235_vm9, %v24681_v63 }
0x10ff   : > { %32538 = vmatmul.mubr.msk.f32.gmra.mrb[138].mxu1 %vm22235_vm9, %v24682_v43 }
0x1100   : > { %32540 = vmatprep.mubr.msk.f32.mxu1 %vm22235_vm9, %v24683_v34 }
0x1103   : > { %32541 = vmatmul.mubr.msk.f32.gmra.mrb[140].mxu1 %vm22235_vm9, %v24684_v59 }
0x1104   : > { %32551 = vmatprep.mubr.msk.f32.mxu1 %vm22235_vm9, %v39854_v37  ;;  %v25360_v37 = vld [vmem:[#allocation3 + $0x48] sm:$0xff] }
0x1107   : > { %32552 = vmatmul.mubr.msk.f32.vlgmr.msra.gmra.mrb[114].mxu1 %vm22235_vm9, %v39858_v41  ;;  %v25361_v41 = vld [vmem:[#allocation3 + $0x50] sm:$0xff] }
0x1108   : > { %32786 = vmatpush3.bf16.msra.mxu1 %v32783_v20  ;;  %32554 = vmatprep.mubr.msk.f32.mxu1 %vm22235_vm9, %v39862_v16  ;;  %v25363_v16 = vld [vmem:[#allocation3 + $0x60] sm:$0xff] }
0x110b   : > { %32555 = vmatmul.mubr.msk.f32.gmra.mrb[116].mxu1 %vm22235_vm9, %v39864_v62  ;;  %v25362_v62 = vld [vmem:[#allocation3 + $0x58] sm:$0xff] }
0x110c   : > { %32557 = vmatprep.mubr.msk.f32.mxu1 %vm22235_vm9, %v39870_v55  ;;  %v25364_v55 = vld [vmem:[#allocation3 + $0x68] sm:$0xff] }
0x110f   : > { %32558 = vmatmul.mubr.msk.f32.gmra.mrb[118].mxu1 %vm22235_vm9, %v39872_v35  ;;  %v25365_v35 = vld [vmem:[#allocation3 + $0x70] sm:$0xff] }
0x1110   : > { %32560 = vmatprep.mubr.msk.f32.mxu1 %vm22235_vm9, %v39878_v42  ;;  %v25367_v42 = vld [vmem:[#allocation3 + $0x80] sm:$0xff] }
0x1113   : > { %32561 = vmatmul.mubr.msk.f32.gmra.mrb[120].mxu1 %vm22235_vm9, %v39882_v36  ;;  %v25366_v36 = vld [vmem:[#allocation3 + $0x78] sm:$0xff] }
0x1114   : > { %32563 = vmatprep.mubr.msk.f32.mxu1 %vm22235_vm9, %v39886_v10  ;;  %v25368_v10 = vld [vmem:[#allocation3 + $0x88] sm:$0xff] }
0x1117   : > { %32564 = vmatmul.mubr.msk.f32.gmra.mrb[122].mxu1 %vm22235_vm9, %v39890_v31  ;;  %v25369_v31 = vld [vmem:[#allocation3 + $0x90] sm:$0xff] }
0x1118   : > { %32566 = vmatprep.mubr.msk.f32.mxu1 %vm22235_vm9, %v39894_v56  ;;  %v25371_v56 = vld [vmem:[#allocation3 + $0xa0] sm:$0xff] }
0x111b   : > { %32567 = vmatmul.mubr.msk.f32.gmra.mrb[124].mxu1 %vm22235_vm9, %v39962_v14  ;;  %v25370_v14 = vld [vmem:[#allocation3 + $0x98] sm:$0xff] }
0x111c   : > { %32569 = vmatprep.mubr.msk.f32.mxu1 %vm22235_vm9, %v40020_v45  ;;  %v25372_v45 = vld [vmem:[#allocation3 + $0xa8] sm:$0xff] }
0x111f   : > { %32570 = vmatmul.mubr.msk.f32.gmra.mrb[126].mxu1 %vm22235_vm9, %v40022_v28  ;;  %v25373_v28 = vld [vmem:[#allocation3 + $0xb0] sm:$0xff] }
0x1120   : > { %32572 = vmatprep.mubr.msk.f32.mxu1 %vm22235_vm9, %v40028_v6  ;;  %v25375_v6 = vld [vmem:[#allocation3 + $0xc0] sm:$0xff] }
0x1123   : > { %32573 = vmatmul.mubr.msk.f32.gmra.mrb[128].mxu1 %vm22235_vm9, %v40032_v27  ;;  %v25374_v27 = vld [vmem:[#allocation3 + $0xb8] sm:$0xff] }
0x1124   : > { %32575 = vmatprep.mubr.msk.f32.mxu1 %vm22235_vm9, %v40036_v29  ;;  %v25376_v29 = vld [vmem:[#allocation3 + $0xc8] sm:$0xff] }
0x1127   : > { %32576 = vmatmul.mubr.msk.f32.gmra.mrb[130].mxu1 %vm22235_vm9, %v40040_v58  ;;  %v25377_v58 = vld [vmem:[#allocation3 + $0xd0] sm:$0xff] }
0x1128   : > { %32578 = vmatprep.mubr.msk.f32.mxu1 %vm22235_vm9, %v40044_v3  ;;  %v25379_v3 = vld [vmem:[#allocation3 + $0xe0] sm:$0xff] }
0x112b   : > { %32579 = vmatmul.mubr.msk.f32.gmra.mrb[132].mxu1 %vm22235_vm9, %v40198_v4 }
0x112c   : > { %32581 = vmatprep.mubr.msk.f32.mxu1 %vm22235_vm9, %v40256_v49 }
0x112f   : > { %32582 = vmatmul.mubr.msk.f32.gmra.mrb[134].mxu1 %vm22235_vm9, %v40258_v0 }
0x1130   : > { %32584 = vmatprep.mubr.msk.f32.mxu1 %vm22235_vm9, %v40264_v57 }
0x1133   : > { %32585 = vmatmul.mubr.msk.f32.gmra.mrb[136].mxu1 %vm22235_vm9, %v40266_v32 }
0x1134   : > { %32587 = vmatprep.mubr.msk.f32.mxu1 %vm22235_vm9, %v40272_v33 }
0x1137   : > { %32588 = vmatmul.mubr.msk.f32.gmra.mrb[138].mxu1 %vm22235_vm9, %v40274_v39 }
0x1138   : > { %32590 = vmatprep.mubr.msk.f32.mxu1 %vm22235_vm9, %v40280_v12 }
0x113b   : > { %32591 = vmatmul.mubr.msk.f32.gmra.mrb[140].mxu1 %vm22235_vm9, %v25034_v48 }
0x113c   : > { %32597 = vmatprep.mubr.msk.f32.mxu1 %vm15346_vm4, %v25357_v47 }
0x113f   : > { %32598 = vmatmul.mubr.msk.f32.vlgmr.msra.gmra.mrb[114].mxu1 %vm15346_vm4, %v25358_v7 }
0x1140   : > { %32600 = vmatprep.mubr.msk.f32.mxu1 %vm15346_vm4, %v25359_v19 }
0x1143   : > { %32601 = vmatmul.mubr.msk.f32.gmra.mrb[116].mxu1 %vm15346_vm4, %v25360_v37 }
0x1144   : > { %32603 = vmatprep.mubr.msk.f32.mxu1 %vm15346_vm4, %v25361_v41 }
0x1147   : > { %32604 = vmatmul.mubr.msk.f32.gmra.mrb[118].mxu1 %vm15346_vm4, %v25362_v62 }
0x1148   : > { %32606 = vmatprep.mubr.msk.f32.mxu1 %vm15346_vm4, %v25363_v16 }
0x114b   : > { %32607 = vmatmul.mubr.msk.f32.gmra.mrb[120].mxu1 %vm15346_vm4, %v25364_v55 }
0x114c   : > { %32609 = vmatprep.mubr.msk.f32.mxu1 %vm15346_vm4, %v25365_v35 }
0x114f   : > { %32610 = vmatmul.mubr.msk.f32.gmra.mrb[122].mxu1 %vm15346_vm4, %v25366_v36 }
0x1150   : > { %32612 = vmatprep.mubr.msk.f32.mxu1 %vm15346_vm4, %v25367_v42 }
0x1153   : > { %32613 = vmatmul.mubr.msk.f32.gmra.mrb[124].mxu1 %vm15346_vm4, %v25368_v10 }
0x1154   : > { %32615 = vmatprep.mubr.msk.f32.mxu1 %vm15346_vm4, %v25369_v31 }
0x1157   : > { %32616 = vmatmul.mubr.msk.f32.gmra.mrb[126].mxu1 %vm15346_vm4, %v25370_v14 }
0x1158   : > { %32618 = vmatprep.mubr.msk.f32.mxu1 %vm15346_vm4, %v25371_v56 }
0x115b   : > { %32619 = vmatmul.mubr.msk.f32.gmra.mrb[128].mxu1 %vm15346_vm4, %v25372_v45 }
0x115c   : > { %32621 = vmatprep.mubr.msk.f32.mxu1 %vm15346_vm4, %v25373_v28 }
0x115f   : > { %32622 = vmatmul.mubr.msk.f32.gmra.mrb[130].mxu1 %vm15346_vm4, %v25374_v27 }
0x1160   : > { %32624 = vmatprep.mubr.msk.f32.mxu1 %vm15346_vm4, %v25375_v6 }
0x1163   : > { %32625 = vmatmul.mubr.msk.f32.gmra.mrb[132].mxu1 %vm15346_vm4, %v25376_v29 }
0x1164   : > { %32627 = vmatprep.mubr.msk.f32.mxu1 %vm15346_vm4, %v25377_v58 }
0x1167   : > { %32628 = vmatmul.mubr.msk.f32.gmra.mrb[134].mxu1 %vm15346_vm4, %v25378_v17 }
0x1168   : > { %32630 = vmatprep.mubr.msk.f32.mxu1 %vm15346_vm4, %v25379_v3 }
0x116b   : > { %32631 = vmatmul.mubr.msk.f32.gmra.mrb[136].mxu1 %vm15346_vm4, %v25380_v61 }
0x116c   : > { %32633 = vmatprep.mubr.msk.f32.mxu1 %vm15346_vm4, %v25381_v38 }
0x116f   : > { %32634 = vmatmul.mubr.msk.f32.gmra.mrb[138].mxu1 %vm15346_vm4, %v25382_v51 }
0x1170   : > { %32636 = vmatprep.mubr.msk.f32.mxu1 %vm15346_vm4, %v25383_v25 }
0x1173   : > { %32637 = vmatmul.mubr.msk.f32.gmra.mrb[140].mxu1 %vm15346_vm4, %v25384_v13 }
0x1212   : > { %v32599_v8 = vpop.f32.mrb[114].mxu1 }
0x1213   : > { %25705 = vst.msk [vmem:[%s34118_s30 + $0x8] sm:$0xff] %vm22235_vm9, %v32599_v8  ;;  %v25537_v30 = vpop.f32.mrb[115].mxu1 }
0x1214   : > { %25704 = vst.msk [vmem:[%s34118_s30] sm:$0xff] %vm22235_vm9, %v25537_v30 }
0x1216   : > { %v32602_v24 = vpop.f32.mrb[116].mxu1 }
0x1217   : > { %25707 = vst.msk [vmem:[%s34118_s30 + $0x18] sm:$0xff] %vm22235_vm9, %v32602_v24  ;;  %v25547_v60 = vpop.f32.mrb[117].mxu1 }
0x1218   : > { %25706 = vst.msk [vmem:[%s34118_s30 + $0x10] sm:$0xff] %vm22235_vm9, %v25547_v60 }
0x121a   : > { %v32605_v53 = vpop.f32.mrb[118].mxu1 }
0x121b   : > { %25709 = vst.msk [vmem:[%s34118_s30 + $0x28] sm:$0xff] %vm22235_vm9, %v32605_v53  ;;  %v25557_v23 = vpop.f32.mrb[119].mxu1 }
0x121c   : > { %25708 = vst.msk [vmem:[%s34118_s30 + $0x20] sm:$0xff] %vm22235_vm9, %v25557_v23 }
0x121e   : > { %v32608_v15 = vpop.f32.mrb[120].mxu1 }
0x121f   : > { %25711 = vst.msk [vmem:[%s34118_s30 + $0x38] sm:$0xff] %vm22235_vm9, %v32608_v15  ;;  %v25567_v4 = vpop.f32.mrb[121].mxu1 }
0x1220   : > { %25710 = vst.msk [vmem:[%s34118_s30 + $0x30] sm:$0xff] %vm22235_vm9, %v25567_v4 }
0x1222   : > { %v32611_v40 = vpop.f32.mrb[122].mxu1 }
0x1223   : > { %25713 = vst.msk [vmem:[%s34118_s30 + $0x48] sm:$0xff] %vm22235_vm9, %v32611_v40  ;;  %v25577_v26 = vpop.f32.mrb[123].mxu1 }
0x1224   : > { %25712 = vst.msk [vmem:[%s34118_s30 + $0x40] sm:$0xff] %vm22235_vm9, %v25577_v26 }
0x1226   : > { %v32614_v5 = vpop.f32.mrb[124].mxu1 }
0x1227   : > { %25715 = vst.msk [vmem:[%s34118_s30 + $0x58] sm:$0xff] %vm22235_vm9, %v32614_v5  ;;  %v25587_v2 = vpop.f32.mrb[125].mxu1 }
0x1228   : > { %25714 = vst.msk [vmem:[%s34118_s30 + $0x50] sm:$0xff] %vm22235_vm9, %v25587_v2 }
0x122a   : > { %v32617_v50 = vpop.f32.mrb[126].mxu1 }
0x122b   : > { %25717 = vst.msk [vmem:[%s34118_s30 + $0x68] sm:$0xff] %vm22235_vm9, %v32617_v50  ;;  %v25597_v46 = vpop.f32.mrb[127].mxu1 }
0x122c   : > { %25716 = vst.msk [vmem:[%s34118_s30 + $0x60] sm:$0xff] %vm22235_vm9, %v25597_v46 }
0x122e   : > { %v32620_v49 = vpop.f32.mrb[128].mxu1 }
0x122f   : > { %25719 = vst.msk [vmem:[%s34118_s30 + $0x78] sm:$0xff] %vm22235_vm9, %v32620_v49  ;;  %v25607_v0 = vpop.f32.mrb[129].mxu1 }
0x1230   : > { %25718 = vst.msk [vmem:[%s34118_s30 + $0x70] sm:$0xff] %vm22235_vm9, %v25607_v0 }
0x1232   : > { %v32623_v57 = vpop.f32.mrb[130].mxu1 }
0x1233   : > { %25721 = vst.msk [vmem:[%s34118_s30 + $0x88] sm:$0xff] %vm22235_vm9, %v32623_v57  ;;  %v25617_v32 = vpop.f32.mrb[131].mxu1 }
0x1234   : > { %25720 = vst.msk [vmem:[%s34118_s30 + $0x80] sm:$0xff] %vm22235_vm9, %v25617_v32 }
0x1236   : > { %v32626_v33 = vpop.f32.mrb[132].mxu1 }
0x1237   : > { %25723 = vst.msk [vmem:[%s34118_s30 + $0x98] sm:$0xff] %vm22235_vm9, %v32626_v33  ;;  %v25627_v39 = vpop.f32.mrb[133].mxu1 }
0x1238   : > { %25722 = vst.msk [vmem:[%s34118_s30 + $0x90] sm:$0xff] %vm22235_vm9, %v25627_v39 }
0x123a   : > { %v32629_v12 = vpop.f32.mrb[134].mxu1 }
0x123b   : > { %25725 = vst.msk [vmem:[%s34118_s30 + $0xa8] sm:$0xff] %vm22235_vm9, %v32629_v12  ;;  %v25637_v44 = vpop.f32.mrb[135].mxu1 }
0x123c   : > { %25724 = vst.msk [vmem:[%s34118_s30 + $0xa0] sm:$0xff] %vm22235_vm9, %v25637_v44 }
0x123e   : > { %v32632_v21 = vpop.f32.mrb[136].mxu1 }
0x123f   : > { %25727 = vst.msk [vmem:[%s34118_s30 + $0xb8] sm:$0xff] %vm22235_vm9, %v32632_v21  ;;  %v25647_v11 = vpop.f32.mrb[137].mxu1 }
0x1240   : > { %25726 = vst.msk [vmem:[%s34118_s30 + $0xb0] sm:$0xff] %vm22235_vm9, %v25647_v11 }
0x1242   : > { %v32635_v22 = vpop.f32.mrb[138].mxu1 }
0x1243   : > { %25729 = vst.msk [vmem:[%s34118_s30 + $0xc8] sm:$0xff] %vm22235_vm9, %v32635_v22  ;;  %v25657_v18 = vpop.f32.mrb[139].mxu1 }
0x1244   : > { %25728 = vst.msk [vmem:[%s34118_s30 + $0xc0] sm:$0xff] %vm22235_vm9, %v25657_v18 }
0x1246   : > { %v32638_v20 = vpop.f32.mrb[140].mxu1 }
0x1247   : > { %25731 = vst.msk [vmem:[%s34118_s30 + $0xd8] sm:$0xff] %vm22235_vm9, %v32638_v20  ;;  %v25667_v52 = vpop.f32.mrb[141].mxu1 }
0x1248   : > { %25730 = vst.msk [vmem:[%s34118_s30 + $0xd0] sm:$0xff] %vm22235_vm9, %v25667_v52 }
0x1249 PF: > { %s22_s17 = sadd.s32 1, %s34033_s17  }
0x124a   : > { %p19_p5 = scmp.ge.s32.totalorder %s22_s17, 4  }
0x124c   :  { %21 = sbr.rel (!%p19_p5) target bundleno = 1 (0x1), region = 162 }

</bundles_post_ra>
